<compile_context>
chip_gen: v7x
topology: tpu7x:2x2x1
jax: 0.10.0
libtpu: 0.0.40
codegen_flags: <defaults>
</compile_context>

<pallas_src>
import functools

import jax
import jax.numpy as jnp
from jax.experimental import pallas as pl
from jax.experimental.pallas import tpu as pltpu

_EPS = 1e-5
_LANE = 128


def _round_up(x, m):
    return (x + m - 1) // m * m


def _pick_ctile(c):
    for t in (512, 256, 128):
        if c % t == 0:
            return t
    return c


@functools.lru_cache(maxsize=None)
def _vmem_limit():
    """VMEM budget with headroom: ~96 MiB on 128 MiB parts (v5e/v6e), ~48 MiB on v7x."""
    cap = 128 * 1024 * 1024
    try:
        cap = int(getattr(pltpu.get_tpu_info(), "vmem_capacity_bytes", cap))
    except Exception:
        pass
    return max(32 * 1024 * 1024, min(96 * 1024 * 1024, (cap * 3) // 4))


# ---------------------------------------------------------------------------
# Fused conv-as-matmul kernel:
#   out = act(patches @ W + bias)   (+ per-m-tile channel sum / sum-of-sq)
# Grid order (oc_tile, m_tile, k_tile); the f32 accumulator scratch is reset
# at k==0 and finalized (bias + activation + stats) at the last k step.
# ---------------------------------------------------------------------------
def _make_conv_mm_kernel(k_steps, m_real, tm, activation, with_stats):
    def kernel(x_ref, w_ref, b_ref, o_ref, *rest):
        if with_stats:
            stat_ref, acc_ref = rest
        else:
            (acc_ref,) = rest

        i = pl.program_id(1)
        k = pl.program_id(2)

        @pl.when(k == 0)
        def _init_acc():
            acc_ref[...] = jnp.zeros_like(acc_ref)

        acc_ref[...] += jnp.dot(x_ref[...], w_ref[...],
                                preferred_element_type=jnp.float32)

        @pl.when(k == k_steps - 1)
        def _finalize():
            y = acc_ref[...] + b_ref[...]
            if activation == "tanh":
                y = jnp.tanh(y)
            o_ref[...] = y.astype(o_ref.dtype)
            if with_stats:
                # Fold the row-validity mask (only the last m-tile can hold
                # padded rows) into a ones row-vector so the axis-0 reduction
                # for the BN stats runs on the MXU instead of the VPU/XLU.
                rows = i * tm + jax.lax.broadcasted_iota(jnp.int32, (1, tm), 1)
                ones_m = (rows < m_real).astype(jnp.float32)
                srow = jnp.dot(ones_m, y, preferred_element_type=jnp.float32)
                qrow = jnp.dot(ones_m, y * y,
                               preferred_element_type=jnp.float32)
                ridx = jax.lax.broadcasted_iota(jnp.int32, stat_ref.shape, 0)
                stat_ref[...] = jnp.where(
                    ridx == 0, srow, jnp.where(ridx == 1, qrow, 0.0))

    return kernel


def conv_matmul(patches, wmat, bias, *, activation=None, with_stats=True,
                out_dtype=jnp.bfloat16):
    """patches (M, K) @ wmat (K, OC) + bias.

    Returns the row/lane-padded output (Mp, OCp) in `out_dtype` and, when
    `with_stats`, an (8 * m_tiles, OCp) f32 array whose rows [8*t + 0] /
    [8*t + 1] hold the per-channel sum / sum-of-squares of m-tile t (padding
    rows masked).  Operands go to the MXU in bf16, f32 accumulation.
    """
    m, k_dim = patches.shape
    oc = wmat.shape[1]

    ocp = _round_up(oc, _LANE)
    if k_dim > 512:
        tk = 512
        kp = _round_up(k_dim, tk)
    else:
        kp = tk = _round_up(k_dim, _LANE)
    if m >= 1024:
        tm = 1024
    elif m >= 512:
        tm = 512
    else:
        tm = _round_up(m, 256)          # fill the 256x256 MXU on v6e/v7x
    mp = _round_up(m, tm)
    toc = _pick_ctile(ocp)
    m_tiles = mp // tm

    x = jnp.pad(patches.astype(jnp.bfloat16), ((0, mp - m), (0, kp - k_dim)))
    w = jnp.pad(wmat.astype(jnp.bfloat16), ((0, kp - k_dim), (0, ocp - oc)))
    b = jnp.pad(bias.astype(jnp.float32), (0, ocp - oc)).reshape(1, ocp)

    grid = (ocp // toc, m_tiles, kp // tk)
    k_steps = grid[2]

    out_bytes = jnp.dtype(out_dtype).itemsize
    stat_bytes = 8 * m_tiles * ocp * 4 if with_stats else 0
    cost = pl.CostEstimate(
        flops=2 * mp * kp * ocp,
        transcendentals=mp * ocp if activation == "tanh" else 0,
        bytes_accessed=(x.size * 2 + w.size * 2 + b.size * 4
                        + mp * ocp * out_bytes + stat_bytes),
    )
    cparams = pltpu.CompilerParams(
        dimension_semantics=("parallel", "parallel", "arbitrary"),
        vmem_limit_bytes=_vmem_limit(),
    )

    in_specs = [
        pl.BlockSpec((tm, tk), lambda j, i, kk: (i, kk)),
        pl.BlockSpec((tk, toc), lambda j, i, kk: (kk, j)),
        pl.BlockSpec((1, toc), lambda j, i, kk: (0, j)),
    ]
    out_spec_main = pl.BlockSpec((tm, toc), lambda j, i, kk: (i, j))
    out_spec_stat = pl.BlockSpec((8, toc), lambda j, i, kk: (i, j))

    kernel = _make_conv_mm_kernel(k_steps, m, tm, activation, with_stats)

    if with_stats:
        out2d, stats = pl.pallas_call(
            kernel,
            grid=grid,
            in_specs=in_specs,
            out_specs=[out_spec_main, out_spec_stat],
            out_shape=[
                jax.ShapeDtypeStruct((mp, ocp), out_dtype),
                jax.ShapeDtypeStruct((8 * m_tiles, ocp), jnp.float32),
            ],
            scratch_shapes=[pltpu.VMEM((tm, toc), jnp.float32)],
            compiler_params=cparams,
            cost_estimate=cost,
        )(x, w, b)
        return out2d, stats

    out2d = pl.pallas_call(
        kernel,
        grid=grid,
        in_specs=in_specs,
        out_specs=out_spec_main,
        out_shape=jax.ShapeDtypeStruct((mp, ocp), out_dtype),
        scratch_shapes=[pltpu.VMEM((tm, toc), jnp.float32)],
        compiler_params=cparams,
        cost_estimate=cost,
    )(x, w, b)
    return out2d


# ---------------------------------------------------------------------------
# Per-channel affine (batch-stats BN folded with gamma/beta) + optional ReLU.
# Operates on the already row/lane-padded (Mp, OCp) bf16 buffer.
# ---------------------------------------------------------------------------
def _norm_act_kernel(x_ref, scale_ref, shift_ref, o_ref, *, relu):
    y = x_ref[...] * scale_ref[...] + shift_ref[...]
    if relu:
        y = jnp.maximum(y, 0.0)
    o_ref[...] = y.astype(o_ref.dtype)


def scale_shift_act(x2d, scale, shift, *, relu=True, out_dtype=jnp.bfloat16):
    mp, c = x2d.shape
    if mp % 1024 == 0:
        tm = 1024
    elif mp % 512 == 0:
        tm = 512
    else:
        tm = 256
    tm = min(tm, mp)
    tc = _pick_ctile(c)
    return pl.pallas_call(
        functools.partial(_norm_act_kernel, relu=relu),
        grid=(mp // tm, c // tc),
        in_specs=[
            pl.BlockSpec((tm, tc), lambda i, j: (i, j)),
            pl.BlockSpec((1, tc), lambda i, j: (0, j)),
            pl.BlockSpec((1, tc), lambda i, j: (0, j)),
        ],
        out_specs=pl.BlockSpec((tm, tc), lambda i, j: (i, j)),
        out_shape=jax.ShapeDtypeStruct((mp, c), out_dtype),
        compiler_params=pltpu.CompilerParams(
            dimension_semantics=("parallel", "parallel"),
            vmem_limit_bytes=_vmem_limit(),
        ),
    )(x2d, scale.reshape(1, c), shift.reshape(1, c))


def _bn_affine(stats, count, gamma, beta, ocp):
    """Fold training-mode batch stats with gamma/beta into scale/shift."""
    st = stats.reshape(-1, 8, ocp)
    s = jnp.sum(st[:, 0, :], axis=0)
    ss = jnp.sum(st[:, 1, :], axis=0)
    mean = s / count
    var = jnp.maximum(ss / count - mean * mean, 0.0)
    g = jnp.pad(gamma.astype(jnp.float32), (0, ocp - gamma.shape[0]))
    b = jnp.pad(beta.astype(jnp.float32), (0, ocp - beta.shape[0]))
    scale = g * jax.lax.rsqrt(var + _EPS)
    shift = b - mean * scale
    return scale, shift


# ---------------------------------------------------------------------------
# Conv layer wrappers (NHWC, real channel count in / out).
# ---------------------------------------------------------------------------
def _im2col(a, kh, kw, stride):
    # TODO(synk): replace with an in-kernel tap loop over a halo'd NHWC block
    # (manual DMA) to remove the KH*KW HBM read amplification.
    n, hp, wp, c = a.shape
    oh = (hp - kh) // stride + 1
    ow = (wp - kw) // stride + 1
    taps = []
    for dh in range(kh):
        for dw in range(kw):
            taps.append(a[:, dh:dh + stride * (oh - 1) + 1:stride,
                          dw:dw + stride * (ow - 1) + 1:stride, :])
    p = jnp.concatenate(taps, axis=-1)
    return p.reshape(n * oh * ow, kh * kw * c), oh, ow


def _conv_weight_matrix(w):
    # (OC, Cin, KH, KW) torch Conv2d layout -> (KH*KW*Cin, OC), tap-major.
    oc, c, kh, kw = w.shape
    return w.transpose(2, 3, 1, 0).reshape(kh * kw * c, oc)


def conv_bn_relu(a, w, bias, gamma, beta, *, stride, pad, pad_mode):
    n, h, wdim, c = a.shape
    oc, kh, kw = w.shape[0], w.shape[2], w.shape[3]
    ap = jnp.pad(a, ((0, 0), (pad, pad), (pad, pad), (0, 0)), mode=pad_mode)
    patches, oh, ow = _im2col(ap, kh, kw, stride)
    out2d, stats = conv_matmul(patches, _conv_weight_matrix(w), bias,
                               with_stats=True)
    m = n * oh * ow
    scale, shift = _bn_affine(stats, float(m), gamma, beta, out2d.shape[1])
    act = scale_shift_act(out2d, scale, shift, relu=True)
    # Single slice after the bf16 affine: drop M padding rows AND padded OC
    # lanes so they are not carried into the next layer's K dimension.
    return act[:m, :oc].reshape(n, oh, ow, oc)


# 4-phase decomposition of ConvTranspose2d(k=3, s=2, p=1, output_padding=1):
# output pixel (2i+r, 2j+s) = sum over taps of x[i+di, j+dj] @ Wt[:, :, 2-dh, 2-dw]
_PHASE_TAPS = (
    ((0, 0), ((0, 0, 1, 1),)),
    ((0, 1), ((0, 0, 1, 0), (0, 1, 1, 2))),
    ((1, 0), ((0, 0, 0, 1), (1, 0, 2, 1))),
    ((1, 1), ((0, 0, 0, 0), (0, 1, 0, 2), (1, 0, 2, 0), (1, 1, 2, 2))),
)


def conv_transpose_bn_relu(a, w_t, bias, gamma, beta):
    n, h, wdim, c = a.shape
    occ = w_t.shape[1]
    ap = jnp.pad(a, ((0, 0), (0, 1), (0, 1), (0, 0)))   # bottom/right halo
    m = n * h * wdim

    phase_outs = []
    stats_sum = None
    for (_, _), taps in _PHASE_TAPS:
        cols = [ap[:, di:di + h, dj:dj + wdim, :] for (di, dj, _, _) in taps]
        patches = jnp.concatenate(cols, axis=-1).reshape(m, len(taps) * c)
        wmat = jnp.concatenate(
            [w_t[:, :, 2 - dh, 2 - dw] for (_, _, dh, dw) in taps], axis=0)
        o2d, st = conv_matmul(patches, wmat, bias, with_stats=True)
        phase_outs.append(o2d)
        stats_sum = st if stats_sum is None else stats_sum + st

    ocp = phase_outs[0].shape[1]
    scale, shift = _bn_affine(stats_sum, float(4 * m), gamma, beta, ocp)
    # Apply the affine per phase (bf16) and interleave in bf16 / real channels:
    # output pixel (2i+r, 2j+s) comes from phase (r, s) at input pixel (i, j).
    acts = [scale_shift_act(o, scale, shift, relu=True)[:m, :occ]
            .reshape(n, h, wdim, occ) for o in phase_outs]
    stacked = jnp.stack(acts).reshape(2, 2, n, h, wdim, occ)
    return stacked.transpose(2, 3, 0, 4, 1, 5).reshape(n, 2 * h, 2 * wdim, occ)


def conv_tanh(a, w, bias):
    n, h, wdim, c = a.shape
    kh, kw = w.shape[2], w.shape[3]
    ap = jnp.pad(a, ((0, 0), (3, 3), (3, 3), (0, 0)), mode="reflect")
    patches, oh, ow = _im2col(ap, kh, kw, 1)
    out2d = conv_matmul(patches, _conv_weight_matrix(w), bias,
                        activation="tanh", with_stats=False,
                        out_dtype=jnp.bfloat16)
    m = n * oh * ow
    # Keep the lane-padded OC for the pooling kernels (lane-dense blocks);
    # real output_nc channels are sliced out after pooling.
    return out2d[:m].reshape(n, oh, ow, out2d.shape[1])


# ---------------------------------------------------------------------------
# Instance-wise average pooling: segmented mean per (batch, instance id).
# One kernel accumulates per-id channel sums AND counts via an in-kernel
# bf16 one-hot on the MXU; a second kernel scatters the means back.
# ---------------------------------------------------------------------------
def _seg_sum_kernel(inst_ref, x_ref, sum_ref, cnt_ref, *, nid):
    @pl.when(pl.program_id(1) == 0)
    def _init():
        sum_ref[...] = jnp.zeros_like(sum_ref)
        cnt_ref[...] = jnp.zeros_like(cnt_ref)

    thw = inst_ref.shape[-1]
    ids = jax.lax.broadcasted_iota(jnp.int32, (nid, thw), 0)
    onehot = (ids == inst_ref[0]).astype(jnp.float32)            # (nid, thw)
    sum_ref[...] += jnp.expand_dims(
        jnp.dot(onehot.astype(jnp.bfloat16), x_ref[0],
                preferred_element_type=jnp.float32), 0)
    cnt_ref[...] += jnp.expand_dims(
        jnp.sum(onehot, axis=1, keepdims=True), 0)


def _seg_gather_kernel(inst_ref, means_ref, o_ref, *, nid):
    thw = inst_ref.shape[-1]
    ids = jax.lax.broadcasted_iota(jnp.int32, (nid, thw), 0)
    onehot = (ids == inst_ref[0]).astype(jnp.bfloat16)           # (nid, thw)
    o_ref[...] = jnp.expand_dims(
        jnp.dot(means_ref[0].astype(jnp.bfloat16), onehot,
                preferred_element_type=jnp.float32), 0)


def instance_pool(y_nhwc, inst, num_ids):
    """y_nhwc (B, H, W, Cp) bf16, inst (B, 1, H, W) int -> (B, Cp, H*W) f32."""
    b, h, wdim, cp = y_nhwc.shape
    hw = h * wdim
    nid = max(_round_up(num_ids, 8), 8)
    thw = min(512, _round_up(hw, _LANE))
    hwp = _round_up(hw, thw)

    x = jnp.pad(y_nhwc.reshape(b, hw, cp), ((0, 0), (0, hwp - hw), (0, 0)))
    iv3 = jnp.pad(inst.reshape(b, hw).astype(jnp.int32),
                  ((0, 0), (0, hwp - hw)),
                  constant_values=-1).reshape(b, 1, hwp)

    grid = (b, hwp // thw)
    sums, counts = pl.pallas_call(
        functools.partial(_seg_sum_kernel, nid=nid),
        grid=grid,
        in_specs=[
            pl.BlockSpec((1, 1, thw), lambda bi, t: (bi, 0, t)),
            pl.BlockSpec((1, thw, cp), lambda bi, t: (bi, t, 0)),
        ],
        out_specs=[
            pl.BlockSpec((1, nid, cp), lambda bi, t: (bi, 0, 0)),
            pl.BlockSpec((1, nid, 1), lambda bi, t: (bi, 0, 0)),
        ],
        out_shape=[
            jax.ShapeDtypeStruct((b, nid, cp), jnp.float32),
            jax.ShapeDtypeStruct((b, nid, 1), jnp.float32),
        ],
        compiler_params=pltpu.CompilerParams(
            dimension_semantics=("parallel", "arbitrary"),
            vmem_limit_bytes=_vmem_limit(),
        ),
    )(iv3, x)

    means_t = jnp.swapaxes(sums / jnp.maximum(counts, 1.0), 1, 2)  # (B, Cp, nid)

    pooled = pl.pallas_call(
        functools.partial(_seg_gather_kernel, nid=nid),
        grid=grid,
        in_specs=[
            pl.BlockSpec((1, 1, thw), lambda bi, t: (bi, 0, t)),
            pl.BlockSpec((1, cp, nid), lambda bi, t: (bi, 0, 0)),
        ],
        out_specs=pl.BlockSpec((1, cp, thw), lambda bi, t: (bi, 0, t)),
        out_shape=jax.ShapeDtypeStruct((b, cp, hwp), jnp.float32),
        compiler_params=pltpu.CompilerParams(
            dimension_semantics=("parallel", "parallel"),
            vmem_limit_bytes=_vmem_limit(),
        ),
    )(iv3, means_t)
    return pooled[:, :, :hw]


# ---------------------------------------------------------------------------
# Parameters + forward.
# ---------------------------------------------------------------------------
def build_params(key, input_nc, output_nc, ngf, n_down):
    kinds, layers = [], []
    keys = jax.random.split(key, 2 + 2 * n_down)
    ki = 0

    def conv_w(k, oc, ic, ks):
        return jax.random.normal(k, (oc, ic, ks, ks), jnp.float32) * 0.02

    kinds.append("conv7")
    layers.append(dict(w=conv_w(keys[ki], ngf, input_nc, 7),
                       b=jnp.zeros((ngf,), jnp.float32),
                       gamma=jnp.ones((ngf,), jnp.float32),
                       beta=jnp.zeros((ngf,), jnp.float32)))
    ki += 1
    for i in range(n_down):
        mult = 2 ** i
        oc = ngf * mult * 2
        kinds.append("down")
        layers.append(dict(w=conv_w(keys[ki], oc, ngf * mult, 3),
                           b=jnp.zeros((oc,), jnp.float32),
                           gamma=jnp.ones((oc,), jnp.float32),
                           beta=jnp.zeros((oc,), jnp.float32)))
        ki += 1
    for i in range(n_down):
        mult = 2 ** (n_down - i)
        icc, occ = ngf * mult, ngf * mult // 2
        kinds.append("up")
        layers.append(dict(
            w=jax.random.normal(keys[ki], (icc, occ, 3, 3), jnp.float32) * 0.02,
            b=jnp.zeros((occ,), jnp.float32),
            gamma=jnp.ones((occ,), jnp.float32),
            beta=jnp.zeros((occ,), jnp.float32)))
        ki += 1
    kinds.append("final")
    layers.append(dict(w=conv_w(keys[ki], output_nc, ngf, 7),
                       b=jnp.zeros((output_nc,), jnp.float32)))
    return tuple(kinds), layers


def encoder_forward(kinds, params, x, inst, output_nc, num_ids):
    # NCHW -> NHWC once; intermediate activations stay bf16 NHWC with their
    # real channel count (K lane-padding happens once inside conv_matmul).
    a = jnp.transpose(x, (0, 2, 3, 1)).astype(jnp.bfloat16)
    y = None
    for kind, layer in zip(kinds, params):
        if kind == "conv7":
            a = conv_bn_relu(a, layer["w"], layer["b"], layer["gamma"],
                             layer["beta"], stride=1, pad=3,
                             pad_mode="reflect")
        elif kind == "down":
            a = conv_bn_relu(a, layer["w"], layer["b"], layer["gamma"],
                             layer["beta"], stride=2, pad=1,
                             pad_mode="constant")
        elif kind == "up":
            a = conv_transpose_bn_relu(a, layer["w"], layer["b"],
                                       layer["gamma"], layer["beta"])
        else:  # "final"
            y = conv_tanh(a, layer["w"], layer["b"])

    b, h, wdim, _ = y.shape
    # TODO(synk): instance ids are assumed to lie in [0, num_ids); arbitrary /
    # sparse id values (PyTorch's np.unique over any ints) would need a remap
    # pass instead of the bounded one-hot.
    pooled = instance_pool(y, inst, num_ids)                    # (B, Cp, HW)
    return pooled[:, :output_nc, :].reshape(b, output_nc, h, wdim)


# ---------------------------------------------------------------------------
if __name__ == "__main__":
    B, input_nc, output_nc, ngf, n_down, H = 2, 4, 3, 8, 2, 16
    NUM_INST_IDS = 8     # static bound on instance-id values (test uses 0..2)

    key = jax.random.PRNGKey(0)
    kx, kinst, kparam = jax.random.split(key, 3)
    x = jax.random.normal(kx, (B, input_nc, H, H), jnp.float32)
    inst = jax.random.randint(kinst, (B, 1, H, H), 0, 3, jnp.int32)

    kinds, params = build_params(kparam, input_nc, output_nc, ngf, n_down)

    fwd = jax.jit(lambda p, xx, ii: encoder_forward(
        kinds, p, xx, ii, output_nc, NUM_INST_IDS))
    out = jax.block_until_ready(fwd(params, x, inst))

    assert out.shape == (B, output_nc, H, H)
    assert bool(jnp.all(jnp.isfinite(out)))
    print("KERNEL_OK")
</pallas_src>

<mosaic_0001>
module attributes {stable_mosaic.version = 11 : i64} {
  func.func @kernel(%arg0: i32, %arg1: i32, %arg2: i32, %arg3: memref<512x256xbf16, #tpu.memory_space<vmem>>, %arg4: memref<256x128xbf16, #tpu.memory_space<vmem>>, %arg5: memref<1x128xf32, #tpu.memory_space<vmem>>, %arg6: memref<512x128xbf16, #tpu.memory_space<vmem>>, %arg7: memref<8x128xf32, #tpu.memory_space<vmem>>, %arg8: memref<512x128xf32, #tpu.memory_space<vmem>>) attributes {dimension_semantics = [#tpu.dimension_semantics<parallel>, #tpu.dimension_semantics<parallel>, #tpu.dimension_semantics<arbitrary>], iteration_bounds = array<i64: 1, 1, 1>, scalar_prefetch = 0 : i64, scratch_operands = 1 : i64, tpu.core_type = #tpu.core_type<tc>, window_params = [{transform_indices = @transform_0, window_bounds = array<i64: 512, 256>}, {transform_indices = @transform_1, window_bounds = array<i64: 256, 128>}, {transform_indices = @transform_2, window_bounds = array<i64: 1, 128>}, {transform_indices = @transform_3, window_bounds = array<i64: 512, 128>}, {transform_indices = @transform_4, window_bounds = array<i64: 8, 128>}]} {
    %c0_i32 = arith.constant 0 : i32
    %0 = arith.cmpi eq, %arg2, %c0_i32 : i32
    %1 = arith.extui %0 : i1 to i32
    %c0_i32_0 = arith.constant 0 : i32
    %2 = arith.cmpi ne, %1, %c0_i32_0 : i32
    scf.if %2 {
      %cst_10 = arith.constant 0.000000e+00 : f32
      %12 = vector.broadcast %cst_10 : f32 to vector<512x128xf32>
      %c0_11 = arith.constant 0 : index
      %c0_12 = arith.constant 0 : index
      %13 = vector.load %arg8[%c0_11, %c0_12] : memref<512x128xf32, #tpu.memory_space<vmem>>, vector<512x128xf32>
      tpu.vector_store %arg8[%c0_11, %c0_12], %12 {strides = array<i32>} : memref<512x128xf32, #tpu.memory_space<vmem>>, vector<512x128xf32>,
    } else {
    }
    %c0 = arith.constant 0 : index
    %c0_1 = arith.constant 0 : index
    %3 = vector.load %arg8[%c0, %c0_1] : memref<512x128xf32, #tpu.memory_space<vmem>>, vector<512x128xf32>
    %c0_2 = arith.constant 0 : index
    %c0_3 = arith.constant 0 : index
    %4 = vector.load %arg3[%c0_2, %c0_3] : memref<512x256xbf16, #tpu.memory_space<vmem>>, vector<512x256xbf16>
    %c0_4 = arith.constant 0 : index
    %c0_5 = arith.constant 0 : index
    %5 = vector.load %arg4[%c0_4, %c0_5] : memref<256x128xbf16, #tpu.memory_space<vmem>>, vector<256x128xbf16>
    %cst = arith.constant dense<0.000000e+00> : vector<512x128xf32>
    %6 = tpu.matmul %4, %5, %cst {dimension_numbers = #tpu.dot_dimension_numbers<[1], [0], [0], [1], [0, 0, 1, 1], [], []>} : vector<512x256xbf16>, vector<256x128xbf16>, vector<512x128xf32> -> vector<512x128xf32>
    %7 = arith.addf %3, %6 : vector<512x128xf32>
    %c0_6 = arith.constant 0 : index
    %c0_7 = arith.constant 0 : index
    %8 = vector.load %arg8[%c0_6, %c0_7] : memref<512x128xf32, #tpu.memory_space<vmem>>, vector<512x128xf32>
    tpu.vector_store %arg8[%c0_6, %c0_7], %7 {strides = array<i32>} : memref<512x128xf32, #tpu.memory_space<vmem>>, vector<512x128xf32>,
    %c0_i32_8 = arith.constant 0 : i32
    %9 = arith.cmpi eq, %arg2, %c0_i32_8 : i32
    %10 = arith.extui %9 : i1 to i32
    %c0_i32_9 = arith.constant 0 : i32
    %11 = arith.cmpi ne, %10, %c0_i32_9 : i32
    scf.if %11 {
      %c0_10 = arith.constant 0 : index
      %c0_11 = arith.constant 0 : index
      %12 = vector.load %arg8[%c0_10, %c0_11] : memref<512x128xf32, #tpu.memory_space<vmem>>, vector<512x128xf32>
      %c0_12 = arith.constant 0 : index
      %c0_13 = arith.constant 0 : index
      %13 = vector.load %arg5[%c0_12, %c0_13] : memref<1x128xf32, #tpu.memory_space<vmem>>, vector<1x128xf32>
      %14 = vector.broadcast %13 : vector<1x128xf32> to vector<512x128xf32>
      %15 = arith.addf %12, %14 : vector<512x128xf32>
      %16 = arith.truncf %15 : vector<512x128xf32> to vector<512x128xbf16>
      %c0_14 = arith.constant 0 : index
      %c0_15 = arith.constant 0 : index
      %17 = vector.load %arg6[%c0_14, %c0_15] : memref<512x128xbf16, #tpu.memory_space<vmem>>, vector<512x128xbf16>
      tpu.vector_store %arg6[%c0_14, %c0_15], %16 {strides = array<i32>} : memref<512x128xbf16, #tpu.memory_space<vmem>>, vector<512x128xbf16>,
      %c512_i32 = arith.constant 512 : i32
      %18 = arith.muli %arg1, %c512_i32 : i32
      %19 = tpu.iota {dimensions = array<i32: 1>} : vector<1x512xi32>
      %20 = vector.broadcast %18 : i32 to vector<1x512xi32>
      %21 = arith.addi %20, %19 : vector<1x512xi32>
      %c512_i32_16 = arith.constant 512 : i32
      %22 = vector.broadcast %c512_i32_16 : i32 to vector<1x512xi32>
      %23 = arith.cmpi slt, %21, %22 : vector<1x512xi32>
      %24 = arith.extui %23 : vector<1x512xi1> to vector<1x512xi32>
      %25 = arith.sitofp %24 : vector<1x512xi32> to vector<1x512xf32>
      %cst_17 = arith.constant dense<0.000000e+00> : vector<1x128xf32>
      %26 = tpu.matmul %25, %15, %cst_17 {dimension_numbers = #tpu.dot_dimension_numbers<[1], [0], [0], [1], [0, 0, 1, 1], [], []>} : vector<1x512xf32>, vector<512x128xf32>, vector<1x128xf32> -> vector<1x128xf32>
      %27 = arith.mulf %15, %15 : vector<512x128xf32>
      %cst_18 = arith.constant dense<0.000000e+00> : vector<1x128xf32>
      %28 = tpu.matmul %25, %27, %cst_18 {dimension_numbers = #tpu.dot_dimension_numbers<[1], [0], [0], [1], [0, 0, 1, 1], [], []>} : vector<1x512xf32>, vector<512x128xf32>, vector<1x128xf32> -> vector<1x128xf32>
      %29 = tpu.iota {dimensions = array<i32: 0>} : vector<8x128xi32>
      %c0_i32_19 = arith.constant 0 : i32
      %30 = vector.broadcast %c0_i32_19 : i32 to vector<8x128xi32>
      %31 = arith.cmpi eq, %29, %30 : vector<8x128xi32>
      %c1_i32 = arith.constant 1 : i32
      %32 = vector.broadcast %c1_i32 : i32 to vector<8x128xi32>
      %33 = arith.cmpi eq, %29, %32 : vector<8x128xi32>
      %cst_20 = arith.constant 0.000000e+00 : f32
      %34 = vector.shape_cast %28 : vector<1x128xf32> to vector<1x128xf32>
      %35 = vector.broadcast %34 : vector<1x128xf32> to vector<8x128xf32>
      %36 = vector.broadcast %cst_20 : f32 to vector<8x128xf32>
      %37 = arith.select %33, %35, %36 : vector<8x128xi1>, vector<8x128xf32>
      %38 = vector.shape_cast %26 : vector<1x128xf32> to vector<1x128xf32>
      %39 = vector.broadcast %38 : vector<1x128xf32> to vector<8x128xf32>
      %40 = arith.select %31, %39, %37 : vector<8x128xi1>, vector<8x128xf32>
      %c0_21 = arith.constant 0 : index
      %c0_22 = arith.constant 0 : index
      %41 = vector.load %arg7[%c0_21, %c0_22] : memref<8x128xf32, #tpu.memory_space<vmem>>, vector<8x128xf32>
      tpu.vector_store %arg7[%c0_21, %c0_22], %40 {strides = array<i32>} : memref<8x128xf32, #tpu.memory_space<vmem>>, vector<8x128xf32>,
    } else {
    }
    return
  }
  func.func @transform_0(%arg0: i32, %arg1: i32, %arg2: i32) -> (i32, i32) {
    %c0_i32 = arith.constant 0 : i32
    return %arg1, %arg2 : i32, i32
  }
  func.func @transform_1(%arg0: i32, %arg1: i32, %arg2: i32) -> (i32, i32) {
    %c0_i32 = arith.constant 0 : i32
    return %arg2, %arg0 : i32, i32
  }
  func.func @transform_2(%arg0: i32, %arg1: i32, %arg2: i32) -> (i32, i32) {
    %c0_i32 = arith.constant 0 : i32
    %c0_i32_0 = arith.constant 0 : i32
    return %c0_i32, %arg0 : i32, i32
  }
  func.func @transform_3(%arg0: i32, %arg1: i32, %arg2: i32) -> (i32, i32) {
    %c0_i32 = arith.constant 0 : i32
    return %arg1, %arg0 : i32, i32
  }
  func.func @transform_4(%arg0: i32, %arg1: i32, %arg2: i32) -> (i32, i32) {
    %c0_i32 = arith.constant 0 : i32
    return %arg1, %arg0 : i32, i32
  }
}

module attributes {stable_mosaic.version = 11 : i64} {
  func.func @_norm_act_kernel(%arg0: i32, %arg1: i32, %arg2: memref<512x128xbf16, #tpu.memory_space<vmem>>, %arg3: memref<1x128xf32, #tpu.memory_space<vmem>>, %arg4: memref<1x128xf32, #tpu.memory_space<vmem>>, %arg5: memref<512x128xbf16, #tpu.memory_space<vmem>>) attributes {dimension_semantics = [#tpu.dimension_semantics<parallel>, #tpu.dimension_semantics<parallel>], iteration_bounds = array<i64: 1, 1>, scalar_prefetch = 0 : i64, scratch_operands = 0 : i64, tpu.core_type = #tpu.core_type<tc>, window_params = [{transform_indices = @transform_0, window_bounds = array<i64: 512, 128>}, {transform_indices = @transform_1, window_bounds = array<i64: 1, 128>}, {transform_indices = @transform_2, window_bounds = array<i64: 1, 128>}, {transform_indices = @transform_3, window_bounds = array<i64: 512, 128>}]} {
    %c0 = arith.constant 0 : index
    %c0_0 = arith.constant 0 : index
    %0 = vector.load %arg2[%c0, %c0_0] : memref<512x128xbf16, #tpu.memory_space<vmem>>, vector<512x128xbf16>
    %c0_1 = arith.constant 0 : index
    %c0_2 = arith.constant 0 : index
    %1 = vector.load %arg3[%c0_1, %c0_2] : memref<1x128xf32, #tpu.memory_space<vmem>>, vector<1x128xf32>
    %2 = arith.extf %0 : vector<512x128xbf16> to vector<512x128xf32>
    %3 = vector.broadcast %1 : vector<1x128xf32> to vector<512x128xf32>
    %4 = arith.mulf %2, %3 : vector<512x128xf32>
    %c0_3 = arith.constant 0 : index
    %c0_4 = arith.constant 0 : index
    %5 = vector.load %arg4[%c0_3, %c0_4] : memref<1x128xf32, #tpu.memory_space<vmem>>, vector<1x128xf32>
    %6 = vector.broadcast %5 : vector<1x128xf32> to vector<512x128xf32>
    %7 = arith.addf %4, %6 : vector<512x128xf32>
    %cst = arith.constant 0.000000e+00 : f32
    %8 = vector.broadcast %cst : f32 to vector<512x128xf32>
    %9 = arith.maximumf %7, %8 : vector<512x128xf32>
    %10 = arith.truncf %9 : vector<512x128xf32> to vector<512x128xbf16>
    %c0_5 = arith.constant 0 : index
    %c0_6 = arith.constant 0 : index
    %11 = vector.load %arg5[%c0_5, %c0_6] : memref<512x128xbf16, #tpu.memory_space<vmem>>, vector<512x128xbf16>
    tpu.vector_store %arg5[%c0_5, %c0_6], %10 {strides = array<i32>} : memref<512x128xbf16, #tpu.memory_space<vmem>>, vector<512x128xbf16>,
    return
  }
  func.func @transform_0(%arg0: i32, %arg1: i32) -> (i32, i32) {
    %c0_i32 = arith.constant 0 : i32
    return %arg0, %arg1 : i32, i32
  }
  func.func @transform_1(%arg0: i32, %arg1: i32) -> (i32, i32) {
    %c0_i32 = arith.constant 0 : i32
    %c0_i32_0 = arith.constant 0 : i32
    return %c0_i32, %arg1 : i32, i32
  }
  func.func @transform_2(%arg0: i32, %arg1: i32) -> (i32, i32) {
    %c0_i32 = arith.constant 0 : i32
    %c0_i32_0 = arith.constant 0 : i32
    return %c0_i32, %arg1 : i32, i32
  }
  func.func @transform_3(%arg0: i32, %arg1: i32) -> (i32, i32) {
    %c0_i32 = arith.constant 0 : i32
    return %arg0, %arg1 : i32, i32
  }
}

module attributes {stable_mosaic.version = 11 : i64} {
  func.func @kernel(%arg0: i32, %arg1: i32, %arg2: i32, %arg3: memref<256x128xbf16, #tpu.memory_space<vmem>>, %arg4: memref<128x128xbf16, #tpu.memory_space<vmem>>, %arg5: memref<1x128xf32, #tpu.memory_space<vmem>>, %arg6: memref<256x128xbf16, #tpu.memory_space<vmem>>, %arg7: memref<8x128xf32, #tpu.memory_space<vmem>>, %arg8: memref<256x128xf32, #tpu.memory_space<vmem>>) attributes {dimension_semantics = [#tpu.dimension_semantics<parallel>, #tpu.dimension_semantics<parallel>, #tpu.dimension_semantics<arbitrary>], iteration_bounds = array<i64: 1, 1, 1>, scalar_prefetch = 0 : i64, scratch_operands = 1 : i64, tpu.core_type = #tpu.core_type<tc>, window_params = [{transform_indices = @transform_0, window_bounds = array<i64: 256, 128>}, {transform_indices = @transform_1, window_bounds = array<i64: 128, 128>}, {transform_indices = @transform_2, window_bounds = array<i64: 1, 128>}, {transform_indices = @transform_3, window_bounds = array<i64: 256, 128>}, {transform_indices = @transform_4, window_bounds = array<i64: 8, 128>}]} {
    %c0_i32 = arith.constant 0 : i32
    %0 = arith.cmpi eq, %arg2, %c0_i32 : i32
    %1 = arith.extui %0 : i1 to i32
    %c0_i32_0 = arith.constant 0 : i32
    %2 = arith.cmpi ne, %1, %c0_i32_0 : i32
    scf.if %2 {
      %cst_10 = arith.constant 0.000000e+00 : f32
      %12 = vector.broadcast %cst_10 : f32 to vector<256x128xf32>
      %c0_11 = arith.constant 0 : index
      %c0_12 = arith.constant 0 : index
      %13 = vector.load %arg8[%c0_11, %c0_12] : memref<256x128xf32, #tpu.memory_space<vmem>>, vector<256x128xf32>
      tpu.vector_store %arg8[%c0_11, %c0_12], %12 {strides = array<i32>} : memref<256x128xf32, #tpu.memory_space<vmem>>, vector<256x128xf32>,
    } else {
    }
    %c0 = arith.constant 0 : index
    %c0_1 = arith.constant 0 : index
    %3 = vector.load %arg8[%c0, %c0_1] : memref<256x128xf32, #tpu.memory_space<vmem>>, vector<256x128xf32>
    %c0_2 = arith.constant 0 : index
    %c0_3 = arith.constant 0 : index
    %4 = vector.load %arg3[%c0_2, %c0_3] : memref<256x128xbf16, #tpu.memory_space<vmem>>, vector<256x128xbf16>
    %c0_4 = arith.constant 0 : index
    %c0_5 = arith.constant 0 : index
    %5 = vector.load %arg4[%c0_4, %c0_5] : memref<128x128xbf16, #tpu.memory_space<vmem>>, vector<128x128xbf16>
    %cst = arith.constant dense<0.000000e+00> : vector<256x128xf32>
    %6 = tpu.matmul %4, %5, %cst {dimension_numbers = #tpu.dot_dimension_numbers<[1], [0], [0], [1], [0, 0, 1, 1], [], []>} : vector<256x128xbf16>, vector<128x128xbf16>, vector<256x128xf32> -> vector<256x128xf32>
    %7 = arith.addf %3, %6 : vector<256x128xf32>
    %c0_6 = arith.constant 0 : index
    %c0_7 = arith.constant 0 : index
    %8 = vector.load %arg8[%c0_6, %c0_7] : memref<256x128xf32, #tpu.memory_space<vmem>>, vector<256x128xf32>
    tpu.vector_store %arg8[%c0_6, %c0_7], %7 {strides = array<i32>} : memref<256x128xf32, #tpu.memory_space<vmem>>, vector<256x128xf32>,
    %c0_i32_8 = arith.constant 0 : i32
    %9 = arith.cmpi eq, %arg2, %c0_i32_8 : i32
    %10 = arith.extui %9 : i1 to i32
    %c0_i32_9 = arith.constant 0 : i32
    %11 = arith.cmpi ne, %10, %c0_i32_9 : i32
    scf.if %11 {
      %c0_10 = arith.constant 0 : index
      %c0_11 = arith.constant 0 : index
      %12 = vector.load %arg8[%c0_10, %c0_11] : memref<256x128xf32, #tpu.memory_space<vmem>>, vector<256x128xf32>
      %c0_12 = arith.constant 0 : index
      %c0_13 = arith.constant 0 : index
      %13 = vector.load %arg5[%c0_12, %c0_13] : memref<1x128xf32, #tpu.memory_space<vmem>>, vector<1x128xf32>
      %14 = vector.broadcast %13 : vector<1x128xf32> to vector<256x128xf32>
      %15 = arith.addf %12, %14 : vector<256x128xf32>
      %16 = arith.truncf %15 : vector<256x128xf32> to vector<256x128xbf16>
      %c0_14 = arith.constant 0 : index
      %c0_15 = arith.constant 0 : index
      %17 = vector.load %arg6[%c0_14, %c0_15] : memref<256x128xbf16, #tpu.memory_space<vmem>>, vector<256x128xbf16>
      tpu.vector_store %arg6[%c0_14, %c0_15], %16 {strides = array<i32>} : memref<256x128xbf16, #tpu.memory_space<vmem>>, vector<256x128xbf16>,
      %c256_i32 = arith.constant 256 : i32
      %18 = arith.muli %arg1, %c256_i32 : i32
      %19 = tpu.iota {dimensions = array<i32: 1>} : vector<1x256xi32>
      %20 = vector.broadcast %18 : i32 to vector<1x256xi32>
      %21 = arith.addi %20, %19 : vector<1x256xi32>
      %c128_i32 = arith.constant 128 : i32
      %22 = vector.broadcast %c128_i32 : i32 to vector<1x256xi32>
      %23 = arith.cmpi slt, %21, %22 : vector<1x256xi32>
      %24 = arith.extui %23 : vector<1x256xi1> to vector<1x256xi32>
      %25 = arith.sitofp %24 : vector<1x256xi32> to vector<1x256xf32>
      %cst_16 = arith.constant dense<0.000000e+00> : vector<1x128xf32>
      %26 = tpu.matmul %25, %15, %cst_16 {dimension_numbers = #tpu.dot_dimension_numbers<[1], [0], [0], [1], [0, 0, 1, 1], [], []>} : vector<1x256xf32>, vector<256x128xf32>, vector<1x128xf32> -> vector<1x128xf32>
      %27 = arith.mulf %15, %15 : vector<256x128xf32>
      %cst_17 = arith.constant dense<0.000000e+00> : vector<1x128xf32>
      %28 = tpu.matmul %25, %27, %cst_17 {dimension_numbers = #tpu.dot_dimension_numbers<[1], [0], [0], [1], [0, 0, 1, 1], [], []>} : vector<1x256xf32>, vector<256x128xf32>, vector<1x128xf32> -> vector<1x128xf32>
      %29 = tpu.iota {dimensions = array<i32: 0>} : vector<8x128xi32>
      %c0_i32_18 = arith.constant 0 : i32
      %30 = vector.broadcast %c0_i32_18 : i32 to vector<8x128xi32>
      %31 = arith.cmpi eq, %29, %30 : vector<8x128xi32>
      %c1_i32 = arith.constant 1 : i32
      %32 = vector.broadcast %c1_i32 : i32 to vector<8x128xi32>
      %33 = arith.cmpi eq, %29, %32 : vector<8x128xi32>
      %cst_19 = arith.constant 0.000000e+00 : f32
      %34 = vector.shape_cast %28 : vector<1x128xf32> to vector<1x128xf32>
      %35 = vector.broadcast %34 : vector<1x128xf32> to vector<8x128xf32>
      %36 = vector.broadcast %cst_19 : f32 to vector<8x128xf32>
      %37 = arith.select %33, %35, %36 : vector<8x128xi1>, vector<8x128xf32>
      %38 = vector.shape_cast %26 : vector<1x128xf32> to vector<1x128xf32>
      %39 = vector.broadcast %38 : vector<1x128xf32> to vector<8x128xf32>
      %40 = arith.select %31, %39, %37 : vector<8x128xi1>, vector<8x128xf32>
      %c0_20 = arith.constant 0 : index
      %c0_21 = arith.constant 0 : index
      %41 = vector.load %arg7[%c0_20, %c0_21] : memref<8x128xf32, #tpu.memory_space<vmem>>, vector<8x128xf32>
      tpu.vector_store %arg7[%c0_20, %c0_21], %40 {strides = array<i32>} : memref<8x128xf32, #tpu.memory_space<vmem>>, vector<8x128xf32>,
    } else {
    }
    return
  }
  func.func @transform_0(%arg0: i32, %arg1: i32, %arg2: i32) -> (i32, i32) {
    %c0_i32 = arith.constant 0 : i32
    return %arg1, %arg2 : i32, i32
  }
  func.func @transform_1(%arg0: i32, %arg1: i32, %arg2: i32) -> (i32, i32) {
    %c0_i32 = arith.constant 0 : i32
    return %arg2, %arg0 : i32, i32
  }
  func.func @transform_2(%arg0: i32, %arg1: i32, %arg2: i32) -> (i32, i32) {
    %c0_i32 = arith.constant 0 : i32
    %c0_i32_0 = arith.constant 0 : i32
    return %c0_i32, %arg0 : i32, i32
  }
  func.func @transform_3(%arg0: i32, %arg1: i32, %arg2: i32) -> (i32, i32) {
    %c0_i32 = arith.constant 0 : i32
    return %arg1, %arg0 : i32, i32
  }
  func.func @transform_4(%arg0: i32, %arg1: i32, %arg2: i32) -> (i32, i32) {
    %c0_i32 = arith.constant 0 : i32
    return %arg1, %arg0 : i32, i32
  }
}

module attributes {stable_mosaic.version = 11 : i64} {
  func.func @_norm_act_kernel(%arg0: i32, %arg1: i32, %arg2: memref<256x128xbf16, #tpu.memory_space<vmem>>, %arg3: memref<1x128xf32, #tpu.memory_space<vmem>>, %arg4: memref<1x128xf32, #tpu.memory_space<vmem>>, %arg5: memref<256x128xbf16, #tpu.memory_space<vmem>>) attributes {dimension_semantics = [#tpu.dimension_semantics<parallel>, #tpu.dimension_semantics<parallel>], iteration_bounds = array<i64: 1, 1>, scalar_prefetch = 0 : i64, scratch_operands = 0 : i64, tpu.core_type = #tpu.core_type<tc>, window_params = [{transform_indices = @transform_0, window_bounds = array<i64: 256, 128>}, {transform_indices = @transform_1, window_bounds = array<i64: 1, 128>}, {transform_indices = @transform_2, window_bounds = array<i64: 1, 128>}, {transform_indices = @transform_3, window_bounds = array<i64: 256, 128>}]} {
    %c0 = arith.constant 0 : index
    %c0_0 = arith.constant 0 : index
    %0 = vector.load %arg2[%c0, %c0_0] : memref<256x128xbf16, #tpu.memory_space<vmem>>, vector<256x128xbf16>
    %c0_1 = arith.constant 0 : index
    %c0_2 = arith.constant 0 : index
    %1 = vector.load %arg3[%c0_1, %c0_2] : memref<1x128xf32, #tpu.memory_space<vmem>>, vector<1x128xf32>
    %2 = arith.extf %0 : vector<256x128xbf16> to vector<256x128xf32>
    %3 = vector.broadcast %1 : vector<1x128xf32> to vector<256x128xf32>
    %4 = arith.mulf %2, %3 : vector<256x128xf32>
    %c0_3 = arith.constant 0 : index
    %c0_4 = arith.constant 0 : index
    %5 = vector.load %arg4[%c0_3, %c0_4] : memref<1x128xf32, #tpu.memory_space<vmem>>, vector<1x128xf32>
    %6 = vector.broadcast %5 : vector<1x128xf32> to vector<256x128xf32>
    %7 = arith.addf %4, %6 : vector<256x128xf32>
    %cst = arith.constant 0.000000e+00 : f32
    %8 = vector.broadcast %cst : f32 to vector<256x128xf32>
    %9 = arith.maximumf %7, %8 : vector<256x128xf32>
    %10 = arith.truncf %9 : vector<256x128xf32> to vector<256x128xbf16>
    %c0_5 = arith.constant 0 : index
    %c0_6 = arith.constant 0 : index
    %11 = vector.load %arg5[%c0_5, %c0_6] : memref<256x128xbf16, #tpu.memory_space<vmem>>, vector<256x128xbf16>
    tpu.vector_store %arg5[%c0_5, %c0_6], %10 {strides = array<i32>} : memref<256x128xbf16, #tpu.memory_space<vmem>>, vector<256x128xbf16>,
    return
  }
  func.func @transform_0(%arg0: i32, %arg1: i32) -> (i32, i32) {
    %c0_i32 = arith.constant 0 : i32
    return %arg0, %arg1 : i32, i32
  }
  func.func @transform_1(%arg0: i32, %arg1: i32) -> (i32, i32) {
    %c0_i32 = arith.constant 0 : i32
    %c0_i32_0 = arith.constant 0 : i32
    return %c0_i32, %arg1 : i32, i32
  }
  func.func @transform_2(%arg0: i32, %arg1: i32) -> (i32, i32) {
    %c0_i32 = arith.constant 0 : i32
    %c0_i32_0 = arith.constant 0 : i32
    return %c0_i32, %arg1 : i32, i32
  }
  func.func @transform_3(%arg0: i32, %arg1: i32) -> (i32, i32) {
    %c0_i32 = arith.constant 0 : i32
    return %arg0, %arg1 : i32, i32
  }
}

module attributes {stable_mosaic.version = 11 : i64} {
  func.func @kernel(%arg0: i32, %arg1: i32, %arg2: i32, %arg3: memref<256x256xbf16, #tpu.memory_space<vmem>>, %arg4: memref<256x128xbf16, #tpu.memory_space<vmem>>, %arg5: memref<1x128xf32, #tpu.memory_space<vmem>>, %arg6: memref<256x128xbf16, #tpu.memory_space<vmem>>, %arg7: memref<8x128xf32, #tpu.memory_space<vmem>>, %arg8: memref<256x128xf32, #tpu.memory_space<vmem>>) attributes {dimension_semantics = [#tpu.dimension_semantics<parallel>, #tpu.dimension_semantics<parallel>, #tpu.dimension_semantics<arbitrary>], iteration_bounds = array<i64: 1, 1, 1>, scalar_prefetch = 0 : i64, scratch_operands = 1 : i64, tpu.core_type = #tpu.core_type<tc>, window_params = [{transform_indices = @transform_0, window_bounds = array<i64: 256, 256>}, {transform_indices = @transform_1, window_bounds = array<i64: 256, 128>}, {transform_indices = @transform_2, window_bounds = array<i64: 1, 128>}, {transform_indices = @transform_3, window_bounds = array<i64: 256, 128>}, {transform_indices = @transform_4, window_bounds = array<i64: 8, 128>}]} {
    %c0_i32 = arith.constant 0 : i32
    %0 = arith.cmpi eq, %arg2, %c0_i32 : i32
    %1 = arith.extui %0 : i1 to i32
    %c0_i32_0 = arith.constant 0 : i32
    %2 = arith.cmpi ne, %1, %c0_i32_0 : i32
    scf.if %2 {
      %cst_10 = arith.constant 0.000000e+00 : f32
      %12 = vector.broadcast %cst_10 : f32 to vector<256x128xf32>
      %c0_11 = arith.constant 0 : index
      %c0_12 = arith.constant 0 : index
      %13 = vector.load %arg8[%c0_11, %c0_12] : memref<256x128xf32, #tpu.memory_space<vmem>>, vector<256x128xf32>
      tpu.vector_store %arg8[%c0_11, %c0_12], %12 {strides = array<i32>} : memref<256x128xf32, #tpu.memory_space<vmem>>, vector<256x128xf32>,
    } else {
    }
    %c0 = arith.constant 0 : index
    %c0_1 = arith.constant 0 : index
    %3 = vector.load %arg8[%c0, %c0_1] : memref<256x128xf32, #tpu.memory_space<vmem>>, vector<256x128xf32>
    %c0_2 = arith.constant 0 : index
    %c0_3 = arith.constant 0 : index
    %4 = vector.load %arg3[%c0_2, %c0_3] : memref<256x256xbf16, #tpu.memory_space<vmem>>, vector<256x256xbf16>
    %c0_4 = arith.constant 0 : index
    %c0_5 = arith.constant 0 : index
    %5 = vector.load %arg4[%c0_4, %c0_5] : memref<256x128xbf16, #tpu.memory_space<vmem>>, vector<256x128xbf16>
    %cst = arith.constant dense<0.000000e+00> : vector<256x128xf32>
    %6 = tpu.matmul %4, %5, %cst {dimension_numbers = #tpu.dot_dimension_numbers<[1], [0], [0], [1], [0, 0, 1, 1], [], []>} : vector<256x256xbf16>, vector<256x128xbf16>, vector<256x128xf32> -> vector<256x128xf32>
    %7 = arith.addf %3, %6 : vector<256x128xf32>
    %c0_6 = arith.constant 0 : index
    %c0_7 = arith.constant 0 : index
    %8 = vector.load %arg8[%c0_6, %c0_7] : memref<256x128xf32, #tpu.memory_space<vmem>>, vector<256x128xf32>
    tpu.vector_store %arg8[%c0_6, %c0_7], %7 {strides = array<i32>} : memref<256x128xf32, #tpu.memory_space<vmem>>, vector<256x128xf32>,
    %c0_i32_8 = arith.constant 0 : i32
    %9 = arith.cmpi eq, %arg2, %c0_i32_8 : i32
    %10 = arith.extui %9 : i1 to i32
    %c0_i32_9 = arith.constant 0 : i32
    %11 = arith.cmpi ne, %10, %c0_i32_9 : i32
    scf.if %11 {
      %c0_10 = arith.constant 0 : index
      %c0_11 = arith.constant 0 : index
      %12 = vector.load %arg8[%c0_10, %c0_11] : memref<256x128xf32, #tpu.memory_space<vmem>>, vector<256x128xf32>
      %c0_12 = arith.constant 0 : index
      %c0_13 = arith.constant 0 : index
      %13 = vector.load %arg5[%c0_12, %c0_13] : memref<1x128xf32, #tpu.memory_space<vmem>>, vector<1x128xf32>
      %14 = vector.broadcast %13 : vector<1x128xf32> to vector<256x128xf32>
      %15 = arith.addf %12, %14 : vector<256x128xf32>
      %16 = arith.truncf %15 : vector<256x128xf32> to vector<256x128xbf16>
      %c0_14 = arith.constant 0 : index
      %c0_15 = arith.constant 0 : index
      %17 = vector.load %arg6[%c0_14, %c0_15] : memref<256x128xbf16, #tpu.memory_space<vmem>>, vector<256x128xbf16>
      tpu.vector_store %arg6[%c0_14, %c0_15], %16 {strides = array<i32>} : memref<256x128xbf16, #tpu.memory_space<vmem>>, vector<256x128xbf16>,
      %c256_i32 = arith.constant 256 : i32
      %18 = arith.muli %arg1, %c256_i32 : i32
      %19 = tpu.iota {dimensions = array<i32: 1>} : vector<1x256xi32>
      %20 = vector.broadcast %18 : i32 to vector<1x256xi32>
      %21 = arith.addi %20, %19 : vector<1x256xi32>
      %c32_i32 = arith.constant 32 : i32
      %22 = vector.broadcast %c32_i32 : i32 to vector<1x256xi32>
      %23 = arith.cmpi slt, %21, %22 : vector<1x256xi32>
      %24 = arith.extui %23 : vector<1x256xi1> to vector<1x256xi32>
      %25 = arith.sitofp %24 : vector<1x256xi32> to vector<1x256xf32>
      %cst_16 = arith.constant dense<0.000000e+00> : vector<1x128xf32>
      %26 = tpu.matmul %25, %15, %cst_16 {dimension_numbers = #tpu.dot_dimension_numbers<[1], [0], [0], [1], [0, 0, 1, 1], [], []>} : vector<1x256xf32>, vector<256x128xf32>, vector<1x128xf32> -> vector<1x128xf32>
      %27 = arith.mulf %15, %15 : vector<256x128xf32>
      %cst_17 = arith.constant dense<0.000000e+00> : vector<1x128xf32>
      %28 = tpu.matmul %25, %27, %cst_17 {dimension_numbers = #tpu.dot_dimension_numbers<[1], [0], [0], [1], [0, 0, 1, 1], [], []>} : vector<1x256xf32>, vector<256x128xf32>, vector<1x128xf32> -> vector<1x128xf32>
      %29 = tpu.iota {dimensions = array<i32: 0>} : vector<8x128xi32>
      %c0_i32_18 = arith.constant 0 : i32
      %30 = vector.broadcast %c0_i32_18 : i32 to vector<8x128xi32>
      %31 = arith.cmpi eq, %29, %30 : vector<8x128xi32>
      %c1_i32 = arith.constant 1 : i32
      %32 = vector.broadcast %c1_i32 : i32 to vector<8x128xi32>
      %33 = arith.cmpi eq, %29, %32 : vector<8x128xi32>
      %cst_19 = arith.constant 0.000000e+00 : f32
      %34 = vector.shape_cast %28 : vector<1x128xf32> to vector<1x128xf32>
      %35 = vector.broadcast %34 : vector<1x128xf32> to vector<8x128xf32>
      %36 = vector.broadcast %cst_19 : f32 to vector<8x128xf32>
      %37 = arith.select %33, %35, %36 : vector<8x128xi1>, vector<8x128xf32>
      %38 = vector.shape_cast %26 : vector<1x128xf32> to vector<1x128xf32>
      %39 = vector.broadcast %38 : vector<1x128xf32> to vector<8x128xf32>
      %40 = arith.select %31, %39, %37 : vector<8x128xi1>, vector<8x128xf32>
      %c0_20 = arith.constant 0 : index
      %c0_21 = arith.constant 0 : index
      %41 = vector.load %arg7[%c0_20, %c0_21] : memref<8x128xf32, #tpu.memory_space<vmem>>, vector<8x128xf32>
      tpu.vector_store %arg7[%c0_20, %c0_21], %40 {strides = array<i32>} : memref<8x128xf32, #tpu.memory_space<vmem>>, vector<8x128xf32>,
    } else {
    }
    return
  }
  func.func @transform_0(%arg0: i32, %arg1: i32, %arg2: i32) -> (i32, i32) {
    %c0_i32 = arith.constant 0 : i32
    return %arg1, %arg2 : i32, i32
  }
  func.func @transform_1(%arg0: i32, %arg1: i32, %arg2: i32) -> (i32, i32) {
    %c0_i32 = arith.constant 0 : i32
    return %arg2, %arg0 : i32, i32
  }
  func.func @transform_2(%arg0: i32, %arg1: i32, %arg2: i32) -> (i32, i32) {
    %c0_i32 = arith.constant 0 : i32
    %c0_i32_0 = arith.constant 0 : i32
    return %c0_i32, %arg0 : i32, i32
  }
  func.func @transform_3(%arg0: i32, %arg1: i32, %arg2: i32) -> (i32, i32) {
    %c0_i32 = arith.constant 0 : i32
    return %arg1, %arg0 : i32, i32
  }
  func.func @transform_4(%arg0: i32, %arg1: i32, %arg2: i32) -> (i32, i32) {
    %c0_i32 = arith.constant 0 : i32
    return %arg1, %arg0 : i32, i32
  }
}

module attributes {stable_mosaic.version = 11 : i64} {
  func.func @kernel(%arg0: i32, %arg1: i32, %arg2: i32, %arg3: memref<256x128xbf16, #tpu.memory_space<vmem>>, %arg4: memref<128x128xbf16, #tpu.memory_space<vmem>>, %arg5: memref<1x128xf32, #tpu.memory_space<vmem>>, %arg6: memref<256x128xbf16, #tpu.memory_space<vmem>>, %arg7: memref<8x128xf32, #tpu.memory_space<vmem>>, %arg8: memref<256x128xf32, #tpu.memory_space<vmem>>) attributes {dimension_semantics = [#tpu.dimension_semantics<parallel>, #tpu.dimension_semantics<parallel>, #tpu.dimension_semantics<arbitrary>], iteration_bounds = array<i64: 1, 1, 1>, scalar_prefetch = 0 : i64, scratch_operands = 1 : i64, tpu.core_type = #tpu.core_type<tc>, window_params = [{transform_indices = @transform_0, window_bounds = array<i64: 256, 128>}, {transform_indices = @transform_1, window_bounds = array<i64: 128, 128>}, {transform_indices = @transform_2, window_bounds = array<i64: 1, 128>}, {transform_indices = @transform_3, window_bounds = array<i64: 256, 128>}, {transform_indices = @transform_4, window_bounds = array<i64: 8, 128>}]} {
    %c0_i32 = arith.constant 0 : i32
    %0 = arith.cmpi eq, %arg2, %c0_i32 : i32
    %1 = arith.extui %0 : i1 to i32
    %c0_i32_0 = arith.constant 0 : i32
    %2 = arith.cmpi ne, %1, %c0_i32_0 : i32
    scf.if %2 {
      %cst_10 = arith.constant 0.000000e+00 : f32
      %12 = vector.broadcast %cst_10 : f32 to vector<256x128xf32>
      %c0_11 = arith.constant 0 : index
      %c0_12 = arith.constant 0 : index
      %13 = vector.load %arg8[%c0_11, %c0_12] : memref<256x128xf32, #tpu.memory_space<vmem>>, vector<256x128xf32>
      tpu.vector_store %arg8[%c0_11, %c0_12], %12 {strides = array<i32>} : memref<256x128xf32, #tpu.memory_space<vmem>>, vector<256x128xf32>,
    } else {
    }
    %c0 = arith.constant 0 : index
    %c0_1 = arith.constant 0 : index
    %3 = vector.load %arg8[%c0, %c0_1] : memref<256x128xf32, #tpu.memory_space<vmem>>, vector<256x128xf32>
    %c0_2 = arith.constant 0 : index
    %c0_3 = arith.constant 0 : index
    %4 = vector.load %arg3[%c0_2, %c0_3] : memref<256x128xbf16, #tpu.memory_space<vmem>>, vector<256x128xbf16>
    %c0_4 = arith.constant 0 : index
    %c0_5 = arith.constant 0 : index
    %5 = vector.load %arg4[%c0_4, %c0_5] : memref<128x128xbf16, #tpu.memory_space<vmem>>, vector<128x128xbf16>
    %cst = arith.constant dense<0.000000e+00> : vector<256x128xf32>
    %6 = tpu.matmul %4, %5, %cst {dimension_numbers = #tpu.dot_dimension_numbers<[1], [0], [0], [1], [0, 0, 1, 1], [], []>} : vector<256x128xbf16>, vector<128x128xbf16>, vector<256x128xf32> -> vector<256x128xf32>
    %7 = arith.addf %3, %6 : vector<256x128xf32>
    %c0_6 = arith.constant 0 : index
    %c0_7 = arith.constant 0 : index
    %8 = vector.load %arg8[%c0_6, %c0_7] : memref<256x128xf32, #tpu.memory_space<vmem>>, vector<256x128xf32>
    tpu.vector_store %arg8[%c0_6, %c0_7], %7 {strides = array<i32>} : memref<256x128xf32, #tpu.memory_space<vmem>>, vector<256x128xf32>,
    %c0_i32_8 = arith.constant 0 : i32
    %9 = arith.cmpi eq, %arg2, %c0_i32_8 : i32
    %10 = arith.extui %9 : i1 to i32
    %c0_i32_9 = arith.constant 0 : i32
    %11 = arith.cmpi ne, %10, %c0_i32_9 : i32
    scf.if %11 {
      %c0_10 = arith.constant 0 : index
      %c0_11 = arith.constant 0 : index
      %12 = vector.load %arg8[%c0_10, %c0_11] : memref<256x128xf32, #tpu.memory_space<vmem>>, vector<256x128xf32>
      %c0_12 = arith.constant 0 : index
      %c0_13 = arith.constant 0 : index
      %13 = vector.load %arg5[%c0_12, %c0_13] : memref<1x128xf32, #tpu.memory_space<vmem>>, vector<1x128xf32>
      %14 = vector.broadcast %13 : vector<1x128xf32> to vector<256x128xf32>
      %15 = arith.addf %12, %14 : vector<256x128xf32>
      %16 = arith.truncf %15 : vector<256x128xf32> to vector<256x128xbf16>
      %c0_14 = arith.constant 0 : index
      %c0_15 = arith.constant 0 : index
      %17 = vector.load %arg6[%c0_14, %c0_15] : memref<256x128xbf16, #tpu.memory_space<vmem>>, vector<256x128xbf16>
      tpu.vector_store %arg6[%c0_14, %c0_15], %16 {strides = array<i32>} : memref<256x128xbf16, #tpu.memory_space<vmem>>, vector<256x128xbf16>,
      %c256_i32 = arith.constant 256 : i32
      %18 = arith.muli %arg1, %c256_i32 : i32
      %19 = tpu.iota {dimensions = array<i32: 1>} : vector<1x256xi32>
      %20 = vector.broadcast %18 : i32 to vector<1x256xi32>
      %21 = arith.addi %20, %19 : vector<1x256xi32>
      %c32_i32 = arith.constant 32 : i32
      %22 = vector.broadcast %c32_i32 : i32 to vector<1x256xi32>
      %23 = arith.cmpi slt, %21, %22 : vector<1x256xi32>
      %24 = arith.extui %23 : vector<1x256xi1> to vector<1x256xi32>
      %25 = arith.sitofp %24 : vector<1x256xi32> to vector<1x256xf32>
      %cst_16 = arith.constant dense<0.000000e+00> : vector<1x128xf32>
      %26 = tpu.matmul %25, %15, %cst_16 {dimension_numbers = #tpu.dot_dimension_numbers<[1], [0], [0], [1], [0, 0, 1, 1], [], []>} : vector<1x256xf32>, vector<256x128xf32>, vector<1x128xf32> -> vector<1x128xf32>
      %27 = arith.mulf %15, %15 : vector<256x128xf32>
      %cst_17 = arith.constant dense<0.000000e+00> : vector<1x128xf32>
      %28 = tpu.matmul %25, %27, %cst_17 {dimension_numbers = #tpu.dot_dimension_numbers<[1], [0], [0], [1], [0, 0, 1, 1], [], []>} : vector<1x256xf32>, vector<256x128xf32>, vector<1x128xf32> -> vector<1x128xf32>
      %29 = tpu.iota {dimensions = array<i32: 0>} : vector<8x128xi32>
      %c0_i32_18 = arith.constant 0 : i32
      %30 = vector.broadcast %c0_i32_18 : i32 to vector<8x128xi32>
      %31 = arith.cmpi eq, %29, %30 : vector<8x128xi32>
      %c1_i32 = arith.constant 1 : i32
      %32 = vector.broadcast %c1_i32 : i32 to vector<8x128xi32>
      %33 = arith.cmpi eq, %29, %32 : vector<8x128xi32>
      %cst_19 = arith.constant 0.000000e+00 : f32
      %34 = vector.shape_cast %28 : vector<1x128xf32> to vector<1x128xf32>
      %35 = vector.broadcast %34 : vector<1x128xf32> to vector<8x128xf32>
      %36 = vector.broadcast %cst_19 : f32 to vector<8x128xf32>
      %37 = arith.select %33, %35, %36 : vector<8x128xi1>, vector<8x128xf32>
      %38 = vector.shape_cast %26 : vector<1x128xf32> to vector<1x128xf32>
      %39 = vector.broadcast %38 : vector<1x128xf32> to vector<8x128xf32>
      %40 = arith.select %31, %39, %37 : vector<8x128xi1>, vector<8x128xf32>
      %c0_20 = arith.constant 0 : index
      %c0_21 = arith.constant 0 : index
      %41 = vector.load %arg7[%c0_20, %c0_21] : memref<8x128xf32, #tpu.memory_space<vmem>>, vector<8x128xf32>
      tpu.vector_store %arg7[%c0_20, %c0_21], %40 {strides = array<i32>} : memref<8x128xf32, #tpu.memory_space<vmem>>, vector<8x128xf32>,
    } else {
    }
    return
  }
  func.func @transform_0(%arg0: i32, %arg1: i32, %arg2: i32) -> (i32, i32) {
    %c0_i32 = arith.constant 0 : i32
    return %arg1, %arg2 : i32, i32
  }
  func.func @transform_1(%arg0: i32, %arg1: i32, %arg2: i32) -> (i32, i32) {
    %c0_i32 = arith.constant 0 : i32
    return %arg2, %arg0 : i32, i32
  }
  func.func @transform_2(%arg0: i32, %arg1: i32, %arg2: i32) -> (i32, i32) {
    %c0_i32 = arith.constant 0 : i32
    %c0_i32_0 = arith.constant 0 : i32
    return %c0_i32, %arg0 : i32, i32
  }
  func.func @transform_3(%arg0: i32, %arg1: i32, %arg2: i32) -> (i32, i32) {
    %c0_i32 = arith.constant 0 : i32
    return %arg1, %arg0 : i32, i32
  }
  func.func @transform_4(%arg0: i32, %arg1: i32, %arg2: i32) -> (i32, i32) {
    %c0_i32 = arith.constant 0 : i32
    return %arg1, %arg0 : i32, i32
  }
}

module attributes {stable_mosaic.version = 11 : i64} {
  func.func @kernel(%arg0: i32, %arg1: i32, %arg2: i32, %arg3: memref<512x512xbf16, #tpu.memory_space<vmem>>, %arg4: memref<512x128xbf16, #tpu.memory_space<vmem>>, %arg5: memref<1x128xf32, #tpu.memory_space<vmem>>, %arg6: memref<512x128xbf16, #tpu.memory_space<vmem>>, %arg7: memref<512x128xf32, #tpu.memory_space<vmem>>) attributes {dimension_semantics = [#tpu.dimension_semantics<parallel>, #tpu.dimension_semantics<parallel>, #tpu.dimension_semantics<arbitrary>], iteration_bounds = array<i64: 1, 1, 1>, scalar_prefetch = 0 : i64, scratch_operands = 1 : i64, tpu.core_type = #tpu.core_type<tc>, window_params = [{transform_indices = @transform_0, window_bounds = array<i64: 512, 512>}, {transform_indices = @transform_1, window_bounds = array<i64: 512, 128>}, {transform_indices = @transform_2, window_bounds = array<i64: 1, 128>}, {transform_indices = @transform_3, window_bounds = array<i64: 512, 128>}]} {
    %c0_i32 = arith.constant 0 : i32
    %0 = arith.cmpi eq, %arg2, %c0_i32 : i32
    %1 = arith.extui %0 : i1 to i32
    %c0_i32_0 = arith.constant 0 : i32
    %2 = arith.cmpi ne, %1, %c0_i32_0 : i32
    scf.if %2 {
      %cst_10 = arith.constant 0.000000e+00 : f32
      %12 = vector.broadcast %cst_10 : f32 to vector<512x128xf32>
      %c0_11 = arith.constant 0 : index
      %c0_12 = arith.constant 0 : index
      %13 = vector.load %arg7[%c0_11, %c0_12] : memref<512x128xf32, #tpu.memory_space<vmem>>, vector<512x128xf32>
      tpu.vector_store %arg7[%c0_11, %c0_12], %12 {strides = array<i32>} : memref<512x128xf32, #tpu.memory_space<vmem>>, vector<512x128xf32>,
    } else {
    }
    %c0 = arith.constant 0 : index
    %c0_1 = arith.constant 0 : index
    %3 = vector.load %arg7[%c0, %c0_1] : memref<512x128xf32, #tpu.memory_space<vmem>>, vector<512x128xf32>
    %c0_2 = arith.constant 0 : index
    %c0_3 = arith.constant 0 : index
    %4 = vector.load %arg3[%c0_2, %c0_3] : memref<512x512xbf16, #tpu.memory_space<vmem>>, vector<512x512xbf16>
    %c0_4 = arith.constant 0 : index
    %c0_5 = arith.constant 0 : index
    %5 = vector.load %arg4[%c0_4, %c0_5] : memref<512x128xbf16, #tpu.memory_space<vmem>>, vector<512x128xbf16>
    %cst = arith.constant dense<0.000000e+00> : vector<512x128xf32>
    %6 = tpu.matmul %4, %5, %cst {dimension_numbers = #tpu.dot_dimension_numbers<[1], [0], [0], [1], [0, 0, 1, 1], [], []>} : vector<512x512xbf16>, vector<512x128xbf16>, vector<512x128xf32> -> vector<512x128xf32>
    %7 = arith.addf %3, %6 : vector<512x128xf32>
    %c0_6 = arith.constant 0 : index
    %c0_7 = arith.constant 0 : index
    %8 = vector.load %arg7[%c0_6, %c0_7] : memref<512x128xf32, #tpu.memory_space<vmem>>, vector<512x128xf32>
    tpu.vector_store %arg7[%c0_6, %c0_7], %7 {strides = array<i32>} : memref<512x128xf32, #tpu.memory_space<vmem>>, vector<512x128xf32>,
    %c0_i32_8 = arith.constant 0 : i32
    %9 = arith.cmpi eq, %arg2, %c0_i32_8 : i32
    %10 = arith.extui %9 : i1 to i32
    %c0_i32_9 = arith.constant 0 : i32
    %11 = arith.cmpi ne, %10, %c0_i32_9 : i32
    scf.if %11 {
      %c0_10 = arith.constant 0 : index
      %c0_11 = arith.constant 0 : index
      %12 = vector.load %arg7[%c0_10, %c0_11] : memref<512x128xf32, #tpu.memory_space<vmem>>, vector<512x128xf32>
      %c0_12 = arith.constant 0 : index
      %c0_13 = arith.constant 0 : index
      %13 = vector.load %arg5[%c0_12, %c0_13] : memref<1x128xf32, #tpu.memory_space<vmem>>, vector<1x128xf32>
      %14 = vector.broadcast %13 : vector<1x128xf32> to vector<512x128xf32>
      %15 = arith.addf %12, %14 : vector<512x128xf32>
      %16 = math.tanh %15 : vector<512x128xf32>
      %17 = arith.truncf %16 : vector<512x128xf32> to vector<512x128xbf16>
      %c0_14 = arith.constant 0 : index
      %c0_15 = arith.constant 0 : index
      %18 = vector.load %arg6[%c0_14, %c0_15] : memref<512x128xbf16, #tpu.memory_space<vmem>>, vector<512x128xbf16>
      tpu.vector_store %arg6[%c0_14, %c0_15], %17 {strides = array<i32>} : memref<512x128xbf16, #tpu.memory_space<vmem>>, vector<512x128xbf16>,
    } else {
    }
    return
  }
  func.func @transform_0(%arg0: i32, %arg1: i32, %arg2: i32) -> (i32, i32) {
    %c0_i32 = arith.constant 0 : i32
    return %arg1, %arg2 : i32, i32
  }
  func.func @transform_1(%arg0: i32, %arg1: i32, %arg2: i32) -> (i32, i32) {
    %c0_i32 = arith.constant 0 : i32
    return %arg2, %arg0 : i32, i32
  }
  func.func @transform_2(%arg0: i32, %arg1: i32, %arg2: i32) -> (i32, i32) {
    %c0_i32 = arith.constant 0 : i32
    %c0_i32_0 = arith.constant 0 : i32
    return %c0_i32, %arg0 : i32, i32
  }
  func.func @transform_3(%arg0: i32, %arg1: i32, %arg2: i32) -> (i32, i32) {
    %c0_i32 = arith.constant 0 : i32
    return %arg1, %arg0 : i32, i32
  }
}

module attributes {stable_mosaic.version = 11 : i64} {
  func.func @_seg_sum_kernel(%arg0: i32, %arg1: i32, %arg2: memref<1x1x256xi32, #tpu.memory_space<vmem>>, %arg3: memref<1x256x128xbf16, #tpu.memory_space<vmem>>, %arg4: memref<1x8x128xf32, #tpu.memory_space<vmem>>, %arg5: memref<1x8x1xf32, #tpu.memory_space<vmem>>) attributes {dimension_semantics = [#tpu.dimension_semantics<parallel>, #tpu.dimension_semantics<arbitrary>], iteration_bounds = array<i64: 2, 1>, scalar_prefetch = 0 : i64, scratch_operands = 0 : i64, tpu.core_type = #tpu.core_type<tc>, window_params = [{transform_indices = @transform_0, window_bounds = array<i64: 1, 1, 256>}, {transform_indices = @transform_1, window_bounds = array<i64: 1, 256, 128>}, {transform_indices = @transform_2, window_bounds = array<i64: 1, 8, 128>}, {transform_indices = @transform_3, window_bounds = array<i64: 1, 8, 1>}]} {
    %c0_i32 = arith.constant 0 : i32
    %0 = arith.cmpi eq, %arg1, %c0_i32 : i32
    %1 = arith.extui %0 : i1 to i32
    %c0_i32_0 = arith.constant 0 : i32
    %2 = arith.cmpi ne, %1, %c0_i32_0 : i32
    scf.if %2 {
      %cst_19 = arith.constant 0.000000e+00 : f32
      %24 = vector.broadcast %cst_19 : f32 to vector<1x8x128xf32>
      %c0_20 = arith.constant 0 : index
      %c0_21 = arith.constant 0 : index
      %c0_22 = arith.constant 0 : index
      %25 = vector.load %arg4[%c0_20, %c0_21, %c0_22] : memref<1x8x128xf32, #tpu.memory_space<vmem>>, vector<1x8x128xf32>
      tpu.vector_store %arg4[%c0_20, %c0_21, %c0_22], %24 {strides = array<i32>} : memref<1x8x128xf32, #tpu.memory_space<vmem>>, vector<1x8x128xf32>,
      %cst_23 = arith.constant 0.000000e+00 : f32
      %26 = vector.broadcast %cst_23 : f32 to vector<1x8x1xf32>
      %c0_24 = arith.constant 0 : index
      %c0_25 = arith.constant 0 : index
      %c0_26 = arith.constant 0 : index
      %27 = vector.load %arg5[%c0_24, %c0_25, %c0_26] : memref<1x8x1xf32, #tpu.memory_space<vmem>>, vector<1x8x1xf32>
      tpu.vector_store %arg5[%c0_24, %c0_25, %c0_26], %26 {strides = array<i32>} : memref<1x8x1xf32, #tpu.memory_space<vmem>>, vector<1x8x1xf32>,
    } else {
    }
    %3 = tpu.iota {dimensions = array<i32: 0>} : vector<8x256xi32>
    %c0 = arith.constant 0 : index
    %c0_1 = arith.constant 0 : index
    %c0_2 = arith.constant 0 : index
    %4 = vector.load %arg2[%c0, %c0_1, %c0_2] : memref<1x1x256xi32, #tpu.memory_space<vmem>>, vector<1x1x256xi32>
    %5 = vector.shape_cast %4 : vector<1x1x256xi32> to vector<1x256xi32>
    %6 = vector.broadcast %5 : vector<1x256xi32> to vector<8x256xi32>
    %7 = arith.cmpi eq, %3, %6 : vector<8x256xi32>
    %8 = arith.extui %7 : vector<8x256xi1> to vector<8x256xi32>
    %9 = arith.sitofp %8 : vector<8x256xi32> to vector<8x256xf32>
    %c0_3 = arith.constant 0 : index
    %c0_4 = arith.constant 0 : index
    %c0_5 = arith.constant 0 : index
    %10 = vector.load %arg4[%c0_3, %c0_4, %c0_5] : memref<1x8x128xf32, #tpu.memory_space<vmem>>, vector<1x8x128xf32>
    %11 = arith.truncf %9 : vector<8x256xf32> to vector<8x256xbf16>
    %c0_6 = arith.constant 0 : index
    %c0_7 = arith.constant 0 : index
    %c0_8 = arith.constant 0 : index
    %12 = vector.load %arg3[%c0_6, %c0_7, %c0_8] : memref<1x256x128xbf16, #tpu.memory_space<vmem>>, vector<1x256x128xbf16>
    %13 = vector.shape_cast %12 : vector<1x256x128xbf16> to vector<256x128xbf16>
    %cst = arith.constant dense<0.000000e+00> : vector<8x128xf32>
    %14 = tpu.matmul %11, %13, %cst {dimension_numbers = #tpu.dot_dimension_numbers<[1], [0], [0], [1], [0, 0, 1, 1], [], []>} : vector<8x256xbf16>, vector<256x128xbf16>, vector<8x128xf32> -> vector<8x128xf32>
    %15 = vector.shape_cast %14 : vector<8x128xf32> to vector<1x8x128xf32>
    %16 = arith.addf %10, %15 : vector<1x8x128xf32>
    %c0_9 = arith.constant 0 : index
    %c0_10 = arith.constant 0 : index
    %c0_11 = arith.constant 0 : index
    %17 = vector.load %arg4[%c0_9, %c0_10, %c0_11] : memref<1x8x128xf32, #tpu.memory_space<vmem>>, vector<1x8x128xf32>
    tpu.vector_store %arg4[%c0_9, %c0_10, %c0_11], %16 {strides = array<i32>} : memref<1x8x128xf32, #tpu.memory_space<vmem>>, vector<1x8x128xf32>,
    %c0_12 = arith.constant 0 : index
    %c0_13 = arith.constant 0 : index
    %c0_14 = arith.constant 0 : index
    %18 = vector.load %arg5[%c0_12, %c0_13, %c0_14] : memref<1x8x1xf32, #tpu.memory_space<vmem>>, vector<1x8x1xf32>
    %cst_15 = arith.constant dense<0.000000e+00> : vector<8xf32>
    %19 = vector.multi_reduction <add>, %9, %cst_15 [1] : vector<8x256xf32> to vector<8xf32>
    %20 = vector.shape_cast %19 : vector<8xf32> to vector<8x1xf32>
    %21 = vector.shape_cast %20 : vector<8x1xf32> to vector<1x8x1xf32>
    %22 = arith.addf %18, %21 : vector<1x8x1xf32>
    %c0_16 = arith.constant 0 : index
    %c0_17 = arith.constant 0 : index
    %c0_18 = arith.constant 0 : index
    %23 = vector.load %arg5[%c0_16, %c0_17, %c0_18] : memref<1x8x1xf32, #tpu.memory_space<vmem>>, vector<1x8x1xf32>
    tpu.vector_store %arg5[%c0_16, %c0_17, %c0_18], %22 {strides = array<i32>} : memref<1x8x1xf32, #tpu.memory_space<vmem>>, vector<1x8x1xf32>,
    return
  }
  func.func @transform_0(%arg0: i32, %arg1: i32) -> (i32, i32, i32) {
    %c0_i32 = arith.constant 0 : i32
    %c0_i32_0 = arith.constant 0 : i32
    return %arg0, %c0_i32, %arg1 : i32, i32, i32
  }
  func.func @transform_1(%arg0: i32, %arg1: i32) -> (i32, i32, i32) {
    %c0_i32 = arith.constant 0 : i32
    %c0_i32_0 = arith.constant 0 : i32
    return %arg0, %arg1, %c0_i32 : i32, i32, i32
  }
  func.func @transform_2(%arg0: i32, %arg1: i32) -> (i32, i32, i32) {
    %c0_i32 = arith.constant 0 : i32
    %c0_i32_0 = arith.constant 0 : i32
    %c0_i32_1 = arith.constant 0 : i32
    return %arg0, %c0_i32, %c0_i32_0 : i32, i32, i32
  }
  func.func @transform_3(%arg0: i32, %arg1: i32) -> (i32, i32, i32) {
    %c0_i32 = arith.constant 0 : i32
    %c0_i32_0 = arith.constant 0 : i32
    %c0_i32_1 = arith.constant 0 : i32
    return %arg0, %c0_i32, %c0_i32_0 : i32, i32, i32
  }
}

module attributes {stable_mosaic.version = 11 : i64} {
  func.func @_seg_gather_kernel(%arg0: i32, %arg1: i32, %arg2: memref<1x1x256xi32, #tpu.memory_space<vmem>>, %arg3: memref<1x128x8xf32, #tpu.memory_space<vmem>>, %arg4: memref<1x128x256xf32, #tpu.memory_space<vmem>>) attributes {dimension_semantics = [#tpu.dimension_semantics<parallel>, #tpu.dimension_semantics<parallel>], iteration_bounds = array<i64: 2, 1>, scalar_prefetch = 0 : i64, scratch_operands = 0 : i64, tpu.core_type = #tpu.core_type<tc>, window_params = [{transform_indices = @transform_0, window_bounds = array<i64: 1, 1, 256>}, {transform_indices = @transform_1, window_bounds = array<i64: 1, 128, 8>}, {transform_indices = @transform_2, window_bounds = array<i64: 1, 128, 256>}]} {
    %0 = tpu.iota {dimensions = array<i32: 0>} : vector<8x256xi32>
    %c0 = arith.constant 0 : index
    %c0_0 = arith.constant 0 : index
    %c0_1 = arith.constant 0 : index
    %1 = vector.load %arg2[%c0, %c0_0, %c0_1] : memref<1x1x256xi32, #tpu.memory_space<vmem>>, vector<1x1x256xi32>
    %2 = vector.shape_cast %1 : vector<1x1x256xi32> to vector<1x256xi32>
    %3 = vector.broadcast %2 : vector<1x256xi32> to vector<8x256xi32>
    %4 = arith.cmpi eq, %0, %3 : vector<8x256xi32>
    %5 = arith.extui %4 : vector<8x256xi1> to vector<8x256xi32>
    %6 = arith.sitofp %5 : vector<8x256xi32> to vector<8x256xf32>
    %7 = arith.truncf %6 : vector<8x256xf32> to vector<8x256xbf16>
    %c0_2 = arith.constant 0 : index
    %c0_3 = arith.constant 0 : index
    %c0_4 = arith.constant 0 : index
    %8 = vector.load %arg3[%c0_2, %c0_3, %c0_4] : memref<1x128x8xf32, #tpu.memory_space<vmem>>, vector<1x128x8xf32>
    %9 = vector.shape_cast %8 : vector<1x128x8xf32> to vector<128x8xf32>
    %10 = arith.truncf %9 : vector<128x8xf32> to vector<128x8xbf16>
    %cst = arith.constant dense<0.000000e+00> : vector<128x256xf32>
    %11 = tpu.matmul %10, %7, %cst {dimension_numbers = #tpu.dot_dimension_numbers<[1], [0], [0], [1], [0, 0, 1, 1], [], []>} : vector<128x8xbf16>, vector<8x256xbf16>, vector<128x256xf32> -> vector<128x256xf32>
    %12 = vector.shape_cast %11 : vector<128x256xf32> to vector<1x128x256xf32>
    %c0_5 = arith.constant 0 : index
    %c0_6 = arith.constant 0 : index
    %c0_7 = arith.constant 0 : index
    %13 = vector.load %arg4[%c0_5, %c0_6, %c0_7] : memref<1x128x256xf32, #tpu.memory_space<vmem>>, vector<1x128x256xf32>
    tpu.vector_store %arg4[%c0_5, %c0_6, %c0_7], %12 {strides = array<i32>} : memref<1x128x256xf32, #tpu.memory_space<vmem>>, vector<1x128x256xf32>,
    return
  }
  func.func @transform_0(%arg0: i32, %arg1: i32) -> (i32, i32, i32) {
    %c0_i32 = arith.constant 0 : i32
    %c0_i32_0 = arith.constant 0 : i32
    return %arg0, %c0_i32, %arg1 : i32, i32, i32
  }
  func.func @transform_1(%arg0: i32, %arg1: i32) -> (i32, i32, i32) {
    %c0_i32 = arith.constant 0 : i32
    %c0_i32_0 = arith.constant 0 : i32
    %c0_i32_1 = arith.constant 0 : i32
    return %arg0, %c0_i32, %c0_i32_0 : i32, i32, i32
  }
  func.func @transform_2(%arg0: i32, %arg1: i32) -> (i32, i32, i32) {
    %c0_i32 = arith.constant 0 : i32
    %c0_i32_0 = arith.constant 0 : i32
    return %arg0, %c0_i32, %arg1 : i32, i32, i32
  }
}

</mosaic_0001>

<bundles_post_ra>
// kernel: _lambda_.26
= control target key start
LH: loop header
LB: loop body
LE: loop exit
PB: predicated region body
PF: predicated region fallthrough
CT: control target
= control target key end

     0   :  { %8 = vsyncpa [#allocation3], 0  ;;  %s1523_s0 = inlined_call_operand.hbm [shape: bf16[512,128], index: 0, kind: input, shape index: {}]   ;;  %s1524_s1 = inlined_call_operand.hbm [shape: f32[1,128], index: 1, kind: input, shape index: {}]   ;;  %s1525_s2 = inlined_call_operand.hbm [shape: f32[1,128], index: 2, kind: input, shape index: {}]   ;;  %s1526_s3 = inlined_call_operand.hbm [shape: bf16[512,128], index: 3, kind: output, shape index: {}]  }
   0x1   :  { %9 = vsyncpa [#allocation6], 0 }
   0x2   :  { %10 = vsyncpa [#allocation4], 0  ;;  %s1304_s12 = smov [#allocation5]   ;;  %s1305_s14 = smov [#allocation2]  }
   0x3   :  { %s29_s13 = sshll.u32 %s1304_s12, 4  ;;  %s16_s15 = sshll.u32 %s1305_s14, 4  ;;  %s30_s13 = int_to_ptr.vmem [resolvable:$true] %s29_s13  ;;  %s1330_s15 = int_to_ptr.vmem [resolvable:$true] %s16_s15 }
   0x4   :  { %s1210_s18 = scalar_lea.hbm %s1524_s1, 16 }
   0x5   :  { %p1211_p0 = scmp.ne.s32.totalorder %s1524_s1, %s1210_s18  ;;  %p1214_p1 = scmp.lt.u32.totalorder %s1210_s18, %s1524_s1 }
   0x7   :  { %p1216_p2 = pnand %p1214_p1, %p1211_p0 }
   0x9   :  { %1219 = shalt.err (!%p1216_p2)
}
   0xa   :  { %s1220_s23 = scalar_lea.vmem %s30_s13, 16  ;;  %s1224_s24 = scalar_lea.vmem %s30_s13, 32 }
   0xb   :  { %p1221_p3 = scmp.ne.s32.totalorder %s30_s13, %s1220_s23  ;;  %p1225_p4 = scmp.lt.s32.totalorder %s30_s13, %s30_s13 }
   0xc   :  { %p1226_p5 = scmp.lt.s32.totalorder %s1224_s24, %s1220_s23 }
   0xe   :  { %p1227_p6 = por %p1226_p5, %p1225_p4 }
  0x10   :  { %p1228_p7 = pnand %p1227_p6, %p1221_p3 }
  0x12   :  { %1231 = shalt.err (!%p1228_p7)
}
  0x13   :  { %32 = dma.hbm_to_vmem [thread:$0]  %s1524_s1, 16, %s30_s13, [#allocation6]  }
  0x14   :  { %s1232_s29 = scalar_lea.hbm %s1523_s0, 4096 }
  0x15   :  { %p1233_p8 = scmp.ne.s32.totalorder %s1523_s0, %s1232_s29  ;;  %p1236_p9 = scmp.lt.u32.totalorder %s1232_s29, %s1523_s0 }
  0x17   :  { %p1238_p10 = pnand %p1236_p9, %p1233_p8 }
  0x19   :  { %1241 = shalt.err (!%p1238_p10)
}
  0x1a   :  { %s1242_s7 = scalar_lea.vmem %s1330_s15, 4096  ;;  %p1247_p12 = scmp.lt.s32.totalorder %s1330_s15, %s1330_s15 }
  0x1b   :  { %p1243_p11 = scmp.ne.s32.totalorder %s1330_s15, %s1242_s7  ;;  %p1248_p13 = scmp.lt.s32.totalorder %s1242_s7, %s1242_s7 }
  0x1d   :  { %p1249_p0 = por %p1248_p13, %p1247_p12 }
  0x1f   :  { %p1250_p1 = pnand %p1249_p0, %p1243_p11 }
  0x21   :  { %1253 = shalt.err (!%p1250_p1)
}
  0x22   :  { %s1306_s1 = smov 64   ;;  %s1307_s8 = smov 4  }
  0x23   :  { %22 = dma.hbm_to_vmem [thread:$0]  %s1523_s0, 4096, %s1330_s15, [#allocation3], %s1306_s1, %s1306_s1, %s1307_s8  }
  0x24   :  { %s1308_s11 = smov [#allocation7]   ;;  %s1254_s16 = scalar_lea.hbm %s1525_s2, 16 }
  0x25   :  { %s39_s12 = sshll.u32 %s1308_s11, 4  ;;  %p1255_p2 = scmp.ne.s32.totalorder %s1525_s2, %s1254_s16  ;;  %s40_s12 = int_to_ptr.vmem [resolvable:$true] %s39_s12 }
  0x26   :  { %p1258_p3 = scmp.lt.u32.totalorder %s1254_s16, %s1525_s2 }
  0x28   :  { %p1260_p4 = pnand %p1258_p3, %p1255_p2 }
  0x2a   :  { %1263 = shalt.err (!%p1260_p4)
}
  0x2b   :  { %s1264_s21 = scalar_lea.vmem %s40_s12, 16  ;;  %s1268_s0 = scalar_lea.vmem %s40_s12, 32 }
  0x2c   :  { %p1265_p5 = scmp.ne.s32.totalorder %s40_s12, %s1264_s21  ;;  %p1269_p6 = scmp.lt.s32.totalorder %s40_s12, %s40_s12 }
  0x2d   :  { %p1270_p7 = scmp.lt.s32.totalorder %s1268_s0, %s1264_s21 }
  0x2f   :  { %p1271_p8 = por %p1270_p7, %p1269_p6 }
  0x31   :  { %p1272_p9 = pnand %p1271_p8, %p1265_p5 }
  0x33   :  { %1275 = shalt.err (!%p1272_p9)
}
  0x34   :  { %42 = dma.hbm_to_vmem [thread:$0]  %s1525_s2, 16, %s40_s12, [#allocation6]  }
  0x35   :  { %1298 = dma.done.wait [#allocation3], 4096  }
  0x36   :  { %1299 = vsyncadd [#allocation3], 4294963200 }
  0x37   :  { %1300 = dma.done.wait [#allocation6], 32  }
  0x38   :  { %1301 = vsyncadd [#allocation6], 4294967264  ;;  %v855_v0 = vld [vmem:[#allocation2] sm:$0xff]   ;;  %v1142_v4 = vld [vmem:[#allocation2 + $0x8] sm:$0xff]   ;;  %s1309_s2 = smov [#allocation8]  }
  0x39   :  { %v1376_v1 = vld [vmem:[#allocation5] ss:$0 sm:$0xff]  ;;  %v856_v2 = vunpack.c.l.bf16 %v855_v0  ;;  %v857_v3 = vunpack.c.h.bf16 %v855_v0  ;;  %v1143_v5 = vld [vmem:[#allocation2 + $0x10] sm:$0xff]   ;;  %v1144_v6 = vld [vmem:[#allocation2 + $0x18] sm:$0xff]   ;;  %v860_v8 = vunpack.c.l.bf16 %v1142_v4  ;;  %v861_v9 = vunpack.c.h.bf16 %v1142_v4  ;;  %s711_s23 = sshll.u32 %s1309_s2, 4  ;;  %s712_s23 = int_to_ptr.vmem [resolvable:$true] %s711_s23 }
  0x3a   :  { %v1378_v7 = vld [vmem:[#allocation7] ss:$0 sm:$0xff]  ;;  %v864_v10 = vunpack.c.l.bf16 %v1143_v5  ;;  %v865_v11 = vunpack.c.h.bf16 %v1143_v5  ;;  %v868_v14 = vunpack.c.l.bf16 %v1144_v6  ;;  %v869_v15 = vunpack.c.h.bf16 %v1144_v6  ;;  %v1146_v33 = vld [vmem:[#allocation2 + $0x28] sm:$0xff]   ;;  %v1147_v38 = vld [vmem:[#allocation2 + $0x30] sm:$0xff]   ;;  %s1276_s24 = scalar_lea.vmem %s712_s23, 4096  ;;  %p1281_p11 = scmp.lt.s32.totalorder %s712_s23, %s712_s23 }
  0x3b   :  { %v187_v12 = vmul.f32 %v856_v2, %v1376_v1  ;;  %v188_v13 = vmul.f32 %v857_v3, %v1376_v1  ;;  %v189_v16 = vmul.f32 %v860_v8, %v1376_v1  ;;  %v190_v17 = vmul.f32 %v861_v9, %v1376_v1  ;;  %v1145_v28 = vld [vmem:[#allocation2 + $0x20] sm:$0xff]   ;;  %v1148_v43 = vld [vmem:[#allocation2 + $0x38] sm:$0xff]   ;;  %p1277_p10 = scmp.ne.s32.totalorder %s712_s23, %s1276_s24  ;;  %p1282_p12 = scmp.lt.s32.totalorder %s1276_s24, %s1276_s24 }
  0x3c   :  { %v191_v18 = vmul.f32 %v864_v10, %v1376_v1  ;;  %v192_v19 = vmul.f32 %v865_v11, %v1376_v1  ;;  %v193_v22 = vmul.f32 %v868_v14, %v1376_v1  ;;  %v194_v23 = vmul.f32 %v869_v15, %v1376_v1  ;;  %v1149_v0 = vld [vmem:[#allocation2 + $0x40] sm:$0xff]   ;;  %v1150_v11 = vld [vmem:[#allocation2 + $0x48] sm:$0xff]  }
  0x3d   :  { %v258_v20 = vadd.f32 %v1378_v7, %v187_v12  ;;  %v259_v21 = vadd.f32 %v1378_v7, %v188_v13  ;;  %v260_v24 = vadd.f32 %v1378_v7, %v189_v16  ;;  %v261_v25 = vadd.f32 %v1378_v7, %v190_v17  ;;  %v1151_v16 = vld [vmem:[#allocation2 + $0x50] sm:$0xff]   ;;  %p1283_p13 = por %p1282_p12, %p1281_p11 }
  0x3e   :  { %v262_v26 = vadd.f32 %v1378_v7, %v191_v18  ;;  %v263_v27 = vadd.f32 %v1378_v7, %v192_v19  ;;  %v264_v31 = vadd.f32 %v1378_v7, %v193_v22  ;;  %v265_v32 = vadd.f32 %v1378_v7, %v194_v23 }
  0x3f   :  { %v322_v29 = vmax.f32 %v258_v20, 0.0  ;;  %v323_v30 = vmax.f32 %v259_v21, 0.0  ;;  %v324_v34 = vmax.f32 %v260_v24, 0.0  ;;  %v325_v35 = vmax.f32 %v261_v25, 0.0  ;;  %v1152_v25 = vld [vmem:[#allocation2 + $0x58] sm:$0xff]   ;;  %p1284_p0 = pnand %p1283_p13, %p1277_p10 }
  0x40   :  { %v326_v36 = vmax.f32 %v262_v26, 0.0  ;;  %v327_v37 = vmax.f32 %v263_v27, 0.0  ;;  %v328_v40 = vmax.f32 %v264_v31, 0.0  ;;  %v329_v41 = vmax.f32 %v265_v32, 0.0 }
  0x41   :  { %v985_v39 = vpack.c.bf16 %v323_v30, %v322_v29  ;;  %v872_v42 = vunpack.c.l.bf16 %v1145_v28  ;;  %v990_v44 = vpack.c.bf16 %v325_v35, %v324_v34  ;;  %v873_v46 = vunpack.c.h.bf16 %v1145_v28 }
  0x42   :  { %v995_v45 = vpack.c.bf16 %v327_v37, %v326_v36  ;;  %v876_v47 = vunpack.c.l.bf16 %v1146_v33  ;;  %v1000_v48 = vpack.c.bf16 %v329_v41, %v328_v40  ;;  %v877_v50 = vunpack.c.h.bf16 %v1146_v33 }
  0x43   :  { %986 = vst [vmem:[#allocation8] sm:$0xff] %v985_v39   ;;  %v195_v49 = vmul.f32 %v872_v42, %v1376_v1  ;;  %v880_v51 = vunpack.c.l.bf16 %v1147_v38  ;;  %1173 = vst [vmem:[#allocation8 + $0x8] sm:$0xff] %v990_v44   ;;  %v196_v52 = vmul.f32 %v873_v46, %v1376_v1  ;;  %v881_v54 = vunpack.c.h.bf16 %v1147_v38  ;;  %v1153_v38 = vld [vmem:[#allocation2 + $0x60] sm:$0xff]  }
  0x44   :  { %1174 = vst [vmem:[#allocation8 + $0x10] sm:$0xff] %v995_v45   ;;  %v197_v53 = vmul.f32 %v876_v47, %v1376_v1  ;;  %v884_v55 = vunpack.c.l.bf16 %v1148_v43  ;;  %1175 = vst [vmem:[#allocation8 + $0x18] sm:$0xff] %v1000_v48   ;;  %v198_v57 = vmul.f32 %v877_v50, %v1376_v1  ;;  %v885_v59 = vunpack.c.h.bf16 %v1148_v43 }
  0x45   :  { %v266_v56 = vadd.f32 %v1378_v7, %v195_v49  ;;  %v199_v58 = vmul.f32 %v880_v51, %v1376_v1  ;;  %v267_v60 = vadd.f32 %v1378_v7, %v196_v52  ;;  %v200_v62 = vmul.f32 %v881_v54, %v1376_v1  ;;  %v1154_v51 = vld [vmem:[#allocation2 + $0x68] sm:$0xff]  }
  0x46   :  { %v268_v61 = vadd.f32 %v1378_v7, %v197_v53  ;;  %v201_v63 = vmul.f32 %v884_v55, %v1376_v1  ;;  %v269_v3 = vadd.f32 %v1378_v7, %v198_v57  ;;  %v202_v5 = vmul.f32 %v885_v59, %v1376_v1 }
  0x47   :  { %v330_v2 = vmax.f32 %v266_v56, 0.0  ;;  %v270_v4 = vadd.f32 %v1378_v7, %v199_v58  ;;  %v331_v6 = vmax.f32 %v267_v60, 0.0  ;;  %v271_v9 = vadd.f32 %v1378_v7, %v200_v62  ;;  %v1155_v60 = vld [vmem:[#allocation2 + $0x70] sm:$0xff]  }
  0x48   :  { %v332_v8 = vmax.f32 %v268_v61, 0.0  ;;  %v272_v10 = vadd.f32 %v1378_v7, %v201_v63  ;;  %v333_v12 = vmax.f32 %v269_v3, 0.0  ;;  %v273_v14 = vadd.f32 %v1378_v7, %v202_v5 }
  0x49   :  { %v334_v13 = vmax.f32 %v270_v4, 0.0  ;;  %v888_v15 = vunpack.c.l.bf16 %v1149_v0  ;;  %v1005_v17 = vpack.c.bf16 %v331_v6, %v330_v2  ;;  %v335_v18 = vmax.f32 %v271_v9, 0.0  ;;  %v1156_v2 = vld [vmem:[#allocation2 + $0x78] sm:$0xff]  }
  0x4a   :  { %v336_v19 = vmax.f32 %v272_v10, 0.0  ;;  %v889_v20 = vunpack.c.h.bf16 %v1149_v0  ;;  %v1010_v21 = vpack.c.bf16 %v333_v12, %v332_v8  ;;  %v337_v22 = vmax.f32 %v273_v14, 0.0  ;;  %v1157_v12 = vld [vmem:[#allocation2 + $0x80] sm:$0xff]  }
  0x4b   :  { %v203_v23 = vmul.f32 %v888_v15, %v1376_v1  ;;  %v892_v24 = vunpack.c.l.bf16 %v1150_v11  ;;  %1176 = vst [vmem:[#allocation8 + $0x20] sm:$0xff] %v1005_v17   ;;  %v1015_v26 = vpack.c.bf16 %v335_v18, %v334_v13  ;;  %v893_v28 = vunpack.c.h.bf16 %v1150_v11 }
  0x4c   :  { %v204_v27 = vmul.f32 %v889_v20, %v1376_v1  ;;  %v896_v29 = vunpack.c.l.bf16 %v1151_v16  ;;  %1177 = vst [vmem:[#allocation8 + $0x28] sm:$0xff] %v1010_v21   ;;  %v1020_v30 = vpack.c.bf16 %v337_v22, %v336_v19  ;;  %v897_v33 = vunpack.c.h.bf16 %v1151_v16 }
  0x4d   :  { %v274_v31 = vadd.f32 %v1378_v7, %v203_v23  ;;  %v205_v32 = vmul.f32 %v892_v24, %v1376_v1  ;;  %1178 = vst [vmem:[#allocation8 + $0x30] sm:$0xff] %v1015_v26   ;;  %v206_v35 = vmul.f32 %v893_v28, %v1376_v1  ;;  %v900_v37 = vunpack.c.l.bf16 %v1152_v25 }
  0x4e   :  { %v275_v34 = vadd.f32 %v1378_v7, %v204_v27  ;;  %v207_v36 = vmul.f32 %v896_v29, %v1376_v1  ;;  %1179 = vst [vmem:[#allocation8 + $0x38] sm:$0xff] %v1020_v30   ;;  %v208_v41 = vmul.f32 %v897_v33, %v1376_v1  ;;  %v901_v42 = vunpack.c.h.bf16 %v1152_v25  ;;  %v1158_v29 = vld [vmem:[#allocation2 + $0x88] sm:$0xff]  }
  0x4f   :  { %v338_v39 = vmax.f32 %v274_v31, 0.0  ;;  %v276_v40 = vadd.f32 %v1378_v7, %v205_v32  ;;  %v277_v44 = vadd.f32 %v1378_v7, %v206_v35  ;;  %v209_v46 = vmul.f32 %v900_v37, %v1376_v1 }
  0x50   :  { %v339_v43 = vmax.f32 %v275_v34, 0.0  ;;  %v278_v45 = vadd.f32 %v1378_v7, %v207_v36  ;;  %v279_v48 = vadd.f32 %v1378_v7, %v208_v41  ;;  %v210_v49 = vmul.f32 %v901_v42, %v1376_v1  ;;  %v1159_v34 = vld [vmem:[#allocation2 + $0x90] sm:$0xff]  }
  0x51   :  { %v340_v47 = vmax.f32 %v276_v40, 0.0  ;;  %v904_v50 = vunpack.c.l.bf16 %v1153_v38  ;;  %v341_v53 = vmax.f32 %v277_v44, 0.0  ;;  %v280_v55 = vadd.f32 %v1378_v7, %v209_v46 }
  0x52   :  { %v1025_v52 = vpack.c.bf16 %v339_v43, %v338_v39  ;;  %v342_v54 = vmax.f32 %v278_v45, 0.0  ;;  %v343_v56 = vmax.f32 %v279_v48, 0.0  ;;  %v281_v57 = vadd.f32 %v1378_v7, %v210_v49  ;;  %v1160_v43 = vld [vmem:[#allocation2 + $0x98] sm:$0xff]  }
  0x53   :  { %v905_v58 = vunpack.c.h.bf16 %v1153_v38  ;;  %v211_v59 = vmul.f32 %v904_v50, %v1376_v1  ;;  %v1030_v61 = vpack.c.bf16 %v341_v53, %v340_v47  ;;  %v344_v62 = vmax.f32 %v280_v55, 0.0 }
  0x54   :  { %1180 = vst [vmem:[#allocation8 + $0x40] sm:$0xff] %v1025_v52   ;;  %v908_v63 = vunpack.c.l.bf16 %v1154_v51  ;;  %v909_v0 = vunpack.c.h.bf16 %v1154_v51  ;;  %v1035_v3 = vpack.c.bf16 %v343_v56, %v342_v54  ;;  %v345_v4 = vmax.f32 %v281_v57, 0.0  ;;  %v1161_v56 = vld [vmem:[#allocation2 + $0xa0] sm:$0xff]  }
  0x55   :  { %v212_v5 = vmul.f32 %v905_v58, %v1376_v1  ;;  %v282_v6 = vadd.f32 %v1378_v7, %v211_v59  ;;  %1181 = vst [vmem:[#allocation8 + $0x48] sm:$0xff] %v1030_v61   ;;  %v912_v10 = vunpack.c.l.bf16 %v1155_v60  ;;  %v913_v11 = vunpack.c.h.bf16 %v1155_v60 }
  0x56   :  { %v213_v8 = vmul.f32 %v908_v63, %v1376_v1  ;;  %v214_v9 = vmul.f32 %v909_v0, %v1376_v1  ;;  %1182 = vst [vmem:[#allocation8 + $0x50] sm:$0xff] %v1035_v3   ;;  %v1040_v13 = vpack.c.bf16 %v345_v4, %v344_v62  ;;  %v916_v16 = vunpack.c.l.bf16 %v1156_v2 }
  0x57   :  { %v283_v14 = vadd.f32 %v1378_v7, %v212_v5  ;;  %v346_v15 = vmax.f32 %v282_v6, 0.0  ;;  %v215_v19 = vmul.f32 %v912_v10, %v1376_v1  ;;  %v216_v20 = vmul.f32 %v913_v11, %v1376_v1 }
  0x58   :  { %v284_v17 = vadd.f32 %v1378_v7, %v213_v8  ;;  %v285_v18 = vadd.f32 %v1378_v7, %v214_v9  ;;  %1183 = vst [vmem:[#allocation8 + $0x58] sm:$0xff] %v1040_v13   ;;  %v917_v22 = vunpack.c.h.bf16 %v1156_v2  ;;  %v217_v23 = vmul.f32 %v916_v16, %v1376_v1  ;;  %v1162_v2 = vld [vmem:[#allocation2 + $0xa8] sm:$0xff]   ;;  %v1163_v16 = vld [vmem:[#allocation2 + $0xb0] sm:$0xff]  }
  0x59   :  { %v347_v21 = vmax.f32 %v283_v14, 0.0  ;;  %v920_v24 = vunpack.c.l.bf16 %v1157_v12  ;;  %v286_v27 = vadd.f32 %v1378_v7, %v215_v19  ;;  %v287_v28 = vadd.f32 %v1378_v7, %v216_v20 }
  0x5a   :  { %v348_v25 = vmax.f32 %v284_v17, 0.0  ;;  %v349_v26 = vmax.f32 %v285_v18, 0.0  ;;  %v218_v31 = vmul.f32 %v917_v22, %v1376_v1  ;;  %v288_v32 = vadd.f32 %v1378_v7, %v217_v23 }
  0x5b   :  { %v1045_v30 = vpack.c.bf16 %v347_v21, %v346_v15  ;;  %v921_v33 = vunpack.c.h.bf16 %v1157_v12  ;;  %v350_v36 = vmax.f32 %v286_v27, 0.0  ;;  %v351_v37 = vmax.f32 %v287_v28, 0.0  ;;  %v1164_v21 = vld [vmem:[#allocation2 + $0xb8] sm:$0xff]  }
  0x5c   :  { %v1050_v35 = vpack.c.bf16 %v349_v26, %v348_v25  ;;  %v219_v38 = vmul.f32 %v920_v24, %v1376_v1  ;;  %v289_v39 = vadd.f32 %v1378_v7, %v218_v31  ;;  %v352_v40 = vmax.f32 %v288_v32, 0.0 }
  0x5d   :  { %1184 = vst [vmem:[#allocation8 + $0x60] sm:$0xff] %v1045_v30   ;;  %v220_v41 = vmul.f32 %v921_v33, %v1376_v1  ;;  %v924_v42 = vunpack.c.l.bf16 %v1158_v29  ;;  %v1055_v44 = vpack.c.bf16 %v351_v37, %v350_v36  ;;  %v925_v46 = vunpack.c.h.bf16 %v1158_v29 }
  0x5e   :  { %1185 = vst [vmem:[#allocation8 + $0x68] sm:$0xff] %v1050_v35   ;;  %v290_v45 = vadd.f32 %v1378_v7, %v219_v38  ;;  %v928_v47 = vunpack.c.l.bf16 %v1159_v34  ;;  %v353_v48 = vmax.f32 %v289_v39, 0.0  ;;  %v929_v51 = vunpack.c.h.bf16 %v1159_v34  ;;  %v1165_v34 = vld [vmem:[#allocation2 + $0xc0] sm:$0xff]  }
  0x5f   :  { %v291_v49 = vadd.f32 %v1378_v7, %v220_v41  ;;  %v221_v50 = vmul.f32 %v924_v42, %v1376_v1  ;;  %1186 = vst [vmem:[#allocation8 + $0x70] sm:$0xff] %v1055_v44   ;;  %v222_v53 = vmul.f32 %v925_v46, %v1376_v1  ;;  %v932_v55 = vunpack.c.l.bf16 %v1160_v43 }
  0x60   :  { %v354_v52 = vmax.f32 %v290_v45, 0.0  ;;  %v223_v54 = vmul.f32 %v928_v47, %v1376_v1  ;;  %v1060_v57 = vpack.c.bf16 %v353_v48, %v352_v40  ;;  %v224_v60 = vmul.f32 %v929_v51, %v1376_v1  ;;  %v1166_v47 = vld [vmem:[#allocation2 + $0xc8] sm:$0xff]  }
  0x61   :  { %v355_v58 = vmax.f32 %v291_v49, 0.0  ;;  %v292_v59 = vadd.f32 %v1378_v7, %v221_v50  ;;  %v293_v61 = vadd.f32 %v1378_v7, %v222_v53  ;;  %v933_v63 = vunpack.c.h.bf16 %v1160_v43 }
  0x62   :  { %v294_v62 = vadd.f32 %v1378_v7, %v223_v54  ;;  %v225_v0 = vmul.f32 %v932_v55, %v1376_v1  ;;  %1187 = vst [vmem:[#allocation8 + $0x78] sm:$0xff] %v1060_v57   ;;  %v295_v5 = vadd.f32 %v1378_v7, %v224_v60  ;;  %v936_v6 = vunpack.c.l.bf16 %v1161_v56 }
  0x63   :  { %v1065_v3 = vpack.c.bf16 %v355_v58, %v354_v52  ;;  %v356_v4 = vmax.f32 %v292_v59, 0.0  ;;  %v357_v8 = vmax.f32 %v293_v61, 0.0  ;;  %v226_v10 = vmul.f32 %v933_v63, %v1376_v1  ;;  %v1167_v52 = vld [vmem:[#allocation2 + $0xd0] sm:$0xff]   ;;  %v1168_v61 = vld [vmem:[#allocation2 + $0xd8] sm:$0xff]  }
  0x64   :  { %v358_v9 = vmax.f32 %v294_v62, 0.0  ;;  %v296_v11 = vadd.f32 %v1378_v7, %v225_v0  ;;  %v359_v12 = vmax.f32 %v295_v5, 0.0  ;;  %v937_v13 = vunpack.c.h.bf16 %v1161_v56 }
  0x65   :  { %1188 = vst [vmem:[#allocation8 + $0x80] sm:$0xff] %v1065_v3   ;;  %v227_v14 = vmul.f32 %v936_v6, %v1376_v1  ;;  %v940_v15 = vunpack.c.l.bf16 %v1162_v2  ;;  %v1070_v17 = vpack.c.bf16 %v357_v8, %v356_v4  ;;  %v297_v18 = vadd.f32 %v1378_v7, %v226_v10 }
  0x66   :  { %v360_v19 = vmax.f32 %v296_v11, 0.0  ;;  %v941_v20 = vunpack.c.h.bf16 %v1162_v2  ;;  %v1075_v22 = vpack.c.bf16 %v359_v12, %v358_v9  ;;  %v228_v23 = vmul.f32 %v937_v13, %v1376_v1  ;;  %v1169_v12 = vld [vmem:[#allocation2 + $0xe0] sm:$0xff]  }
  0x67   :  { %v298_v24 = vadd.f32 %v1378_v7, %v227_v14  ;;  %v229_v25 = vmul.f32 %v940_v15, %v1376_v1  ;;  %1189 = vst [vmem:[#allocation8 + $0x88] sm:$0xff] %v1070_v17   ;;  %v361_v26 = vmax.f32 %v297_v18, 0.0  ;;  %v944_v28 = vunpack.c.l.bf16 %v1163_v16 }
  0x68   :  { %v230_v27 = vmul.f32 %v941_v20, %v1376_v1  ;;  %v945_v29 = vunpack.c.h.bf16 %v1163_v16  ;;  %1190 = vst [vmem:[#allocation8 + $0x90] sm:$0xff] %v1075_v22   ;;  %v299_v30 = vadd.f32 %v1378_v7, %v228_v23  ;;  %v948_v33 = vunpack.c.l.bf16 %v1164_v21 }
  0x69   :  { %v362_v31 = vmax.f32 %v298_v24, 0.0  ;;  %v300_v32 = vadd.f32 %v1378_v7, %v229_v25  ;;  %v1080_v35 = vpack.c.bf16 %v361_v26, %v360_v19  ;;  %v231_v37 = vmul.f32 %v944_v28, %v1376_v1 }
  0x6a   :  { %v301_v36 = vadd.f32 %v1378_v7, %v230_v27  ;;  %v232_v38 = vmul.f32 %v945_v29, %v1376_v1  ;;  %v363_v39 = vmax.f32 %v299_v30, 0.0  ;;  %v949_v41 = vunpack.c.h.bf16 %v1164_v21  ;;  %v1170_v21 = vld [vmem:[#allocation2 + $0xe8] sm:$0xff]  }
  0x6b   :  { %v364_v40 = vmax.f32 %v300_v32, 0.0  ;;  %v233_v42 = vmul.f32 %v948_v33, %v1376_v1  ;;  %1191 = vst [vmem:[#allocation8 + $0x98] sm:$0xff] %v1080_v35   ;;  %v302_v44 = vadd.f32 %v1378_v7, %v231_v37  ;;  %v952_v46 = vunpack.c.l.bf16 %v1165_v34 }
  0x6c   :  { %v365_v43 = vmax.f32 %v301_v36, 0.0  ;;  %v303_v45 = vadd.f32 %v1378_v7, %v232_v38  ;;  %v1085_v48 = vpack.c.bf16 %v363_v39, %v362_v31  ;;  %v234_v49 = vmul.f32 %v949_v41, %v1376_v1  ;;  %v1172_v39 = vld [vmem:[#allocation2 + $0xf8] sm:$0xff]  }
  0x6d   :  { %v304_v50 = vadd.f32 %v1378_v7, %v233_v42  ;;  %v953_v51 = vunpack.c.h.bf16 %v1165_v34  ;;  %v366_v54 = vmax.f32 %v302_v44, 0.0  ;;  %v235_v56 = vmul.f32 %v952_v46, %v1376_v1  ;;  %v1171_v34 = vld [vmem:[#allocation2 + $0xf0] sm:$0xff]  }
  0x6e   :  { %v1090_v53 = vpack.c.bf16 %v365_v43, %v364_v40  ;;  %v367_v55 = vmax.f32 %v303_v45, 0.0  ;;  %1192 = vst [vmem:[#allocation8 + $0xa0] sm:$0xff] %v1085_v48   ;;  %v305_v57 = vadd.f32 %v1378_v7, %v234_v49  ;;  %v956_v60 = vunpack.c.l.bf16 %v1166_v47 }
  0x6f   :  { %v368_v58 = vmax.f32 %v304_v50, 0.0  ;;  %v236_v59 = vmul.f32 %v953_v51, %v1376_v1  ;;  %v306_v63 = vadd.f32 %v1378_v7, %v235_v56  ;;  %v957_v0 = vunpack.c.h.bf16 %v1166_v47 }
  0x70   :  { %1193 = vst [vmem:[#allocation8 + $0xa8] sm:$0xff] %v1090_v53   ;;  %v1095_v62 = vpack.c.bf16 %v367_v55, %v366_v54  ;;  %v960_v2 = vunpack.c.l.bf16 %v1167_v52  ;;  %v369_v3 = vmax.f32 %v305_v57, 0.0  ;;  %v237_v5 = vmul.f32 %v956_v60, %v1376_v1 }
  0x71   :  { %v307_v4 = vadd.f32 %v1378_v7, %v236_v59  ;;  %v961_v6 = vunpack.c.h.bf16 %v1167_v52  ;;  %v370_v8 = vmax.f32 %v306_v63, 0.0  ;;  %v238_v9 = vmul.f32 %v957_v0, %v1376_v1 }
  0x72   :  { %1194 = vst [vmem:[#allocation8 + $0xb0] sm:$0xff] %v1095_v62   ;;  %v239_v10 = vmul.f32 %v960_v2, %v1376_v1  ;;  %v964_v11 = vunpack.c.l.bf16 %v1168_v61  ;;  %v1100_v13 = vpack.c.bf16 %v369_v3, %v368_v58  ;;  %v308_v15 = vadd.f32 %v1378_v7, %v237_v5 }
  0x73   :  { %v371_v14 = vmax.f32 %v307_v4, 0.0  ;;  %v240_v16 = vmul.f32 %v961_v6, %v1376_v1  ;;  %v309_v17 = vadd.f32 %v1378_v7, %v238_v9  ;;  %v965_v19 = vunpack.c.h.bf16 %v1168_v61 }
  0x74   :  { %v310_v18 = vadd.f32 %v1378_v7, %v239_v10  ;;  %v241_v20 = vmul.f32 %v964_v11, %v1376_v1  ;;  %1195 = vst [vmem:[#allocation8 + $0xb8] sm:$0xff] %v1100_v13   ;;  %v372_v23 = vmax.f32 %v308_v15, 0.0  ;;  %v968_v25 = vunpack.c.l.bf16 %v1169_v12 }
  0x75   :  { %v1105_v22 = vpack.c.bf16 %v371_v14, %v370_v8  ;;  %v311_v24 = vadd.f32 %v1378_v7, %v240_v16  ;;  %v373_v26 = vmax.f32 %v309_v17, 0.0  ;;  %v242_v28 = vmul.f32 %v965_v19, %v1376_v1 }
  0x76   :  { %v374_v27 = vmax.f32 %v310_v18, 0.0  ;;  %v312_v29 = vadd.f32 %v1378_v7, %v241_v20  ;;  %v969_v31 = vunpack.c.h.bf16 %v1169_v12  ;;  %v243_v32 = vmul.f32 %v968_v25, %v1376_v1 }
  0x77   :  { %1196 = vst [vmem:[#allocation8 + $0xc0] sm:$0xff] %v1105_v22   ;;  %v375_v30 = vmax.f32 %v311_v24, 0.0  ;;  %v972_v33 = vunpack.c.l.bf16 %v1170_v21  ;;  %v1110_v35 = vpack.c.bf16 %v373_v26, %v372_v23  ;;  %v313_v36 = vadd.f32 %v1378_v7, %v242_v28 }
  0x78   :  { %v376_v37 = vmax.f32 %v312_v29, 0.0  ;;  %v973_v38 = vunpack.c.h.bf16 %v1170_v21  ;;  %v244_v41 = vmul.f32 %v969_v31, %v1376_v1  ;;  %v314_v42 = vadd.f32 %v1378_v7, %v243_v32 }
  0x79   :  { %v1115_v40 = vpack.c.bf16 %v375_v30, %v374_v27  ;;  %v245_v43 = vmul.f32 %v972_v33, %v1376_v1  ;;  %1197 = vst [vmem:[#allocation8 + $0xc8] sm:$0xff] %v1110_v35   ;;  %v377_v44 = vmax.f32 %v313_v36, 0.0  ;;  %v976_v46 = vunpack.c.l.bf16 %v1171_v34 }
  0x7a   :  { %v246_v45 = vmul.f32 %v973_v38, %v1376_v1  ;;  %v977_v47 = vunpack.c.h.bf16 %v1171_v34  ;;  %v315_v48 = vadd.f32 %v1378_v7, %v244_v41  ;;  %v378_v49 = vmax.f32 %v314_v42, 0.0 }
  0x7b   :  { %1198 = vst [vmem:[#allocation8 + $0xd0] sm:$0xff] %v1115_v40   ;;  %v316_v50 = vadd.f32 %v1378_v7, %v245_v43  ;;  %v980_v51 = vunpack.c.l.bf16 %v1172_v39  ;;  %v1120_v52 = vpack.c.bf16 %v377_v44, %v376_v37  ;;  %v247_v54 = vmul.f32 %v976_v46, %v1376_v1 }
  0x7c   :  { %v317_v53 = vadd.f32 %v1378_v7, %v246_v45  ;;  %v248_v55 = vmul.f32 %v977_v47, %v1376_v1  ;;  %v379_v56 = vmax.f32 %v315_v48, 0.0  ;;  %v981_v58 = vunpack.c.h.bf16 %v1172_v39 }
  0x7d   :  { %v380_v57 = vmax.f32 %v316_v50, 0.0  ;;  %v249_v59 = vmul.f32 %v980_v51, %v1376_v1  ;;  %1199 = vst [vmem:[#allocation8 + $0xd8] sm:$0xff] %v1120_v52   ;;  %v318_v61 = vadd.f32 %v1378_v7, %v247_v54 }
  0x7e   :  { %v381_v60 = vmax.f32 %v317_v53, 0.0  ;;  %v319_v62 = vadd.f32 %v1378_v7, %v248_v55  ;;  %v1125_v63 = vpack.c.bf16 %v379_v56, %v378_v49  ;;  %v250_v0 = vmul.f32 %v981_v58, %v1376_v1 }
  0x7f   :  { %v320_v2 = vadd.f32 %v1378_v7, %v249_v59  ;;  %v382_v4 = vmax.f32 %v318_v61, 0.0 }
  0x80   :  { %v1130_v3 = vpack.c.bf16 %v381_v60, %v380_v57  ;;  %v383_v5 = vmax.f32 %v319_v62, 0.0  ;;  %1200 = vst [vmem:[#allocation8 + $0xe0] sm:$0xff] %v1125_v63   ;;  %v321_v6 = vadd.f32 %v1378_v7, %v250_v0 }
  0x81   :  { %v384_v8 = vmax.f32 %v320_v2, 0.0 }
  0x82   :  { %1201 = vst [vmem:[#allocation8 + $0xe8] sm:$0xff] %v1130_v3   ;;  %v1135_v9 = vpack.c.bf16 %v383_v5, %v382_v4  ;;  %v385_v10 = vmax.f32 %v321_v6, 0.0 }
  0x84   :  { %1202 = vst [vmem:[#allocation8 + $0xf0] sm:$0xff] %v1135_v9   ;;  %v1140_v11 = vpack.c.bf16 %v385_v10, %v384_v8 }
  0x86   :  { %1203 = vst [vmem:[#allocation8 + $0xf8] sm:$0xff] %v1140_v11  }
  0x87   :  { %1287 = shalt.err (!%p1284_p0)
}
  0x88   :  { %s1288_s27 = scalar_lea.hbm %s1526_s3, 4096 }
  0x89   :  { %p1289_p1 = scmp.ne.s32.totalorder %s1526_s3, %s1288_s27  ;;  %p1292_p2 = scmp.lt.u32.totalorder %s1288_s27, %s1526_s3 }
  0x8b   :  { %p1294_p3 = pnand %p1292_p2, %p1289_p1 }
  0x8d   :  { %1297 = shalt.err (!%p1294_p3)
}
  0x8e   :  { %717 = dma.vmem_to_hbm [thread:$0]  %s712_s23, 4096, %s1526_s3, [#allocation4], %s1306_s1, %s1306_s1, %s1307_s8  }
  0x8f   :  { %1302 = dma.done.wait [#allocation4], 4096  }
  0x90   :  { %1303 = vsyncadd [#allocation4], 4294963200 }
  0x91   :  { %721 = vsyncpa [#allocation3], 1 }
  0x92   :  { %722 = vsyncpa [#allocation6], 1 }
  0x93   :  { %723 = vsyncpa [#allocation4], 1 }

// kernel: _lambda_.25
= control target key start
LH: loop header
LB: loop body
LE: loop exit
PB: predicated region body
PF: predicated region fallthrough
CT: control target
= control target key end

     0   :  { %10 = vsyncpa [#allocation4], 0  ;;  %s3472_s0 = inlined_call_operand.hbm [shape: bf16[512,256], index: 0, kind: input, shape index: {}]   ;;  %s3473_s1 = inlined_call_operand.hbm [shape: bf16[256,128], index: 1, kind: input, shape index: {}]   ;;  %s3474_s2 = inlined_call_operand.hbm [shape: f32[1,128], index: 2, kind: input, shape index: {}]   ;;  %s3475_s3 = inlined_call_operand.hbm [shape: bf16[512,128], index: 3, kind: output, shape index: {0}]   ;;  %s3476_s4 = inlined_call_operand.hbm [shape: f32[8,128], index: 4, kind: output, shape index: {1}]  }
   0x1   :  { %11 = vsyncpa [#allocation7], 0 }
   0x2   :  { %12 = vsyncpa [#allocation5], 0 }
   0x3   :  { %13 = vsyncpa [#allocation11], 0  ;;  %s2932_s15 = smov [#allocation6]   ;;  %s2814_s19 = scalar_lea.hbm %s3473_s1, 2048 }
   0x4   :  { %s31_s16 = sshll.u32 %s2932_s15, 4  ;;  %p2815_p0 = scmp.ne.s32.totalorder %s3473_s1, %s2814_s19  ;;  %s32_s16 = int_to_ptr.vmem [resolvable:$true] %s31_s16 }
   0x5   :  { %p2818_p1 = scmp.lt.u32.totalorder %s2814_s19, %s3473_s1 }
   0x7   :  { %p2820_p2 = pnand %p2818_p1, %p2815_p0 }
   0x9   :  { %2823 = shalt.err (!%p2820_p2)
}
   0xa   :  { %s2824_s24 = scalar_lea.vmem %s32_s16, 2048  ;;  %p2829_p4 = scmp.lt.s32.totalorder %s32_s16, %s32_s16 }
   0xb   :  { %p2825_p3 = scmp.ne.s32.totalorder %s32_s16, %s2824_s24  ;;  %p2830_p5 = scmp.lt.s32.totalorder %s2824_s24, %s2824_s24 }
   0xd   :  { %p2831_p6 = por %p2830_p5, %p2829_p4 }
   0xf   :  { %p2832_p7 = pnand %p2831_p6, %p2825_p3 }
  0x11   :  { %2835 = shalt.err (!%p2832_p7)
}
  0x12   :  { %s2933_s25 = smov 64   ;;  %s2934_s26 = smov 4  }
  0x13   :  { %37 = dma.hbm_to_vmem [thread:$0]  %s3473_s1, 2048, %s32_s16, [#allocation7], %s2933_s25, %s2933_s25, %s2934_s26  }
  0x14   :  { %s2935_s29 = smov [#allocation3]   ;;  %s2836_s7 = scalar_lea.hbm %s3472_s0, 8192 }
  0x15   :  { %s19_s30 = sshll.u32 %s2935_s29, 4  ;;  %p2837_p8 = scmp.ne.s32.totalorder %s3472_s0, %s2836_s7  ;;  %s20_s30 = int_to_ptr.vmem [resolvable:$true] %s19_s30 }
  0x16   :  { %p2840_p9 = scmp.lt.u32.totalorder %s2836_s7, %s3472_s0 }
  0x18   :  { %p2842_p10 = pnand %p2840_p9, %p2837_p8 }
  0x1a   :  { %2845 = shalt.err (!%p2842_p10)
}
  0x1b   :  { %s2846_s12 = scalar_lea.vmem %s20_s30, 8192  ;;  %p2851_p12 = scmp.lt.s32.totalorder %s20_s30, %s20_s30 }
  0x1c   :  { %p2847_p11 = scmp.ne.s32.totalorder %s20_s30, %s2846_s12  ;;  %p2852_p13 = scmp.lt.s32.totalorder %s2846_s12, %s2846_s12 }
  0x1e   :  { %p2853_p0 = por %p2852_p13, %p2851_p12 }
  0x20   :  { %p2854_p1 = pnand %p2853_p0, %p2847_p11 }
  0x22   :  { %2857 = shalt.err (!%p2854_p1)
}
  0x23   :  { %s2936_s1 = smov 128   ;;  %s2937_s13 = smov 8  }
  0x24   :  { %25 = dma.hbm_to_vmem [thread:$0]  %s3472_s0, 8192, %s20_s30, [#allocation4], %s2936_s1, %s2936_s1, %s2937_s13  }
  0x25   :  { %s2938_s16 = smov [#allocation8]   ;;  %s2858_s20 = scalar_lea.hbm %s3474_s2, 16 }
  0x26   :  { %s44_s17 = sshll.u32 %s2938_s16, 4  ;;  %p2859_p2 = scmp.ne.s32.totalorder %s3474_s2, %s2858_s20  ;;  %s45_s17 = int_to_ptr.vmem [resolvable:$true] %s44_s17 }
  0x27   :  { %p2862_p3 = scmp.lt.u32.totalorder %s2858_s20, %s3474_s2 }
  0x29   :  { %p2864_p4 = pnand %p2862_p3, %p2859_p2 }
  0x2b   :  { %2867 = shalt.err (!%p2864_p4)
}
  0x2c   :  { %s2868_s27 = scalar_lea.vmem %s45_s17, 16  ;;  %s2872_s0 = scalar_lea.vmem %s45_s17, 32 }
  0x2d   :  { %p2869_p5 = scmp.ne.s32.totalorder %s45_s17, %s2868_s27  ;;  %p2873_p6 = scmp.lt.s32.totalorder %s45_s17, %s45_s17 }
  0x2e   :  { %p2874_p7 = scmp.lt.s32.totalorder %s2872_s0, %s2868_s27 }
  0x30   :  { %p2875_p8 = por %p2874_p7, %p2873_p6 }
  0x32   :  { %p2876_p9 = pnand %p2875_p8, %p2869_p5 }
  0x34   :  { %2879 = shalt.err (!%p2876_p9)
}
  0x35   :  { %47 = dma.hbm_to_vmem [thread:$0]  %s3474_s2, 16, %s45_s17, [#allocation7]  }
  0x36   :  { %2924 = dma.done.wait [#allocation4], 8192  }
  0x37   :  { %2925 = vsyncadd [#allocation4], 4294959104 }
  0x38   :  { %2926 = dma.done.wait [#allocation7], 2064  }
  0x39   :  { %2927 = vsyncadd [#allocation7], 4294965232  ;;  %v2939_v0 = vmov 0   ;;  %v2702_v1 = vld [vmem:[#allocation6] sm:$0xff]   ;;  %v2703_v2 = vld [vmem:[#allocation6 + $0x8] sm:$0xff]   ;;  %s2941_s2 = smov [#allocation9]  }
  0x3a   :  { %702 = vmatprep.subr.bf16.mxu0 %v2939_v0  ;;  %2659 = vmatprep.subr.bf16.mxu1 %v2939_v0  ;;  %v2704_v3 = vld [vmem:[#allocation6 + $0x10] sm:$0xff]   ;;  %v2705_v4 = vld [vmem:[#allocation6 + $0x18] sm:$0xff]   ;;  %v2706_v5 = vld [vmem:[#allocation6 + $0x20] sm:$0xff]   ;;  %s1964_s30 = sshll.u32 %s2941_s2, 4  ;;  %s1965_s30 = int_to_ptr.vmem [resolvable:$true] %s1964_s30 }
  0x3b   :  { %703 = vmatpush1.bf16.msra.mxu0 %v2702_v1  ;;  %2675 = vmatpush1.bf16.msra.mxu1 %v2702_v1  ;;  %v2720_v6 = vld [vmem:[#allocation3 + $0x4] ss:$8 sps:$4 sm:$0xff]   ;;  %v2708_v8 = vld [vmem:[#allocation6 + $0x30] sm:$0xff]   ;;  %v2709_v9 = vld [vmem:[#allocation6 + $0x38] sm:$0xff]   ;;  %s2880_s5 = scalar_lea.vmem %s1965_s30, 4096  ;;  %p2885_p11 = scmp.lt.s32.totalorder %s1965_s30, %s1965_s30 }
  0x3c   :  { %704 = vmatprep.subr.bf16.mxu0 %v2939_v0  ;;  %2660 = vmatprep.subr.bf16.mxu1 %v2939_v0  ;;  %v2707_v7 = vld [vmem:[#allocation6 + $0x28] sm:$0xff]   ;;  %v2710_v10 = vld [vmem:[#allocation6 + $0x40] sm:$0xff]   ;;  %v2712_v12 = vld [vmem:[#allocation6 + $0x50] sm:$0xff]   ;;  %p2881_p10 = scmp.ne.s32.totalorder %s1965_s30, %s2880_s5  ;;  %p2886_p12 = scmp.lt.s32.totalorder %s2880_s5, %s2880_s5 }
  0x3d   :  { %734 = vmatprep.mubr.bf16.mxu0 %v2720_v6  ;;  %v2711_v11 = vld [vmem:[#allocation6 + $0x48] sm:$0xff]   ;;  %v2713_v13 = vld [vmem:[#allocation6 + $0x58] sm:$0xff]   ;;  %v2714_v15 = vld [vmem:[#allocation6 + $0x60] sm:$0xff]  }
  0x3e   :  { %v2764_v14 = vld [vmem:[#allocation3 + $0x174] ss:$8 sps:$4 sm:$0xff]   ;;  %v2715_v16 = vld [vmem:[#allocation6 + $0x68] sm:$0xff]   ;;  %v2762_v20 = vld [vmem:[#allocation3 + $0x170] ss:$8 sps:$4 sm:$0xff]   ;;  %p2887_p13 = por %p2886_p12, %p2885_p11 }
  0x3f   :  { %705 = vmatpush1.bf16.msra.mxu0 %v2703_v2  ;;  %2676 = vmatpush1.bf16.msra.mxu1 %v2703_v2  ;;  %v2716_v17 = vld [vmem:[#allocation6 + $0x70] sm:$0xff]   ;;  %v2717_v18 = vld [vmem:[#allocation6 + $0x78] sm:$0xff]   ;;  %v2718_v19 = vld [vmem:[#allocation3] ss:$8 sps:$4 sm:$0xff]  }
  0x40   :  { %706 = vmatprep.subr.bf16.mxu0 %v2939_v0  ;;  %2661 = vmatprep.subr.bf16.mxu1 %v2939_v0  ;;  %v2721_v21 = vld [vmem:[#allocation3 + $0x14] ss:$8 sps:$4 sm:$0xff]   ;;  %v2768_v22 = vld [vmem:[#allocation3 + $0x184] ss:$8 sps:$4 sm:$0xff]   ;;  %v2723_v23 = vld [vmem:[#allocation3 + $0x10] ss:$8 sps:$4 sm:$0xff]   ;;  %p2888_p0 = pnand %p2887_p13, %p2881_p10 }
  0x41   :  { %918 = vmatprep.mubr.bf16.mxu1 %v2764_v14  ;;  %v2771_v24 = vld [vmem:[#allocation3 + $0x180] ss:$8 sps:$4 sm:$0xff]   ;;  %v2724_v25 = vld [vmem:[#allocation3 + $0x24] ss:$8 sps:$4 sm:$0xff]   ;;  %v2774_v26 = vld [vmem:[#allocation3 + $0x194] ss:$8 sps:$4 sm:$0xff]  }
  0x42   :  { %v2726_v27 = vld [vmem:[#allocation3 + $0x20] ss:$8 sps:$4 sm:$0xff]   ;;  %v2777_v28 = vld [vmem:[#allocation3 + $0x190] ss:$8 sps:$4 sm:$0xff]   ;;  %v2727_v29 = vld [vmem:[#allocation3 + $0x34] ss:$8 sps:$4 sm:$0xff]  }
  0x43   :  { %707 = vmatpush1.bf16.msra.mxu0 %v2704_v3  ;;  %2677 = vmatpush1.bf16.msra.mxu1 %v2704_v3  ;;  %v2780_v30 = vld [vmem:[#allocation3 + $0x1a4] ss:$8 sps:$4 sm:$0xff]   ;;  %v2729_v31 = vld [vmem:[#allocation3 + $0x30] ss:$8 sps:$4 sm:$0xff]   ;;  %v2783_v32 = vld [vmem:[#allocation3 + $0x1a0] ss:$8 sps:$4 sm:$0xff]  }
  0x44   :  { %708 = vmatprep.subr.bf16.mxu0 %v2939_v0  ;;  %2662 = vmatprep.subr.bf16.mxu1 %v2939_v0  ;;  %v2730_v33 = vld [vmem:[#allocation3 + $0x44] ss:$8 sps:$4 sm:$0xff]   ;;  %v2786_v34 = vld [vmem:[#allocation3 + $0x1b4] ss:$8 sps:$4 sm:$0xff]   ;;  %v2732_v35 = vld [vmem:[#allocation3 + $0x40] ss:$8 sps:$4 sm:$0xff]  }
  0x45   :  { %v2789_v36 = vld [vmem:[#allocation3 + $0x1b0] ss:$8 sps:$4 sm:$0xff]   ;;  %v2733_v37 = vld [vmem:[#allocation3 + $0x54] ss:$8 sps:$4 sm:$0xff]   ;;  %v2792_v38 = vld [vmem:[#allocation3 + $0x1c4] ss:$8 sps:$4 sm:$0xff]  }
  0x46   :  { %v2735_v39 = vld [vmem:[#allocation3 + $0x50] ss:$8 sps:$4 sm:$0xff]   ;;  %v2795_v40 = vld [vmem:[#allocation3 + $0x1c0] ss:$8 sps:$4 sm:$0xff]   ;;  %v2736_v41 = vld [vmem:[#allocation3 + $0x64] ss:$8 sps:$4 sm:$0xff]  }
  0x47   :  { %709 = vmatpush1.bf16.msra.mxu0 %v2705_v4  ;;  %2678 = vmatpush1.bf16.msra.mxu1 %v2705_v4  ;;  %v2798_v42 = vld [vmem:[#allocation3 + $0x1d4] ss:$8 sps:$4 sm:$0xff]   ;;  %v2738_v43 = vld [vmem:[#allocation3 + $0x60] ss:$8 sps:$4 sm:$0xff]   ;;  %v2801_v44 = vld [vmem:[#allocation3 + $0x1d0] ss:$8 sps:$4 sm:$0xff]  }
  0x48   :  { %710 = vmatprep.subr.bf16.mxu0 %v2939_v0  ;;  %2663 = vmatprep.subr.bf16.mxu1 %v2939_v0  ;;  %v2739_v45 = vld [vmem:[#allocation3 + $0x74] ss:$8 sps:$4 sm:$0xff]   ;;  %v2804_v46 = vld [vmem:[#allocation3 + $0x1e4] ss:$8 sps:$4 sm:$0xff]   ;;  %v2741_v47 = vld [vmem:[#allocation3 + $0x70] ss:$8 sps:$4 sm:$0xff]  }
  0x49   :  { %v2807_v48 = vld [vmem:[#allocation3 + $0x1e0] ss:$8 sps:$4 sm:$0xff]   ;;  %v2742_v49 = vld [vmem:[#allocation3 + $0x84] ss:$8 sps:$4 sm:$0xff]   ;;  %v2810_v50 = vld [vmem:[#allocation3 + $0x1f4] ss:$8 sps:$4 sm:$0xff]  }
  0x4a   :  { %v2744_v51 = vld [vmem:[#allocation3 + $0x80] ss:$8 sps:$4 sm:$0xff]   ;;  %v2813_v52 = vld [vmem:[#allocation3 + $0x1f0] ss:$8 sps:$4 sm:$0xff]   ;;  %v2745_v53 = vld [vmem:[#allocation3 + $0x94] ss:$8 sps:$4 sm:$0xff]  }
  0x4b   :  { %711 = vmatpush1.bf16.msra.mxu0 %v2706_v5  ;;  %2679 = vmatpush1.bf16.msra.mxu1 %v2706_v5  ;;  %v2747_v54 = vld [vmem:[#allocation3 + $0x90] ss:$8 sps:$4 sm:$0xff]   ;;  %v2748_v55 = vld [vmem:[#allocation3 + $0xa4] ss:$8 sps:$4 sm:$0xff]   ;;  %v2750_v56 = vld [vmem:[#allocation3 + $0xa0] ss:$8 sps:$4 sm:$0xff]  }
  0x4c   :  { %712 = vmatprep.subr.bf16.mxu0 %v2939_v0  ;;  %2664 = vmatprep.subr.bf16.mxu1 %v2939_v0  ;;  %v2751_v57 = vld [vmem:[#allocation3 + $0xb4] ss:$8 sps:$4 sm:$0xff]   ;;  %v2753_v58 = vld [vmem:[#allocation3 + $0xb0] ss:$8 sps:$4 sm:$0xff]   ;;  %v2754_v59 = vld [vmem:[#allocation3 + $0xc4] ss:$8 sps:$4 sm:$0xff]  }
  0x4d   :  { %v2756_v60 = vld [vmem:[#allocation3 + $0xc0] ss:$8 sps:$4 sm:$0xff]   ;;  %v2757_v61 = vld [vmem:[#allocation3 + $0xd4] ss:$8 sps:$4 sm:$0xff]   ;;  %v2759_v62 = vld [vmem:[#allocation3 + $0xd0] ss:$8 sps:$4 sm:$0xff]  }
  0x4e   :  { %v2760_v63 = vld [vmem:[#allocation3 + $0xe4] ss:$8 sps:$4 sm:$0xff]   ;;  %v2766_v1 = vld [vmem:[#allocation3 + $0xf4] ss:$8 sps:$4 sm:$0xff]   ;;  %v2770_v2 = vld [vmem:[#allocation3 + $0xf0] ss:$8 sps:$4 sm:$0xff]  }
  0x4f   :  { %713 = vmatpush1.bf16.msra.mxu0 %v2707_v7  ;;  %2680 = vmatpush1.bf16.msra.mxu1 %v2707_v7  ;;  %v2772_v3 = vld [vmem:[#allocation3 + $0x104] ss:$8 sps:$4 sm:$0xff]   ;;  %v2776_v4 = vld [vmem:[#allocation3 + $0x100] ss:$8 sps:$4 sm:$0xff]   ;;  %v2778_v5 = vld [vmem:[#allocation3 + $0x114] ss:$8 sps:$4 sm:$0xff]  }
  0x50   :  { %714 = vmatprep.subr.bf16.mxu0 %v2939_v0  ;;  %2665 = vmatprep.subr.bf16.mxu1 %v2939_v0  ;;  %v2782_v6 = vld [vmem:[#allocation3 + $0x110] ss:$8 sps:$4 sm:$0xff]   ;;  %v2784_v7 = vld [vmem:[#allocation3 + $0x124] ss:$8 sps:$4 sm:$0xff]  }
  0x51   :  { %v2806_v14 = vld [vmem:[#allocation3 + $0x150] ss:$8 sps:$4 sm:$0xff]  }
  0x53   :  { %715 = vmatpush1.bf16.msra.mxu0 %v2708_v8  ;;  %2681 = vmatpush1.bf16.msra.mxu1 %v2708_v8  ;;  %v2788_v8 = vld [vmem:[#allocation3 + $0x120] ss:$8 sps:$4 sm:$0xff]  }
  0x54   :  { %716 = vmatprep.subr.bf16.mxu0 %v2939_v0  ;;  %2666 = vmatprep.subr.bf16.mxu1 %v2939_v0 }
  0x57   :  { %717 = vmatpush1.bf16.msra.mxu0 %v2709_v9  ;;  %2682 = vmatpush1.bf16.msra.mxu1 %v2709_v9  ;;  %v2790_v9 = vld [vmem:[#allocation3 + $0x134] ss:$8 sps:$4 sm:$0xff]  }
  0x58   :  { %718 = vmatprep.subr.bf16.mxu0 %v2939_v0  ;;  %2667 = vmatprep.subr.bf16.mxu1 %v2939_v0 }
  0x5b   :  { %719 = vmatpush1.bf16.msra.mxu0 %v2710_v10  ;;  %2683 = vmatpush1.bf16.msra.mxu1 %v2710_v10  ;;  %v2794_v10 = vld [vmem:[#allocation3 + $0x130] ss:$8 sps:$4 sm:$0xff]  }
  0x5c   :  { %720 = vmatprep.subr.bf16.mxu0 %v2939_v0  ;;  %2668 = vmatprep.subr.bf16.mxu1 %v2939_v0 }
  0x5f   :  { %721 = vmatpush1.bf16.msra.mxu0 %v2711_v11  ;;  %2684 = vmatpush1.bf16.msra.mxu1 %v2711_v11  ;;  %v2796_v11 = vld [vmem:[#allocation3 + $0x144] ss:$8 sps:$4 sm:$0xff]  }
  0x60   :  { %722 = vmatprep.subr.bf16.mxu0 %v2939_v0  ;;  %2669 = vmatprep.subr.bf16.mxu1 %v2939_v0 }
  0x63   :  { %723 = vmatpush1.bf16.msra.mxu0 %v2712_v12  ;;  %2685 = vmatpush1.bf16.msra.mxu1 %v2712_v12  ;;  %v2800_v12 = vld [vmem:[#allocation3 + $0x140] ss:$8 sps:$4 sm:$0xff]  }
  0x64   :  { %724 = vmatprep.subr.bf16.mxu0 %v2939_v0  ;;  %2670 = vmatprep.subr.bf16.mxu1 %v2939_v0 }
  0x67   :  { %725 = vmatpush1.bf16.msra.mxu0 %v2713_v13  ;;  %2686 = vmatpush1.bf16.msra.mxu1 %v2713_v13  ;;  %v2802_v13 = vld [vmem:[#allocation3 + $0x154] ss:$8 sps:$4 sm:$0xff]  }
  0x68   :  { %726 = vmatprep.subr.bf16.mxu0 %v2939_v0  ;;  %2671 = vmatprep.subr.bf16.mxu1 %v2939_v0 }
  0x6b   :  { %727 = vmatpush1.bf16.msra.mxu0 %v2714_v15  ;;  %2687 = vmatpush1.bf16.msra.mxu1 %v2714_v15  ;;  %v2808_v15 = vld [vmem:[#allocation3 + $0x164] ss:$8 sps:$4 sm:$0xff]  }
  0x6c   :  { %728 = vmatprep.subr.bf16.mxu0 %v2939_v0  ;;  %2672 = vmatprep.subr.bf16.mxu1 %v2939_v0 }
  0x6f   :  { %729 = vmatpush1.bf16.msra.mxu0 %v2715_v16  ;;  %2688 = vmatpush1.bf16.msra.mxu1 %v2715_v16  ;;  %v2812_v16 = vld [vmem:[#allocation3 + $0x160] ss:$8 sps:$4 sm:$0xff]  }
  0x70   :  { %730 = vmatprep.subr.bf16.mxu0 %v2939_v0  ;;  %2673 = vmatprep.subr.bf16.mxu1 %v2939_v0 }
  0x73   :  { %731 = vmatpush1.bf16.msra.mxu0 %v2716_v17  ;;  %2689 = vmatpush1.bf16.msra.mxu1 %v2716_v17  ;;  %v3039_v17 = vld [vmem:[#allocation8] ss:$0 sm:$0xff] }
  0x74   :  { %732 = vmatprep.subr.bf16.mxu0 %v2939_v0  ;;  %2674 = vmatprep.subr.bf16.mxu1 %v2939_v0  ;;  %v2765_v0 = vld [vmem:[#allocation3 + $0xe0] ss:$8 sps:$4 sm:$0xff]  }
  0x77   :  { %733 = vmatpush1.bf16.msra.mxu0 %v2717_v18  ;;  %2690 = vmatpush1.bf16.msra.mxu1 %v2717_v18 }
  0x7a   :  { %735 = vmatmul.mubr.bf16.vlgmr.msra.gmra.mrb[0].mxu0 %v2718_v19  ;;  %919 = vmatmul.mubr.bf16.vlgmr.msra.gmra.mrb[0].mxu1 %v2762_v20 }
  0x7b   :  { %742 = vmatprep.mubr.bf16.mxu0 %v2721_v21  ;;  %926 = vmatprep.mubr.bf16.mxu1 %v2768_v22 }
  0x82   :  { %743 = vmatmul.mubr.bf16.gmra.mrb[4].mxu0 %v2723_v23  ;;  %927 = vmatmul.mubr.bf16.gmra.mrb[4].mxu1 %v2771_v24 }
  0x83   :  { %750 = vmatprep.mubr.bf16.mxu0 %v2724_v25  ;;  %934 = vmatprep.mubr.bf16.mxu1 %v2774_v26 }
  0x8a   :  { %751 = vmatmul.mubr.bf16.gmra.mrb[8].mxu0 %v2726_v27  ;;  %935 = vmatmul.mubr.bf16.gmra.mrb[8].mxu1 %v2777_v28 }
  0x8b   :  { %758 = vmatprep.mubr.bf16.mxu0 %v2727_v29  ;;  %942 = vmatprep.mubr.bf16.mxu1 %v2780_v30 }
  0x92   :  { %759 = vmatmul.mubr.bf16.gmra.mrb[12].mxu0 %v2729_v31  ;;  %943 = vmatmul.mubr.bf16.gmra.mrb[12].mxu1 %v2783_v32 }
  0x93   :  { %766 = vmatprep.mubr.bf16.mxu0 %v2730_v33  ;;  %950 = vmatprep.mubr.bf16.mxu1 %v2786_v34 }
  0x9a   :  { %767 = vmatmul.mubr.bf16.gmra.mrb[16].mxu0 %v2732_v35  ;;  %951 = vmatmul.mubr.bf16.gmra.mrb[16].mxu1 %v2789_v36 }
  0x9b   :  { %774 = vmatprep.mubr.bf16.mxu0 %v2733_v37  ;;  %958 = vmatprep.mubr.bf16.mxu1 %v2792_v38  ;;  %v3477_v38 = vmov 1.0  }
  0xa2   :  { %775 = vmatmul.mubr.bf16.gmra.mrb[20].mxu0 %v2735_v39  ;;  %959 = vmatmul.mubr.bf16.gmra.mrb[20].mxu1 %v2795_v40 }
  0xa3   :  { %782 = vmatprep.mubr.bf16.mxu0 %v2736_v41  ;;  %966 = vmatprep.mubr.bf16.mxu1 %v2798_v42 }
  0xaa   :  { %783 = vmatmul.mubr.bf16.gmra.mrb[24].mxu0 %v2738_v43  ;;  %967 = vmatmul.mubr.bf16.gmra.mrb[24].mxu1 %v2801_v44 }
  0xab   :  { %790 = vmatprep.mubr.bf16.mxu0 %v2739_v45  ;;  %974 = vmatprep.mubr.bf16.mxu1 %v2804_v46 }
  0xb2   :  { %791 = vmatmul.mubr.bf16.gmra.mrb[28].mxu0 %v2741_v47  ;;  %975 = vmatmul.mubr.bf16.gmra.mrb[28].mxu1 %v2807_v48 }
  0xb3   :  { %798 = vmatprep.mubr.bf16.mxu0 %v2742_v49  ;;  %982 = vmatprep.mubr.bf16.mxu1 %v2810_v50 }
  0xba   :  { %799 = vmatmul.mubr.bf16.gmra.mrb[32].mxu0 %v2744_v51  ;;  %983 = vmatmul.mubr.bf16.gmra.mrb[32].mxu1 %v2813_v52 }
  0xbb   :  { %806 = vmatprep.mubr.bf16.mxu0 %v2745_v53  ;;  %1664 = vmatprep.mubr.f32.mxu1 %v3477_v38 }
  0xc2   :  { %807 = vmatmul.mubr.bf16.gmra.mrb[36].mxu0 %v2747_v54 }
  0xc3   :  { %814 = vmatprep.mubr.bf16.mxu0 %v2748_v55 }
  0xca   :  { %815 = vmatmul.mubr.bf16.gmra.mrb[40].mxu0 %v2750_v56 }
  0xcb   :  { %822 = vmatprep.mubr.bf16.mxu0 %v2751_v57 }
  0xd2   :  { %823 = vmatmul.mubr.bf16.gmra.mrb[44].mxu0 %v2753_v58 }
  0xd3   :  { %830 = vmatprep.mubr.bf16.mxu0 %v2754_v59 }
  0xda   :  { %831 = vmatmul.mubr.bf16.gmra.mrb[48].mxu0 %v2756_v60 }
  0xdb   :  { %838 = vmatprep.mubr.bf16.mxu0 %v2757_v61 }
  0xe2   :  { %839 = vmatmul.mubr.bf16.gmra.mrb[52].mxu0 %v2759_v62 }
  0xe3   :  { %846 = vmatprep.mubr.bf16.mxu0 %v2760_v63 }
  0xea   :  { %847 = vmatmul.mubr.bf16.gmra.mrb[56].mxu0 %v2765_v0 }
  0xeb   :  { %854 = vmatprep.mubr.bf16.mxu0 %v2766_v1 }
  0xf2   :  { %855 = vmatmul.mubr.bf16.gmra.mrb[60].mxu0 %v2770_v2 }
  0xf3   :  { %862 = vmatprep.mubr.bf16.mxu0 %v2772_v3 }
  0xfa   :  { %863 = vmatmul.mubr.bf16.gmra.mrb[64].mxu0 %v2776_v4 }
  0xfb   :  { %870 = vmatprep.mubr.bf16.mxu0 %v2778_v5 }
 0x102   :  { %871 = vmatmul.mubr.bf16.gmra.mrb[68].mxu0 %v2782_v6 }
 0x103   :  { %878 = vmatprep.mubr.bf16.mxu0 %v2784_v7 }
 0x10a   :  { %879 = vmatmul.mubr.bf16.gmra.mrb[72].mxu0 %v2788_v8 }
 0x10b   :  { %886 = vmatprep.mubr.bf16.mxu0 %v2790_v9 }
 0x112   :  { %887 = vmatmul.mubr.bf16.gmra.mrb[76].mxu0 %v2794_v10 }
 0x113   :  { %894 = vmatprep.mubr.bf16.mxu0 %v2796_v11 }
 0x11a   :  { %895 = vmatmul.mubr.bf16.gmra.mrb[80].mxu0 %v2800_v12 }
 0x11b   :  { %902 = vmatprep.mubr.bf16.mxu0 %v2802_v13 }
 0x122   :  { %903 = vmatmul.mubr.bf16.gmra.mrb[84].mxu0 %v2806_v14 }
 0x123   :  { %910 = vmatprep.mubr.bf16.mxu0 %v2808_v15 }
 0x12a   :  { %911 = vmatmul.mubr.bf16.gmra.mrb[88].mxu0 %v2812_v16 }
 0x14d   :  { %v736_v18 = vpop.f32.mrb[0].mxu0  ;;  %v920_v19 = vpop.f32.mrb[0].mxu1 }
 0x14e   :  { %v1193_v20 = vadd.f32 %v3039_v17, %v736_v18  ;;  %v738_v21 = vpop.f32.mrb[1].mxu0  ;;  %v1239_v22 = vadd.f32 %v3039_v17, %v920_v19  ;;  %v922_v23 = vpop.f32.mrb[1].mxu1 }
 0x14f   :  { %v739_v24 = vpop.f32.mrb[2].mxu0  ;;  %v923_v25 = vpop.f32.mrb[2].mxu1 }
 0x150   :  { %v1194_v26 = vadd.f32 %v3039_v17, %v739_v24  ;;  %v741_v27 = vpop.f32.mrb[3].mxu0  ;;  %v3044_v28 = vmul.f32 %v1239_v22, %v1239_v22  ;;  %v1240_v29 = vadd.f32 %v3039_v17, %v923_v25  ;;  %v925_v30 = vpop.f32.mrb[3].mxu1  ;;  %v3047_v31 = vmul.f32 %v1193_v20, %v1193_v20 }
 0x152   :  { %3495 = vst [vmem:[#allocation16_spill] sm:$0xff] %v3044_v28  ;;  %v3049_v32 = vpack.c.bf16 %v1194_v26, %v1193_v20  ;;  %v3051_v33 = vmul.f32 %v1194_v26, %v1194_v26  ;;  %v3053_v34 = vpack.c.bf16 %v1240_v29, %v1239_v22  ;;  %v3055_v35 = vmul.f32 %v1240_v29, %v1240_v29 }
 0x154   :  { %3496 = vst [vmem:[#allocation17_spill] sm:$0xff] %v3055_v35  ;;  %2204 = vst [vmem:[#allocation9] sm:$0xff] %v3049_v32  }
 0x155   :  { %2382 = vst [vmem:[#allocation9 + $0xb8] sm:$0xff] %v3053_v34   ;;  %v744_v39 = vpop.f32.mrb[4].mxu0  ;;  %v928_v40 = vpop.f32.mrb[4].mxu1 }
 0x156   :  { %v1195_v41 = vadd.f32 %v3039_v17, %v744_v39  ;;  %v746_v42 = vpop.f32.mrb[5].mxu0  ;;  %v1241_v43 = vadd.f32 %v3039_v17, %v928_v40  ;;  %v930_v44 = vpop.f32.mrb[5].mxu1 }
 0x157   :  { %v747_v45 = vpop.f32.mrb[6].mxu0  ;;  %v931_v46 = vpop.f32.mrb[6].mxu1 }
 0x158   :  { %v1196_v47 = vadd.f32 %v3039_v17, %v747_v45  ;;  %v749_v48 = vpop.f32.mrb[7].mxu0  ;;  %v3067_v49 = vmul.f32 %v1241_v43, %v1241_v43  ;;  %v1242_v50 = vadd.f32 %v3039_v17, %v931_v46  ;;  %v933_v51 = vpop.f32.mrb[7].mxu1  ;;  %v3070_v52 = vmul.f32 %v1195_v41, %v1195_v41 }
 0x15a   :  { %v3072_v53 = vpack.c.bf16 %v1196_v47, %v1195_v41  ;;  %v3074_v54 = vmul.f32 %v1196_v47, %v1196_v47  ;;  %v3076_v55 = vpack.c.bf16 %v1242_v50, %v1241_v43  ;;  %v3078_v56 = vmul.f32 %v1242_v50, %v1242_v50 }
 0x15c   :  { %2360 = vst [vmem:[#allocation9 + $0x8] sm:$0xff] %v3072_v53   ;;  %2383 = vst [vmem:[#allocation9 + $0xc0] sm:$0xff] %v3076_v55  }
 0x15d   :  { %v752_v59 = vpop.f32.mrb[8].mxu0  ;;  %v936_v60 = vpop.f32.mrb[8].mxu1 }
 0x15e   :  { %v1197_v61 = vadd.f32 %v3039_v17, %v752_v59  ;;  %v754_v62 = vpop.f32.mrb[9].mxu0  ;;  %v1243_v63 = vadd.f32 %v3039_v17, %v936_v60  ;;  %v938_v0 = vpop.f32.mrb[9].mxu1 }
 0x15f   :  { %v755_v1 = vpop.f32.mrb[10].mxu0  ;;  %v939_v2 = vpop.f32.mrb[10].mxu1 }
 0x160   :  { %v1198_v3 = vadd.f32 %v3039_v17, %v755_v1  ;;  %v757_v4 = vpop.f32.mrb[11].mxu0  ;;  %v3089_v5 = vmul.f32 %v1243_v63, %v1243_v63  ;;  %v1244_v6 = vadd.f32 %v3039_v17, %v939_v2  ;;  %v941_v7 = vpop.f32.mrb[11].mxu1  ;;  %v3092_v8 = vmul.f32 %v1197_v61, %v1197_v61 }
 0x162   :  { %v3094_v9 = vpack.c.bf16 %v1198_v3, %v1197_v61  ;;  %v3096_v10 = vmul.f32 %v1198_v3, %v1198_v3  ;;  %v3098_v11 = vpack.c.bf16 %v1244_v6, %v1243_v63  ;;  %v3100_v12 = vmul.f32 %v1244_v6, %v1244_v6 }
 0x164   :  { %2361 = vst [vmem:[#allocation9 + $0x10] sm:$0xff] %v3094_v9   ;;  %2384 = vst [vmem:[#allocation9 + $0xc8] sm:$0xff] %v3098_v11  }
 0x165   :  { %v760_v15 = vpop.f32.mrb[12].mxu0  ;;  %v944_v16 = vpop.f32.mrb[12].mxu1 }
 0x166   :  { %v1199_v18 = vadd.f32 %v3039_v17, %v760_v15  ;;  %v762_v19 = vpop.f32.mrb[13].mxu0  ;;  %v1245_v20 = vadd.f32 %v3039_v17, %v944_v16  ;;  %v946_v21 = vpop.f32.mrb[13].mxu1 }
 0x167   :  { %v763_v22 = vpop.f32.mrb[14].mxu0  ;;  %v947_v23 = vpop.f32.mrb[14].mxu1 }
 0x168   :  { %v1200_v24 = vadd.f32 %v3039_v17, %v763_v22  ;;  %v765_v25 = vpop.f32.mrb[15].mxu0  ;;  %v3111_v26 = vmul.f32 %v1245_v20, %v1245_v20  ;;  %v1246_v27 = vadd.f32 %v3039_v17, %v947_v23  ;;  %v949_v29 = vpop.f32.mrb[15].mxu1  ;;  %v3114_v30 = vmul.f32 %v1199_v18, %v1199_v18 }
 0x16a   :  { %v3116_v39 = vpack.c.bf16 %v1200_v24, %v1199_v18  ;;  %v3118_v40 = vmul.f32 %v1200_v24, %v1200_v24  ;;  %v3120_v41 = vpack.c.bf16 %v1246_v27, %v1245_v20  ;;  %v3122_v42 = vmul.f32 %v1246_v27, %v1246_v27 }
 0x16c   :  { %2362 = vst [vmem:[#allocation9 + $0x18] sm:$0xff] %v3116_v39   ;;  %2385 = vst [vmem:[#allocation9 + $0xd0] sm:$0xff] %v3120_v41  }
 0x16d   :  { %v768_v45 = vpop.f32.mrb[16].mxu0  ;;  %v952_v46 = vpop.f32.mrb[16].mxu1 }
 0x16e   :  { %v1201_v47 = vadd.f32 %v3039_v17, %v768_v45  ;;  %v770_v48 = vpop.f32.mrb[17].mxu0  ;;  %v1247_v50 = vadd.f32 %v3039_v17, %v952_v46  ;;  %v954_v51 = vpop.f32.mrb[17].mxu1 }
 0x16f   :  { %v771_v59 = vpop.f32.mrb[18].mxu0  ;;  %v955_v60 = vpop.f32.mrb[18].mxu1 }
 0x170   :  { %v1202_v61 = vadd.f32 %v3039_v17, %v771_v59  ;;  %v773_v62 = vpop.f32.mrb[19].mxu0  ;;  %v3133_v63 = vmul.f32 %v1247_v50, %v1247_v50  ;;  %v1248_v0 = vadd.f32 %v3039_v17, %v955_v60  ;;  %v957_v1 = vpop.f32.mrb[19].mxu1  ;;  %v3136_v2 = vmul.f32 %v1201_v47, %v1201_v47 }
 0x172   :  { %3497 = vst [vmem:[#allocation18_spill] sm:$0xff] %v3133_v63  ;;  %v3138_v3 = vpack.c.bf16 %v1202_v61, %v1201_v47  ;;  %v3140_v4 = vmul.f32 %v1202_v61, %v1202_v61  ;;  %v3142_v6 = vpack.c.bf16 %v1248_v0, %v1247_v50  ;;  %v3144_v7 = vmul.f32 %v1248_v0, %v1248_v0 }
 0x174   :  { %3498 = vst [vmem:[#allocation19_spill] sm:$0xff] %v3144_v7  ;;  %2363 = vst [vmem:[#allocation9 + $0x20] sm:$0xff] %v3138_v3  }
 0x175   :  { %2386 = vst [vmem:[#allocation9 + $0xd8] sm:$0xff] %v3142_v6   ;;  %v776_v18 = vpop.f32.mrb[20].mxu0  ;;  %v960_v19 = vpop.f32.mrb[20].mxu1 }
 0x176   :  { %v1203_v20 = vadd.f32 %v3039_v17, %v776_v18  ;;  %v778_v21 = vpop.f32.mrb[21].mxu0  ;;  %v1249_v22 = vadd.f32 %v3039_v17, %v960_v19  ;;  %v962_v23 = vpop.f32.mrb[21].mxu1 }
 0x177   :  { %v779_v24 = vpop.f32.mrb[22].mxu0  ;;  %v963_v25 = vpop.f32.mrb[22].mxu1 }
 0x178   :  { %v1204_v27 = vadd.f32 %v3039_v17, %v779_v24  ;;  %v781_v29 = vpop.f32.mrb[23].mxu0  ;;  %v3155_v45 = vmul.f32 %v1249_v22, %v1249_v22  ;;  %v1250_v46 = vadd.f32 %v3039_v17, %v963_v25  ;;  %v965_v47 = vpop.f32.mrb[23].mxu1  ;;  %v3158_v48 = vmul.f32 %v1203_v20, %v1203_v20 }
 0x17a   :  { %3499 = vst [vmem:[#allocation20_spill] sm:$0xff] %v3155_v45  ;;  %v3160_v50 = vpack.c.bf16 %v1204_v27, %v1203_v20  ;;  %v3162_v51 = vmul.f32 %v1204_v27, %v1204_v27  ;;  %v3164_v59 = vpack.c.bf16 %v1250_v46, %v1249_v22  ;;  %v3166_v60 = vmul.f32 %v1250_v46, %v1250_v46 }
 0x17c   :  { %3500 = vst [vmem:[#allocation21_spill] sm:$0xff] %v3166_v60  ;;  %2364 = vst [vmem:[#allocation9 + $0x28] sm:$0xff] %v3160_v50  }
 0x17d   :  { %2387 = vst [vmem:[#allocation9 + $0xe0] sm:$0xff] %v3164_v59   ;;  %v784_v0 = vpop.f32.mrb[24].mxu0  ;;  %v968_v1 = vpop.f32.mrb[24].mxu1 }
 0x17e   :  { %v1205_v18 = vadd.f32 %v3039_v17, %v784_v0  ;;  %v786_v19 = vpop.f32.mrb[25].mxu0  ;;  %v1251_v20 = vadd.f32 %v3039_v17, %v968_v1  ;;  %v970_v21 = vpop.f32.mrb[25].mxu1 }
 0x17f   :  { %v787_v22 = vpop.f32.mrb[26].mxu0  ;;  %v971_v23 = vpop.f32.mrb[26].mxu1 }
 0x180   :  { %v1206_v24 = vadd.f32 %v3039_v17, %v787_v22  ;;  %v789_v25 = vpop.f32.mrb[27].mxu0  ;;  %v3177_v27 = vmul.f32 %v1251_v20, %v1251_v20  ;;  %v1252_v29 = vadd.f32 %v3039_v17, %v971_v23  ;;  %v973_v46 = vpop.f32.mrb[27].mxu1  ;;  %v3180_v47 = vmul.f32 %v1205_v18, %v1205_v18 }
 0x182   :  { %3501 = vst [vmem:[#allocation22_spill] sm:$0xff] %v3177_v27  ;;  %v3182_v37 = vpack.c.bf16 %v1206_v24, %v1205_v18  ;;  %v3184_v62 = vmul.f32 %v1206_v24, %v1206_v24  ;;  %v3186_v0 = vpack.c.bf16 %v1252_v29, %v1251_v20  ;;  %v3188_v1 = vmul.f32 %v1252_v29, %v1252_v29 }
 0x184   :  { %3502 = vst [vmem:[#allocation23_spill] sm:$0xff] %v3188_v1  ;;  %2365 = vst [vmem:[#allocation9 + $0x30] sm:$0xff] %v3182_v37  }
 0x185   :  { %2388 = vst [vmem:[#allocation9 + $0xe8] sm:$0xff] %v3186_v0   ;;  %v792_v22 = vpop.f32.mrb[28].mxu0  ;;  %v976_v23 = vpop.f32.mrb[28].mxu1 }
 0x186   :  { %v1207_v18 = vadd.f32 %v3039_v17, %v792_v22  ;;  %v794_v24 = vpop.f32.mrb[29].mxu0  ;;  %v1253_v20 = vadd.f32 %v3039_v17, %v976_v23  ;;  %v978_v25 = vpop.f32.mrb[29].mxu1 }
 0x187   :  { %v795_v29 = vpop.f32.mrb[30].mxu0  ;;  %v979_v46 = vpop.f32.mrb[30].mxu1 }
 0x188   :  { %v1208_v16 = vadd.f32 %v3039_v17, %v795_v29  ;;  %v797_v44 = vpop.f32.mrb[31].mxu0  ;;  %v3199_v14 = vmul.f32 %v1253_v20, %v1253_v20  ;;  %v1254_v58 = vadd.f32 %v3039_v17, %v979_v46  ;;  %v981_v19 = vpop.f32.mrb[31].mxu1  ;;  %v3202_v61 = vmul.f32 %v1207_v18, %v1207_v18 }
 0x18a   :  { %3503 = vst [vmem:[#allocation24_spill] sm:$0xff] %v3199_v14  ;;  %v3204_v21 = vpack.c.bf16 %v1208_v16, %v1207_v18  ;;  %v3206_v15 = vmul.f32 %v1208_v16, %v1208_v16  ;;  %v3208_v22 = vpack.c.bf16 %v1254_v58, %v1253_v20  ;;  %v3210_v23 = vmul.f32 %v1254_v58, %v1254_v58 }
 0x18c   :  { %3504 = vst [vmem:[#allocation25_spill] sm:$0xff] %v3210_v23  ;;  %2366 = vst [vmem:[#allocation9 + $0x38] sm:$0xff] %v3204_v21  }
 0x18d   :  { %2389 = vst [vmem:[#allocation9 + $0xf0] sm:$0xff] %v3208_v22   ;;  %v800_v24 = vpop.f32.mrb[32].mxu0  ;;  %v984_v25 = vpop.f32.mrb[32].mxu1 }
 0x18e   :  { %v1209_v18 = vadd.f32 %v3039_v17, %v800_v24  ;;  %v802_v16 = vpop.f32.mrb[33].mxu0  ;;  %v1255_v20 = vadd.f32 %v3039_v17, %v984_v25  ;;  %v986_v29 = vpop.f32.mrb[33].mxu1 }
 0x18f   :  { %v803_v58 = vpop.f32.mrb[34].mxu0  ;;  %v987_v46 = vpop.f32.mrb[34].mxu1 }
 0x190   :  { %v1210_v43 = vadd.f32 %v3039_v17, %v803_v58  ;;  %v805_v13 = vpop.f32.mrb[35].mxu0  ;;  %v3221_v57 = vmul.f32 %v1255_v20, %v1255_v20  ;;  %v1256_v44 = vadd.f32 %v3039_v17, %v987_v46  ;;  %v989_v36 = vpop.f32.mrb[35].mxu1  ;;  %v3224_v38 = vmul.f32 %v1209_v18, %v1209_v18 }
 0x192   :  { %3505 = vst [vmem:[#allocation26_spill] sm:$0xff] %v3221_v57  ;;  %v2243_v19 = vpack.c.bf16 %v1210_v43, %v1209_v18  ;;  %v3226_v28 = vmul.f32 %v1210_v43, %v1210_v43  ;;  %v3228_v24 = vpack.c.bf16 %v1256_v44, %v1255_v20  ;;  %v3230_v16 = vmul.f32 %v1256_v44, %v1256_v44 }
 0x194   :  { %3506 = vst [vmem:[#allocation27_spill] sm:$0xff] %v3230_v16  ;;  %2367 = vst [vmem:[#allocation9 + $0x40] sm:$0xff] %v2243_v19   ;;  %2532 = vmatprep.subr.bf16.mxu1 %v2243_v19 }
 0x195   :  { %2390 = vst [vmem:[#allocation9 + $0xf8] sm:$0xff] %v3228_v24   ;;  %v808_v36 = vpop.f32.mrb[36].mxu0  ;;  %2534 = vmatpush3.bf16.msra.mxu1 %v3049_v32 }
 0x196   :  { %v1211_v43 = vadd.f32 %v3039_v17, %v808_v36  ;;  %v810_v18 = vpop.f32.mrb[37].mxu0 }
 0x197   :  { %v811_v20 = vpop.f32.mrb[38].mxu0 }
 0x198   :  { %v1212_v44 = vadd.f32 %v3039_v17, %v811_v20  ;;  %v813_v29 = vpop.f32.mrb[39].mxu0  ;;  %v3240_v58 = vmul.f32 %v1211_v43, %v1211_v43 }
 0x19a   :  { %v2248_v19 = vpack.c.bf16 %v1212_v44, %v1211_v43  ;;  %v3242_v46 = vmul.f32 %v1212_v44, %v1212_v44 }
 0x19c   :  { %2368 = vst [vmem:[#allocation9 + $0x48] sm:$0xff] %v2248_v19   ;;  %2536 = vmatprep.subr.bf16.mxu1 %v2248_v19 }
 0x19d   :  { %v816_v13 = vpop.f32.mrb[40].mxu0  ;;  %2538 = vmatpush3.bf16.msra.mxu1 %v3072_v53 }
 0x19e   :  { %v1213_v32 = vadd.f32 %v3039_v17, %v816_v13  ;;  %v818_v36 = vpop.f32.mrb[41].mxu0 }
 0x19f   :  { %v819_v18 = vpop.f32.mrb[42].mxu0 }
 0x1a0   :  { %v1214_v20 = vadd.f32 %v3039_v17, %v819_v18  ;;  %v821_v29 = vpop.f32.mrb[43].mxu0  ;;  %v3249_v35 = vmul.f32 %v1213_v32, %v1213_v32 }
 0x1a2   :  { %v2253_v43 = vpack.c.bf16 %v1214_v20, %v1213_v32  ;;  %v3251_v44 = vmul.f32 %v1214_v20, %v1214_v20 }
 0x1a4   :  { %2369 = vst [vmem:[#allocation9 + $0x50] sm:$0xff] %v2253_v43   ;;  %2540 = vmatprep.subr.bf16.mxu1 %v2253_v43 }
 0x1a5   :  { %v824_v25 = vpop.f32.mrb[44].mxu0  ;;  %2542 = vmatpush3.bf16.msra.mxu1 %v3094_v9 }
 0x1a6   :  { %v1215_v53 = vadd.f32 %v3039_v17, %v824_v25  ;;  %v826_v13 = vpop.f32.mrb[45].mxu0 }
 0x1a7   :  { %v827_v36 = vpop.f32.mrb[46].mxu0 }
 0x1a8   :  { %v1216_v18 = vadd.f32 %v3039_v17, %v827_v36  ;;  %v829_v29 = vpop.f32.mrb[47].mxu0  ;;  %v3258_v57 = vmul.f32 %v1215_v53, %v1215_v53 }
 0x1aa   :  { %v2258_v32 = vpack.c.bf16 %v1216_v18, %v1215_v53  ;;  %v3260_v20 = vmul.f32 %v1216_v18, %v1216_v18 }
 0x1ac   :  { %2370 = vst [vmem:[#allocation9 + $0x58] sm:$0xff] %v2258_v32   ;;  %2544 = vmatprep.subr.bf16.mxu1 %v2258_v32 }
 0x1ad   :  { %v832_v19 = vpop.f32.mrb[48].mxu0  ;;  %2546 = vmatpush3.bf16.msra.mxu1 %v3116_v39 }
 0x1ae   :  { %v1217_v9 = vadd.f32 %v3039_v17, %v832_v19  ;;  %v834_v25 = vpop.f32.mrb[49].mxu0 }
 0x1af   :  { %v835_v13 = vpop.f32.mrb[50].mxu0 }
 0x1b0   :  { %v1218_v36 = vadd.f32 %v3039_v17, %v835_v13  ;;  %v837_v29 = vpop.f32.mrb[51].mxu0  ;;  %v3267_v16 = vmul.f32 %v1217_v9, %v1217_v9 }
 0x1b2   :  { %v2263_v53 = vpack.c.bf16 %v1218_v36, %v1217_v9  ;;  %v3269_v18 = vmul.f32 %v1218_v36, %v1218_v36 }
 0x1b4   :  { %2371 = vst [vmem:[#allocation9 + $0x60] sm:$0xff] %v2263_v53   ;;  %2548 = vmatprep.subr.bf16.mxu1 %v2263_v53 }
 0x1b5   :  { %v840_v43 = vpop.f32.mrb[52].mxu0  ;;  %2550 = vmatpush3.bf16.msra.mxu1 %v3138_v3 }
 0x1b6   :  { %v1219_v39 = vadd.f32 %v3039_v17, %v840_v43  ;;  %v842_v19 = vpop.f32.mrb[53].mxu0 }
 0x1b7   :  { %v843_v25 = vpop.f32.mrb[54].mxu0 }
 0x1b8   :  { %v1220_v13 = vadd.f32 %v3039_v17, %v843_v25  ;;  %v845_v29 = vpop.f32.mrb[55].mxu0  ;;  %v3276_v14 = vmul.f32 %v1219_v39, %v1219_v39 }
 0x1ba   :  { %v2268_v9 = vpack.c.bf16 %v1220_v13, %v1219_v39  ;;  %v3278_v36 = vmul.f32 %v1220_v13, %v1220_v13 }
 0x1bc   :  { %2372 = vst [vmem:[#allocation9 + $0x68] sm:$0xff] %v2268_v9   ;;  %2552 = vmatprep.subr.bf16.mxu1 %v2268_v9 }
 0x1bd   :  { %v848_v32 = vpop.f32.mrb[56].mxu0  ;;  %2554 = vmatpush3.bf16.msra.mxu1 %v3160_v50 }
 0x1be   :  { %v1221_v3 = vadd.f32 %v3039_v17, %v848_v32  ;;  %v850_v43 = vpop.f32.mrb[57].mxu0 }
 0x1bf   :  { %v851_v19 = vpop.f32.mrb[58].mxu0 }
 0x1c0   :  { %v1222_v25 = vadd.f32 %v3039_v17, %v851_v19  ;;  %v853_v29 = vpop.f32.mrb[59].mxu0  ;;  %v3285_v23 = vmul.f32 %v1221_v3, %v1221_v3 }
 0x1c2   :  { %v2273_v39 = vpack.c.bf16 %v1222_v25, %v1221_v3  ;;  %v3287_v13 = vmul.f32 %v1222_v25, %v1222_v25 }
 0x1c4   :  { %2373 = vst [vmem:[#allocation9 + $0x70] sm:$0xff] %v2273_v39   ;;  %2556 = vmatprep.subr.bf16.mxu1 %v2273_v39 }
 0x1c5   :  { %v856_v53 = vpop.f32.mrb[60].mxu0  ;;  %2558 = vmatpush3.bf16.msra.mxu1 %v3182_v37 }
 0x1c6   :  { %v1223_v50 = vadd.f32 %v3039_v17, %v856_v53  ;;  %v858_v32 = vpop.f32.mrb[61].mxu0 }
 0x1c7   :  { %v859_v43 = vpop.f32.mrb[62].mxu0 }
 0x1c8   :  { %v1224_v19 = vadd.f32 %v3039_v17, %v859_v43  ;;  %v861_v29 = vpop.f32.mrb[63].mxu0  ;;  %v3294_v27 = vmul.f32 %v1223_v50, %v1223_v50 }
 0x1ca   :  { %v2278_v3 = vpack.c.bf16 %v1224_v19, %v1223_v50  ;;  %v3296_v25 = vmul.f32 %v1224_v19, %v1224_v19  ;;  %v3507_v50 = vmov 1.0  }
 0x1cc   :  { %2374 = vst [vmem:[#allocation9 + $0x78] sm:$0xff] %v2278_v3   ;;  %2560 = vmatprep.subr.bf16.mxu1 %v2278_v3 }
 0x1cd   :  { %v864_v9 = vpop.f32.mrb[64].mxu0  ;;  %2562 = vmatpush3.bf16.msra.mxu1 %v3204_v21 }
 0x1ce   :  { %v1225_v37 = vadd.f32 %v3039_v17, %v864_v9  ;;  %v866_v53 = vpop.f32.mrb[65].mxu0  ;;  %2564 = vmatprep.subr.bf16.mxu1 %v3076_v55 }
 0x1cf   :  { %v867_v32 = vpop.f32.mrb[66].mxu0 }
 0x1d0   :  { %v1226_v43 = vadd.f32 %v3039_v17, %v867_v32  ;;  %v869_v29 = vpop.f32.mrb[67].mxu0  ;;  %1665 = vmatmul.mubr.f32.vlgmr.msra.gmra.mrb[36].mxu1 %v3507_v50  ;;  %v3306_v19 = vmul.f32 %v1225_v37, %v1225_v37 }
 0x1d1   :  { %1734 = vmatprep.mubr.f32.mxu1 %v3507_v50 }
 0x1d2   :  { %v2283_v3 = vpack.c.bf16 %v1226_v43, %v1225_v37  ;;  %v3308_v39 = vmul.f32 %v1226_v43, %v1226_v43 }
 0x1d4   :  { %2375 = vst [vmem:[#allocation9 + $0x80] sm:$0xff] %v2283_v3   ;;  %2566 = vmatpush3.bf16.msra.mxu1 %v2283_v3 }
 0x1d5   :  { %v872_v9 = vpop.f32.mrb[68].mxu0  ;;  %2568 = vmatprep.subr.bf16.mxu1 %v3098_v11 }
 0x1d6   :  { %v1227_v55 = vadd.f32 %v3039_v17, %v872_v9  ;;  %v874_v53 = vpop.f32.mrb[69].mxu0 }
 0x1d7   :  { %v875_v32 = vpop.f32.mrb[70].mxu0 }
 0x1d8   :  { %v1228_v29 = vadd.f32 %v3039_v17, %v875_v32  ;;  %v877_v1 = vpop.f32.mrb[71].mxu0  ;;  %v3315_v45 = vmul.f32 %v1227_v55, %v1227_v55 }
 0x1da   :  { %v2288_v37 = vpack.c.bf16 %v1228_v29, %v1227_v55  ;;  %v3317_v43 = vmul.f32 %v1228_v29, %v1228_v29 }
 0x1dc   :  { %2376 = vst [vmem:[#allocation9 + $0x88] sm:$0xff] %v2288_v37   ;;  %2570 = vmatpush3.bf16.msra.mxu1 %v2288_v37 }
 0x1dd   :  { %v880_v3 = vpop.f32.mrb[72].mxu0  ;;  %2572 = vmatprep.subr.bf16.mxu1 %v3120_v41 }
 0x1de   :  { %v1229_v11 = vadd.f32 %v3039_v17, %v880_v3  ;;  %v882_v9 = vpop.f32.mrb[73].mxu0 }
 0x1df   :  { %v883_v53 = vpop.f32.mrb[74].mxu0 }
 0x1e0   :  { %v1230_v32 = vadd.f32 %v3039_v17, %v883_v53  ;;  %v885_v1 = vpop.f32.mrb[75].mxu0  ;;  %v3324_v60 = vmul.f32 %v1229_v11, %v1229_v11 }
 0x1e2   :  { %3508 = vst [vmem:[#allocation28_spill] sm:$0xff] %v3324_v60  ;;  %v2293_v55 = vpack.c.bf16 %v1230_v32, %v1229_v11  ;;  %v3326_v29 = vmul.f32 %v1230_v32, %v1230_v32 }
 0x1e4   :  { %3509 = vst [vmem:[#allocation29_spill] sm:$0xff] %v3326_v29  ;;  %2377 = vst [vmem:[#allocation9 + $0x90] sm:$0xff] %v2293_v55   ;;  %2574 = vmatpush3.bf16.msra.mxu1 %v2293_v55 }
 0x1e5   :  { %v888_v37 = vpop.f32.mrb[76].mxu0  ;;  %2576 = vmatprep.subr.bf16.mxu1 %v3142_v6 }
 0x1e6   :  { %v1231_v41 = vadd.f32 %v3039_v17, %v888_v37  ;;  %v890_v3 = vpop.f32.mrb[77].mxu0 }
 0x1e7   :  { %v891_v9 = vpop.f32.mrb[78].mxu0 }
 0x1e8   :  { %v1232_v53 = vadd.f32 %v3039_v17, %v891_v9  ;;  %v893_v1 = vpop.f32.mrb[79].mxu0  ;;  %v3333_v63 = vmul.f32 %v1231_v41, %v1231_v41 }
 0x1ea   :  { %3510 = vst [vmem:[#allocation30_spill] sm:$0xff] %v3333_v63  ;;  %v2298_v11 = vpack.c.bf16 %v1232_v53, %v1231_v41  ;;  %v3335_v32 = vmul.f32 %v1232_v53, %v1232_v53 }
 0x1ec   :  { %3511 = vst [vmem:[#allocation31_spill] sm:$0xff] %v3335_v32  ;;  %2378 = vst [vmem:[#allocation9 + $0x98] sm:$0xff] %v2298_v11   ;;  %2578 = vmatpush3.bf16.msra.mxu1 %v2298_v11 }
 0x1ed   :  { %v896_v55 = vpop.f32.mrb[80].mxu0  ;;  %2580 = vmatprep.subr.bf16.mxu1 %v3164_v59 }
 0x1ee   :  { %v1233_v6 = vadd.f32 %v3039_v17, %v896_v55  ;;  %v898_v37 = vpop.f32.mrb[81].mxu0 }
 0x1ef   :  { %v899_v3 = vpop.f32.mrb[82].mxu0 }
 0x1f0   :  { %v1234_v9 = vadd.f32 %v3039_v17, %v899_v3  ;;  %v901_v1 = vpop.f32.mrb[83].mxu0  ;;  %v3342_v7 = vmul.f32 %v1233_v6, %v1233_v6 }
 0x1f2   :  { %v2303_v41 = vpack.c.bf16 %v1234_v9, %v1233_v6  ;;  %v1781_v53 = vmul.f32 %v1234_v9, %v1234_v9 }
 0x1f4   :  { %2379 = vst [vmem:[#allocation9 + $0xa0] sm:$0xff] %v2303_v41   ;;  %v2645_v60 = vpack.c.bf16 %v1781_v53, %v3342_v7  ;;  %2582 = vmatpush3.bf16.msra.mxu1 %v2303_v41 }
 0x1f5   :  { %v904_v21 = vpop.f32.mrb[84].mxu0  ;;  %2584 = vmatprep.subr.bf16.mxu1 %v3186_v0 }
 0x1f6   :  { %v1235_v59 = vadd.f32 %v3039_v17, %v904_v21  ;;  %v906_v11 = vpop.f32.mrb[85].mxu0 }
 0x1f7   :  { %v907_v55 = vpop.f32.mrb[86].mxu0 }
 0x1f8   :  { %v1236_v37 = vadd.f32 %v3039_v17, %v907_v55  ;;  %v909_v63 = vpop.f32.mrb[87].mxu0  ;;  %v1782_v3 = vmul.f32 %v1235_v59, %v1235_v59 }
 0x1fa   :  { %v2308_v1 = vpack.c.bf16 %v1236_v37, %v1235_v59  ;;  %v1783_v32 = vmul.f32 %v1236_v37, %v1236_v37 }
 0x1fc   :  { %2380 = vst [vmem:[#allocation9 + $0xa8] sm:$0xff] %v2308_v1   ;;  %v2649_v6 = vpack.c.bf16 %v1783_v32, %v1782_v3  ;;  %2586 = vmatpush3.bf16.msra.mxu1 %v2308_v1  ;;  %v3514_v32 = vpack.c.bf16 %v3242_v46, %v3240_v58  ;;  %v3548_v58 = vld [vmem:[#allocation25_spill] sm:$0xff]  ;;  %v3549_v46 = vld [vmem:[#allocation24_spill] sm:$0xff] }
 0x1fd   :  { %v912_v9 = vpop.f32.mrb[88].mxu0  ;;  %2588 = vmatprep.subr.bf16.mxu1 %v3208_v22  ;;  %v3512_v22 = vpack.c.bf16 %v3226_v28, %v3224_v38  ;;  %v3516_v28 = vpack.c.bf16 %v3251_v44, %v3249_v35  ;;  %v3520_v38 = vpack.c.bf16 %v3269_v18, %v3267_v16  ;;  %v3521_v35 = vpack.c.bf16 %v3140_v4, %v3136_v2  ;;  %v3545_v16 = vld [vmem:[#allocation23_spill] sm:$0xff]  ;;  %v3552_v18 = vld [vmem:[#allocation26_spill] sm:$0xff] }
 0x1fe   :  { %v1237_v7 = vadd.f32 %v3039_v17, %v912_v9  ;;  %v914_v41 = vpop.f32.mrb[89].mxu0  ;;  %v3530_v2 = vpack.c.bf16 %v3100_v12, %v3089_v5  ;;  %v3531_v4 = vpack.c.bf16 %v3317_v43, %v3315_v45  ;;  %v3542_v12 = vld [vmem:[#allocation21_spill] sm:$0xff]  ;;  %v3550_v44 = vpack.c.bf16 %v3548_v58, %v3549_v46 }
 0x1ff   :  { %v915_v0 = vpop.f32.mrb[90].mxu0 }
 0x200   :  { %v1238_v21 = vadd.f32 %v3039_v17, %v915_v0  ;;  %v917_v53 = vpop.f32.mrb[91].mxu0  ;;  %v1784_v11 = vmul.f32 %v1237_v7, %v1237_v7  ;;  %v3513_v17 = vpack.c.bf16 %v3051_v33, %v3047_v31  ;;  %v3518_v31 = vpack.c.bf16 %v3260_v20, %v3258_v57  ;;  %v3551_v20 = vld [vmem:[#allocation27_spill] sm:$0xff] }
 0x201   :  { %v3519_v33 = vpack.c.bf16 %v3118_v40, %v3114_v30  ;;  %v3524_v57 = vpack.c.bf16 %v3287_v13, %v3285_v23  ;;  %v3528_v30 = vpack.c.bf16 %v3078_v56, %v3067_v49  ;;  %v3529_v40 = vpack.c.bf16 %v3308_v39, %v3306_v19  ;;  %v3533_v56 = vld [vmem:[#allocation29_spill] sm:$0xff]  ;;  %v3543_v23 = vld [vmem:[#allocation20_spill] sm:$0xff] }
 0x202   :  { %v2313_v29 = vpack.c.bf16 %v1238_v21, %v1237_v7  ;;  %v1785_v55 = vmul.f32 %v1238_v21, %v1238_v21  ;;  %v3532_v49 = vpack.c.bf16 %v3122_v42, %v3111_v26  ;;  %v3544_v45 = vpack.c.bf16 %v3542_v12, %v3543_v23  ;;  %v3546_v26 = vld [vmem:[#allocation22_spill] sm:$0xff]  ;;  %v3554_v13 = vld [vmem:[#allocation17_spill] sm:$0xff] }
 0x203   :  { %v3547_v42 = vpack.c.bf16 %v3545_v16, %v3546_v26 }
 0x204   :  { %2381 = vst [vmem:[#allocation9 + $0xb0] sm:$0xff] %v2313_v29   ;;  %v2653_v63 = vpack.c.bf16 %v1785_v55, %v1784_v11  ;;  %2590 = vmatpush3.bf16.msra.mxu1 %v2313_v29 }
 0x205   :  { %2592 = vmatprep.subr.bf16.mxu1 %v3228_v24  ;;  %v3515_v24 = vpack.c.bf16 %v3074_v54, %v3070_v52  ;;  %v3522_v52 = vpack.c.bf16 %v3278_v36, %v3276_v14  ;;  %v3523_v54 = vpack.c.bf16 %v3162_v51, %v3158_v48  ;;  %v3527_v14 = vpack.c.bf16 %v3206_v15, %v3202_v61  ;;  %v3534_v15 = vld [vmem:[#allocation28_spill] sm:$0xff]  ;;  %v3536_v51 = vld [vmem:[#allocation19_spill] sm:$0xff]  ;;  %v3537_v61 = vld [vmem:[#allocation18_spill] sm:$0xff] }
 0x206   :  { %v3535_v48 = vpack.c.bf16 %v3533_v56, %v3534_v15  ;;  %v3553_v36 = vpack.c.bf16 %v3551_v20, %v3552_v18 }
 0x208   :  { %2594 = vmatpush3.bf16.msra.mxu1 %v3053_v34  ;;  %v3517_v34 = vpack.c.bf16 %v3096_v10, %v3092_v8  ;;  %v3525_v8 = vpack.c.bf16 %v3184_v62, %v3180_v47  ;;  %v3526_v10 = vpack.c.bf16 %v3296_v25, %v3294_v27  ;;  %v3538_v62 = vpack.c.bf16 %v3536_v51, %v3537_v61  ;;  %v3539_v27 = vld [vmem:[#allocation31_spill] sm:$0xff]  ;;  %v3540_v47 = vld [vmem:[#allocation30_spill] sm:$0xff]  ;;  %v3555_v25 = vld [vmem:[#allocation16_spill] sm:$0xff] }
 0x209   :  { %2596 = vmatprep.subr.bf16.mxu1 %v3512_v22  ;;  %v3541_v5 = vpack.c.bf16 %v3539_v27, %v3540_v47  ;;  %v3556_v39 = vpack.c.bf16 %v3554_v13, %v3555_v25 }
 0x20b   :  { %1735 = vmatmul.mubr.f32.vlgmr.msra.gmra.mrb[38].mxu1 %v3507_v50 }
 0x20c   :  { %2598 = vmatpush3.bf16.msra.mxu1 %v3513_v17  ;;  %1868 = vmatprep.mubr.f32.mxu1 %v3507_v50 }
 0x20d   :  { %2600 = vmatprep.subr.bf16.mxu1 %v3514_v32 }
 0x210   :  { %2602 = vmatpush3.bf16.msra.mxu1 %v3515_v24 }
 0x211   :  { %2604 = vmatprep.subr.bf16.mxu1 %v3516_v28 }
 0x214   :  { %2606 = vmatpush3.bf16.msra.mxu1 %v3517_v34 }
 0x215   :  { %2608 = vmatprep.subr.bf16.mxu1 %v3518_v31 }
 0x218   :  { %2610 = vmatpush3.bf16.msra.mxu1 %v3519_v33 }
 0x219   :  { %2612 = vmatprep.subr.bf16.mxu1 %v3520_v38 }
 0x21c   :  { %2614 = vmatpush3.bf16.msra.mxu1 %v3521_v35 }
 0x21d   :  { %2616 = vmatprep.subr.bf16.mxu1 %v3522_v52 }
 0x220   :  { %2618 = vmatpush3.bf16.msra.mxu1 %v3523_v54 }
 0x221   :  { %2620 = vmatprep.subr.bf16.mxu1 %v3524_v57 }
 0x224   :  { %2622 = vmatpush3.bf16.msra.mxu1 %v3525_v8 }
 0x225   :  { %2624 = vmatprep.subr.bf16.mxu1 %v3526_v10 }
 0x228   :  { %2626 = vmatpush3.bf16.msra.mxu1 %v3527_v14 }
 0x229   :  { %2628 = vmatprep.subr.bf16.mxu1 %v3528_v30 }
 0x22b   :  { %1869 = vmatmul.mubr.f32.vlgmr.msra.gmra.mrb[40].mxu1 %v3507_v50 }
 0x22c   :  { %2630 = vmatpush3.bf16.msra.mxu1 %v3529_v40  ;;  %1938 = vmatprep.mubr.f32.mxu1 %v3507_v50 }
 0x22d   :  { %2632 = vmatprep.subr.bf16.mxu1 %v3530_v2 }
 0x230   :  { %2634 = vmatpush3.bf16.msra.mxu1 %v3531_v4 }
 0x231   :  { %2636 = vmatprep.subr.bf16.mxu1 %v3532_v49 }
 0x234   :  { %2638 = vmatpush3.bf16.msra.mxu1 %v3535_v48 }
 0x235   :  { %2640 = vmatprep.subr.bf16.mxu1 %v3538_v62 }
 0x238   :  { %2642 = vmatpush3.bf16.msra.mxu1 %v3541_v5 }
 0x239   :  { %2644 = vmatprep.subr.bf16.mxu1 %v3544_v45 }
 0x23c   :  { %2646 = vmatpush3.bf16.msra.mxu1 %v2645_v60 }
 0x23d   :  { %2648 = vmatprep.subr.bf16.mxu1 %v3547_v42 }
 0x240   :  { %2650 = vmatpush3.bf16.msra.mxu1 %v2649_v6 }
 0x241   :  { %2652 = vmatprep.subr.bf16.mxu1 %v3550_v44 }
 0x244   :  { %2654 = vmatpush3.bf16.msra.mxu1 %v2653_v63 }
 0x245   :  { %2656 = vmatprep.subr.bf16.mxu1 %v3553_v36 }
 0x248   :  { %2658 = vmatpush3.bf16.msra.mxu1 %v3556_v39 }
 0x24b   :  { %1939 = vmatmul.mubr.f32.vlgmr.msra.gmra.mrb[42].mxu1 %v3507_v50 }
 0x2a3   :  { %v2423_v60 = vpop.f32.mrb[36].mxu1 }
 0x2a4   :  { %v2424_v19 = vpop.f32.mrb[37].mxu1 }
 0x2a5   :  { %v2425_v43 = vadd.f32 %v2424_v19, %v2423_v60 }
 0x2a6   :  { %2891 = shalt.err (!%p2888_p0)
}
 0x2a7   :  { %s2892_s8 = scalar_lea.hbm %s3475_s3, 4096 }
 0x2a8   :  { %p2893_p1 = scmp.ne.s32.totalorder %s3475_s3, %s2892_s8  ;;  %p2896_p2 = scmp.lt.u32.totalorder %s2892_s8, %s3475_s3 }
 0x2aa   :  { %p2898_p3 = pnand %p2896_p2, %p2893_p1 }
 0x2ac   :  { %2901 = shalt.err (!%p2898_p3)
}
 0x2ad   :  { %1970 = dma.vmem_to_hbm [thread:$0]  %s1965_s30, 4096, %s3475_s3, [#allocation5], %s2933_s25, %s2933_s25, %s2934_s26   ;;  %v1944_v9 = vlaneseq }
 0x2ae   :  { %s2942_s14 = smov [#allocation10]  }
 0x2af   :  { %v1945_v7 = vshrl.u32 %v1944_v9, 7  ;;  %s1977_s15 = sshll.u32 %s2942_s14, 4  ;;  %s1978_s15 = int_to_ptr.vmem [resolvable:$true] %s1977_s15 }
 0x2b0   :  { %s2902_s3 = scalar_lea.vmem %s1978_s15, 128  ;;  %p2907_p5 = scmp.lt.s32.totalorder %s1978_s15, %s1978_s15 }
 0x2b1   :  { %v1950_v53 = vsub.s32 0, %v1945_v7  ;;  %vm1947_vm0 = vcmp.eq.s32.totalorder %v1945_v7, 1  ;;  %vm1946_vm1 = vcmp.eq.s32.totalorder %v1945_v7, 0  ;;  %p2903_p4 = scmp.ne.s32.totalorder %s1978_s15, %s2902_s3  ;;  %p2908_p6 = scmp.lt.s32.totalorder %s2902_s3, %s2902_s3 }
 0x2b3   :  { %p2909_p7 = por %p2908_p6, %p2907_p5 }
 0x2b5   :  { %p2910_p8 = pnand %p2909_p7, %p2903_p4 }
 0x2de   :  { %v2458_v50 = vpop.f32.mrb[38].mxu1 }
 0x2df   :  { %v2459_v29 = vpop.f32.mrb[39].mxu1 }
 0x2e0   :  { %v2460_v59 = vadd.f32 %v2459_v29, %v2458_v50 }
 0x2e2   :  { %v1737_v37 = vadd.f32 %v2460_v59, %v2425_v43 }
 0x2e4   :  { %v1956_v63 = vrot.slane %v1737_v37, %v1950_v53 }
 0x2fe   :  { %v2493_v3 = vpop.f32.mrb[40].mxu1 }
 0x2ff   :  { %v2494_v1 = vpop.f32.mrb[41].mxu1 }
 0x300   :  { %v2495_v6 = vadd.f32 %v2494_v1, %v2493_v3 }
 0x31e   :  { %v2528_v41 = vpop.f32.mrb[42].mxu1 }
 0x31f   :  { %v2529_v0 = vpop.f32.mrb[43].mxu1 }
 0x320   :  { %v2530_v21 = vadd.f32 %v2529_v0, %v2528_v41 }
 0x322   :  { %v1941_v11 = vadd.f32 %v2530_v21, %v2495_v6 }
 0x324   :  { %v1951_v55 = vrot.slane %v1941_v11, %v1950_v53 }
 0x326   :  { %v1952_v22 = vsel %vm1947_vm0, %v1951_v55, 0.0 }
 0x327   :  { %v1957_v17 = vsel %vm1946_vm1, %v1956_v63, %v1952_v22 }
 0x328   :  { %1958 = vst [vmem:[#allocation10] sm:$0xff] %v1957_v17 }
 0x329   :  { %2913 = shalt.err (!%p2910_p8)
}
 0x32a   :  { %s2914_s16 = scalar_lea.hbm %s3476_s4, 128 }
 0x32b   :  { %p2915_p9 = scmp.ne.s32.totalorder %s3476_s4, %s2914_s16  ;;  %p2918_p10 = scmp.lt.u32.totalorder %s2914_s16, %s3476_s4 }
 0x32d   :  { %p2920_p11 = pnand %p2918_p10, %p2915_p9 }
 0x32f   :  { %2923 = shalt.err (!%p2920_p11)
}
 0x330   :  { %1980 = dma.vmem_to_hbm [thread:$0]  %s1978_s15, 128, %s3476_s4, [#allocation11]  }
 0x331   :  { %2928 = dma.done.wait [#allocation5], 4096  }
 0x332   :  { %2929 = vsyncadd [#allocation5], 4294963200 }
 0x333   :  { %2930 = dma.done.wait [#allocation11], 128  }
 0x334   :  { %2931 = vsyncadd [#allocation11], 4294967168 }
 0x335   :  { %1987 = vsyncpa [#allocation4], 1 }
 0x336   :  { %1988 = vsyncpa [#allocation7], 1 }
 0x337   :  { %1989 = vsyncpa [#allocation5], 1 }
 0x338   :  { %1990 = vsyncpa [#allocation11], 1 }

// kernel: _lambda_.27
= control target key start
LH: loop header
LB: loop body
LE: loop exit
PB: predicated region body
PF: predicated region fallthrough
CT: control target
= control target key end

     0   :  { %10 = vsyncpa [#allocation4], 0  ;;  %s1824_s0 = inlined_call_operand.hbm [shape: bf16[256,128], index: 0, kind: input, shape index: {}]   ;;  %s1825_s1 = inlined_call_operand.hbm [shape: bf16[128,128], index: 1, kind: input, shape index: {}]   ;;  %s1826_s2 = inlined_call_operand.hbm [shape: f32[1,128], index: 2, kind: input, shape index: {}]   ;;  %s1827_s3 = inlined_call_operand.hbm [shape: bf16[256,128], index: 3, kind: output, shape index: {0}]   ;;  %s1828_s4 = inlined_call_operand.hbm [shape: f32[8,128], index: 4, kind: output, shape index: {1}]  }
   0x1   :  { %11 = vsyncpa [#allocation7], 0 }
   0x2   :  { %12 = vsyncpa [#allocation5], 0 }
   0x3   :  { %13 = vsyncpa [#allocation11], 0  ;;  %s1550_s15 = smov [#allocation6]   ;;  %s1551_s17 = smov [#allocation3]  }
   0x4   :  { %s31_s16 = sshll.u32 %s1550_s15, 4  ;;  %s19_s18 = sshll.u32 %s1551_s17, 4  ;;  %s32_s16 = int_to_ptr.vmem [resolvable:$true] %s31_s16  ;;  %s1584_s18 = int_to_ptr.vmem [resolvable:$true] %s19_s18 }
   0x5   :  { %s1432_s21 = scalar_lea.hbm %s1825_s1, 1024 }
   0x6   :  { %p1433_p0 = scmp.ne.s32.totalorder %s1825_s1, %s1432_s21  ;;  %p1436_p1 = scmp.lt.u32.totalorder %s1432_s21, %s1825_s1 }
   0x8   :  { %p1438_p2 = pnand %p1436_p1, %p1433_p0 }
   0xa   :  { %1441 = shalt.err (!%p1438_p2)
}
   0xb   :  { %s1442_s26 = scalar_lea.vmem %s32_s16, 1024  ;;  %p1447_p4 = scmp.lt.s32.totalorder %s32_s16, %s32_s16 }
   0xc   :  { %p1443_p3 = scmp.ne.s32.totalorder %s32_s16, %s1442_s26  ;;  %p1448_p5 = scmp.lt.s32.totalorder %s1442_s26, %s1442_s26 }
   0xe   :  { %p1449_p6 = por %p1448_p5, %p1447_p4 }
  0x10   :  { %p1450_p7 = pnand %p1449_p6, %p1443_p3 }
  0x12   :  { %1453 = shalt.err (!%p1450_p7)
}
  0x13   :  { %s1552_s27 = smov 64   ;;  %s1553_s28 = smov 4  }
  0x14   :  { %37 = dma.hbm_to_vmem [thread:$0]  %s1825_s1, 1024, %s32_s16, [#allocation7], %s1552_s27, %s1552_s27, %s1553_s28  }
  0x15   :  { %s1454_s7 = scalar_lea.hbm %s1824_s0, 2048 }
  0x16   :  { %p1455_p8 = scmp.ne.s32.totalorder %s1824_s0, %s1454_s7  ;;  %p1458_p9 = scmp.lt.u32.totalorder %s1454_s7, %s1824_s0 }
  0x18   :  { %p1460_p10 = pnand %p1458_p9, %p1455_p8 }
  0x1a   :  { %1463 = shalt.err (!%p1460_p10)
}
  0x1b   :  { %s1464_s12 = scalar_lea.vmem %s1584_s18, 2048  ;;  %p1469_p12 = scmp.lt.s32.totalorder %s1584_s18, %s1584_s18 }
  0x1c   :  { %p1465_p11 = scmp.ne.s32.totalorder %s1584_s18, %s1464_s12  ;;  %p1470_p13 = scmp.lt.s32.totalorder %s1464_s12, %s1464_s12 }
  0x1e   :  { %p1471_p0 = por %p1470_p13, %p1469_p12 }
  0x20   :  { %p1472_p1 = pnand %p1471_p0, %p1465_p11 }
  0x22   :  { %1475 = shalt.err (!%p1472_p1)
}
  0x23   :  { %25 = dma.hbm_to_vmem [thread:$0]  %s1824_s0, 2048, %s1584_s18, [#allocation4], %s1552_s27, %s1552_s27, %s1553_s28  }
  0x24   :  { %s1554_s14 = smov [#allocation8]   ;;  %s1476_s19 = scalar_lea.hbm %s1826_s2, 16 }
  0x25   :  { %s44_s15 = sshll.u32 %s1554_s14, 4  ;;  %p1477_p2 = scmp.ne.s32.totalorder %s1826_s2, %s1476_s19  ;;  %s45_s15 = int_to_ptr.vmem [resolvable:$true] %s44_s15 }
  0x26   :  { %p1480_p3 = scmp.lt.u32.totalorder %s1476_s19, %s1826_s2 }
  0x28   :  { %p1482_p4 = pnand %p1480_p3, %p1477_p2 }
  0x2a   :  { %1485 = shalt.err (!%p1482_p4)
}
  0x2b   :  { %s1486_s24 = scalar_lea.vmem %s45_s15, 16  ;;  %s1490_s0 = scalar_lea.vmem %s45_s15, 32 }
  0x2c   :  { %p1487_p5 = scmp.ne.s32.totalorder %s45_s15, %s1486_s24  ;;  %p1491_p6 = scmp.lt.s32.totalorder %s45_s15, %s45_s15 }
  0x2d   :  { %p1492_p7 = scmp.lt.s32.totalorder %s1490_s0, %s1486_s24 }
  0x2f   :  { %p1493_p8 = por %p1492_p7, %p1491_p6 }
  0x31   :  { %p1494_p9 = pnand %p1493_p8, %p1487_p5 }
  0x33   :  { %1497 = shalt.err (!%p1494_p9)
}
  0x34   :  { %47 = dma.hbm_to_vmem [thread:$0]  %s1826_s2, 16, %s45_s15, [#allocation7]  }
  0x35   :  { %1542 = dma.done.wait [#allocation4], 2048  }
  0x36   :  { %1543 = vsyncadd [#allocation4], 4294965248 }
  0x37   :  { %1544 = dma.done.wait [#allocation7], 1040  }
  0x38   :  { %1545 = vsyncadd [#allocation7], 4294966256  ;;  %v1408_v0 = vld [vmem:[#allocation6] sm:$0xff]   ;;  %v1409_v1 = vld [vmem:[#allocation6 + $0x8] sm:$0xff]   ;;  %v1555_v24 = vmov 0.0   ;;  %s1557_s2 = smov [#allocation9]  }
  0x39   :  { %1287 = vmatprep.subr.bf16.mxu0 %v1408_v0  ;;  %v1410_v2 = vld [vmem:[#allocation6 + $0x10] sm:$0xff]   ;;  %v1411_v3 = vld [vmem:[#allocation6 + $0x18] sm:$0xff]   ;;  %v1416_v4 = vld [vmem:[#allocation3] sm:$0xff]   ;;  %854 = vmatprep.mubr.f32.mxu1 %v1555_v24  ;;  %s982_s26 = sshll.u32 %s1557_s2, 4  ;;  %s983_s26 = int_to_ptr.vmem [resolvable:$true] %s982_s26 }
  0x3a   :  { %1288 = vmatpush3.bf16.msra.mxu0 %v1408_v0  ;;  %1303 = vmatprep.mubr.bf16.mxu0 %v1416_v4  ;;  %v1412_v5 = vld [vmem:[#allocation6 + $0x20] sm:$0xff]   ;;  %v1413_v6 = vld [vmem:[#allocation6 + $0x28] sm:$0xff]   ;;  %v1414_v7 = vld [vmem:[#allocation6 + $0x30] sm:$0xff]   ;;  %s1498_s29 = scalar_lea.vmem %s983_s26, 2048  ;;  %p1503_p11 = scmp.lt.s32.totalorder %s983_s26, %s983_s26 }
  0x3b   :  { %1289 = vmatprep.subr.bf16.mxu0 %v1409_v1  ;;  %v1415_v8 = vld [vmem:[#allocation6 + $0x38] sm:$0xff]   ;;  %v1417_v9 = vld [vmem:[#allocation3 + $0x8] sm:$0xff]   ;;  %v1418_v10 = vld [vmem:[#allocation3 + $0x10] sm:$0xff]   ;;  %p1499_p10 = scmp.ne.s32.totalorder %s983_s26, %s1498_s29  ;;  %p1504_p12 = scmp.lt.s32.totalorder %s1498_s29, %s1498_s29 }
  0x3c   :  { %v1419_v11 = vld [vmem:[#allocation3 + $0x18] sm:$0xff]   ;;  %v1420_v12 = vld [vmem:[#allocation3 + $0x20] sm:$0xff]   ;;  %v1421_v13 = vld [vmem:[#allocation3 + $0x28] sm:$0xff]  }
  0x3d   :  { %v1422_v14 = vld [vmem:[#allocation3 + $0x30] sm:$0xff]   ;;  %v1423_v15 = vld [vmem:[#allocation3 + $0x38] sm:$0xff]   ;;  %v1424_v16 = vld [vmem:[#allocation3 + $0x40] sm:$0xff]   ;;  %p1505_p13 = por %p1504_p12, %p1503_p11 }
  0x3e   :  { %1290 = vmatpush3.bf16.msra.mxu0 %v1409_v1  ;;  %v1425_v17 = vld [vmem:[#allocation3 + $0x48] sm:$0xff]   ;;  %v1426_v18 = vld [vmem:[#allocation3 + $0x50] sm:$0xff]   ;;  %v1427_v19 = vld [vmem:[#allocation3 + $0x58] sm:$0xff]  }
  0x3f   :  { %1291 = vmatprep.subr.bf16.mxu0 %v1410_v2  ;;  %v1428_v20 = vld [vmem:[#allocation3 + $0x60] sm:$0xff]   ;;  %v1429_v21 = vld [vmem:[#allocation3 + $0x68] sm:$0xff]   ;;  %v1430_v22 = vld [vmem:[#allocation3 + $0x70] sm:$0xff]   ;;  %p1506_p0 = pnand %p1505_p13, %p1499_p10 }
  0x40   :  { %v1431_v23 = vld [vmem:[#allocation3 + $0x78] sm:$0xff]   ;;  %v1634_v25 = vld [vmem:[#allocation8] ss:$0 sm:$0xff] }
  0x42   :  { %1292 = vmatpush3.bf16.msra.mxu0 %v1410_v2 }
  0x43   :  { %1293 = vmatprep.subr.bf16.mxu0 %v1411_v3 }
  0x46   :  { %1294 = vmatpush3.bf16.msra.mxu0 %v1411_v3 }
  0x47   :  { %1295 = vmatprep.subr.bf16.mxu0 %v1412_v5 }
  0x4a   :  { %1296 = vmatpush3.bf16.msra.mxu0 %v1412_v5 }
  0x4b   :  { %1297 = vmatprep.subr.bf16.mxu0 %v1413_v6 }
  0x4e   :  { %1298 = vmatpush3.bf16.msra.mxu0 %v1413_v6 }
  0x4f   :  { %1299 = vmatprep.subr.bf16.mxu0 %v1414_v7 }
  0x52   :  { %1300 = vmatpush3.bf16.msra.mxu0 %v1414_v7 }
  0x53   :  { %1301 = vmatprep.subr.bf16.mxu0 %v1415_v8 }
  0x56   :  { %1302 = vmatpush3.bf16.msra.mxu0 %v1415_v8 }
  0x59   :  { %1304 = vmatmul.mubr.bf16.vlgmr.msra.gmra.mrb[0].mxu0 %v1417_v9 }
  0x5a   :  { %1307 = vmatprep.mubr.bf16.mxu0 %v1418_v10 }
  0x61   :  { %1308 = vmatmul.mubr.bf16.gmra.mrb[4].mxu0 %v1419_v11 }
  0x62   :  { %1311 = vmatprep.mubr.bf16.mxu0 %v1420_v12 }
  0x69   :  { %1312 = vmatmul.mubr.bf16.gmra.mrb[8].mxu0 %v1421_v13 }
  0x6a   :  { %1315 = vmatprep.mubr.bf16.mxu0 %v1422_v14 }
  0x71   :  { %1316 = vmatmul.mubr.bf16.gmra.mrb[12].mxu0 %v1423_v15 }
  0x72   :  { %1319 = vmatprep.mubr.bf16.mxu0 %v1424_v16 }
  0x79   :  { %1320 = vmatmul.mubr.bf16.gmra.mrb[16].mxu0 %v1425_v17 }
  0x7a   :  { %1323 = vmatprep.mubr.bf16.mxu0 %v1426_v18 }
  0x81   :  { %1324 = vmatmul.mubr.bf16.gmra.mrb[20].mxu0 %v1427_v19 }
  0x82   :  { %1327 = vmatprep.mubr.bf16.mxu0 %v1428_v20 }
  0x89   :  { %1328 = vmatmul.mubr.bf16.gmra.mrb[24].mxu0 %v1429_v21 }
  0x8a   :  { %1331 = vmatprep.mubr.bf16.mxu0 %v1430_v22 }
  0x91   :  { %1332 = vmatmul.mubr.bf16.gmra.mrb[28].mxu0 %v1431_v23 }
 0x12c   :  { %v1305_v26 = vpop.f32.mrb[0].mxu0 }
 0x12d   :  { %v587_v27 = vadd.f32 %v1305_v26, %v1634_v25  ;;  %v352_v28 = vpop.f32.mrb[1].mxu0 }
 0x12e   :  { %v585_v29 = vadd.f32 %v1634_v25, %v352_v28  ;;  %v1306_v30 = vpop.f32.mrb[2].mxu0 }
 0x12f   :  { %v588_v31 = vadd.f32 %v1306_v30, %v1634_v25  ;;  %v355_v32 = vpop.f32.mrb[3].mxu0  ;;  %v1640_v34 = vmul.f32 %v587_v27, %v587_v27 }
 0x130   :  { %v586_v33 = vadd.f32 %v1634_v25, %v355_v32  ;;  %v1646_v37 = vmul.f32 %v585_v29, %v585_v29 }
 0x131   :  { %v1642_v35 = vpack.c.bf16 %v588_v31, %v587_v27  ;;  %v1644_v36 = vmul.f32 %v588_v31, %v588_v31 }
 0x132   :  { %v1648_v38 = vmul.f32 %v586_v33, %v586_v33  ;;  %v1650_v39 = vpack.c.bf16 %v586_v33, %v585_v29 }
 0x133   :  { %1178 = vst [vmem:[#allocation9 + $0x8] sm:$0xff] %v1642_v35   ;;  %v1373_v40 = vpack.c.bf16 %v1644_v36, %v1640_v34 }
 0x134   :  { %v1369_v41 = vpack.c.bf16 %v1648_v38, %v1646_v37  ;;  %v1309_v42 = vpop.f32.mrb[4].mxu0  ;;  %1102 = vst [vmem:[#allocation9] sm:$0xff] %v1650_v39  }
 0x135   :  { %v591_v43 = vadd.f32 %v1309_v42, %v1634_v25  ;;  %v368_v44 = vpop.f32.mrb[5].mxu0 }
 0x136   :  { %v589_v45 = vadd.f32 %v1634_v25, %v368_v44  ;;  %v1310_v46 = vpop.f32.mrb[6].mxu0 }
 0x137   :  { %v592_v47 = vadd.f32 %v1310_v46, %v1634_v25  ;;  %v371_v48 = vpop.f32.mrb[7].mxu0  ;;  %v1662_v50 = vmul.f32 %v591_v43, %v591_v43 }
 0x138   :  { %v590_v49 = vadd.f32 %v1634_v25, %v371_v48  ;;  %v1668_v53 = vmul.f32 %v589_v45, %v589_v45 }
 0x139   :  { %v1664_v51 = vpack.c.bf16 %v592_v47, %v591_v43  ;;  %v1666_v52 = vmul.f32 %v592_v47, %v592_v47 }
 0x13a   :  { %v1670_v54 = vpack.c.bf16 %v590_v49, %v589_v45  ;;  %v1672_v55 = vmul.f32 %v590_v49, %v590_v49 }
 0x13b   :  { %1180 = vst [vmem:[#allocation9 + $0x18] sm:$0xff] %v1664_v51   ;;  %v1381_v56 = vpack.c.bf16 %v1666_v52, %v1662_v50 }
 0x13c   :  { %1179 = vst [vmem:[#allocation9 + $0x10] sm:$0xff] %v1670_v54   ;;  %v1377_v57 = vpack.c.bf16 %v1672_v55, %v1668_v53  ;;  %v1313_v58 = vpop.f32.mrb[8].mxu0 }
 0x13d   :  { %v595_v59 = vadd.f32 %v1313_v58, %v1634_v25  ;;  %v384_v60 = vpop.f32.mrb[9].mxu0 }
 0x13e   :  { %v593_v61 = vadd.f32 %v1634_v25, %v384_v60  ;;  %v1314_v62 = vpop.f32.mrb[10].mxu0 }
 0x13f   :  { %v596_v63 = vadd.f32 %v1314_v62, %v1634_v25  ;;  %v387_v0 = vpop.f32.mrb[11].mxu0  ;;  %v1684_v2 = vmul.f32 %v595_v59, %v595_v59 }
 0x140   :  { %v594_v1 = vadd.f32 %v1634_v25, %v387_v0  ;;  %v1690_v5 = vmul.f32 %v593_v61, %v593_v61 }
 0x141   :  { %v1686_v3 = vpack.c.bf16 %v596_v63, %v595_v59  ;;  %v1688_v4 = vmul.f32 %v596_v63, %v596_v63 }
 0x142   :  { %v1692_v6 = vpack.c.bf16 %v594_v1, %v593_v61  ;;  %v1694_v7 = vmul.f32 %v594_v1, %v594_v1 }
 0x143   :  { %1182 = vst [vmem:[#allocation9 + $0x28] sm:$0xff] %v1686_v3   ;;  %v1389_v8 = vpack.c.bf16 %v1688_v4, %v1684_v2 }
 0x144   :  { %1181 = vst [vmem:[#allocation9 + $0x20] sm:$0xff] %v1692_v6   ;;  %v1385_v9 = vpack.c.bf16 %v1694_v7, %v1690_v5  ;;  %v1317_v10 = vpop.f32.mrb[12].mxu0 }
 0x145   :  { %v599_v11 = vadd.f32 %v1317_v10, %v1634_v25  ;;  %v400_v12 = vpop.f32.mrb[13].mxu0 }
 0x146   :  { %v597_v13 = vadd.f32 %v1634_v25, %v400_v12  ;;  %v1318_v14 = vpop.f32.mrb[14].mxu0 }
 0x147   :  { %v600_v15 = vadd.f32 %v1318_v14, %v1634_v25  ;;  %v403_v16 = vpop.f32.mrb[15].mxu0  ;;  %v1706_v18 = vmul.f32 %v599_v11, %v599_v11 }
 0x148   :  { %v598_v17 = vadd.f32 %v1634_v25, %v403_v16  ;;  %v1712_v21 = vmul.f32 %v597_v13, %v597_v13 }
 0x149   :  { %v1708_v19 = vpack.c.bf16 %v600_v15, %v599_v11  ;;  %v1710_v20 = vmul.f32 %v600_v15, %v600_v15 }
 0x14a   :  { %v1714_v22 = vpack.c.bf16 %v598_v17, %v597_v13  ;;  %v1716_v23 = vmul.f32 %v598_v17, %v598_v17 }
 0x14b   :  { %1184 = vst [vmem:[#allocation9 + $0x38] sm:$0xff] %v1708_v19   ;;  %v1397_v26 = vpack.c.bf16 %v1710_v20, %v1706_v18 }
 0x14c   :  { %1183 = vst [vmem:[#allocation9 + $0x30] sm:$0xff] %v1714_v22   ;;  %v1393_v27 = vpack.c.bf16 %v1716_v23, %v1712_v21  ;;  %v1321_v28 = vpop.f32.mrb[16].mxu0 }
 0x14d   :  { %v603_v29 = vadd.f32 %v1321_v28, %v1634_v25  ;;  %v416_v30 = vpop.f32.mrb[17].mxu0 }
 0x14e   :  { %v601_v31 = vadd.f32 %v1634_v25, %v416_v30  ;;  %v1322_v32 = vpop.f32.mrb[18].mxu0 }
 0x14f   :  { %v604_v33 = vadd.f32 %v1322_v32, %v1634_v25  ;;  %v419_v42 = vpop.f32.mrb[19].mxu0  ;;  %v1728_v44 = vmul.f32 %v603_v29, %v603_v29 }
 0x150   :  { %v602_v43 = vadd.f32 %v1634_v25, %v419_v42  ;;  %v1732_v47 = vmul.f32 %v601_v31, %v601_v31 }
 0x151   :  { %v1146_v45 = vpack.c.bf16 %v604_v33, %v603_v29  ;;  %v1730_v46 = vmul.f32 %v604_v33, %v604_v33 }
 0x152   :  { %v1734_v48 = vmul.f32 %v602_v43, %v602_v43  ;;  %v1141_v49 = vpack.c.bf16 %v602_v43, %v601_v31 }
 0x153   :  { %1186 = vst [vmem:[#allocation9 + $0x48] sm:$0xff] %v1146_v45   ;;  %v1371_v58 = vpack.c.bf16 %v1730_v46, %v1728_v44 }
 0x154   :  { %v1325_v59 = vpop.f32.mrb[20].mxu0  ;;  %1185 = vst [vmem:[#allocation9 + $0x40] sm:$0xff] %v1141_v49   ;;  %1336 = vmatprep.subr.bf16.mxu1 %v1141_v49  ;;  %v1367_v60 = vpack.c.bf16 %v1734_v48, %v1732_v47 }
 0x155   :  { %v607_v61 = vadd.f32 %v1325_v59, %v1634_v25  ;;  %v432_v62 = vpop.f32.mrb[21].mxu0  ;;  %1338 = vmatpush3.bf16.msra.mxu1 %v1650_v39 }
 0x156   :  { %v605_v63 = vadd.f32 %v1634_v25, %v432_v62  ;;  %v1326_v0 = vpop.f32.mrb[22].mxu0  ;;  %1340 = vmatprep.subr.bf16.mxu1 %v1146_v45 }
 0x157   :  { %v608_v1 = vadd.f32 %v1326_v0, %v1634_v25  ;;  %v435_v10 = vpop.f32.mrb[23].mxu0  ;;  %v1745_v12 = vmul.f32 %v607_v61, %v607_v61 }
 0x158   :  { %v606_v11 = vadd.f32 %v1634_v25, %v435_v10  ;;  %v880_v15 = vmul.f32 %v605_v63, %v605_v63 }
 0x159   :  { %v1156_v13 = vpack.c.bf16 %v608_v1, %v607_v61  ;;  %v1747_v14 = vmul.f32 %v608_v1, %v608_v1  ;;  %1342 = vmatpush3.bf16.msra.mxu1 %v1642_v35 }
 0x15a   :  { %v1151_v16 = vpack.c.bf16 %v606_v11, %v605_v63  ;;  %v881_v17 = vmul.f32 %v606_v11, %v606_v11 }
 0x15b   :  { %1188 = vst [vmem:[#allocation9 + $0x58] sm:$0xff] %v1156_v13   ;;  %v1379_v39 = vpack.c.bf16 %v1747_v14, %v1745_v12 }
 0x15c   :  { %1187 = vst [vmem:[#allocation9 + $0x50] sm:$0xff] %v1151_v16   ;;  %v1329_v28 = vpop.f32.mrb[24].mxu0  ;;  %1344 = vmatprep.subr.bf16.mxu1 %v1151_v16  ;;  %v1375_v29 = vpack.c.bf16 %v881_v17, %v880_v15 }
 0x15d   :  { %v611_v30 = vadd.f32 %v1329_v28, %v1634_v25  ;;  %v448_v31 = vpop.f32.mrb[25].mxu0  ;;  %1346 = vmatpush3.bf16.msra.mxu1 %v1670_v54 }
 0x15e   :  { %v609_v32 = vadd.f32 %v1634_v25, %v448_v31  ;;  %v1330_v33 = vpop.f32.mrb[26].mxu0  ;;  %1348 = vmatprep.subr.bf16.mxu1 %v1156_v13 }
 0x15f   :  { %v612_v35 = vadd.f32 %v1330_v33, %v1634_v25  ;;  %v451_v42 = vpop.f32.mrb[27].mxu0  ;;  %v886_v45 = vmul.f32 %v611_v30, %v611_v30 }
 0x160   :  { %v610_v43 = vadd.f32 %v1634_v25, %v451_v42  ;;  %v884_v61 = vmul.f32 %v609_v32, %v609_v32 }
 0x161   :  { %v1166_v49 = vpack.c.bf16 %v612_v35, %v611_v30  ;;  %v887_v59 = vmul.f32 %v612_v35, %v612_v35  ;;  %1350 = vmatpush3.bf16.msra.mxu1 %v1664_v51 }
 0x162   :  { %v1161_v62 = vpack.c.bf16 %v610_v43, %v609_v32  ;;  %v885_v63 = vmul.f32 %v610_v43, %v610_v43 }
 0x163   :  { %1190 = vst [vmem:[#allocation9 + $0x68] sm:$0xff] %v1166_v49   ;;  %v1387_v0 = vpack.c.bf16 %v887_v59, %v886_v45 }
 0x164   :  { %1189 = vst [vmem:[#allocation9 + $0x60] sm:$0xff] %v1161_v62   ;;  %v1333_v54 = vpop.f32.mrb[28].mxu0  ;;  %1352 = vmatprep.subr.bf16.mxu1 %v1161_v62  ;;  %v1383_v1 = vpack.c.bf16 %v885_v63, %v884_v61 }
 0x165   :  { %v615_v10 = vadd.f32 %v1333_v54, %v1634_v25  ;;  %v464_v11 = vpop.f32.mrb[29].mxu0  ;;  %1354 = vmatpush3.bf16.msra.mxu1 %v1692_v6 }
 0x166   :  { %v613_v12 = vadd.f32 %v1634_v25, %v464_v11  ;;  %v1334_v13 = vpop.f32.mrb[30].mxu0  ;;  %1356 = vmatprep.subr.bf16.mxu1 %v1166_v49 }
 0x167   :  { %v616_v51 = vadd.f32 %v1334_v13, %v1634_v25  ;;  %v467_v14 = vpop.f32.mrb[31].mxu0  ;;  %v890_v16 = vmul.f32 %v615_v10, %v615_v10 }
 0x168   :  { %v614_v15 = vadd.f32 %v1634_v25, %v467_v14  ;;  %v888_v30 = vmul.f32 %v613_v12, %v613_v12  ;;  %v1556_v25 = vmov 1.0  }
 0x169   :  { %v1176_v17 = vpack.c.bf16 %v616_v51, %v615_v10  ;;  %v891_v28 = vmul.f32 %v616_v51, %v616_v51  ;;  %1358 = vmatpush3.bf16.msra.mxu1 %v1686_v3 }
 0x16a   :  { %v1171_v31 = vpack.c.bf16 %v614_v15, %v613_v12  ;;  %v889_v32 = vmul.f32 %v614_v15, %v614_v15 }
 0x16b   :  { %1192 = vst [vmem:[#allocation9 + $0x78] sm:$0xff] %v1176_v17   ;;  %v1395_v33 = vpack.c.bf16 %v891_v28, %v890_v16 }
 0x16c   :  { %1191 = vst [vmem:[#allocation9 + $0x70] sm:$0xff] %v1171_v31   ;;  %1360 = vmatprep.subr.bf16.mxu1 %v1171_v31  ;;  %v1391_v6 = vpack.c.bf16 %v889_v32, %v888_v30 }
 0x16d   :  { %1362 = vmatpush3.bf16.msra.mxu1 %v1714_v22 }
 0x16e   :  { %1364 = vmatprep.subr.bf16.mxu1 %v1176_v17 }
 0x171   :  { %1366 = vmatpush3.bf16.msra.mxu1 %v1708_v19 }
 0x172   :  { %1368 = vmatprep.subr.bf16.mxu1 %v1367_v60 }
 0x174   :  { %855 = vmatmul.mubr.f32.vlgmr.msra.gmra.mrb[0].mxu1 %v1556_v25 }
 0x175   :  { %1370 = vmatpush3.bf16.msra.mxu1 %v1369_v41  ;;  %956 = vmatprep.mubr.f32.mxu1 %v1555_v24 }
 0x176   :  { %1372 = vmatprep.subr.bf16.mxu1 %v1371_v58 }
 0x179   :  { %1374 = vmatpush3.bf16.msra.mxu1 %v1373_v40 }
 0x17a   :  { %1376 = vmatprep.subr.bf16.mxu1 %v1375_v29 }
 0x17d   :  { %1378 = vmatpush3.bf16.msra.mxu1 %v1377_v57 }
 0x17e   :  { %1380 = vmatprep.subr.bf16.mxu1 %v1379_v39 }
 0x181   :  { %1382 = vmatpush3.bf16.msra.mxu1 %v1381_v56 }
 0x182   :  { %1384 = vmatprep.subr.bf16.mxu1 %v1383_v1 }
 0x185   :  { %1386 = vmatpush3.bf16.msra.mxu1 %v1385_v9 }
 0x186   :  { %1388 = vmatprep.subr.bf16.mxu1 %v1387_v0 }
 0x189   :  { %1390 = vmatpush3.bf16.msra.mxu1 %v1389_v8 }
 0x18a   :  { %1392 = vmatprep.subr.bf16.mxu1 %v1391_v6 }
 0x18d   :  { %1394 = vmatpush3.bf16.msra.mxu1 %v1393_v27 }
 0x18e   :  { %1396 = vmatprep.subr.bf16.mxu1 %v1395_v33 }
 0x191   :  { %1398 = vmatpush3.bf16.msra.mxu1 %v1397_v26 }
 0x194   :  { %957 = vmatmul.mubr.f32.vlgmr.msra.gmra.mrb[2].mxu1 %v1556_v25 }
 0x195   :  { %1509 = shalt.err (!%p1506_p0)
}
 0x196   :  { %s1510_s6 = scalar_lea.hbm %s1827_s3, 2048 }
 0x197   :  { %p1511_p1 = scmp.ne.s32.totalorder %s1827_s3, %s1510_s6  ;;  %p1514_p2 = scmp.lt.u32.totalorder %s1510_s6, %s1827_s3 }
 0x199   :  { %p1516_p3 = pnand %p1514_p2, %p1511_p1 }
 0x19b   :  { %1519 = shalt.err (!%p1516_p3)
}
 0x19c   :  { %988 = dma.vmem_to_hbm [thread:$0]  %s983_s26, 2048, %s1827_s3, [#allocation5], %s1552_s27, %s1552_s27, %s1553_s28   ;;  %v962_v37 = vlaneseq }
 0x19d   :  { %s1558_s1 = smov [#allocation10]  }
 0x19e   :  { %v963_v38 = vshrl.u32 %v962_v37, 7  ;;  %s995_s13 = sshll.u32 %s1558_s1, 4  ;;  %s996_s13 = int_to_ptr.vmem [resolvable:$true] %s995_s13 }
 0x19f   :  { %s1520_s3 = scalar_lea.vmem %s996_s13, 128  ;;  %p1525_p5 = scmp.lt.s32.totalorder %s996_s13, %s996_s13 }
 0x1a0   :  { %v968_v41 = vsub.s32 0, %v963_v38  ;;  %vm965_vm0 = vcmp.eq.s32.totalorder %v963_v38, 1  ;;  %vm964_vm1 = vcmp.eq.s32.totalorder %v963_v38, 0  ;;  %p1521_p4 = scmp.ne.s32.totalorder %s996_s13, %s1520_s3  ;;  %p1526_p6 = scmp.lt.s32.totalorder %s1520_s3, %s1520_s3 }
 0x1a2   :  { %p1527_p7 = por %p1526_p6, %p1525_p5 }
 0x1a4   :  { %p1528_p8 = pnand %p1527_p7, %p1521_p4 }
 0x247   :  { %v1249_v24 = vpop.f32.mrb[0].mxu1 }
 0x248   :  { %v1250_v34 = vpop.f32.mrb[1].mxu1 }
 0x249   :  { %v1251_v36 = vadd.f32 %v1250_v34, %v1249_v24 }
 0x24b   :  { %v974_v55 = vrot.slane %v1251_v36, %v968_v41 }
 0x267   :  { %v1284_v40 = vpop.f32.mrb[2].mxu1 }
 0x268   :  { %v1285_v50 = vpop.f32.mrb[3].mxu1 }
 0x269   :  { %v1286_v52 = vadd.f32 %v1285_v50, %v1284_v40 }
 0x26b   :  { %v969_v53 = vrot.slane %v1286_v52, %v968_v41 }
 0x26d   :  { %v970_v56 = vsel %vm965_vm0, %v969_v53, 0.0 }
 0x26e   :  { %v975_v57 = vsel %vm964_vm1, %v974_v55, %v970_v56 }
 0x26f   :  { %976 = vst [vmem:[#allocation10] sm:$0xff] %v975_v57 }
 0x270   :  { %1531 = shalt.err (!%p1528_p8)
}
 0x271   :  { %s1532_s14 = scalar_lea.hbm %s1828_s4, 128 }
 0x272   :  { %p1533_p9 = scmp.ne.s32.totalorder %s1828_s4, %s1532_s14  ;;  %p1536_p10 = scmp.lt.u32.totalorder %s1532_s14, %s1828_s4 }
 0x274   :  { %p1538_p11 = pnand %p1536_p10, %p1533_p9 }
 0x276   :  { %1541 = shalt.err (!%p1538_p11)
}
 0x277   :  { %998 = dma.vmem_to_hbm [thread:$0]  %s996_s13, 128, %s1828_s4, [#allocation11]  }
 0x278   :  { %1546 = dma.done.wait [#allocation5], 2048  }
 0x279   :  { %1547 = vsyncadd [#allocation5], 4294965248 }
 0x27a   :  { %1548 = dma.done.wait [#allocation11], 128  }
 0x27b   :  { %1549 = vsyncadd [#allocation11], 4294967168 }
 0x27c   :  { %1005 = vsyncpa [#allocation4], 1 }
 0x27d   :  { %1006 = vsyncpa [#allocation7], 1 }
 0x27e   :  { %1007 = vsyncpa [#allocation5], 1 }
 0x27f   :  { %1008 = vsyncpa [#allocation11], 1 }

// kernel: _lambda_.28
= control target key start
LH: loop header
LB: loop body
LE: loop exit
PB: predicated region body
PF: predicated region fallthrough
CT: control target
= control target key end

     0   :  { %8 = vsyncpa [#allocation3], 0  ;;  %s899_s0 = inlined_call_operand.hbm [shape: bf16[256,128], index: 0, kind: input, shape index: {}]   ;;  %s900_s1 = inlined_call_operand.hbm [shape: f32[1,128], index: 1, kind: input, shape index: {}]   ;;  %s901_s2 = inlined_call_operand.hbm [shape: f32[1,128], index: 2, kind: input, shape index: {}]   ;;  %s902_s3 = inlined_call_operand.hbm [shape: bf16[256,128], index: 3, kind: output, shape index: {}]  }
   0x1   :  { %9 = vsyncpa [#allocation6], 0 }
   0x2   :  { %10 = vsyncpa [#allocation4], 0  ;;  %s744_s12 = smov [#allocation5]   ;;  %s745_s14 = smov [#allocation2]  }
   0x3   :  { %s29_s13 = sshll.u32 %s744_s12, 4  ;;  %s16_s15 = sshll.u32 %s745_s14, 4  ;;  %s30_s13 = int_to_ptr.vmem [resolvable:$true] %s29_s13  ;;  %s770_s15 = int_to_ptr.vmem [resolvable:$true] %s16_s15 }
   0x4   :  { %s650_s18 = scalar_lea.hbm %s900_s1, 16 }
   0x5   :  { %p651_p0 = scmp.ne.s32.totalorder %s900_s1, %s650_s18  ;;  %p654_p1 = scmp.lt.u32.totalorder %s650_s18, %s900_s1 }
   0x7   :  { %p656_p2 = pnand %p654_p1, %p651_p0 }
   0x9   :  { %659 = shalt.err (!%p656_p2)
}
   0xa   :  { %s660_s23 = scalar_lea.vmem %s30_s13, 16  ;;  %s664_s24 = scalar_lea.vmem %s30_s13, 32 }
   0xb   :  { %p661_p3 = scmp.ne.s32.totalorder %s30_s13, %s660_s23  ;;  %p665_p4 = scmp.lt.s32.totalorder %s30_s13, %s30_s13 }
   0xc   :  { %p666_p5 = scmp.lt.s32.totalorder %s664_s24, %s660_s23 }
   0xe   :  { %p667_p6 = por %p666_p5, %p665_p4 }
  0x10   :  { %p668_p7 = pnand %p667_p6, %p661_p3 }
  0x12   :  { %671 = shalt.err (!%p668_p7)
}
  0x13   :  { %32 = dma.hbm_to_vmem [thread:$0]  %s900_s1, 16, %s30_s13, [#allocation6]  }
  0x14   :  { %s672_s29 = scalar_lea.hbm %s899_s0, 2048 }
  0x15   :  { %p673_p8 = scmp.ne.s32.totalorder %s899_s0, %s672_s29  ;;  %p676_p9 = scmp.lt.u32.totalorder %s672_s29, %s899_s0 }
  0x17   :  { %p678_p10 = pnand %p676_p9, %p673_p8 }
  0x19   :  { %681 = shalt.err (!%p678_p10)
}
  0x1a   :  { %s682_s7 = scalar_lea.vmem %s770_s15, 2048  ;;  %p687_p12 = scmp.lt.s32.totalorder %s770_s15, %s770_s15 }
  0x1b   :  { %p683_p11 = scmp.ne.s32.totalorder %s770_s15, %s682_s7  ;;  %p688_p13 = scmp.lt.s32.totalorder %s682_s7, %s682_s7 }
  0x1d   :  { %p689_p0 = por %p688_p13, %p687_p12 }
  0x1f   :  { %p690_p1 = pnand %p689_p0, %p683_p11 }
  0x21   :  { %693 = shalt.err (!%p690_p1)
}
  0x22   :  { %s746_s1 = smov 64   ;;  %s747_s8 = smov 4  }
  0x23   :  { %22 = dma.hbm_to_vmem [thread:$0]  %s899_s0, 2048, %s770_s15, [#allocation3], %s746_s1, %s746_s1, %s747_s8  }
  0x24   :  { %s748_s11 = smov [#allocation7]   ;;  %s694_s16 = scalar_lea.hbm %s901_s2, 16 }
  0x25   :  { %s39_s12 = sshll.u32 %s748_s11, 4  ;;  %p695_p2 = scmp.ne.s32.totalorder %s901_s2, %s694_s16  ;;  %s40_s12 = int_to_ptr.vmem [resolvable:$true] %s39_s12 }
  0x26   :  { %p698_p3 = scmp.lt.u32.totalorder %s694_s16, %s901_s2 }
  0x28   :  { %p700_p4 = pnand %p698_p3, %p695_p2 }
  0x2a   :  { %703 = shalt.err (!%p700_p4)
}
  0x2b   :  { %s704_s21 = scalar_lea.vmem %s40_s12, 16  ;;  %s708_s0 = scalar_lea.vmem %s40_s12, 32 }
  0x2c   :  { %p705_p5 = scmp.ne.s32.totalorder %s40_s12, %s704_s21  ;;  %p709_p6 = scmp.lt.s32.totalorder %s40_s12, %s40_s12 }
  0x2d   :  { %p710_p7 = scmp.lt.s32.totalorder %s708_s0, %s704_s21 }
  0x2f   :  { %p711_p8 = por %p710_p7, %p709_p6 }
  0x31   :  { %p712_p9 = pnand %p711_p8, %p705_p5 }
  0x33   :  { %715 = shalt.err (!%p712_p9)
}
  0x34   :  { %42 = dma.hbm_to_vmem [thread:$0]  %s901_s2, 16, %s40_s12, [#allocation6]  }
  0x35   :  { %738 = dma.done.wait [#allocation3], 2048  }
  0x36   :  { %739 = vsyncadd [#allocation3], 4294965248 }
  0x37   :  { %740 = dma.done.wait [#allocation6], 32  }
  0x38   :  { %741 = vsyncadd [#allocation6], 4294967264  ;;  %v471_v0 = vld [vmem:[#allocation2] sm:$0xff]   ;;  %v614_v4 = vld [vmem:[#allocation2 + $0x8] sm:$0xff]   ;;  %s749_s2 = smov [#allocation8]  }
  0x39   :  { %v816_v1 = vld [vmem:[#allocation5] ss:$0 sm:$0xff]  ;;  %v472_v2 = vunpack.c.l.bf16 %v471_v0  ;;  %v473_v3 = vunpack.c.h.bf16 %v471_v0  ;;  %v615_v5 = vld [vmem:[#allocation2 + $0x10] sm:$0xff]   ;;  %v616_v6 = vld [vmem:[#allocation2 + $0x18] sm:$0xff]   ;;  %v476_v8 = vunpack.c.l.bf16 %v614_v4  ;;  %v477_v9 = vunpack.c.h.bf16 %v614_v4  ;;  %s391_s23 = sshll.u32 %s749_s2, 4  ;;  %s392_s23 = int_to_ptr.vmem [resolvable:$true] %s391_s23 }
  0x3a   :  { %v818_v7 = vld [vmem:[#allocation7] ss:$0 sm:$0xff]  ;;  %v480_v10 = vunpack.c.l.bf16 %v615_v5  ;;  %v481_v11 = vunpack.c.h.bf16 %v615_v5  ;;  %v484_v14 = vunpack.c.l.bf16 %v616_v6  ;;  %v485_v15 = vunpack.c.h.bf16 %v616_v6  ;;  %v618_v33 = vld [vmem:[#allocation2 + $0x28] sm:$0xff]   ;;  %v619_v38 = vld [vmem:[#allocation2 + $0x30] sm:$0xff]   ;;  %s716_s24 = scalar_lea.vmem %s392_s23, 2048  ;;  %p721_p11 = scmp.lt.s32.totalorder %s392_s23, %s392_s23 }
  0x3b   :  { %v123_v12 = vmul.f32 %v472_v2, %v816_v1  ;;  %v124_v13 = vmul.f32 %v473_v3, %v816_v1  ;;  %v125_v16 = vmul.f32 %v476_v8, %v816_v1  ;;  %v126_v17 = vmul.f32 %v477_v9, %v816_v1  ;;  %v617_v28 = vld [vmem:[#allocation2 + $0x20] sm:$0xff]   ;;  %v620_v43 = vld [vmem:[#allocation2 + $0x38] sm:$0xff]   ;;  %p717_p10 = scmp.ne.s32.totalorder %s392_s23, %s716_s24  ;;  %p722_p12 = scmp.lt.s32.totalorder %s716_s24, %s716_s24 }
  0x3c   :  { %v127_v18 = vmul.f32 %v480_v10, %v816_v1  ;;  %v128_v19 = vmul.f32 %v481_v11, %v816_v1  ;;  %v129_v22 = vmul.f32 %v484_v14, %v816_v1  ;;  %v130_v23 = vmul.f32 %v485_v15, %v816_v1  ;;  %v621_v0 = vld [vmem:[#allocation2 + $0x40] sm:$0xff]   ;;  %v622_v11 = vld [vmem:[#allocation2 + $0x48] sm:$0xff]  }
  0x3d   :  { %v162_v20 = vadd.f32 %v818_v7, %v123_v12  ;;  %v163_v21 = vadd.f32 %v818_v7, %v124_v13  ;;  %v164_v24 = vadd.f32 %v818_v7, %v125_v16  ;;  %v165_v25 = vadd.f32 %v818_v7, %v126_v17  ;;  %v623_v16 = vld [vmem:[#allocation2 + $0x50] sm:$0xff]   ;;  %p723_p13 = por %p722_p12, %p721_p11 }
  0x3e   :  { %v166_v26 = vadd.f32 %v818_v7, %v127_v18  ;;  %v167_v27 = vadd.f32 %v818_v7, %v128_v19  ;;  %v168_v31 = vadd.f32 %v818_v7, %v129_v22  ;;  %v169_v32 = vadd.f32 %v818_v7, %v130_v23 }
  0x3f   :  { %v194_v29 = vmax.f32 %v162_v20, 0.0  ;;  %v195_v30 = vmax.f32 %v163_v21, 0.0  ;;  %v196_v34 = vmax.f32 %v164_v24, 0.0  ;;  %v197_v35 = vmax.f32 %v165_v25, 0.0  ;;  %v624_v25 = vld [vmem:[#allocation2 + $0x58] sm:$0xff]   ;;  %p724_p0 = pnand %p723_p13, %p717_p10 }
  0x40   :  { %v198_v36 = vmax.f32 %v166_v26, 0.0  ;;  %v199_v37 = vmax.f32 %v167_v27, 0.0  ;;  %v200_v40 = vmax.f32 %v168_v31, 0.0  ;;  %v201_v41 = vmax.f32 %v169_v32, 0.0 }
  0x41   :  { %v537_v39 = vpack.c.bf16 %v195_v30, %v194_v29  ;;  %v488_v42 = vunpack.c.l.bf16 %v617_v28  ;;  %v542_v44 = vpack.c.bf16 %v197_v35, %v196_v34  ;;  %v489_v46 = vunpack.c.h.bf16 %v617_v28 }
  0x42   :  { %v547_v45 = vpack.c.bf16 %v199_v37, %v198_v36  ;;  %v492_v47 = vunpack.c.l.bf16 %v618_v33  ;;  %v552_v48 = vpack.c.bf16 %v201_v41, %v200_v40  ;;  %v493_v50 = vunpack.c.h.bf16 %v618_v33 }
  0x43   :  { %538 = vst [vmem:[#allocation8] sm:$0xff] %v537_v39   ;;  %v131_v49 = vmul.f32 %v488_v42, %v816_v1  ;;  %v496_v51 = vunpack.c.l.bf16 %v619_v38  ;;  %629 = vst [vmem:[#allocation8 + $0x8] sm:$0xff] %v542_v44   ;;  %v132_v52 = vmul.f32 %v489_v46, %v816_v1  ;;  %v497_v54 = vunpack.c.h.bf16 %v619_v38  ;;  %v625_v38 = vld [vmem:[#allocation2 + $0x60] sm:$0xff]  }
  0x44   :  { %630 = vst [vmem:[#allocation8 + $0x10] sm:$0xff] %v547_v45   ;;  %v133_v53 = vmul.f32 %v492_v47, %v816_v1  ;;  %v500_v55 = vunpack.c.l.bf16 %v620_v43  ;;  %631 = vst [vmem:[#allocation8 + $0x18] sm:$0xff] %v552_v48   ;;  %v134_v57 = vmul.f32 %v493_v50, %v816_v1  ;;  %v501_v59 = vunpack.c.h.bf16 %v620_v43 }
  0x45   :  { %v170_v56 = vadd.f32 %v818_v7, %v131_v49  ;;  %v135_v58 = vmul.f32 %v496_v51, %v816_v1  ;;  %v171_v60 = vadd.f32 %v818_v7, %v132_v52  ;;  %v136_v62 = vmul.f32 %v497_v54, %v816_v1  ;;  %v626_v51 = vld [vmem:[#allocation2 + $0x68] sm:$0xff]  }
  0x46   :  { %v172_v61 = vadd.f32 %v818_v7, %v133_v53  ;;  %v137_v63 = vmul.f32 %v500_v55, %v816_v1  ;;  %v173_v3 = vadd.f32 %v818_v7, %v134_v57  ;;  %v138_v5 = vmul.f32 %v501_v59, %v816_v1 }
  0x47   :  { %v202_v2 = vmax.f32 %v170_v56, 0.0  ;;  %v174_v4 = vadd.f32 %v818_v7, %v135_v58  ;;  %v203_v6 = vmax.f32 %v171_v60, 0.0  ;;  %v175_v9 = vadd.f32 %v818_v7, %v136_v62  ;;  %v627_v60 = vld [vmem:[#allocation2 + $0x70] sm:$0xff]  }
  0x48   :  { %v204_v8 = vmax.f32 %v172_v61, 0.0  ;;  %v176_v10 = vadd.f32 %v818_v7, %v137_v63  ;;  %v205_v12 = vmax.f32 %v173_v3, 0.0  ;;  %v177_v14 = vadd.f32 %v818_v7, %v138_v5 }
  0x49   :  { %v206_v13 = vmax.f32 %v174_v4, 0.0  ;;  %v504_v15 = vunpack.c.l.bf16 %v621_v0  ;;  %v557_v17 = vpack.c.bf16 %v203_v6, %v202_v2  ;;  %v207_v18 = vmax.f32 %v175_v9, 0.0  ;;  %v628_v2 = vld [vmem:[#allocation2 + $0x78] sm:$0xff]  }
  0x4a   :  { %v208_v19 = vmax.f32 %v176_v10, 0.0  ;;  %v505_v20 = vunpack.c.h.bf16 %v621_v0  ;;  %v562_v21 = vpack.c.bf16 %v205_v12, %v204_v8  ;;  %v209_v22 = vmax.f32 %v177_v14, 0.0 }
  0x4b   :  { %v139_v23 = vmul.f32 %v504_v15, %v816_v1  ;;  %v508_v24 = vunpack.c.l.bf16 %v622_v11  ;;  %632 = vst [vmem:[#allocation8 + $0x20] sm:$0xff] %v557_v17   ;;  %v567_v26 = vpack.c.bf16 %v207_v18, %v206_v13  ;;  %v509_v28 = vunpack.c.h.bf16 %v622_v11 }
  0x4c   :  { %v140_v27 = vmul.f32 %v505_v20, %v816_v1  ;;  %v512_v29 = vunpack.c.l.bf16 %v623_v16  ;;  %633 = vst [vmem:[#allocation8 + $0x28] sm:$0xff] %v562_v21   ;;  %v572_v30 = vpack.c.bf16 %v209_v22, %v208_v19  ;;  %v513_v33 = vunpack.c.h.bf16 %v623_v16 }
  0x4d   :  { %v178_v31 = vadd.f32 %v818_v7, %v139_v23  ;;  %v141_v32 = vmul.f32 %v508_v24, %v816_v1  ;;  %634 = vst [vmem:[#allocation8 + $0x30] sm:$0xff] %v567_v26   ;;  %v142_v35 = vmul.f32 %v509_v28, %v816_v1  ;;  %v516_v37 = vunpack.c.l.bf16 %v624_v25 }
  0x4e   :  { %v179_v34 = vadd.f32 %v818_v7, %v140_v27  ;;  %v143_v36 = vmul.f32 %v512_v29, %v816_v1  ;;  %635 = vst [vmem:[#allocation8 + $0x38] sm:$0xff] %v572_v30   ;;  %v144_v41 = vmul.f32 %v513_v33, %v816_v1  ;;  %v517_v42 = vunpack.c.h.bf16 %v624_v25 }
  0x4f   :  { %v210_v39 = vmax.f32 %v178_v31, 0.0  ;;  %v180_v40 = vadd.f32 %v818_v7, %v141_v32  ;;  %v181_v44 = vadd.f32 %v818_v7, %v142_v35  ;;  %v145_v46 = vmul.f32 %v516_v37, %v816_v1 }
  0x50   :  { %v211_v43 = vmax.f32 %v179_v34, 0.0  ;;  %v182_v45 = vadd.f32 %v818_v7, %v143_v36  ;;  %v183_v48 = vadd.f32 %v818_v7, %v144_v41  ;;  %v146_v49 = vmul.f32 %v517_v42, %v816_v1 }
  0x51   :  { %v212_v47 = vmax.f32 %v180_v40, 0.0  ;;  %v520_v50 = vunpack.c.l.bf16 %v625_v38  ;;  %v213_v53 = vmax.f32 %v181_v44, 0.0  ;;  %v184_v55 = vadd.f32 %v818_v7, %v145_v46 }
  0x52   :  { %v577_v52 = vpack.c.bf16 %v211_v43, %v210_v39  ;;  %v214_v54 = vmax.f32 %v182_v45, 0.0  ;;  %v215_v56 = vmax.f32 %v183_v48, 0.0  ;;  %v185_v57 = vadd.f32 %v818_v7, %v146_v49 }
  0x53   :  { %v521_v58 = vunpack.c.h.bf16 %v625_v38  ;;  %v147_v59 = vmul.f32 %v520_v50, %v816_v1  ;;  %v582_v61 = vpack.c.bf16 %v213_v53, %v212_v47  ;;  %v216_v62 = vmax.f32 %v184_v55, 0.0 }
  0x54   :  { %636 = vst [vmem:[#allocation8 + $0x40] sm:$0xff] %v577_v52   ;;  %v524_v63 = vunpack.c.l.bf16 %v626_v51  ;;  %v525_v0 = vunpack.c.h.bf16 %v626_v51  ;;  %v587_v3 = vpack.c.bf16 %v215_v56, %v214_v54  ;;  %v217_v4 = vmax.f32 %v185_v57, 0.0 }
  0x55   :  { %v148_v5 = vmul.f32 %v521_v58, %v816_v1  ;;  %v186_v6 = vadd.f32 %v818_v7, %v147_v59  ;;  %637 = vst [vmem:[#allocation8 + $0x48] sm:$0xff] %v582_v61   ;;  %v528_v10 = vunpack.c.l.bf16 %v627_v60  ;;  %v529_v11 = vunpack.c.h.bf16 %v627_v60 }
  0x56   :  { %v149_v8 = vmul.f32 %v524_v63, %v816_v1  ;;  %v150_v9 = vmul.f32 %v525_v0, %v816_v1  ;;  %638 = vst [vmem:[#allocation8 + $0x50] sm:$0xff] %v587_v3   ;;  %v592_v12 = vpack.c.bf16 %v217_v4, %v216_v62  ;;  %v532_v15 = vunpack.c.l.bf16 %v628_v2 }
  0x57   :  { %v187_v13 = vadd.f32 %v818_v7, %v148_v5  ;;  %v218_v14 = vmax.f32 %v186_v6, 0.0  ;;  %v151_v18 = vmul.f32 %v528_v10, %v816_v1  ;;  %v152_v19 = vmul.f32 %v529_v11, %v816_v1 }
  0x58   :  { %v188_v16 = vadd.f32 %v818_v7, %v149_v8  ;;  %v189_v17 = vadd.f32 %v818_v7, %v150_v9  ;;  %639 = vst [vmem:[#allocation8 + $0x58] sm:$0xff] %v592_v12   ;;  %v533_v21 = vunpack.c.h.bf16 %v628_v2  ;;  %v153_v22 = vmul.f32 %v532_v15, %v816_v1 }
  0x59   :  { %v219_v20 = vmax.f32 %v187_v13, 0.0  ;;  %v190_v25 = vadd.f32 %v818_v7, %v151_v18  ;;  %v191_v26 = vadd.f32 %v818_v7, %v152_v19 }
  0x5a   :  { %v220_v23 = vmax.f32 %v188_v16, 0.0  ;;  %v221_v24 = vmax.f32 %v189_v17, 0.0  ;;  %v154_v28 = vmul.f32 %v533_v21, %v816_v1  ;;  %v192_v29 = vadd.f32 %v818_v7, %v153_v22 }
  0x5b   :  { %v597_v27 = vpack.c.bf16 %v219_v20, %v218_v14  ;;  %v222_v31 = vmax.f32 %v190_v25, 0.0  ;;  %v223_v32 = vmax.f32 %v191_v26, 0.0 }
  0x5c   :  { %v602_v30 = vpack.c.bf16 %v221_v24, %v220_v23  ;;  %v193_v33 = vadd.f32 %v818_v7, %v154_v28  ;;  %v224_v34 = vmax.f32 %v192_v29, 0.0 }
  0x5d   :  { %640 = vst [vmem:[#allocation8 + $0x60] sm:$0xff] %v597_v27   ;;  %v607_v35 = vpack.c.bf16 %v223_v32, %v222_v31 }
  0x5e   :  { %641 = vst [vmem:[#allocation8 + $0x68] sm:$0xff] %v602_v30   ;;  %v225_v36 = vmax.f32 %v193_v33, 0.0 }
  0x5f   :  { %642 = vst [vmem:[#allocation8 + $0x70] sm:$0xff] %v607_v35  }
  0x60   :  { %v612_v37 = vpack.c.bf16 %v225_v36, %v224_v34 }
  0x62   :  { %643 = vst [vmem:[#allocation8 + $0x78] sm:$0xff] %v612_v37  }
  0x63   :  { %727 = shalt.err (!%p724_p0)
}
  0x64   :  { %s728_s27 = scalar_lea.hbm %s902_s3, 2048 }
  0x65   :  { %p729_p1 = scmp.ne.s32.totalorder %s902_s3, %s728_s27  ;;  %p732_p2 = scmp.lt.u32.totalorder %s728_s27, %s902_s3 }
  0x67   :  { %p734_p3 = pnand %p732_p2, %p729_p1 }
  0x69   :  { %737 = shalt.err (!%p734_p3)
}
  0x6a   :  { %397 = dma.vmem_to_hbm [thread:$0]  %s392_s23, 2048, %s902_s3, [#allocation4], %s746_s1, %s746_s1, %s747_s8  }
  0x6b   :  { %742 = dma.done.wait [#allocation4], 2048  }
  0x6c   :  { %743 = vsyncadd [#allocation4], 4294965248 }
  0x6d   :  { %401 = vsyncpa [#allocation3], 1 }
  0x6e   :  { %402 = vsyncpa [#allocation6], 1 }
  0x6f   :  { %403 = vsyncpa [#allocation4], 1 }

// kernel: _lambda_.29
= control target key start
LH: loop header
LB: loop body
LE: loop exit
PB: predicated region body
PF: predicated region fallthrough
CT: control target
= control target key end

     0   :  { %10 = vsyncpa [#allocation4], 0  ;;  %s2108_s0 = inlined_call_operand.hbm [shape: bf16[256,256], index: 0, kind: input, shape index: {}]   ;;  %s2109_s1 = inlined_call_operand.hbm [shape: bf16[256,128], index: 1, kind: input, shape index: {}]   ;;  %s2110_s2 = inlined_call_operand.hbm [shape: f32[1,128], index: 2, kind: input, shape index: {}]   ;;  %s2111_s3 = inlined_call_operand.hbm [shape: bf16[256,128], index: 3, kind: output, shape index: {0}]   ;;  %s2112_s4 = inlined_call_operand.hbm [shape: f32[8,128], index: 4, kind: output, shape index: {1}]  }
   0x1   :  { %11 = vsyncpa [#allocation7], 0 }
   0x2   :  { %12 = vsyncpa [#allocation5], 0 }
   0x3   :  { %13 = vsyncpa [#allocation11], 0  ;;  %s1803_s15 = smov [#allocation6]   ;;  %s1685_s19 = scalar_lea.hbm %s2109_s1, 2048 }
   0x4   :  { %s31_s16 = sshll.u32 %s1803_s15, 4  ;;  %p1686_p0 = scmp.ne.s32.totalorder %s2109_s1, %s1685_s19  ;;  %s32_s16 = int_to_ptr.vmem [resolvable:$true] %s31_s16 }
   0x5   :  { %p1689_p1 = scmp.lt.u32.totalorder %s1685_s19, %s2109_s1 }
   0x7   :  { %p1691_p2 = pnand %p1689_p1, %p1686_p0 }
   0x9   :  { %1694 = shalt.err (!%p1691_p2)
}
   0xa   :  { %s1695_s24 = scalar_lea.vmem %s32_s16, 2048  ;;  %p1700_p4 = scmp.lt.s32.totalorder %s32_s16, %s32_s16 }
   0xb   :  { %p1696_p3 = scmp.ne.s32.totalorder %s32_s16, %s1695_s24  ;;  %p1701_p5 = scmp.lt.s32.totalorder %s1695_s24, %s1695_s24 }
   0xd   :  { %p1702_p6 = por %p1701_p5, %p1700_p4 }
   0xf   :  { %p1703_p7 = pnand %p1702_p6, %p1696_p3 }
  0x11   :  { %1706 = shalt.err (!%p1703_p7)
}
  0x12   :  { %s1804_s25 = smov 64   ;;  %s1805_s26 = smov 4  }
  0x13   :  { %37 = dma.hbm_to_vmem [thread:$0]  %s2109_s1, 2048, %s32_s16, [#allocation7], %s1804_s25, %s1804_s25, %s1805_s26  }
  0x14   :  { %s1806_s29 = smov [#allocation3]   ;;  %s1707_s7 = scalar_lea.hbm %s2108_s0, 4096 }
  0x15   :  { %s19_s30 = sshll.u32 %s1806_s29, 4  ;;  %p1708_p8 = scmp.ne.s32.totalorder %s2108_s0, %s1707_s7  ;;  %s20_s30 = int_to_ptr.vmem [resolvable:$true] %s19_s30 }
  0x16   :  { %p1711_p9 = scmp.lt.u32.totalorder %s1707_s7, %s2108_s0 }
  0x18   :  { %p1713_p10 = pnand %p1711_p9, %p1708_p8 }
  0x1a   :  { %1716 = shalt.err (!%p1713_p10)
}
  0x1b   :  { %s1717_s12 = scalar_lea.vmem %s20_s30, 4096  ;;  %p1722_p12 = scmp.lt.s32.totalorder %s20_s30, %s20_s30 }
  0x1c   :  { %p1718_p11 = scmp.ne.s32.totalorder %s20_s30, %s1717_s12  ;;  %p1723_p13 = scmp.lt.s32.totalorder %s1717_s12, %s1717_s12 }
  0x1e   :  { %p1724_p0 = por %p1723_p13, %p1722_p12 }
  0x20   :  { %p1725_p1 = pnand %p1724_p0, %p1718_p11 }
  0x22   :  { %1728 = shalt.err (!%p1725_p1)
}
  0x23   :  { %s1807_s1 = smov 128   ;;  %s1808_s13 = smov 8  }
  0x24   :  { %25 = dma.hbm_to_vmem [thread:$0]  %s2108_s0, 4096, %s20_s30, [#allocation4], %s1807_s1, %s1807_s1, %s1808_s13  }
  0x25   :  { %s1809_s16 = smov [#allocation8]   ;;  %s1729_s20 = scalar_lea.hbm %s2110_s2, 16 }
  0x26   :  { %s44_s17 = sshll.u32 %s1809_s16, 4  ;;  %p1730_p2 = scmp.ne.s32.totalorder %s2110_s2, %s1729_s20  ;;  %s45_s17 = int_to_ptr.vmem [resolvable:$true] %s44_s17 }
  0x27   :  { %p1733_p3 = scmp.lt.u32.totalorder %s1729_s20, %s2110_s2 }
  0x29   :  { %p1735_p4 = pnand %p1733_p3, %p1730_p2 }
  0x2b   :  { %1738 = shalt.err (!%p1735_p4)
}
  0x2c   :  { %s1739_s27 = scalar_lea.vmem %s45_s17, 16  ;;  %s1743_s0 = scalar_lea.vmem %s45_s17, 32 }
  0x2d   :  { %p1740_p5 = scmp.ne.s32.totalorder %s45_s17, %s1739_s27  ;;  %p1744_p6 = scmp.lt.s32.totalorder %s45_s17, %s45_s17 }
  0x2e   :  { %p1745_p7 = scmp.lt.s32.totalorder %s1743_s0, %s1739_s27 }
  0x30   :  { %p1746_p8 = por %p1745_p7, %p1744_p6 }
  0x32   :  { %p1747_p9 = pnand %p1746_p8, %p1740_p5 }
  0x34   :  { %1750 = shalt.err (!%p1747_p9)
}
  0x35   :  { %47 = dma.hbm_to_vmem [thread:$0]  %s2110_s2, 16, %s45_s17, [#allocation7]  }
  0x36   :  { %1795 = dma.done.wait [#allocation4], 4096  }
  0x37   :  { %1796 = vsyncadd [#allocation4], 4294963200 }
  0x38   :  { %1797 = dma.done.wait [#allocation7], 2064  }
  0x39   :  { %1798 = vsyncadd [#allocation7], 4294965232  ;;  %v1621_v0 = vld [vmem:[#allocation6 + $0x40] sm:$0xff]   ;;  %v1623_v2 = vld [vmem:[#allocation6 + $0x48] sm:$0xff]   ;;  %v1810_v48 = vmov 0.0   ;;  %s1812_s2 = smov [#allocation9]  }
  0x3a   :  { %v1622_v1 = vld [vmem:[#allocation6] sm:$0xff]   ;;  %1348 = vmatprep.subr.bf16.mxu0 %v1621_v0  ;;  %1594 = vmatprep.subr.bf16.mxu1 %v1621_v0  ;;  %v1624_v3 = vld [vmem:[#allocation6 + $0x8] sm:$0xff]   ;;  %v1625_v4 = vld [vmem:[#allocation6 + $0x50] sm:$0xff]   ;;  %s1110_s30 = sshll.u32 %s1812_s2, 4  ;;  %s1111_s30 = int_to_ptr.vmem [resolvable:$true] %s1110_s30 }
  0x3b   :  { %1349 = vmatpush3.bf16.msra.mxu0 %v1622_v1  ;;  %1602 = vmatpush3.bf16.msra.mxu1 %v1622_v1  ;;  %v1626_v5 = vld [vmem:[#allocation6 + $0x10] sm:$0xff]   ;;  %v1627_v6 = vld [vmem:[#allocation6 + $0x58] sm:$0xff]   ;;  %v1629_v8 = vld [vmem:[#allocation6 + $0x60] sm:$0xff]   ;;  %s1751_s5 = scalar_lea.vmem %s1111_s30, 2048  ;;  %p1756_p11 = scmp.lt.s32.totalorder %s1111_s30, %s1111_s30 }
  0x3c   :  { %1350 = vmatprep.subr.bf16.mxu0 %v1623_v2  ;;  %1595 = vmatprep.subr.bf16.mxu1 %v1623_v2  ;;  %v1628_v7 = vld [vmem:[#allocation6 + $0x18] sm:$0xff]   ;;  %v1630_v9 = vld [vmem:[#allocation6 + $0x20] sm:$0xff]   ;;  %v1631_v10 = vld [vmem:[#allocation6 + $0x68] sm:$0xff]   ;;  %p1752_p10 = scmp.ne.s32.totalorder %s1111_s30, %s1751_s5  ;;  %p1757_p12 = scmp.lt.s32.totalorder %s1751_s5, %s1751_s5 }
  0x3d   :  { %v1639_v11 = vld [vmem:[#allocation3 + $0x4] ss:$8 sps:$4 sm:$0xff]   ;;  %v1633_v13 = vld [vmem:[#allocation6 + $0x70] sm:$0xff]   ;;  %v1635_v15 = vld [vmem:[#allocation6 + $0x78] sm:$0xff]  }
  0x3e   :  { %v1632_v12 = vld [vmem:[#allocation6 + $0x28] sm:$0xff]   ;;  %478 = vmatprep.mubr.bf16.mxu0 %v1639_v11  ;;  %v1634_v14 = vld [vmem:[#allocation6 + $0x30] sm:$0xff]   ;;  %v1636_v16 = vld [vmem:[#allocation6 + $0x38] sm:$0xff]   ;;  %p1758_p13 = por %p1757_p12, %p1756_p11 }
  0x3f   :  { %1351 = vmatpush3.bf16.msra.mxu0 %v1624_v3  ;;  %1603 = vmatpush3.bf16.msra.mxu1 %v1624_v3  ;;  %v1666_v17 = vld [vmem:[#allocation3 + $0xb4] ss:$8 sps:$4 sm:$0xff]   ;;  %v1637_v18 = vld [vmem:[#allocation3] ss:$8 sps:$4 sm:$0xff]   ;;  %v1664_v20 = vld [vmem:[#allocation3 + $0xb0] ss:$8 sps:$4 sm:$0xff]  }
  0x40   :  { %1352 = vmatprep.subr.bf16.mxu0 %v1625_v4  ;;  %1596 = vmatprep.subr.bf16.mxu1 %v1625_v4  ;;  %v1640_v19 = vld [vmem:[#allocation3 + $0x14] ss:$8 sps:$4 sm:$0xff]   ;;  %v1670_v21 = vld [vmem:[#allocation3 + $0xc4] ss:$8 sps:$4 sm:$0xff]   ;;  %v1642_v22 = vld [vmem:[#allocation3 + $0x10] ss:$8 sps:$4 sm:$0xff]   ;;  %p1759_p0 = pnand %p1758_p13, %p1752_p10 }
  0x41   :  { %566 = vmatprep.mubr.bf16.mxu1 %v1666_v17  ;;  %v1643_v23 = vld [vmem:[#allocation3 + $0x24] ss:$8 sps:$4 sm:$0xff]   ;;  %v1672_v24 = vld [vmem:[#allocation3 + $0xc0] ss:$8 sps:$4 sm:$0xff]   ;;  %v1676_v25 = vld [vmem:[#allocation3 + $0xd4] ss:$8 sps:$4 sm:$0xff]  }
  0x42   :  { %v1645_v26 = vld [vmem:[#allocation3 + $0x20] ss:$8 sps:$4 sm:$0xff]   ;;  %v1646_v27 = vld [vmem:[#allocation3 + $0x34] ss:$8 sps:$4 sm:$0xff]   ;;  %v1678_v28 = vld [vmem:[#allocation3 + $0xd0] ss:$8 sps:$4 sm:$0xff]  }
  0x43   :  { %1353 = vmatpush3.bf16.msra.mxu0 %v1626_v5  ;;  %1604 = vmatpush3.bf16.msra.mxu1 %v1626_v5  ;;  %v1679_v29 = vld [vmem:[#allocation3 + $0xe4] ss:$8 sps:$4 sm:$0xff]   ;;  %v1648_v30 = vld [vmem:[#allocation3 + $0x30] ss:$8 sps:$4 sm:$0xff]   ;;  %v1681_v32 = vld [vmem:[#allocation3 + $0xe0] ss:$8 sps:$4 sm:$0xff]  }
  0x44   :  { %1354 = vmatprep.subr.bf16.mxu0 %v1627_v6  ;;  %1597 = vmatprep.subr.bf16.mxu1 %v1627_v6  ;;  %v1649_v31 = vld [vmem:[#allocation3 + $0x44] ss:$8 sps:$4 sm:$0xff]   ;;  %v1682_v33 = vld [vmem:[#allocation3 + $0xf4] ss:$8 sps:$4 sm:$0xff]   ;;  %v1651_v34 = vld [vmem:[#allocation3 + $0x40] ss:$8 sps:$4 sm:$0xff]  }
  0x45   :  { %v1652_v35 = vld [vmem:[#allocation3 + $0x54] ss:$8 sps:$4 sm:$0xff]   ;;  %v1684_v36 = vld [vmem:[#allocation3 + $0xf0] ss:$8 sps:$4 sm:$0xff]   ;;  %v1655_v38 = vld [vmem:[#allocation3 + $0x64] ss:$8 sps:$4 sm:$0xff]  }
  0x46   :  { %v1654_v37 = vld [vmem:[#allocation3 + $0x50] ss:$8 sps:$4 sm:$0xff]   ;;  %v1657_v39 = vld [vmem:[#allocation3 + $0x60] ss:$8 sps:$4 sm:$0xff]   ;;  %v1658_v40 = vld [vmem:[#allocation3 + $0x74] ss:$8 sps:$4 sm:$0xff]  }
  0x47   :  { %1355 = vmatpush3.bf16.msra.mxu0 %v1628_v7  ;;  %1605 = vmatpush3.bf16.msra.mxu1 %v1628_v7  ;;  %v1660_v41 = vld [vmem:[#allocation3 + $0x70] ss:$8 sps:$4 sm:$0xff]   ;;  %v1661_v42 = vld [vmem:[#allocation3 + $0x84] ss:$8 sps:$4 sm:$0xff]   ;;  %v1663_v43 = vld [vmem:[#allocation3 + $0x80] ss:$8 sps:$4 sm:$0xff]  }
  0x48   :  { %1356 = vmatprep.subr.bf16.mxu0 %v1629_v8  ;;  %1598 = vmatprep.subr.bf16.mxu1 %v1629_v8  ;;  %v1667_v44 = vld [vmem:[#allocation3 + $0x94] ss:$8 sps:$4 sm:$0xff]   ;;  %v1669_v45 = vld [vmem:[#allocation3 + $0x90] ss:$8 sps:$4 sm:$0xff]   ;;  %v1673_v46 = vld [vmem:[#allocation3 + $0xa4] ss:$8 sps:$4 sm:$0xff]  }
  0x49   :  { %v1675_v47 = vld [vmem:[#allocation3 + $0xa0] ss:$8 sps:$4 sm:$0xff]  }
  0x4a   :  { %v1879_v51 = vld [vmem:[#allocation8] ss:$0 sm:$0xff] }
  0x4b   :  { %1357 = vmatpush3.bf16.msra.mxu0 %v1630_v9  ;;  %1606 = vmatpush3.bf16.msra.mxu1 %v1630_v9 }
  0x4c   :  { %1358 = vmatprep.subr.bf16.mxu0 %v1631_v10  ;;  %1599 = vmatprep.subr.bf16.mxu1 %v1631_v10 }
  0x4f   :  { %1359 = vmatpush3.bf16.msra.mxu0 %v1632_v12  ;;  %1607 = vmatpush3.bf16.msra.mxu1 %v1632_v12 }
  0x50   :  { %1360 = vmatprep.subr.bf16.mxu0 %v1633_v13  ;;  %1600 = vmatprep.subr.bf16.mxu1 %v1633_v13 }
  0x53   :  { %1361 = vmatpush3.bf16.msra.mxu0 %v1634_v14  ;;  %1608 = vmatpush3.bf16.msra.mxu1 %v1634_v14 }
  0x54   :  { %1362 = vmatprep.subr.bf16.mxu0 %v1635_v15  ;;  %1601 = vmatprep.subr.bf16.mxu1 %v1635_v15 }
  0x57   :  { %1363 = vmatpush3.bf16.msra.mxu0 %v1636_v16  ;;  %1609 = vmatpush3.bf16.msra.mxu1 %v1636_v16 }
  0x5a   :  { %479 = vmatmul.mubr.bf16.vlgmr.msra.gmra.mrb[0].mxu0 %v1637_v18  ;;  %567 = vmatmul.mubr.bf16.vlgmr.msra.gmra.mrb[0].mxu1 %v1664_v20 }
  0x5b   :  { %486 = vmatprep.mubr.bf16.mxu0 %v1640_v19  ;;  %574 = vmatprep.mubr.bf16.mxu1 %v1670_v21 }
  0x62   :  { %487 = vmatmul.mubr.bf16.gmra.mrb[4].mxu0 %v1642_v22  ;;  %575 = vmatmul.mubr.bf16.gmra.mrb[4].mxu1 %v1672_v24 }
  0x63   :  { %494 = vmatprep.mubr.bf16.mxu0 %v1643_v23  ;;  %582 = vmatprep.mubr.bf16.mxu1 %v1676_v25 }
  0x6a   :  { %495 = vmatmul.mubr.bf16.gmra.mrb[8].mxu0 %v1645_v26  ;;  %583 = vmatmul.mubr.bf16.gmra.mrb[8].mxu1 %v1678_v28 }
  0x6b   :  { %502 = vmatprep.mubr.bf16.mxu0 %v1646_v27  ;;  %590 = vmatprep.mubr.bf16.mxu1 %v1679_v29 }
  0x72   :  { %503 = vmatmul.mubr.bf16.gmra.mrb[12].mxu0 %v1648_v30  ;;  %591 = vmatmul.mubr.bf16.gmra.mrb[12].mxu1 %v1681_v32 }
  0x73   :  { %510 = vmatprep.mubr.bf16.mxu0 %v1649_v31  ;;  %598 = vmatprep.mubr.bf16.mxu1 %v1682_v33 }
  0x7a   :  { %511 = vmatmul.mubr.bf16.gmra.mrb[16].mxu0 %v1651_v34  ;;  %599 = vmatmul.mubr.bf16.gmra.mrb[16].mxu1 %v1684_v36 }
  0x7b   :  { %518 = vmatprep.mubr.bf16.mxu0 %v1652_v35  ;;  %982 = vmatprep.mubr.f32.mxu1 %v1810_v48 }
  0x82   :  { %519 = vmatmul.mubr.bf16.gmra.mrb[20].mxu0 %v1654_v37 }
  0x83   :  { %526 = vmatprep.mubr.bf16.mxu0 %v1655_v38 }
  0x8a   :  { %527 = vmatmul.mubr.bf16.gmra.mrb[24].mxu0 %v1657_v39 }
  0x8b   :  { %534 = vmatprep.mubr.bf16.mxu0 %v1658_v40 }
  0x92   :  { %535 = vmatmul.mubr.bf16.gmra.mrb[28].mxu0 %v1660_v41 }
  0x93   :  { %542 = vmatprep.mubr.bf16.mxu0 %v1661_v42 }
  0x9a   :  { %543 = vmatmul.mubr.bf16.gmra.mrb[32].mxu0 %v1663_v43 }
  0x9b   :  { %550 = vmatprep.mubr.bf16.mxu0 %v1667_v44 }
  0xa2   :  { %551 = vmatmul.mubr.bf16.gmra.mrb[36].mxu0 %v1669_v45 }
  0xa3   :  { %558 = vmatprep.mubr.bf16.mxu0 %v1673_v46 }
  0xaa   :  { %559 = vmatmul.mubr.bf16.gmra.mrb[40].mxu0 %v1675_v47 }
 0x12d   :  { %v1364_v49 = vpop.f32.mrb[0].mxu0  ;;  %v1430_v52 = vpop.f32.mrb[0].mxu1 }
 0x12e   :  { %v1365_v50 = vpop.f32.mrb[1].mxu0  ;;  %v1431_v55 = vpop.f32.mrb[1].mxu1 }
 0x12f   :  { %v1366_v53 = vadd.f32 %v1365_v50, %v1364_v49  ;;  %v1367_v54 = vpop.f32.mrb[2].mxu0  ;;  %v1432_v57 = vadd.f32 %v1431_v55, %v1430_v52  ;;  %v1433_v58 = vpop.f32.mrb[2].mxu1 }
 0x130   :  { %v1368_v56 = vpop.f32.mrb[3].mxu0  ;;  %v1434_v61 = vpop.f32.mrb[3].mxu1 }
 0x131   :  { %v713_v59 = vadd.f32 %v1366_v53, %v1879_v51  ;;  %v1369_v60 = vadd.f32 %v1368_v56, %v1367_v54  ;;  %v735_v62 = vadd.f32 %v1432_v57, %v1879_v51  ;;  %v1435_v63 = vadd.f32 %v1434_v61, %v1433_v58 }
 0x133   :  { %v714_v0 = vadd.f32 %v1369_v60, %v1879_v51  ;;  %v1884_v1 = vmul.f32 %v735_v62, %v735_v62  ;;  %v736_v2 = vadd.f32 %v1435_v63, %v1879_v51  ;;  %v1887_v3 = vmul.f32 %v713_v59, %v713_v59 }
 0x135   :  { %v1889_v4 = vpack.c.bf16 %v714_v0, %v713_v59  ;;  %v1891_v5 = vmul.f32 %v714_v0, %v714_v0  ;;  %v1370_v6 = vpop.f32.mrb[4].mxu0  ;;  %v1893_v8 = vmul.f32 %v736_v2, %v736_v2  ;;  %v1436_v9 = vpop.f32.mrb[4].mxu1  ;;  %v1895_v10 = vpack.c.bf16 %v736_v2, %v735_v62 }
 0x136   :  { %v1371_v7 = vpop.f32.mrb[5].mxu0  ;;  %v1437_v14 = vpop.f32.mrb[5].mxu1 }
 0x137   :  { %1257 = vst [vmem:[#allocation9] sm:$0xff] %v1889_v4   ;;  %v1564_v11 = vpack.c.bf16 %v1891_v5, %v1887_v3  ;;  %v1372_v12 = vadd.f32 %v1371_v7, %v1370_v6  ;;  %v1373_v13 = vpop.f32.mrb[6].mxu0  ;;  %v1438_v16 = vadd.f32 %v1437_v14, %v1436_v9  ;;  %v1439_v17 = vpop.f32.mrb[6].mxu1  ;;  %1343 = vst [vmem:[#allocation9 + $0x58] sm:$0xff] %v1895_v10  }
 0x138   :  { %v1374_v15 = vpop.f32.mrb[7].mxu0  ;;  %v1574_v18 = vpack.c.bf16 %v1893_v8, %v1884_v1  ;;  %v1440_v21 = vpop.f32.mrb[7].mxu1 }
 0x139   :  { %v715_v19 = vadd.f32 %v1372_v12, %v1879_v51  ;;  %v1375_v20 = vadd.f32 %v1374_v15, %v1373_v13  ;;  %v737_v22 = vadd.f32 %v1438_v16, %v1879_v51  ;;  %v1441_v23 = vadd.f32 %v1440_v21, %v1439_v17 }
 0x13b   :  { %v716_v24 = vadd.f32 %v1375_v20, %v1879_v51  ;;  %v1906_v25 = vmul.f32 %v737_v22, %v737_v22  ;;  %v738_v26 = vadd.f32 %v1441_v23, %v1879_v51  ;;  %v1909_v27 = vmul.f32 %v715_v19, %v715_v19 }
 0x13d   :  { %v1911_v28 = vpack.c.bf16 %v716_v24, %v715_v19  ;;  %v1913_v29 = vmul.f32 %v716_v24, %v716_v24  ;;  %v1376_v30 = vpop.f32.mrb[8].mxu0  ;;  %v1915_v32 = vmul.f32 %v738_v26, %v738_v26  ;;  %v1442_v33 = vpop.f32.mrb[8].mxu1  ;;  %v1917_v34 = vpack.c.bf16 %v738_v26, %v737_v22 }
 0x13e   :  { %v1377_v31 = vpop.f32.mrb[9].mxu0  ;;  %v1443_v38 = vpop.f32.mrb[9].mxu1 }
 0x13f   :  { %1333 = vst [vmem:[#allocation9 + $0x8] sm:$0xff] %v1911_v28   ;;  %v1568_v35 = vpack.c.bf16 %v1913_v29, %v1909_v27  ;;  %v1378_v36 = vadd.f32 %v1377_v31, %v1376_v30  ;;  %v1379_v37 = vpop.f32.mrb[10].mxu0  ;;  %v1444_v40 = vadd.f32 %v1443_v38, %v1442_v33  ;;  %v1445_v41 = vpop.f32.mrb[10].mxu1  ;;  %1344 = vst [vmem:[#allocation9 + $0x60] sm:$0xff] %v1917_v34  }
 0x140   :  { %v1380_v39 = vpop.f32.mrb[11].mxu0  ;;  %v1446_v45 = vpop.f32.mrb[11].mxu1 }
 0x141   :  { %v717_v43 = vadd.f32 %v1378_v36, %v1879_v51  ;;  %v1381_v44 = vadd.f32 %v1380_v39, %v1379_v37  ;;  %v739_v46 = vadd.f32 %v1444_v40, %v1879_v51  ;;  %v1447_v47 = vadd.f32 %v1446_v45, %v1445_v41 }
 0x143   :  { %v718_v49 = vadd.f32 %v1381_v44, %v1879_v51  ;;  %v1928_v50 = vmul.f32 %v739_v46, %v739_v46  ;;  %v740_v52 = vadd.f32 %v1447_v47, %v1879_v51  ;;  %v1931_v53 = vmul.f32 %v717_v43, %v717_v43 }
 0x145   :  { %v1933_v54 = vpack.c.bf16 %v718_v49, %v717_v43  ;;  %v1935_v55 = vmul.f32 %v718_v49, %v718_v49  ;;  %v1382_v56 = vpop.f32.mrb[12].mxu0  ;;  %v1937_v58 = vmul.f32 %v740_v52, %v740_v52  ;;  %v1448_v59 = vpop.f32.mrb[12].mxu1  ;;  %v1939_v60 = vpack.c.bf16 %v740_v52, %v739_v46 }
 0x146   :  { %v1383_v57 = vpop.f32.mrb[13].mxu0  ;;  %v1449_v0 = vpop.f32.mrb[13].mxu1 }
 0x147   :  { %1334 = vst [vmem:[#allocation9 + $0x10] sm:$0xff] %v1933_v54   ;;  %v1572_v61 = vpack.c.bf16 %v1935_v55, %v1931_v53  ;;  %v1384_v62 = vadd.f32 %v1383_v57, %v1382_v56  ;;  %v1385_v63 = vpop.f32.mrb[14].mxu0  ;;  %v1450_v6 = vadd.f32 %v1449_v0, %v1448_v59  ;;  %v1451_v7 = vpop.f32.mrb[14].mxu1  ;;  %1345 = vst [vmem:[#allocation9 + $0x68] sm:$0xff] %v1939_v60  }
 0x148   :  { %v1386_v2 = vpop.f32.mrb[15].mxu0  ;;  %v1452_v14 = vpop.f32.mrb[15].mxu1 }
 0x149   :  { %v719_v12 = vadd.f32 %v1384_v62, %v1879_v51  ;;  %v1387_v13 = vadd.f32 %v1386_v2, %v1385_v63  ;;  %v741_v15 = vadd.f32 %v1450_v6, %v1879_v51  ;;  %v1453_v16 = vadd.f32 %v1452_v14, %v1451_v7 }
 0x14b   :  { %v720_v17 = vadd.f32 %v1387_v13, %v1879_v51  ;;  %v1950_v19 = vmul.f32 %v741_v15, %v741_v15  ;;  %v742_v20 = vadd.f32 %v1453_v16, %v1879_v51  ;;  %v1953_v21 = vmul.f32 %v719_v12, %v719_v12 }
 0x14d   :  { %v1955_v22 = vpack.c.bf16 %v720_v17, %v719_v12  ;;  %v1957_v23 = vmul.f32 %v720_v17, %v720_v17  ;;  %v1388_v24 = vpop.f32.mrb[16].mxu0  ;;  %v1959_v30 = vmul.f32 %v742_v20, %v742_v20  ;;  %v1454_v31 = vpop.f32.mrb[16].mxu1  ;;  %v1961_v33 = vpack.c.bf16 %v742_v20, %v741_v15 }
 0x14e   :  { %v1389_v26 = vpop.f32.mrb[17].mxu0  ;;  %v1455_v39 = vpop.f32.mrb[17].mxu1 }
 0x14f   :  { %1335 = vst [vmem:[#allocation9 + $0x18] sm:$0xff] %v1955_v22   ;;  %v1390_v37 = vadd.f32 %v1389_v26, %v1388_v24  ;;  %v1391_v38 = vpop.f32.mrb[18].mxu0  ;;  %v1456_v41 = vadd.f32 %v1455_v39, %v1454_v31  ;;  %v1457_v43 = vpop.f32.mrb[18].mxu1  ;;  %1346 = vst [vmem:[#allocation9 + $0x70] sm:$0xff] %v1961_v33   ;;  %v2113_v3 = vpack.c.bf16 %v1957_v23, %v1953_v21 }
 0x150   :  { %v1392_v40 = vpop.f32.mrb[19].mxu0  ;;  %v1458_v47 = vpop.f32.mrb[19].mxu1  ;;  %v2118_v8 = vpack.c.bf16 %v1959_v30, %v1950_v19 }
 0x151   :  { %v721_v45 = vadd.f32 %v1390_v37, %v1879_v51  ;;  %v1393_v46 = vadd.f32 %v1392_v40, %v1391_v38  ;;  %v743_v49 = vadd.f32 %v1456_v41, %v1879_v51  ;;  %v1459_v52 = vadd.f32 %v1458_v47, %v1457_v43 }
 0x153   :  { %v722_v56 = vadd.f32 %v1393_v46, %v1879_v51  ;;  %v1972_v57 = vmul.f32 %v743_v49, %v743_v49  ;;  %v744_v59 = vadd.f32 %v1459_v52, %v1879_v51  ;;  %v1975_v62 = vmul.f32 %v721_v45, %v721_v45 }
 0x155   :  { %v1977_v63 = vpack.c.bf16 %v722_v56, %v721_v45  ;;  %v1979_v0 = vmul.f32 %v722_v56, %v722_v56  ;;  %v1394_v2 = vpop.f32.mrb[20].mxu0  ;;  %v1981_v7 = vmul.f32 %v744_v59, %v744_v59  ;;  %v1983_v12 = vpack.c.bf16 %v744_v59, %v743_v49 }
 0x156   :  { %v1395_v6 = vpop.f32.mrb[21].mxu0 }
 0x157   :  { %1336 = vst [vmem:[#allocation9 + $0x20] sm:$0xff] %v1977_v63   ;;  %v1396_v14 = vadd.f32 %v1395_v6, %v1394_v2  ;;  %v1397_v15 = vpop.f32.mrb[22].mxu0  ;;  %1347 = vst [vmem:[#allocation9 + $0x78] sm:$0xff] %v1983_v12   ;;  %v2115_v5 = vpack.c.bf16 %v1979_v0, %v1975_v62 }
 0x158   :  { %v1398_v16 = vpop.f32.mrb[23].mxu0 }
 0x159   :  { %v723_v20 = vadd.f32 %v1396_v14, %v1879_v51  ;;  %v1399_v24 = vadd.f32 %v1398_v16, %v1397_v15 }
 0x15b   :  { %v724_v26 = vadd.f32 %v1399_v24, %v1879_v51  ;;  %v1993_v31 = vmul.f32 %v723_v20, %v723_v20 }
 0x15d   :  { %v1995_v37 = vpack.c.bf16 %v724_v26, %v723_v20  ;;  %v1997_v38 = vmul.f32 %v724_v26, %v724_v26  ;;  %v1400_v39 = vpop.f32.mrb[24].mxu0 }
 0x15e   :  { %v1401_v40 = vpop.f32.mrb[25].mxu0 }
 0x15f   :  { %1337 = vst [vmem:[#allocation9 + $0x28] sm:$0xff] %v1995_v37   ;;  %v1402_v43 = vadd.f32 %v1401_v40, %v1400_v39  ;;  %v1403_v45 = vpop.f32.mrb[26].mxu0  ;;  %v2117_v1 = vpack.c.bf16 %v1997_v38, %v1993_v31 }
 0x160   :  { %v1404_v46 = vpop.f32.mrb[27].mxu0 }
 0x161   :  { %v725_v47 = vadd.f32 %v1402_v43, %v1879_v51  ;;  %v1405_v49 = vadd.f32 %v1404_v46, %v1403_v45 }
 0x163   :  { %v726_v52 = vadd.f32 %v1405_v49, %v1879_v51  ;;  %v2004_v56 = vmul.f32 %v725_v47, %v725_v47 }
 0x165   :  { %v2006_v59 = vpack.c.bf16 %v726_v52, %v725_v47  ;;  %v2008_v2 = vmul.f32 %v726_v52, %v726_v52  ;;  %v1406_v6 = vpop.f32.mrb[28].mxu0 }
 0x166   :  { %v1407_v14 = vpop.f32.mrb[29].mxu0 }
 0x167   :  { %1338 = vst [vmem:[#allocation9 + $0x30] sm:$0xff] %v2006_v59   ;;  %v1408_v16 = vadd.f32 %v1407_v14, %v1406_v6  ;;  %v1409_v20 = vpop.f32.mrb[30].mxu0 }
 0x168   :  { %v1410_v24 = vpop.f32.mrb[31].mxu0 }
 0x169   :  { %v727_v26 = vadd.f32 %v1408_v16, %v1879_v51  ;;  %v1411_v39 = vadd.f32 %v1410_v24, %v1409_v20 }
 0x16b   :  { %v728_v40 = vadd.f32 %v1411_v39, %v1879_v51  ;;  %v2015_v43 = vmul.f32 %v727_v26, %v727_v26 }
 0x16d   :  { %v1291_v45 = vpack.c.bf16 %v728_v40, %v727_v26  ;;  %v2017_v46 = vmul.f32 %v728_v40, %v728_v40  ;;  %v1412_v47 = vpop.f32.mrb[32].mxu0 }
 0x16e   :  { %v1413_v49 = vpop.f32.mrb[33].mxu0 }
 0x16f   :  { %1339 = vst [vmem:[#allocation9 + $0x38] sm:$0xff] %v1291_v45   ;;  %v1414_v17 = vadd.f32 %v1413_v49, %v1412_v47  ;;  %v1415_v6 = vpop.f32.mrb[34].mxu0  ;;  %v2121_v27 = vpack.c.bf16 %v2017_v46, %v2015_v43 }
 0x170   :  { %v1416_v14 = vpop.f32.mrb[35].mxu0 }
 0x171   :  { %v729_v15 = vadd.f32 %v1414_v17, %v1879_v51  ;;  %v1417_v16 = vadd.f32 %v1416_v14, %v1415_v6 }
 0x173   :  { %v730_v20 = vadd.f32 %v1417_v16, %v1879_v51  ;;  %v1004_v24 = vmul.f32 %v729_v15, %v729_v15 }
 0x175   :  { %v1005_v39 = vmul.f32 %v730_v20, %v730_v20  ;;  %v1418_v44 = vpop.f32.mrb[36].mxu0  ;;  %v1296_v26 = vpack.c.bf16 %v730_v20, %v729_v15 }
 0x176   :  { %v1419_v40 = vpop.f32.mrb[37].mxu0 }
 0x177   :  { %v1420_v41 = vadd.f32 %v1419_v40, %v1418_v44  ;;  %v1421_v9 = vpop.f32.mrb[38].mxu0  ;;  %1340 = vst [vmem:[#allocation9 + $0x40] sm:$0xff] %v1296_v26   ;;  %1531 = vmatprep.subr.bf16.mxu1 %v1296_v26  ;;  %v1562_v13 = vpack.c.bf16 %v1005_v39, %v1004_v24 }
 0x178   :  { %v1422_v42 = vpop.f32.mrb[39].mxu0  ;;  %1533 = vmatpush3.bf16.msra.mxu1 %v1889_v4 }
 0x179   :  { %v731_v47 = vadd.f32 %v1420_v41, %v1879_v51  ;;  %v1423_v49 = vadd.f32 %v1422_v42, %v1421_v9 }
 0x17b   :  { %v732_v17 = vadd.f32 %v1423_v49, %v1879_v51  ;;  %v1006_v6 = vmul.f32 %v731_v47, %v731_v47 }
 0x17d   :  { %v1007_v14 = vmul.f32 %v732_v17, %v732_v17  ;;  %v1424_v16 = vpop.f32.mrb[40].mxu0  ;;  %v1301_v52 = vpack.c.bf16 %v732_v17, %v731_v47 }
 0x17e   :  { %v1425_v36 = vpop.f32.mrb[41].mxu0 }
 0x17f   :  { %v1426_v15 = vadd.f32 %v1425_v36, %v1424_v16  ;;  %v1427_v20 = vpop.f32.mrb[42].mxu0  ;;  %1341 = vst [vmem:[#allocation9 + $0x48] sm:$0xff] %v1301_v52   ;;  %1535 = vmatprep.subr.bf16.mxu1 %v1301_v52  ;;  %v1566_v44 = vpack.c.bf16 %v1007_v14, %v1006_v6 }
 0x180   :  { %v1428_v26 = vpop.f32.mrb[43].mxu0  ;;  %1537 = vmatpush3.bf16.msra.mxu1 %v1911_v28 }
 0x181   :  { %v733_v4 = vadd.f32 %v1426_v15, %v1879_v51  ;;  %v1429_v24 = vadd.f32 %v1428_v26, %v1427_v20 }
 0x183   :  { %v734_v42 = vadd.f32 %v1429_v24, %v1879_v51  ;;  %v1008_v9 = vmul.f32 %v733_v4, %v733_v4  ;;  %v906_v51 = vlaneseq }
 0x185   :  { %v1009_v41 = vmul.f32 %v734_v42, %v734_v42  ;;  %v1306_v39 = vpack.c.bf16 %v734_v42, %v733_v4  ;;  %v907_v28 = vand.u32 127, %v906_v51 }
 0x187   :  { %1342 = vst [vmem:[#allocation9 + $0x50] sm:$0xff] %v1306_v39   ;;  %1539 = vmatprep.subr.bf16.mxu1 %v1306_v39  ;;  %v1570_v40 = vpack.c.bf16 %v1009_v41, %v1008_v9  ;;  %vm912_vm0 = vcmp.lt.s32.totalorder %v907_v28, 32 }
 0x188   :  { %1541 = vmatpush3.bf16.msra.mxu1 %v1933_v54 }
 0x189   :  { %1543 = vmatprep.subr.bf16.mxu1 %v1895_v10  ;;  %v1811_v10 = vmov 1.0  }
 0x18c   :  { %1545 = vmatpush3.bf16.msra.mxu1 %v1955_v22 }
 0x18d   :  { %1547 = vmatprep.subr.bf16.mxu1 %v1917_v34 }
 0x190   :  { %1549 = vmatpush3.bf16.msra.mxu1 %v1977_v63 }
 0x191   :  { %1551 = vmatprep.subr.bf16.mxu1 %v1939_v60 }
 0x194   :  { %1553 = vmatpush3.bf16.msra.mxu1 %v1995_v37 }
 0x195   :  { %1555 = vmatprep.subr.bf16.mxu1 %v1961_v33 }
 0x198   :  { %1557 = vmatpush3.bf16.msra.mxu1 %v2006_v59 }
 0x199   :  { %1559 = vmatprep.subr.bf16.mxu1 %v1983_v12 }
 0x19c   :  { %1561 = vmatpush3.bf16.msra.mxu1 %v1291_v45 }
 0x19d   :  { %1563 = vmatprep.subr.bf16.mxu1 %v1562_v13 }
 0x19f   :  { %1219 = vmatmul.mubr.msk.f32.vlgmr.msra.gmra.mrb[20].mxu1 %vm912_vm0, %v1811_v10 }
 0x1a0   :  { %1565 = vmatpush3.bf16.msra.mxu1 %v1564_v11  ;;  %1084 = vmatprep.mubr.f32.mxu1 %v1810_v48  ;;  %v2114_v48 = vpack.c.bf16 %v1915_v32, %v1906_v25  ;;  %v2116_v11 = vpack.c.bf16 %v1937_v58, %v1928_v50  ;;  %v2120_v25 = vpack.c.bf16 %v1981_v7, %v1972_v57 }
 0x1a1   :  { %1567 = vmatprep.subr.bf16.mxu1 %v1566_v44 }
 0x1a4   :  { %1569 = vmatpush3.bf16.msra.mxu1 %v1568_v35 }
 0x1a5   :  { %1571 = vmatprep.subr.bf16.mxu1 %v1570_v40 }
 0x1a8   :  { %1573 = vmatpush3.bf16.msra.mxu1 %v1572_v61 }
 0x1a9   :  { %1575 = vmatprep.subr.bf16.mxu1 %v1574_v18  ;;  %v2119_v18 = vpack.c.bf16 %v2008_v2, %v2004_v56 }
 0x1ac   :  { %1577 = vmatpush3.bf16.msra.mxu1 %v2113_v3 }
 0x1ad   :  { %1579 = vmatprep.subr.bf16.mxu1 %v2114_v48 }
 0x1b0   :  { %1581 = vmatpush3.bf16.msra.mxu1 %v2115_v5 }
 0x1b1   :  { %1583 = vmatprep.subr.bf16.mxu1 %v2116_v11 }
 0x1b4   :  { %1585 = vmatpush3.bf16.msra.mxu1 %v2117_v1 }
 0x1b5   :  { %1587 = vmatprep.subr.bf16.mxu1 %v2118_v8 }
 0x1b8   :  { %1589 = vmatpush3.bf16.msra.mxu1 %v2119_v18 }
 0x1b9   :  { %1591 = vmatprep.subr.bf16.mxu1 %v2120_v25 }
 0x1bc   :  { %1593 = vmatpush3.bf16.msra.mxu1 %v2121_v27 }
 0x1bf   :  { %1220 = vmatmul.mubr.msk.f32.vlgmr.msra.gmra.mrb[22].mxu1 %vm912_vm0, %v1811_v10 }
 0x1c0   :  { %1762 = shalt.err (!%p1759_p0)
}
 0x1c1   :  { %s1763_s8 = scalar_lea.hbm %s2111_s3, 2048 }
 0x1c2   :  { %p1764_p1 = scmp.ne.s32.totalorder %s2111_s3, %s1763_s8  ;;  %p1767_p2 = scmp.lt.u32.totalorder %s1763_s8, %s2111_s3 }
 0x1c4   :  { %p1769_p3 = pnand %p1767_p2, %p1764_p1 }
 0x1c6   :  { %1772 = shalt.err (!%p1769_p3)
}
 0x1c7   :  { %1116 = dma.vmem_to_hbm [thread:$0]  %s1111_s30, 2048, %s2111_s3, [#allocation5], %s1804_s25, %s1804_s25, %s1805_s26   ;;  %v1091_v35 = vshrl.u32 %v906_v51, 7 }
 0x1c8   :  { %s1813_s14 = smov [#allocation10]  }
 0x1c9   :  { %v1096_v53 = vsub.s32 0, %v1091_v35  ;;  %vm1093_vm1 = vcmp.eq.s32.totalorder %v1091_v35, 1  ;;  %s1123_s15 = sshll.u32 %s1813_s14, 4  ;;  %vm1092_vm2 = vcmp.eq.s32.totalorder %v1091_v35, 0  ;;  %s1124_s15 = int_to_ptr.vmem [resolvable:$true] %s1123_s15 }
 0x1ca   :  { %s1773_s16 = scalar_lea.vmem %s1124_s15, 128  ;;  %p1778_p5 = scmp.lt.s32.totalorder %s1124_s15, %s1124_s15 }
 0x1cb   :  { %p1774_p4 = scmp.ne.s32.totalorder %s1124_s15, %s1773_s16  ;;  %p1779_p6 = scmp.lt.s32.totalorder %s1773_s16, %s1773_s16 }
 0x1cd   :  { %p1780_p7 = por %p1779_p6, %p1778_p5 }
 0x1cf   :  { %p1781_p8 = pnand %p1780_p7, %p1774_p4 }
 0x272   :  { %v1492_v29 = vpop.f32.mrb[20].mxu1 }
 0x273   :  { %v1493_v32 = vpop.f32.mrb[21].mxu1 }
 0x274   :  { %v1494_v34 = vadd.f32 %v1493_v32, %v1492_v29 }
 0x276   :  { %v1102_v60 = vrot.slane %v1494_v34, %v1096_v53 }
 0x292   :  { %v1527_v50 = vpop.f32.mrb[22].mxu1 }
 0x293   :  { %v1528_v54 = vpop.f32.mrb[23].mxu1 }
 0x294   :  { %v1529_v55 = vadd.f32 %v1528_v54, %v1527_v50 }
 0x296   :  { %v1097_v58 = vrot.slane %v1529_v55, %v1096_v53 }
 0x298   :  { %v1098_v61 = vsel %vm1093_vm1, %v1097_v58, 0.0 }
 0x299   :  { %v1103_v19 = vsel %vm1092_vm2, %v1102_v60, %v1098_v61 }
 0x29a   :  { %1104 = vst [vmem:[#allocation10] sm:$0xff] %v1103_v19 }
 0x29b   :  { %1784 = shalt.err (!%p1781_p8)
}
 0x29c   :  { %s1785_s26 = scalar_lea.hbm %s2112_s4, 128 }
 0x29d   :  { %p1786_p9 = scmp.ne.s32.totalorder %s2112_s4, %s1785_s26  ;;  %p1789_p10 = scmp.lt.u32.totalorder %s1785_s26, %s2112_s4 }
 0x29f   :  { %p1791_p11 = pnand %p1789_p10, %p1786_p9 }
 0x2a1   :  { %1794 = shalt.err (!%p1791_p11)
}
 0x2a2   :  { %1126 = dma.vmem_to_hbm [thread:$0]  %s1124_s15, 128, %s2112_s4, [#allocation11]  }
 0x2a3   :  { %1799 = dma.done.wait [#allocation5], 2048  }
 0x2a4   :  { %1800 = vsyncadd [#allocation5], 4294965248 }
 0x2a5   :  { %1801 = dma.done.wait [#allocation11], 128  }
 0x2a6   :  { %1802 = vsyncadd [#allocation11], 4294967168 }
 0x2a7   :  { %1133 = vsyncpa [#allocation4], 1 }
 0x2a8   :  { %1134 = vsyncpa [#allocation7], 1 }
 0x2a9   :  { %1135 = vsyncpa [#allocation5], 1 }
 0x2aa   :  { %1136 = vsyncpa [#allocation11], 1 }

// kernel: _lambda_.32
= control target key start
LH: loop header
LB: loop body
LE: loop exit
PB: predicated region body
PF: predicated region fallthrough
CT: control target
= control target key end

     0   :  { %10 = vsyncpa [#allocation4], 0  ;;  %s1835_s0 = inlined_call_operand.hbm [shape: bf16[256,128], index: 0, kind: input, shape index: {}]   ;;  %s1836_s1 = inlined_call_operand.hbm [shape: bf16[128,128], index: 1, kind: input, shape index: {}]   ;;  %s1837_s2 = inlined_call_operand.hbm [shape: f32[1,128], index: 2, kind: input, shape index: {}]   ;;  %s1838_s3 = inlined_call_operand.hbm [shape: bf16[256,128], index: 3, kind: output, shape index: {0}]   ;;  %s1839_s4 = inlined_call_operand.hbm [shape: f32[8,128], index: 4, kind: output, shape index: {1}]  }
   0x1   :  { %11 = vsyncpa [#allocation7], 0 }
   0x2   :  { %12 = vsyncpa [#allocation5], 0 }
   0x3   :  { %13 = vsyncpa [#allocation11], 0  ;;  %s1553_s15 = smov [#allocation6]   ;;  %s1554_s17 = smov [#allocation3]  }
   0x4   :  { %s31_s16 = sshll.u32 %s1553_s15, 4  ;;  %s19_s18 = sshll.u32 %s1554_s17, 4  ;;  %s32_s16 = int_to_ptr.vmem [resolvable:$true] %s31_s16  ;;  %s1587_s18 = int_to_ptr.vmem [resolvable:$true] %s19_s18 }
   0x5   :  { %s1435_s21 = scalar_lea.hbm %s1836_s1, 1024 }
   0x6   :  { %p1436_p0 = scmp.ne.s32.totalorder %s1836_s1, %s1435_s21  ;;  %p1439_p1 = scmp.lt.u32.totalorder %s1435_s21, %s1836_s1 }
   0x8   :  { %p1441_p2 = pnand %p1439_p1, %p1436_p0 }
   0xa   :  { %1444 = shalt.err (!%p1441_p2)
}
   0xb   :  { %s1445_s26 = scalar_lea.vmem %s32_s16, 1024  ;;  %p1450_p4 = scmp.lt.s32.totalorder %s32_s16, %s32_s16 }
   0xc   :  { %p1446_p3 = scmp.ne.s32.totalorder %s32_s16, %s1445_s26  ;;  %p1451_p5 = scmp.lt.s32.totalorder %s1445_s26, %s1445_s26 }
   0xe   :  { %p1452_p6 = por %p1451_p5, %p1450_p4 }
  0x10   :  { %p1453_p7 = pnand %p1452_p6, %p1446_p3 }
  0x12   :  { %1456 = shalt.err (!%p1453_p7)
}
  0x13   :  { %s1555_s27 = smov 64   ;;  %s1556_s28 = smov 4  }
  0x14   :  { %37 = dma.hbm_to_vmem [thread:$0]  %s1836_s1, 1024, %s32_s16, [#allocation7], %s1555_s27, %s1555_s27, %s1556_s28  }
  0x15   :  { %s1457_s7 = scalar_lea.hbm %s1835_s0, 2048 }
  0x16   :  { %p1458_p8 = scmp.ne.s32.totalorder %s1835_s0, %s1457_s7  ;;  %p1461_p9 = scmp.lt.u32.totalorder %s1457_s7, %s1835_s0 }
  0x18   :  { %p1463_p10 = pnand %p1461_p9, %p1458_p8 }
  0x1a   :  { %1466 = shalt.err (!%p1463_p10)
}
  0x1b   :  { %s1467_s12 = scalar_lea.vmem %s1587_s18, 2048  ;;  %p1472_p12 = scmp.lt.s32.totalorder %s1587_s18, %s1587_s18 }
  0x1c   :  { %p1468_p11 = scmp.ne.s32.totalorder %s1587_s18, %s1467_s12  ;;  %p1473_p13 = scmp.lt.s32.totalorder %s1467_s12, %s1467_s12 }
  0x1e   :  { %p1474_p0 = por %p1473_p13, %p1472_p12 }
  0x20   :  { %p1475_p1 = pnand %p1474_p0, %p1468_p11 }
  0x22   :  { %1478 = shalt.err (!%p1475_p1)
}
  0x23   :  { %25 = dma.hbm_to_vmem [thread:$0]  %s1835_s0, 2048, %s1587_s18, [#allocation4], %s1555_s27, %s1555_s27, %s1556_s28  }
  0x24   :  { %s1557_s14 = smov [#allocation8]   ;;  %s1479_s19 = scalar_lea.hbm %s1837_s2, 16 }
  0x25   :  { %s44_s15 = sshll.u32 %s1557_s14, 4  ;;  %p1480_p2 = scmp.ne.s32.totalorder %s1837_s2, %s1479_s19  ;;  %s45_s15 = int_to_ptr.vmem [resolvable:$true] %s44_s15 }
  0x26   :  { %p1483_p3 = scmp.lt.u32.totalorder %s1479_s19, %s1837_s2 }
  0x28   :  { %p1485_p4 = pnand %p1483_p3, %p1480_p2 }
  0x2a   :  { %1488 = shalt.err (!%p1485_p4)
}
  0x2b   :  { %s1489_s24 = scalar_lea.vmem %s45_s15, 16  ;;  %s1493_s0 = scalar_lea.vmem %s45_s15, 32 }
  0x2c   :  { %p1490_p5 = scmp.ne.s32.totalorder %s45_s15, %s1489_s24  ;;  %p1494_p6 = scmp.lt.s32.totalorder %s45_s15, %s45_s15 }
  0x2d   :  { %p1495_p7 = scmp.lt.s32.totalorder %s1493_s0, %s1489_s24 }
  0x2f   :  { %p1496_p8 = por %p1495_p7, %p1494_p6 }
  0x31   :  { %p1497_p9 = pnand %p1496_p8, %p1490_p5 }
  0x33   :  { %1500 = shalt.err (!%p1497_p9)
}
  0x34   :  { %47 = dma.hbm_to_vmem [thread:$0]  %s1837_s2, 16, %s45_s15, [#allocation7]  }
  0x35   :  { %1545 = dma.done.wait [#allocation4], 2048  }
  0x36   :  { %1546 = vsyncadd [#allocation4], 4294965248 }
  0x37   :  { %1547 = dma.done.wait [#allocation7], 1040  }
  0x38   :  { %1548 = vsyncadd [#allocation7], 4294966256  ;;  %v1411_v0 = vld [vmem:[#allocation6] sm:$0xff]   ;;  %v1412_v1 = vld [vmem:[#allocation6 + $0x8] sm:$0xff]   ;;  %v1558_v24 = vmov 0.0   ;;  %s1560_s2 = smov [#allocation9]  }
  0x39   :  { %1290 = vmatprep.subr.bf16.mxu0 %v1411_v0  ;;  %v1413_v2 = vld [vmem:[#allocation6 + $0x10] sm:$0xff]   ;;  %v1414_v3 = vld [vmem:[#allocation6 + $0x18] sm:$0xff]   ;;  %v1419_v4 = vld [vmem:[#allocation3] sm:$0xff]   ;;  %854 = vmatprep.mubr.f32.mxu1 %v1558_v24  ;;  %s982_s26 = sshll.u32 %s1560_s2, 4  ;;  %s983_s26 = int_to_ptr.vmem [resolvable:$true] %s982_s26 }
  0x3a   :  { %1291 = vmatpush3.bf16.msra.mxu0 %v1411_v0  ;;  %1306 = vmatprep.mubr.bf16.mxu0 %v1419_v4  ;;  %v1415_v5 = vld [vmem:[#allocation6 + $0x20] sm:$0xff]   ;;  %v1416_v6 = vld [vmem:[#allocation6 + $0x28] sm:$0xff]   ;;  %v1417_v7 = vld [vmem:[#allocation6 + $0x30] sm:$0xff]   ;;  %s1501_s29 = scalar_lea.vmem %s983_s26, 2048  ;;  %p1506_p11 = scmp.lt.s32.totalorder %s983_s26, %s983_s26 }
  0x3b   :  { %1292 = vmatprep.subr.bf16.mxu0 %v1412_v1  ;;  %v1418_v8 = vld [vmem:[#allocation6 + $0x38] sm:$0xff]   ;;  %v1420_v9 = vld [vmem:[#allocation3 + $0x8] sm:$0xff]   ;;  %v1421_v10 = vld [vmem:[#allocation3 + $0x10] sm:$0xff]   ;;  %p1502_p10 = scmp.ne.s32.totalorder %s983_s26, %s1501_s29  ;;  %p1507_p12 = scmp.lt.s32.totalorder %s1501_s29, %s1501_s29 }
  0x3c   :  { %v1422_v11 = vld [vmem:[#allocation3 + $0x18] sm:$0xff]   ;;  %v1423_v12 = vld [vmem:[#allocation3 + $0x20] sm:$0xff]   ;;  %v1424_v13 = vld [vmem:[#allocation3 + $0x28] sm:$0xff]  }
  0x3d   :  { %v1425_v14 = vld [vmem:[#allocation3 + $0x30] sm:$0xff]   ;;  %v1426_v15 = vld [vmem:[#allocation3 + $0x38] sm:$0xff]   ;;  %v1427_v16 = vld [vmem:[#allocation3 + $0x40] sm:$0xff]   ;;  %p1508_p13 = por %p1507_p12, %p1506_p11 }
  0x3e   :  { %1293 = vmatpush3.bf16.msra.mxu0 %v1412_v1  ;;  %v1428_v17 = vld [vmem:[#allocation3 + $0x48] sm:$0xff]   ;;  %v1429_v18 = vld [vmem:[#allocation3 + $0x50] sm:$0xff]   ;;  %v1430_v19 = vld [vmem:[#allocation3 + $0x58] sm:$0xff]  }
  0x3f   :  { %1294 = vmatprep.subr.bf16.mxu0 %v1413_v2  ;;  %v1431_v20 = vld [vmem:[#allocation3 + $0x60] sm:$0xff]   ;;  %v1432_v21 = vld [vmem:[#allocation3 + $0x68] sm:$0xff]   ;;  %v1433_v22 = vld [vmem:[#allocation3 + $0x70] sm:$0xff]   ;;  %p1509_p0 = pnand %p1508_p13, %p1502_p10 }
  0x40   :  { %v1434_v23 = vld [vmem:[#allocation3 + $0x78] sm:$0xff]   ;;  %v1637_v25 = vld [vmem:[#allocation8] ss:$0 sm:$0xff] }
  0x42   :  { %1295 = vmatpush3.bf16.msra.mxu0 %v1413_v2 }
  0x43   :  { %1296 = vmatprep.subr.bf16.mxu0 %v1414_v3 }
  0x46   :  { %1297 = vmatpush3.bf16.msra.mxu0 %v1414_v3 }
  0x47   :  { %1298 = vmatprep.subr.bf16.mxu0 %v1415_v5 }
  0x4a   :  { %1299 = vmatpush3.bf16.msra.mxu0 %v1415_v5 }
  0x4b   :  { %1300 = vmatprep.subr.bf16.mxu0 %v1416_v6 }
  0x4e   :  { %1301 = vmatpush3.bf16.msra.mxu0 %v1416_v6 }
  0x4f   :  { %1302 = vmatprep.subr.bf16.mxu0 %v1417_v7 }
  0x52   :  { %1303 = vmatpush3.bf16.msra.mxu0 %v1417_v7 }
  0x53   :  { %1304 = vmatprep.subr.bf16.mxu0 %v1418_v8 }
  0x56   :  { %1305 = vmatpush3.bf16.msra.mxu0 %v1418_v8 }
  0x59   :  { %1307 = vmatmul.mubr.bf16.vlgmr.msra.gmra.mrb[0].mxu0 %v1420_v9 }
  0x5a   :  { %1310 = vmatprep.mubr.bf16.mxu0 %v1421_v10 }
  0x61   :  { %1311 = vmatmul.mubr.bf16.gmra.mrb[4].mxu0 %v1422_v11 }
  0x62   :  { %1314 = vmatprep.mubr.bf16.mxu0 %v1423_v12 }
  0x69   :  { %1315 = vmatmul.mubr.bf16.gmra.mrb[8].mxu0 %v1424_v13 }
  0x6a   :  { %1318 = vmatprep.mubr.bf16.mxu0 %v1425_v14 }
  0x71   :  { %1319 = vmatmul.mubr.bf16.gmra.mrb[12].mxu0 %v1426_v15 }
  0x72   :  { %1322 = vmatprep.mubr.bf16.mxu0 %v1427_v16 }
  0x79   :  { %1323 = vmatmul.mubr.bf16.gmra.mrb[16].mxu0 %v1428_v17 }
  0x7a   :  { %1326 = vmatprep.mubr.bf16.mxu0 %v1429_v18 }
  0x81   :  { %1327 = vmatmul.mubr.bf16.gmra.mrb[20].mxu0 %v1430_v19 }
  0x82   :  { %1330 = vmatprep.mubr.bf16.mxu0 %v1431_v20 }
  0x89   :  { %1331 = vmatmul.mubr.bf16.gmra.mrb[24].mxu0 %v1432_v21 }
  0x8a   :  { %1334 = vmatprep.mubr.bf16.mxu0 %v1433_v22 }
  0x91   :  { %1335 = vmatmul.mubr.bf16.gmra.mrb[28].mxu0 %v1434_v23 }
 0x12c   :  { %v1308_v26 = vpop.f32.mrb[0].mxu0 }
 0x12d   :  { %v587_v27 = vadd.f32 %v1308_v26, %v1637_v25  ;;  %v352_v28 = vpop.f32.mrb[1].mxu0 }
 0x12e   :  { %v585_v29 = vadd.f32 %v1637_v25, %v352_v28  ;;  %v1309_v30 = vpop.f32.mrb[2].mxu0 }
 0x12f   :  { %v588_v31 = vadd.f32 %v1309_v30, %v1637_v25  ;;  %v355_v32 = vpop.f32.mrb[3].mxu0  ;;  %v1643_v34 = vmul.f32 %v587_v27, %v587_v27 }
 0x130   :  { %v586_v33 = vadd.f32 %v1637_v25, %v355_v32  ;;  %v1649_v37 = vmul.f32 %v585_v29, %v585_v29 }
 0x131   :  { %v1645_v35 = vpack.c.bf16 %v588_v31, %v587_v27  ;;  %v1647_v36 = vmul.f32 %v588_v31, %v588_v31 }
 0x132   :  { %v1651_v38 = vmul.f32 %v586_v33, %v586_v33  ;;  %v1653_v39 = vpack.c.bf16 %v586_v33, %v585_v29 }
 0x133   :  { %1181 = vst [vmem:[#allocation9 + $0x8] sm:$0xff] %v1645_v35   ;;  %v1376_v40 = vpack.c.bf16 %v1647_v36, %v1643_v34 }
 0x134   :  { %v1372_v41 = vpack.c.bf16 %v1651_v38, %v1649_v37  ;;  %v1312_v42 = vpop.f32.mrb[4].mxu0  ;;  %1105 = vst [vmem:[#allocation9] sm:$0xff] %v1653_v39  }
 0x135   :  { %v591_v43 = vadd.f32 %v1312_v42, %v1637_v25  ;;  %v368_v44 = vpop.f32.mrb[5].mxu0 }
 0x136   :  { %v589_v45 = vadd.f32 %v1637_v25, %v368_v44  ;;  %v1313_v46 = vpop.f32.mrb[6].mxu0 }
 0x137   :  { %v592_v47 = vadd.f32 %v1313_v46, %v1637_v25  ;;  %v371_v48 = vpop.f32.mrb[7].mxu0  ;;  %v1665_v50 = vmul.f32 %v591_v43, %v591_v43 }
 0x138   :  { %v590_v49 = vadd.f32 %v1637_v25, %v371_v48  ;;  %v1671_v53 = vmul.f32 %v589_v45, %v589_v45 }
 0x139   :  { %v1667_v51 = vpack.c.bf16 %v592_v47, %v591_v43  ;;  %v1669_v52 = vmul.f32 %v592_v47, %v592_v47 }
 0x13a   :  { %v1673_v54 = vpack.c.bf16 %v590_v49, %v589_v45  ;;  %v1675_v55 = vmul.f32 %v590_v49, %v590_v49 }
 0x13b   :  { %1183 = vst [vmem:[#allocation9 + $0x18] sm:$0xff] %v1667_v51   ;;  %v1384_v56 = vpack.c.bf16 %v1669_v52, %v1665_v50 }
 0x13c   :  { %1182 = vst [vmem:[#allocation9 + $0x10] sm:$0xff] %v1673_v54   ;;  %v1380_v57 = vpack.c.bf16 %v1675_v55, %v1671_v53  ;;  %v1316_v58 = vpop.f32.mrb[8].mxu0 }
 0x13d   :  { %v595_v59 = vadd.f32 %v1316_v58, %v1637_v25  ;;  %v384_v60 = vpop.f32.mrb[9].mxu0 }
 0x13e   :  { %v593_v61 = vadd.f32 %v1637_v25, %v384_v60  ;;  %v1317_v62 = vpop.f32.mrb[10].mxu0 }
 0x13f   :  { %v596_v63 = vadd.f32 %v1317_v62, %v1637_v25  ;;  %v387_v0 = vpop.f32.mrb[11].mxu0  ;;  %v1687_v2 = vmul.f32 %v595_v59, %v595_v59 }
 0x140   :  { %v594_v1 = vadd.f32 %v1637_v25, %v387_v0  ;;  %v1693_v5 = vmul.f32 %v593_v61, %v593_v61 }
 0x141   :  { %v1689_v3 = vpack.c.bf16 %v596_v63, %v595_v59  ;;  %v1691_v4 = vmul.f32 %v596_v63, %v596_v63 }
 0x142   :  { %v1695_v6 = vpack.c.bf16 %v594_v1, %v593_v61  ;;  %v1697_v7 = vmul.f32 %v594_v1, %v594_v1 }
 0x143   :  { %1185 = vst [vmem:[#allocation9 + $0x28] sm:$0xff] %v1689_v3   ;;  %v1392_v8 = vpack.c.bf16 %v1691_v4, %v1687_v2 }
 0x144   :  { %1184 = vst [vmem:[#allocation9 + $0x20] sm:$0xff] %v1695_v6   ;;  %v1388_v9 = vpack.c.bf16 %v1697_v7, %v1693_v5  ;;  %v1320_v10 = vpop.f32.mrb[12].mxu0 }
 0x145   :  { %v599_v11 = vadd.f32 %v1320_v10, %v1637_v25  ;;  %v400_v12 = vpop.f32.mrb[13].mxu0 }
 0x146   :  { %v597_v13 = vadd.f32 %v1637_v25, %v400_v12  ;;  %v1321_v14 = vpop.f32.mrb[14].mxu0 }
 0x147   :  { %v600_v15 = vadd.f32 %v1321_v14, %v1637_v25  ;;  %v403_v16 = vpop.f32.mrb[15].mxu0  ;;  %v1709_v18 = vmul.f32 %v599_v11, %v599_v11 }
 0x148   :  { %v598_v17 = vadd.f32 %v1637_v25, %v403_v16  ;;  %v1715_v21 = vmul.f32 %v597_v13, %v597_v13 }
 0x149   :  { %v1711_v19 = vpack.c.bf16 %v600_v15, %v599_v11  ;;  %v1713_v20 = vmul.f32 %v600_v15, %v600_v15 }
 0x14a   :  { %v1717_v22 = vpack.c.bf16 %v598_v17, %v597_v13  ;;  %v1719_v23 = vmul.f32 %v598_v17, %v598_v17 }
 0x14b   :  { %1187 = vst [vmem:[#allocation9 + $0x38] sm:$0xff] %v1711_v19   ;;  %v1400_v26 = vpack.c.bf16 %v1713_v20, %v1709_v18 }
 0x14c   :  { %1186 = vst [vmem:[#allocation9 + $0x30] sm:$0xff] %v1717_v22   ;;  %v1396_v27 = vpack.c.bf16 %v1719_v23, %v1715_v21  ;;  %v1324_v28 = vpop.f32.mrb[16].mxu0 }
 0x14d   :  { %v603_v29 = vadd.f32 %v1324_v28, %v1637_v25  ;;  %v416_v30 = vpop.f32.mrb[17].mxu0 }
 0x14e   :  { %v601_v31 = vadd.f32 %v1637_v25, %v416_v30  ;;  %v1325_v32 = vpop.f32.mrb[18].mxu0 }
 0x14f   :  { %v604_v33 = vadd.f32 %v1325_v32, %v1637_v25  ;;  %v419_v42 = vpop.f32.mrb[19].mxu0  ;;  %v1731_v44 = vmul.f32 %v603_v29, %v603_v29 }
 0x150   :  { %v602_v43 = vadd.f32 %v1637_v25, %v419_v42  ;;  %v1735_v47 = vmul.f32 %v601_v31, %v601_v31 }
 0x151   :  { %v1149_v45 = vpack.c.bf16 %v604_v33, %v603_v29  ;;  %v1733_v46 = vmul.f32 %v604_v33, %v604_v33 }
 0x152   :  { %v1737_v48 = vmul.f32 %v602_v43, %v602_v43  ;;  %v1144_v49 = vpack.c.bf16 %v602_v43, %v601_v31 }
 0x153   :  { %1189 = vst [vmem:[#allocation9 + $0x48] sm:$0xff] %v1149_v45   ;;  %v1374_v58 = vpack.c.bf16 %v1733_v46, %v1731_v44 }
 0x154   :  { %v1328_v59 = vpop.f32.mrb[20].mxu0  ;;  %1188 = vst [vmem:[#allocation9 + $0x40] sm:$0xff] %v1144_v49   ;;  %1339 = vmatprep.subr.bf16.mxu1 %v1144_v49  ;;  %v1370_v60 = vpack.c.bf16 %v1737_v48, %v1735_v47 }
 0x155   :  { %v607_v61 = vadd.f32 %v1328_v59, %v1637_v25  ;;  %v432_v62 = vpop.f32.mrb[21].mxu0  ;;  %1341 = vmatpush3.bf16.msra.mxu1 %v1653_v39 }
 0x156   :  { %v605_v63 = vadd.f32 %v1637_v25, %v432_v62  ;;  %v1329_v0 = vpop.f32.mrb[22].mxu0  ;;  %1343 = vmatprep.subr.bf16.mxu1 %v1149_v45 }
 0x157   :  { %v608_v1 = vadd.f32 %v1329_v0, %v1637_v25  ;;  %v435_v10 = vpop.f32.mrb[23].mxu0  ;;  %v1748_v12 = vmul.f32 %v607_v61, %v607_v61 }
 0x158   :  { %v606_v11 = vadd.f32 %v1637_v25, %v435_v10  ;;  %v1753_v15 = vmul.f32 %v605_v63, %v605_v63 }
 0x159   :  { %v1159_v13 = vpack.c.bf16 %v608_v1, %v607_v61  ;;  %v1750_v14 = vmul.f32 %v608_v1, %v608_v1  ;;  %1345 = vmatpush3.bf16.msra.mxu1 %v1645_v35 }
 0x15a   :  { %v1154_v16 = vpack.c.bf16 %v606_v11, %v605_v63  ;;  %v1755_v39 = vmul.f32 %v606_v11, %v606_v11 }
 0x15b   :  { %1191 = vst [vmem:[#allocation9 + $0x58] sm:$0xff] %v1159_v13   ;;  %v1382_v17 = vpack.c.bf16 %v1750_v14, %v1748_v12 }
 0x15c   :  { %1190 = vst [vmem:[#allocation9 + $0x50] sm:$0xff] %v1154_v16   ;;  %v1332_v28 = vpop.f32.mrb[24].mxu0  ;;  %1347 = vmatprep.subr.bf16.mxu1 %v1154_v16  ;;  %v1378_v29 = vpack.c.bf16 %v1755_v39, %v1753_v15 }
 0x15d   :  { %v611_v30 = vadd.f32 %v1332_v28, %v1637_v25  ;;  %v448_v31 = vpop.f32.mrb[25].mxu0  ;;  %1349 = vmatpush3.bf16.msra.mxu1 %v1673_v54 }
 0x15e   :  { %v609_v35 = vadd.f32 %v1637_v25, %v448_v31  ;;  %v1333_v32 = vpop.f32.mrb[26].mxu0  ;;  %1351 = vmatprep.subr.bf16.mxu1 %v1159_v13 }
 0x15f   :  { %v612_v33 = vadd.f32 %v1333_v32, %v1637_v25  ;;  %v451_v42 = vpop.f32.mrb[27].mxu0  ;;  %v886_v45 = vmul.f32 %v611_v30, %v611_v30 }
 0x160   :  { %v610_v43 = vadd.f32 %v1637_v25, %v451_v42  ;;  %v884_v61 = vmul.f32 %v609_v35, %v609_v35 }
 0x161   :  { %v1169_v49 = vpack.c.bf16 %v612_v33, %v611_v30  ;;  %v887_v59 = vmul.f32 %v612_v33, %v612_v33  ;;  %1353 = vmatpush3.bf16.msra.mxu1 %v1667_v51  ;;  %v778_v30 = vlaneseq }
 0x162   :  { %v1164_v62 = vpack.c.bf16 %v610_v43, %v609_v35  ;;  %v885_v63 = vmul.f32 %v610_v43, %v610_v43 }
 0x163   :  { %1193 = vst [vmem:[#allocation9 + $0x68] sm:$0xff] %v1169_v49   ;;  %v1390_v0 = vpack.c.bf16 %v887_v59, %v886_v45  ;;  %v779_v42 = vand.u32 127, %v778_v30 }
 0x164   :  { %1192 = vst [vmem:[#allocation9 + $0x60] sm:$0xff] %v1164_v62   ;;  %v1336_v54 = vpop.f32.mrb[28].mxu0  ;;  %1355 = vmatprep.subr.bf16.mxu1 %v1164_v62  ;;  %v1386_v1 = vpack.c.bf16 %v885_v63, %v884_v61 }
 0x165   :  { %v615_v10 = vadd.f32 %v1336_v54, %v1637_v25  ;;  %v464_v11 = vpop.f32.mrb[29].mxu0  ;;  %1357 = vmatpush3.bf16.msra.mxu1 %v1695_v6  ;;  %vm784_vm0 = vcmp.lt.s32.totalorder %v779_v42, 32 }
 0x166   :  { %v613_v12 = vadd.f32 %v1637_v25, %v464_v11  ;;  %v1337_v13 = vpop.f32.mrb[30].mxu0  ;;  %1359 = vmatprep.subr.bf16.mxu1 %v1169_v49 }
 0x167   :  { %v616_v51 = vadd.f32 %v1337_v13, %v1637_v25  ;;  %v467_v14 = vpop.f32.mrb[31].mxu0  ;;  %v890_v16 = vmul.f32 %v615_v10, %v615_v10 }
 0x168   :  { %v614_v15 = vadd.f32 %v1637_v25, %v467_v14  ;;  %v888_v31 = vmul.f32 %v613_v12, %v613_v12  ;;  %v1559_v25 = vmov 1.0  }
 0x169   :  { %v1179_v39 = vpack.c.bf16 %v616_v51, %v615_v10  ;;  %v891_v28 = vmul.f32 %v616_v51, %v616_v51  ;;  %1361 = vmatpush3.bf16.msra.mxu1 %v1689_v3 }
 0x16a   :  { %v1174_v35 = vpack.c.bf16 %v614_v15, %v613_v12  ;;  %v889_v32 = vmul.f32 %v614_v15, %v614_v15 }
 0x16b   :  { %1195 = vst [vmem:[#allocation9 + $0x78] sm:$0xff] %v1179_v39   ;;  %v1398_v6 = vpack.c.bf16 %v891_v28, %v890_v16 }
 0x16c   :  { %1194 = vst [vmem:[#allocation9 + $0x70] sm:$0xff] %v1174_v35   ;;  %1363 = vmatprep.subr.bf16.mxu1 %v1174_v35  ;;  %v1394_v33 = vpack.c.bf16 %v889_v32, %v888_v31 }
 0x16d   :  { %1365 = vmatpush3.bf16.msra.mxu1 %v1717_v22 }
 0x16e   :  { %1367 = vmatprep.subr.bf16.mxu1 %v1179_v39 }
 0x171   :  { %1369 = vmatpush3.bf16.msra.mxu1 %v1711_v19 }
 0x172   :  { %1371 = vmatprep.subr.bf16.mxu1 %v1370_v60 }
 0x174   :  { %1067 = vmatmul.mubr.msk.f32.vlgmr.msra.gmra.mrb[0].mxu1 %vm784_vm0, %v1559_v25 }
 0x175   :  { %1373 = vmatpush3.bf16.msra.mxu1 %v1372_v41  ;;  %956 = vmatprep.mubr.f32.mxu1 %v1558_v24 }
 0x176   :  { %1375 = vmatprep.subr.bf16.mxu1 %v1374_v58 }
 0x179   :  { %1377 = vmatpush3.bf16.msra.mxu1 %v1376_v40 }
 0x17a   :  { %1379 = vmatprep.subr.bf16.mxu1 %v1378_v29 }
 0x17d   :  { %1381 = vmatpush3.bf16.msra.mxu1 %v1380_v57 }
 0x17e   :  { %1383 = vmatprep.subr.bf16.mxu1 %v1382_v17 }
 0x181   :  { %1385 = vmatpush3.bf16.msra.mxu1 %v1384_v56 }
 0x182   :  { %1387 = vmatprep.subr.bf16.mxu1 %v1386_v1 }
 0x185   :  { %1389 = vmatpush3.bf16.msra.mxu1 %v1388_v9 }
 0x186   :  { %1391 = vmatprep.subr.bf16.mxu1 %v1390_v0 }
 0x189   :  { %1393 = vmatpush3.bf16.msra.mxu1 %v1392_v8 }
 0x18a   :  { %1395 = vmatprep.subr.bf16.mxu1 %v1394_v33 }
 0x18d   :  { %1397 = vmatpush3.bf16.msra.mxu1 %v1396_v27 }
 0x18e   :  { %1399 = vmatprep.subr.bf16.mxu1 %v1398_v6 }
 0x191   :  { %1401 = vmatpush3.bf16.msra.mxu1 %v1400_v26 }
 0x194   :  { %1068 = vmatmul.mubr.msk.f32.vlgmr.msra.gmra.mrb[2].mxu1 %vm784_vm0, %v1559_v25 }
 0x195   :  { %1512 = shalt.err (!%p1509_p0)
}
 0x196   :  { %s1513_s6 = scalar_lea.hbm %s1838_s3, 2048 }
 0x197   :  { %p1514_p1 = scmp.ne.s32.totalorder %s1838_s3, %s1513_s6  ;;  %p1517_p2 = scmp.lt.u32.totalorder %s1513_s6, %s1838_s3 }
 0x199   :  { %p1519_p3 = pnand %p1517_p2, %p1514_p1 }
 0x19b   :  { %1522 = shalt.err (!%p1519_p3)
}
 0x19c   :  { %988 = dma.vmem_to_hbm [thread:$0]  %s983_s26, 2048, %s1838_s3, [#allocation5], %s1555_s27, %s1555_s27, %s1556_s28   ;;  %v963_v24 = vshrl.u32 %v778_v30, 7 }
 0x19d   :  { %s1561_s1 = smov [#allocation10]  }
 0x19e   :  { %v968_v36 = vsub.s32 0, %v963_v24  ;;  %vm965_vm1 = vcmp.eq.s32.totalorder %v963_v24, 1  ;;  %s995_s13 = sshll.u32 %s1561_s1, 4  ;;  %vm964_vm2 = vcmp.eq.s32.totalorder %v963_v24, 0  ;;  %s996_s13 = int_to_ptr.vmem [resolvable:$true] %s995_s13 }
 0x19f   :  { %s1523_s14 = scalar_lea.vmem %s996_s13, 128  ;;  %p1528_p5 = scmp.lt.s32.totalorder %s996_s13, %s996_s13 }
 0x1a0   :  { %p1524_p4 = scmp.ne.s32.totalorder %s996_s13, %s1523_s14  ;;  %p1529_p6 = scmp.lt.s32.totalorder %s1523_s14, %s1523_s14 }
 0x1a2   :  { %p1530_p7 = por %p1529_p6, %p1528_p5 }
 0x1a4   :  { %p1531_p8 = pnand %p1530_p7, %p1524_p4 }
 0x247   :  { %v1252_v34 = vpop.f32.mrb[0].mxu1 }
 0x248   :  { %v1253_v37 = vpop.f32.mrb[1].mxu1 }
 0x249   :  { %v1254_v38 = vadd.f32 %v1253_v37, %v1252_v34 }
 0x24b   :  { %v974_v40 = vrot.slane %v1254_v38, %v968_v36 }
 0x267   :  { %v1287_v41 = vpop.f32.mrb[2].mxu1 }
 0x268   :  { %v1288_v50 = vpop.f32.mrb[3].mxu1 }
 0x269   :  { %v1289_v52 = vadd.f32 %v1288_v50, %v1287_v41 }
 0x26b   :  { %v969_v53 = vrot.slane %v1289_v52, %v968_v36 }
 0x26d   :  { %v970_v55 = vsel %vm965_vm1, %v969_v53, 0.0 }
 0x26e   :  { %v975_v56 = vsel %vm964_vm2, %v974_v40, %v970_v55 }
 0x26f   :  { %976 = vst [vmem:[#allocation10] sm:$0xff] %v975_v56 }
 0x270   :  { %1534 = shalt.err (!%p1531_p8)
}
 0x271   :  { %s1535_s28 = scalar_lea.hbm %s1839_s4, 128 }
 0x272   :  { %p1536_p9 = scmp.ne.s32.totalorder %s1839_s4, %s1535_s28  ;;  %p1539_p10 = scmp.lt.u32.totalorder %s1535_s28, %s1839_s4 }
 0x274   :  { %p1541_p11 = pnand %p1539_p10, %p1536_p9 }
 0x276   :  { %1544 = shalt.err (!%p1541_p11)
}
 0x277   :  { %998 = dma.vmem_to_hbm [thread:$0]  %s996_s13, 128, %s1839_s4, [#allocation11]  }
 0x278   :  { %1549 = dma.done.wait [#allocation5], 2048  }
 0x279   :  { %1550 = vsyncadd [#allocation5], 4294965248 }
 0x27a   :  { %1551 = dma.done.wait [#allocation11], 128  }
 0x27b   :  { %1552 = vsyncadd [#allocation11], 4294967168 }
 0x27c   :  { %1005 = vsyncpa [#allocation4], 1 }
 0x27d   :  { %1006 = vsyncpa [#allocation7], 1 }
 0x27e   :  { %1007 = vsyncpa [#allocation5], 1 }
 0x27f   :  { %1008 = vsyncpa [#allocation11], 1 }

// kernel: _lambda_.48
= control target key start
LH: loop header
LB: loop body
LE: loop exit
PB: predicated region body
PF: predicated region fallthrough
CT: control target
= control target key end

     0   :  { %9 = vsyncpa [#allocation3], 0  ;;  %s1288_s0 = inlined_call_operand.hbm [shape: s32[2,1,256], index: 0, kind: input, shape index: {}]   ;;  %s1289_s1 = inlined_call_operand.hbm [shape: bf16[2,256,128], index: 1, kind: input, shape index: {}]   ;;  %s1290_s2 = inlined_call_operand.hbm [shape: f32[2,8,128], index: 2, kind: output, shape index: {0}]   ;;  %s1291_s3 = inlined_call_operand.hbm [shape: f32[2,8,1], index: 3, kind: output, shape index: {1}]  }
   0x1   :  { %11 = vsyncpa [#allocation3 + $0x1], 0 }
   0x2   :  { %12 = vsyncpa [#allocation6], 0 }
   0x3   :  { %14 = vsyncpa [#allocation6 + $0x1], 0 }
   0x4   :  { %15 = vsyncpa [#allocation4], 0 }
   0x5   :  { %17 = vsyncpa [#allocation4 + $0x1], 0 }
   0x6   :  { %18 = vsyncpa [#allocation9], 0 }
   0x7   :  { %20 = vsyncpa [#allocation9 + $0x1], 0  ;;  %s1003_s12 = smov 0   ;;  %s1005_s13 = smov 0  }
   0x8   :  { %s1007_s14 = smov 0   ;;  %s1009_s15 = smov 0  }
   0x9   :  { %s1011_s16 = smov 0   ;;  %s1013_s17 = smov 0  }
   0xa LB: > { %s636_s18 = sadd.s32 4294967295, %s973_s17   ;;  %s637_s19 = sadd.s32 4294967294, %s973_s17   ;;  %s973_s17 = sphi %s1013_s17, %s26_s17   ;;  %s969_s16 = sphi %s1011_s16, %s1310_s16   ;;  %s965_s15 = sphi %s1009_s15, %s1309_s15   ;;  %s961_s14 = sphi %s1007_s14, %s1308_s14   ;;  %s957_s13 = sphi %s1005_s13, %s1307_s13   ;;  %s953_s12 = sphi %s1003_s12, %s1306_s12  }
   0xb   : > { %s38_s20 = sadd.s32 1, %s969_s16  ;;  %s47_s21 = sadd.s32 1, %s961_s14 }
   0xc   : > { %p40_p0 = scmp.ge.s32.totalorder %s38_s20, 2  ;;  %p54_p1 = scmp.ne.s32.totalorder %s961_s14, %s957_s13 }
   0xd   : > { %p55_p2 = scmp.eq.s32.totalorder %s973_s17, 0  ;;  %p60_p3 = scmp.ne.s32.totalorder %s957_s13, %s953_s12 }
   0xe   : > { %s1312_s20 = smov (%p40_p0, %s38_s20), 0  ;;  %p61_p5 = scmp.eq.s32.totalorder %s636_s18, 0 }
   0xf   : > { %p1044_p4 = por %p55_p2, %p54_p1  ;;  %s42_s23 = ssub.s32 %s969_s16, %s1312_s20 }
  0x10   : > { %p112_p6 = scmp.eq.s32.totalorder %s636_s18, 1  ;;  %p45_p7 = scmp.eq.s32.totalorder %s42_s23, 0 }
  0x11   : > { %p1050_p8 = por %p61_p5, %p60_p3  ;;  %p118_p10 = scmp.eq.s32.totalorder %s637_s19, 1 }
  0x12   : > { %p1054_p9 = por %p112_p6, %p54_p1  ;;  %p725_p13 = scmp.lt.s32.totalorder %s973_s17, 2 }
  0x13   : > { %s1295_s24 = scalar_select %p1050_p8, 1, 0 }
  0x14   : > { %s1296_s25 = scalar_select %p1054_p9, 1, 0 }
  0x15   : > { %s1059_s26 = scalar_select %p45_p7, %s961_s14, %s47_s21  }
  0x16   : > { %p1061_p11 = por %p118_p10, %p60_p3  ;;  %s1068_s28 = sand.u32 1, %s961_s14  }
  0x17   : > { %s640_s29 = sshll.u32 %s1068_s28, 1  ;;  %s679_s30 = sshll.u32 %s969_s16, 5 }
  0x18   : > { %s1297_s27 = scalar_select %p1061_p11, 1, 0 }
  0x19   : > { %s1075_s6 = scalar_lea.hbm %s1288_s0, %s679_s30  ;;  %s168_s7 = scalar_lea.vmem [#allocation2], %s640_s29 }
  0x1a   : > { %s178_s8 = sshll.u32 %s168_s7, 4  ;;  %p1081_p0 = pnand %p725_p13, %p1044_p4  ;;  %s1077_s8 = int_to_ptr.vmem [resolvable:$true] %s178_s8 }
  0x1b   : > { %s165_s10 = scalar_lea.sflag [#allocation3], %s1068_s28  ;;  %s795_s11 = scalar_lea.hbm %s1075_s6, 32 }
  0x1c   : > { %p796_p3 = scmp.ne.s32.totalorder %s1075_s6, %s795_s11  ;;  %p797_p5 = pneg %p1081_p0 }
  0x1d   : > { %s800_s21 = scalar_lea.hbm %s1288_s0, 64  ;;  %p801_p4 = scmp.lt.u32.totalorder %s1075_s6, %s1288_s0 }
  0x1e   : > { %p798_p6 = pnand %p797_p5, %p796_p3  ;;  %p802_p10 = scmp.lt.u32.totalorder %s800_s21, %s795_s11 }
  0x1f   : > { %p804_p12 = scmp.lt.u32.totalorder %s795_s11, %s1075_s6 }
  0x20   : > { %p799_p7 = pneg %p798_p6  ;;  %p803_p13 = por %p802_p10, %p801_p4 }
  0x22   : > { %p805_p1 = por %p804_p12, %p803_p13 }
  0x24   : > { %p806_p2 = pnand %p805_p1, %p799_p7 }
  0x26   : > { %809 = shalt.err (!%p806_p2)
}
  0x27   : > { %s810_s29 = scalar_lea.vmem %s1077_s8, 32  ;;  %s975_s30 = smov [#allocation2]  }
  0x28   : > { %p811_p3 = scmp.ne.s32.totalorder %s1077_s8, %s810_s29  ;;  %s815_s4 = sshll.u32 %s975_s30, 4  ;;  %s816_s4 = int_to_ptr.vmem [resolvable:$false] %s815_s4 }
  0x29   : > { %s817_s5 = scalar_lea.vmem %s816_s4, 64  ;;  %p818_p9 = scmp.lt.s32.totalorder %s1077_s8, %s816_s4 }
  0x2a   : > { %p813_p6 = pnand %p811_p3, %p797_p5  ;;  %p819_p4 = scmp.lt.s32.totalorder %s817_s5, %s810_s29 }
  0x2c   : > { %p814_p11 = pneg %p813_p6  ;;  %p820_p10 = por %p819_p4, %p818_p9 }
  0x2e   : > { %p821_p12 = pnand %p820_p10, %p814_p11 }
  0x30   : > { %824 = shalt.err (!%p821_p12)
}
  0x31   : > { %714 = dma.hbm_to_vmem [thread:$0]  (!%p1081_p0), %s1075_s6, 32, %s1077_s8, %s165_s10  }
  0x32   : > { %p1299_p1 = scmp.lt.s32.totalorder %s973_s17, 3  ;;  %p1300_p2 = scmp.ge.s32.totalorder %s973_s17, 1 }
  0x33   : > { %s643_s11 = sshll.u32 %s1068_s28, 7  ;;  %s680_s18 = sshll.u32 %s969_s16, 11 }
  0x34   : > { %p1117_p7 = pnand %p1300_p2, %p1299_p1  ;;  %s1126_s22 = scalar_lea.hbm %s1289_s1, %s680_s18 }
  0x35   : > { %s189_s23 = scalar_lea.vmem [#allocation5], %s643_s11  ;;  %s186_s6 = scalar_lea.sflag [#allocation6], %s1068_s28 }
  0x36   : > { %s198_s29 = sshll.u32 %s189_s23, 4  ;;  %s825_s8 = scalar_lea.hbm %s1126_s22, 2048  ;;  %s1128_s29 = int_to_ptr.vmem [resolvable:$true] %s198_s29 }
  0x37   : > { %p826_p9 = scmp.ne.s32.totalorder %s1126_s22, %s825_s8  ;;  %s830_s4 = scalar_lea.hbm %s1289_s1, 4096 }
  0x38   : > { %p831_p3 = scmp.lt.u32.totalorder %s1126_s22, %s1289_s1  ;;  %p832_p6 = scmp.lt.u32.totalorder %s830_s4, %s825_s8 }
  0x39   : > { %p828_p11 = pnand %p826_p9, %p797_p5  ;;  %p834_p10 = scmp.lt.u32.totalorder %s825_s8, %s1126_s22 }
  0x3a   : > { %p833_p4 = por %p832_p6, %p831_p3 }
  0x3b   : > { %p829_p13 = pneg %p828_p11 }
  0x3c   : > { %p835_p12 = por %p834_p10, %p833_p4 }
  0x3e   : > { %p836_p1 = pnand %p835_p12, %p829_p13 }
  0x40   : > { %839 = shalt.err (!%p836_p1)
}
  0x41   : > { %s840_s11 = scalar_lea.vmem %s1128_s29, 2048  ;;  %s976_s19 = smov [#allocation5]  }
  0x42   : > { %p841_p2 = scmp.ne.s32.totalorder %s1128_s29, %s840_s11  ;;  %s845_s21 = sshll.u32 %s976_s19, 4  ;;  %s846_s21 = int_to_ptr.vmem [resolvable:$false] %s845_s21 }
  0x43   : > { %s847_s23 = scalar_lea.vmem %s846_s21, 4096  ;;  %p848_p8 = scmp.lt.s32.totalorder %s1128_s29, %s846_s21 }
  0x44   : > { %p843_p9 = pnand %p841_p2, %p797_p5  ;;  %p849_p3 = scmp.lt.s32.totalorder %s847_s23, %s840_s11 }
  0x46   : > { %p844_p11 = pneg %p843_p9  ;;  %p850_p6 = por %p849_p3, %p848_p8 }
  0x48   : > { %p851_p4 = pnand %p850_p6, %p844_p11 }
  0x4a   : > { %854 = shalt.err (!%p851_p4)
}
  0x4b   : > { %s977_s8 = smov 64   ;;  %s978_s10 = smov 4  }
  0x4c   : > { %717 = dma.hbm_to_vmem [thread:$0]  (!%p1081_p0), %s1126_s22, 2048, %s1128_s29, %s186_s6, %s977_s8, %s977_s8, %s978_s10  }
  0x4d   : > { %210 = sbr.rel (%p1117_p7) target bundleno = 350 (0x15e), region = 28  ;;  %s1159_s30 = sand.u32 (!%p1117_p7), 1, %s957_s13  }
  0x4e   : > { %s647_s4 = sshll.u32 (!%p1117_p7), %s1159_s30, 1  ;;  %s213_s5 = scalar_lea.sflag (!%p1117_p7), [#allocation3], %s1159_s30 }
  0x4f   : > { %s1163_s18 = scalar_lea.vmem (!%p1117_p7), [#allocation2], %s647_s4  ;;  %p1302_p8 = scmp.ne.s32.totalorder (!%p1117_p7), %s1295_s24, 0 }
  0x54   : > { %936 = dma.done.wait (%p1302_p8), %s213_s5, 32  }
  0x55   : > { %938 = vsyncadd (%p1302_p8), %s213_s5, 4294967264  ;;  %s648_s28 = sshll.u32 %s1159_s30, 7  ;;  %s222_s9 = scalar_lea.sflag [#allocation6], %s1159_s30 }
  0x56   : > { %s1171_s7 = scalar_lea.vmem [#allocation5], %s648_s28 }
  0x57   : > { %940 = dma.done.wait (%p1302_p8), %s222_s9, 2048  }
  0x58   : > { %942 = vsyncadd (%p1302_p8), %s222_s9, 4294965248  ;;  %v779_v0 = vld [vmem:[%s1171_s7 + $0x40] sm:$0xff]   ;;  %v781_v2 = vld [vmem:[%s1171_s7 + $0x48] sm:$0xff]   ;;  %v268_v5 = vlaneseq  ;;  %v979_v20 = vmov 0.0   ;;  %v980_v23 = vmov 1.0|1.0  }
  0x59   : > { %v780_v1 = vld [vmem:[%s1171_s7] sm:$0xff]   ;;  %681 = vmatprep.subr.bf16.mxu0 %v779_v0  ;;  %v782_v3 = vld [vmem:[%s1171_s7 + $0x8] sm:$0xff]   ;;  %v783_v4 = vld [vmem:[%s1171_s7 + $0x50] sm:$0xff]   ;;  %s649_s24 = sshll.u32 %s1159_s30, 3  ;;  %vm266_vm4 = vcmask 7168   ;;  %s675_s29 = sshll.u32 %s965_s15, 7 }
  0x5a   : > { %682 = vmatpush3.bf16.msra.mxu0 %v780_v1  ;;  %v784_v6 = vld [vmem:[%s1171_s7 + $0x10] sm:$0xff]   ;;  %v785_v7 = vld [vmem:[%s1171_s7 + $0x58] sm:$0xff]   ;;  %v269_v8 = vshrl.u32 %v268_v5, 7  ;;  %v787_v10 = vld [vmem:[%s1171_s7 + $0x60] sm:$0xff]   ;;  %s257_s22 = scalar_lea.vmem [#allocation8], %s649_s24  ;;  %s1206_s21 = scalar_lea.hbm %s1291_s3, %s675_s29 }
  0x5b   : > { %683 = vmatprep.subr.bf16.mxu0 %v781_v2  ;;  %v786_v9 = vld [vmem:[%s1171_s7 + $0x18] sm:$0xff]   ;;  %v788_v13 = vld [vmem:[%s1171_s7 + $0x20] sm:$0xff]   ;;  %v789_v14 = vld [vmem:[%s1171_s7 + $0x68] sm:$0xff]   ;;  %267 = vst.msk [vmem:[%s257_s22] sm:$0xff] %vm266_vm4, %v979_v20  ;;  %s497_s6 = sshll.u32 %s257_s22, 4  ;;  %s471_s23 = scalar_lea.sflag [#allocation9], %s1159_s30  ;;  %s1208_s6 = int_to_ptr.vmem [resolvable:$true] %s497_s6 }
  0x5c   : > { %v273_v11 = vsub.s32 0, %v269_v8  ;;  %v277_v12 = vsub.s32 1, %v269_v8  ;;  %v270_v15 = vld [vmem:[%s1163_s18] sm:$0x3]  ;;  %v790_v18 = vld [vmem:[%s1171_s7 + $0x28] sm:$0xff]   ;;  %v791_v19 = vld [vmem:[%s1171_s7 + $0x70] sm:$0xff]  }
  0x5d   : > { %v792_v25 = vld [vmem:[%s1171_s7 + $0x30] sm:$0xff]   ;;  %v793_v26 = vld [vmem:[%s1171_s7 + $0x78] sm:$0xff]   ;;  %s855_s8 = scalar_lea.vmem %s1208_s6, 128  ;;  %p1303_p5 = scmp.ne.s32.totalorder %s1296_s25, 0 }
  0x5e   : > { %684 = vmatpush3.bf16.msra.mxu0 %v782_v3  ;;  %v274_v16 = vrot.slane %v270_v15, %v273_v11  ;;  %v278_v17 = vrot.slane %v270_v15, %v277_v12  ;;  %v794_v27 = vld [vmem:[%s1171_s7 + $0x38] sm:$0xff]   ;;  %p856_p0 = scmp.ne.s32.totalorder %s1208_s6, %s855_s8  ;;  %s981_s10 = smov [#allocation8]  }
  0x5f   : > { %685 = vmatprep.subr.bf16.mxu0 %v783_v4  ;;  %s859_s4 = sshll.u32 %s981_s10, 4  ;;  %s860_s4 = int_to_ptr.vmem [resolvable:$false] %s859_s4 }
  0x60   : > { %vm280_vm0 = vcmp.eq.s32.totalorder %v269_v8, %v278_v17  ;;  %vm279_vm1 = vcmp.eq.s32.totalorder %v269_v8, %v274_v16  ;;  %p857_p7 = pnand %p856_p0, %p1303_p5  ;;  %s861_s5 = scalar_lea.vmem %s860_s4, 256 }
  0x61   : > { %vm669_vm2 = vmpackc.low %vm280_vm0, %vm280_vm0  ;;  %v651_v21 = vsel %vm279_vm1, 1.0, %v979_v20  ;;  %v652_v22 = vsel %vm280_vm0, 1.0, %v979_v20  ;;  %p862_p10 = scmp.lt.s32.totalorder %s1208_s6, %s860_s4  ;;  %p863_p12 = scmp.lt.s32.totalorder %s861_s5, %s855_s8 }
  0x62   : > { %686 = vmatpush3.bf16.msra.mxu0 %v784_v6  ;;  %670 = vmatprep.mubr.msk.bf16.mxu0 %vm669_vm2, %v980_v23  ;;  %v459_v24 = vadd.f32 %v652_v22, %v651_v21  ;;  %vm671_vm3 = vmpackc.low %vm279_vm1, %vm279_vm1  ;;  %v458_v28 = vld [vmem:[%s257_s22] sm:$0xff]  ;;  %p858_p13 = pneg %p857_p7 }
  0x63   : > { %687 = vmatprep.subr.bf16.mxu0 %v785_v7  ;;  %p864_p1 = por %p863_p12, %p862_p10 }
  0x64   : > { %460 = vadd.xlane.f32.xlu0 %v459_v24 }
  0x65   : > { %p865_p2 = pnand %p864_p1, %p858_p13 }
  0x66   : > { %688 = vmatpush3.bf16.msra.mxu0 %v786_v9 }
  0x67   : > { %689 = vmatprep.subr.bf16.mxu0 %v787_v10 }
  0x6a   : > { %690 = vmatpush3.bf16.msra.mxu0 %v788_v13 }
  0x6b   : > { %691 = vmatprep.subr.bf16.mxu0 %v789_v14 }
  0x6e   : > { %692 = vmatpush3.bf16.msra.mxu0 %v790_v18 }
  0x6f   : > { %693 = vmatprep.subr.bf16.mxu0 %v791_v19 }
  0x72   : > { %694 = vmatpush3.bf16.msra.mxu0 %v792_v25 }
  0x73   : > { %695 = vmatprep.subr.bf16.mxu0 %v793_v26 }
  0x76   : > { %696 = vmatpush3.bf16.msra.mxu0 %v794_v27 }
  0x79   : > { %672 = vmatmul.mubr.msk.bf16.vlgmr.msra.gmra.mrb[0].mxu0 %vm671_vm3, %v980_v23 }
  0xf1   : > { %v461_v29 = vpop.xlane.xlu0 %460 }
  0xf2   : > { %v462_v30 = vadd.f32 %v461_v29, %v458_v28 }
  0xf4   : > { %464 = vst.msk [vmem:[%s257_s22] sm:$0xff] %vm266_vm4, %v462_v30 }
  0xf5   : > { %868 = shalt.err (!%p865_p2)
}
  0xf6   : > { %s869_s18 = scalar_lea.hbm %s1206_s21, 128  ;;  %s873_s7 = scalar_lea.hbm %s1291_s3, 256 }
  0xf7   : > { %p870_p9 = scmp.ne.s32.totalorder %s1206_s21, %s869_s18  ;;  %p874_p6 = scmp.lt.u32.totalorder %s1206_s21, %s1291_s3 }
  0xf8   : > { %p875_p4 = scmp.lt.u32.totalorder %s873_s7, %s869_s18  ;;  %p877_p0 = scmp.lt.u32.totalorder %s869_s18, %s1206_s21 }
  0xf9   : > { %p871_p11 = pnand %p870_p9, %p1303_p5 }
  0xfa   : > { %p876_p8 = por %p875_p4, %p874_p6 }
  0xfb   : > { %p872_p3 = pneg %p871_p11 }
  0xfc   : > { %p878_p7 = por %p877_p0, %p876_p8 }
  0xfe   : > { %p879_p13 = pnand %p878_p7, %p872_p3 }
 0x100   : > { %882 = shalt.err (!%p879_p13)
}
 0x101   : > { %708 = dma.vmem_to_hbm [thread:$0]  (%p1303_p5), %s1208_s6, 128, %s1206_s21, %s471_s23  }
 0x102   : > { %s250_s19 = scalar_lea.vmem [#allocation7], %s649_s24  ;;  %s1239_s5 = scalar_lea.hbm %s1290_s2, %s675_s29 }
 0x103   : > { %s484_s8 = sshll.u32 %s250_s19, 4  ;;  %s466_s6 = scalar_lea.sflag [#allocation4], %s1159_s30  ;;  %s1241_s8 = int_to_ptr.vmem [resolvable:$true] %s484_s8 }
 0x104   : > { %s883_s21 = scalar_lea.vmem %s1241_s8, 128  ;;  %s982_s24 = smov [#allocation7]  }
 0x105   : > { %p884_p10 = scmp.ne.s32.totalorder %s1241_s8, %s883_s21  ;;  %s887_s23 = sshll.u32 %s982_s24, 4  ;;  %s888_s23 = int_to_ptr.vmem [resolvable:$false] %s887_s23 }
 0x106   : > { %s889_s15 = scalar_lea.vmem %s888_s23, 256  ;;  %p890_p2 = scmp.lt.s32.totalorder %s1241_s8, %s888_s23 }
 0x107   : > { %p885_p12 = pnand %p884_p10, %p1303_p5  ;;  %p891_p9 = scmp.lt.s32.totalorder %s889_s15, %s883_s21 }
 0x109   : > { %p886_p1 = pneg %p885_p12  ;;  %p892_p11 = por %p891_p9, %p890_p2 }
 0x10b   : > { %p893_p3 = pnand %p892_p11, %p886_p1 }
 0x14c   : > { %v697_v31 = vpop.f32.mrb[0].mxu0 }
 0x14d   : > { %v698_v32 = vpop.f32.mrb[1].mxu0 }
 0x14e   : > { %v699_v33 = vadd.f32 %v698_v32, %v697_v31  ;;  %v700_v34 = vpop.f32.mrb[2].mxu0 }
 0x14f   : > { %v701_v35 = vpop.f32.mrb[3].mxu0 }
 0x150   : > { %457 = vst [vmem:[%s250_s19] sm:$0xff] %v699_v33 }
 0x151   : > { %896 = shalt.err (!%p893_p3)
}
 0x152   : > { %s897_s30 = scalar_lea.hbm %s1239_s5, 128  ;;  %s901_s28 = scalar_lea.hbm %s1290_s2, 256 }
 0x153   : > { %p898_p6 = scmp.ne.s32.totalorder %s1239_s5, %s897_s30  ;;  %p902_p0 = scmp.lt.u32.totalorder %s1239_s5, %s1290_s2 }
 0x154   : > { %p903_p7 = scmp.lt.u32.totalorder %s901_s28, %s897_s30  ;;  %p905_p10 = scmp.lt.u32.totalorder %s897_s30, %s1239_s5 }
 0x155   : > { %p899_p4 = pnand %p898_p6, %p1303_p5 }
 0x156   : > { %p904_p13 = por %p903_p7, %p902_p0 }
 0x157   : > { %p900_p8 = pneg %p899_p4 }
 0x158   : > { %p906_p12 = por %p905_p10, %p904_p13 }
 0x15a   : > { %p907_p1 = pnand %p906_p12, %p900_p8 }
 0x15c   : > { %910 = shalt.err (!%p907_p1)
}
 0x15d   : > { %707 = dma.vmem_to_hbm [thread:$0]  (%p1303_p5), %s1241_s8, 128, %s1239_s5, %s466_s6  }
 0x15e PF: > { %s509_s22 = sand.u32 1, %s953_s12   ;;  %p1304_p2 = scmp.ne.s32.totalorder %s1297_s27, 0 }
 0x15f   : > { %p1305_p9 = scmp.ge.s32.totalorder %s973_s17, 2  ;;  %s510_s11 = scalar_lea.sflag [#allocation4], %s509_s22 }
 0x161   : > { %p719_p11 = pnand %p1305_p9, %p1304_p2 }
 0x163   : > { %944 = dma.done.wait (!%p719_p11), %s510_s11, 128  }
 0x164   : > { %946 = vsyncadd (!%p719_p11), %s510_s11, 4294967168  ;;  %s519_s19 = scalar_lea.sflag [#allocation9], %s509_s22 }
 0x165   : > { %948 = dma.done.wait (!%p719_p11), %s519_s19, 128  }
 0x166   : > { %950 = vsyncadd (!%p719_p11), %s519_s19, 4294967168  ;;  %s26_s17 = sadd.s32 1, %s973_s17   ;;  %s1306_s12 = smov %s957_s13 }
 0x167   : > { %p23_p3 = scmp.ge.s32.totalorder %s26_s17, 4   ;;  %s1307_s13 = smov %s961_s14 }
 0x168   : > { %s1308_s14 = smov %s1059_s26  ;;  %s1309_s15 = smov %s969_s16 }
 0x169   : > { %s1310_s16 = smov %s1312_s20  ;;  %25 = sbr.rel (!%p23_p3) target bundleno = 10 (0xa), region = 107 }
 0x170   :  { %524 = vsyncpa [#allocation3], 1 }
 0x171   :  { %526 = vsyncpa [#allocation3 + $0x1], 1 }
 0x172   :  { %527 = vsyncpa [#allocation6], 1 }
 0x173   :  { %529 = vsyncpa [#allocation6 + $0x1], 1 }
 0x174   :  { %530 = vsyncpa [#allocation4], 1 }
 0x175   :  { %532 = vsyncpa [#allocation4 + $0x1], 1 }
 0x176   :  { %533 = vsyncpa [#allocation9], 1 }
 0x177   :  { %535 = vsyncpa [#allocation9 + $0x1], 1 }

// kernel: _lambda_.49
= control target key start
LH: loop header
LB: loop body
LE: loop exit
PB: predicated region body
PF: predicated region fallthrough
CT: control target
= control target key end

     0   :  { %7 = vsyncpa [#allocation3], 0  ;;  %s1134_s0 = inlined_call_operand.hbm [shape: s32[2,1,256], index: 0, kind: input, shape index: {}]   ;;  %s1135_s1 = inlined_call_operand.hbm [shape: f32[2,128,8], index: 1, kind: input, shape index: {}]   ;;  %s1136_s2 = inlined_call_operand.hbm [shape: f32[2,128,256], index: 2, kind: output, shape index: {}]  }
   0x1   :  { %9 = vsyncpa [#allocation3 + $0x1], 0 }
   0x2   :  { %10 = vsyncpa [#allocation6], 0 }
   0x3   :  { %12 = vsyncpa [#allocation6 + $0x1], 0 }
   0x4   :  { %13 = vsyncpa [#allocation4], 0 }
   0x5   :  { %15 = vsyncpa [#allocation4 + $0x1], 0  ;;  %s847_s9 = smov 0   ;;  %s849_s10 = smov 0  }
   0x6   :  { %s851_s11 = smov 0   ;;  %s853_s12 = smov 0  }
   0x7   :  { %s855_s13 = smov 0   ;;  %s857_s14 = smov 0  }
   0x8 LB: > { %s567_s15 = sadd.s32 4294967295, %s821_s14   ;;  %s568_s16 = sadd.s32 4294967294, %s821_s14   ;;  %s821_s14 = sphi %s857_s14, %s21_s14   ;;  %s817_s13 = sphi %s855_s13, %s1155_s13   ;;  %s813_s12 = sphi %s853_s12, %s1154_s12   ;;  %s809_s11 = sphi %s851_s11, %s1153_s11   ;;  %s805_s10 = sphi %s849_s10, %s1152_s10   ;;  %s801_s9 = sphi %s847_s9, %s1151_s9  }
   0x9   : > { %s33_s17 = sadd.s32 1, %s817_s13  ;;  %s42_s18 = sadd.s32 1, %s809_s11 }
   0xa   : > { %p35_p0 = scmp.ge.s32.totalorder %s33_s17, 2  ;;  %p49_p1 = scmp.ne.s32.totalorder %s809_s11, %s805_s10 }
   0xb   : > { %p50_p2 = scmp.eq.s32.totalorder %s821_s14, 0  ;;  %p55_p3 = scmp.ne.s32.totalorder %s805_s10, %s801_s9 }
   0xc   : > { %s1157_s17 = smov (%p35_p0, %s33_s17), 0  ;;  %p56_p5 = scmp.eq.s32.totalorder %s567_s15, 0 }
   0xd   : > { %p888_p4 = por %p50_p2, %p49_p1  ;;  %s37_s20 = ssub.s32 %s817_s13, %s1157_s17 }
   0xe   : > { %p107_p6 = scmp.eq.s32.totalorder %s567_s15, 1  ;;  %p40_p7 = scmp.eq.s32.totalorder %s37_s20, 0 }
   0xf   : > { %p894_p8 = por %p56_p5, %p55_p3  ;;  %p113_p10 = scmp.eq.s32.totalorder %s568_s16, 1 }
  0x10   : > { %p898_p9 = por %p107_p6, %p49_p1  ;;  %p619_p13 = scmp.lt.s32.totalorder %s821_s14, 2 }
  0x11   : > { %s1140_s21 = scalar_select %p894_p8, 1, 0 }
  0x12   : > { %s1141_s22 = scalar_select %p898_p9, 1, 0 }
  0x13   : > { %s903_s23 = scalar_select %p40_p7, %s809_s11, %s42_s18  }
  0x14   : > { %p905_p11 = por %p113_p10, %p55_p3  ;;  %s912_s25 = sand.u32 1, %s809_s11  }
  0x15   : > { %s571_s26 = sshll.u32 %s912_s25, 1  ;;  %s597_s27 = sshll.u32 %s817_s13, 5 }
  0x16   : > { %s1142_s24 = scalar_select %p905_p11, 1, 0 }
  0x17   : > { %s919_s30 = scalar_lea.hbm %s1134_s0, %s597_s27  ;;  %s137_s3 = scalar_lea.vmem [#allocation2], %s571_s26 }
  0x18   : > { %s147_s4 = sshll.u32 %s137_s3, 4  ;;  %p925_p0 = pnand %p619_p13, %p888_p4  ;;  %s921_s4 = int_to_ptr.vmem [resolvable:$true] %s147_s4 }
  0x19   : > { %s134_s6 = scalar_lea.sflag [#allocation3], %s912_s25  ;;  %s675_s7 = scalar_lea.hbm %s919_s30, 32 }
  0x1a   : > { %p676_p3 = scmp.ne.s32.totalorder %s919_s30, %s675_s7  ;;  %p677_p5 = pneg %p925_p0 }
  0x1b   : > { %s680_s16 = scalar_lea.hbm %s1134_s0, 64  ;;  %p681_p4 = scmp.lt.u32.totalorder %s919_s30, %s1134_s0 }
  0x1c   : > { %p678_p6 = pnand %p677_p5, %p676_p3  ;;  %p682_p10 = scmp.lt.u32.totalorder %s680_s16, %s675_s7 }
  0x1d   : > { %p684_p12 = scmp.lt.u32.totalorder %s675_s7, %s919_s30 }
  0x1e   : > { %p679_p7 = pneg %p678_p6  ;;  %p683_p13 = por %p682_p10, %p681_p4 }
  0x20   : > { %p685_p1 = por %p684_p12, %p683_p13 }
  0x22   : > { %p686_p2 = pnand %p685_p1, %p679_p7 }
  0x24   : > { %689 = shalt.err (!%p686_p2)
}
  0x25   : > { %s690_s20 = scalar_lea.vmem %s921_s4, 32  ;;  %s823_s26 = smov [#allocation2]  }
  0x26   : > { %p691_p3 = scmp.ne.s32.totalorder %s921_s4, %s690_s20  ;;  %s695_s27 = sshll.u32 %s823_s26, 4  ;;  %s696_s27 = int_to_ptr.vmem [resolvable:$false] %s695_s27 }
  0x27   : > { %s697_s28 = scalar_lea.vmem %s696_s27, 64  ;;  %p698_p9 = scmp.lt.s32.totalorder %s921_s4, %s696_s27 }
  0x28   : > { %p693_p6 = pnand %p691_p3, %p677_p5  ;;  %p699_p4 = scmp.lt.s32.totalorder %s697_s28, %s690_s20 }
  0x2a   : > { %p694_p11 = pneg %p693_p6  ;;  %p700_p10 = por %p699_p4, %p698_p9 }
  0x2c   : > { %p701_p12 = pnand %p700_p10, %p694_p11 }
  0x2e   : > { %704 = shalt.err (!%p701_p12)
}
  0x2f   : > { %611 = dma.hbm_to_vmem [thread:$0]  (!%p925_p0), %s919_s30, 32, %s921_s4, %s134_s6  }
  0x30   : > { %p1144_p1 = scmp.lt.s32.totalorder %s821_s14, 3  ;;  %p1145_p2 = scmp.ge.s32.totalorder %s821_s14, 1 }
  0x31   : > { %s574_s3 = sshll.u32 %s912_s25, 7  ;;  %s598_s7 = sshll.u32 %s817_s13, 11 }
  0x32   : > { %p961_p7 = pnand %p1145_p2, %p1144_p1  ;;  %s970_s16 = scalar_lea.hbm %s1135_s1, %s598_s7 }
  0x33   : > { %s158_s18 = scalar_lea.vmem [#allocation5], %s574_s3  ;;  %s155_s30 = scalar_lea.sflag [#allocation6], %s912_s25 }
  0x34   : > { %s165_s19 = sshll.u32 %s158_s18, 4  ;;  %s705_s4 = scalar_lea.hbm %s970_s16, 2048  ;;  %s972_s19 = int_to_ptr.vmem [resolvable:$true] %s165_s19 }
  0x35   : > { %p706_p9 = scmp.ne.s32.totalorder %s970_s16, %s705_s4  ;;  %s710_s26 = scalar_lea.hbm %s1135_s1, 4096 }
  0x36   : > { %p711_p3 = scmp.lt.u32.totalorder %s970_s16, %s1135_s1  ;;  %p712_p6 = scmp.lt.u32.totalorder %s710_s26, %s705_s4 }
  0x37   : > { %p708_p11 = pnand %p706_p9, %p677_p5  ;;  %p714_p10 = scmp.lt.u32.totalorder %s705_s4, %s970_s16 }
  0x38   : > { %p713_p4 = por %p712_p6, %p711_p3 }
  0x39   : > { %p709_p13 = pneg %p708_p11 }
  0x3a   : > { %p715_p12 = por %p714_p10, %p713_p4 }
  0x3c   : > { %p716_p1 = pnand %p715_p12, %p709_p13 }
  0x3e   : > { %719 = shalt.err (!%p716_p1)
}
  0x3f   : > { %s720_s3 = scalar_lea.vmem %s972_s19, 2048  ;;  %s824_s7 = smov [#allocation5]  }
  0x40   : > { %p721_p2 = scmp.ne.s32.totalorder %s972_s19, %s720_s3  ;;  %s725_s8 = sshll.u32 %s824_s7, 4  ;;  %s726_s8 = int_to_ptr.vmem [resolvable:$false] %s725_s8 }
  0x41   : > { %s727_s15 = scalar_lea.vmem %s726_s8, 4096  ;;  %p728_p8 = scmp.lt.s32.totalorder %s972_s19, %s726_s8 }
  0x42   : > { %p723_p9 = pnand %p721_p2, %p677_p5  ;;  %p729_p3 = scmp.lt.s32.totalorder %s727_s15, %s720_s3 }
  0x44   : > { %p724_p11 = pneg %p723_p9  ;;  %p730_p6 = por %p729_p3, %p728_p8 }
  0x46   : > { %p731_p4 = pnand %p730_p6, %p724_p11 }
  0x48   : > { %734 = shalt.err (!%p731_p4)
}
  0x49   : > { %s825_s18 = smov 128   ;;  %s826_s4 = smov 8  }
  0x4a   : > { %614 = dma.hbm_to_vmem [thread:$0]  (!%p925_p0), %s970_s16, 2048, %s972_s19, %s155_s30, %s825_s18, %s825_s18, %s826_s4  }
  0x4b   : > { %177 = sbr.rel (%p961_p7) target bundleno = 356 (0x164), region = 28  ;;  %s1003_s6 = sand.u32 (!%p961_p7), 1, %s805_s10  }
  0x4c   : > { %s578_s20 = sshll.u32 (!%p961_p7), %s1003_s6, 1  ;;  %s180_s26 = scalar_lea.sflag (!%p961_p7), [#allocation3], %s1003_s6 }
  0x4d   : > { %s183_s27 = scalar_lea.vmem (!%p961_p7), [#allocation2], %s578_s20  ;;  %p1147_p8 = scmp.ne.s32.totalorder (!%p961_p7), %s1140_s21, 0 }
  0x52   : > { %788 = dma.done.wait (%p1147_p8), %s180_s26, 32  }
  0x53   : > { %790 = vsyncadd (%p1147_p8), %s180_s26, 4294967264  ;;  %s579_s25 = sshll.u32 %s1003_s6, 7  ;;  %s189_s5 = scalar_lea.sflag [#allocation6], %s1003_s6 }
  0x54   : > { %s1013_s29 = scalar_lea.vmem [#allocation5], %s579_s25 }
  0x55   : > { %792 = dma.done.wait (%p1147_p8), %s189_s5, 2048  }
  0x56   : > { %794 = vsyncadd (%p1147_p8), %s189_s5, 4294965248  ;;  %v221_v0 = vlaneseq  ;;  %v827_v1 = vmov 0   ;;  %v223_v5 = vld [vmem:[%s183_s27] sm:$0x3]  ;;  %v240_v8 = vld [vmem:[%s1013_s29] sm:$0xff]  ;;  %v828_v9 = vmov 0.0  }
  0x57   : > { %328 = vmatprep.mubr.bf16.mxu0 %v827_v1  ;;  %368 = vmatprep.mubr.bf16.mxu1 %v827_v1  ;;  %vm289_vm2 = vcmask 1043456   ;;  %v241_v12 = vld [vmem:[%s1013_s29 + $0x8] sm:$0xff]  ;;  %v248_v13 = vld [vmem:[%s1013_s29 + $0x40] sm:$0xff]  ;;  %vm264_vm3 = vcmask 64512   ;;  %v242_v20 = vld [vmem:[%s1013_s29 + $0x10] sm:$0xff]  ;;  %s580_s21 = sshll.u32 %s1003_s6, 8 }
  0x58   : > { %v222_v2 = vshrl.u32 %v221_v0, 7  ;;  %v249_v14 = vld [vmem:[%s1013_s29 + $0x48] sm:$0xff]  ;;  %v256_v18 = vpack.c.bf16 %v241_v12, %v240_v8  ;;  %v243_v21 = vld [vmem:[%s1013_s29 + $0x18] sm:$0xff]  ;;  %v250_v22 = vld [vmem:[%s1013_s29 + $0x50] sm:$0xff]  ;;  %s1044_s16 = scalar_lea.vmem [#allocation7], %s580_s21  ;;  %s599_s19 = sshll.u32 %s813_s12, 12 }
  0x59   : > { %v260_v19 = vpack.c.bf16 %v249_v14, %v248_v13  ;;  %v251_v23 = vld [vmem:[%s1013_s29 + $0x58] sm:$0xff]  ;;  %v257_v24 = vpack.c.bf16 %v243_v21, %v242_v20  ;;  %v244_v26 = vld [vmem:[%s1013_s29 + $0x20] sm:$0xff]  ;;  %v245_v27 = vld [vmem:[%s1013_s29 + $0x28] sm:$0xff]  ;;  %s457_s30 = sshll.u32 %s1044_s16, 4  ;;  %s1077_s7 = scalar_lea.hbm %s1136_s2, %s599_s19  ;;  %s1079_s30 = int_to_ptr.vmem [resolvable:$true] %s457_s30 }
  0x5a   : > { %v230_v3 = vsub.s32 1, %v222_v2  ;;  %v226_v4 = vsub.s32 0, %v222_v2  ;;  %v261_v25 = vpack.c.bf16 %v251_v23, %v250_v22  ;;  %v252_v28 = vld [vmem:[%s1013_s29 + $0x60] sm:$0xff]  ;;  %v253_v29 = vld [vmem:[%s1013_s29 + $0x68] sm:$0xff]  ;;  %v258_v30 = vpack.c.bf16 %v245_v27, %v244_v26  ;;  %v246_v32 = vld [vmem:[%s1013_s29 + $0x30] sm:$0xff]  ;;  %s442_s12 = scalar_lea.sflag [#allocation4], %s1003_s6 }
  0x5b   : > { %v262_v31 = vpack.c.bf16 %v253_v29, %v252_v28  ;;  %v247_v33 = vld [vmem:[%s1013_s29 + $0x38] sm:$0xff]  ;;  %v254_v34 = vld [vmem:[%s1013_s29 + $0x70] sm:$0xff]  ;;  %s735_s8 = scalar_lea.vmem %s1079_s30, 4096  ;;  %p1148_p5 = scmp.ne.s32.totalorder %s1141_s22, 0 }
  0x5c   : > { %v231_v6 = vrot.slane %v223_v5, %v230_v3  ;;  %v227_v7 = vrot.slane %v223_v5, %v226_v4  ;;  %v255_v35 = vld [vmem:[%s1013_s29 + $0x78] sm:$0xff]  ;;  %v259_v36 = vpack.c.bf16 %v247_v33, %v246_v32  ;;  %p736_p0 = scmp.ne.s32.totalorder %s1079_s30, %s735_s8  ;;  %s829_s15 = smov [#allocation7]  }
  0x5d   : > { %v263_v37 = vpack.c.bf16 %v255_v35, %v254_v34  ;;  %s739_s18 = sshll.u32 %s829_s15, 4  ;;  %s740_s18 = int_to_ptr.vmem [resolvable:$false] %s739_s18 }
  0x5e   : > { %vm233_vm0 = vcmp.eq.s32.totalorder %v222_v2, %v231_v6  ;;  %vm232_vm1 = vcmp.eq.s32.totalorder %v222_v2, %v227_v7  ;;  %p737_p7 = pnand %p736_p0, %p1148_p5  ;;  %s741_s4 = scalar_lea.vmem %s740_s18, 8192 }
  0x5f   : > { %v582_v10 = vsel %vm233_vm0, 1.0, %v828_v9  ;;  %v581_v11 = vsel %vm232_vm1, 1.0, %v828_v9  ;;  %p742_p10 = scmp.lt.s32.totalorder %s1079_s30, %s740_s18  ;;  %p743_p12 = scmp.lt.s32.totalorder %s741_s4, %s735_s8 }
  0x60   : > { %v239_v15 = vpack.c.bf16 %v582_v10, %v582_v10  ;;  %v238_v16 = vpack.c.bf16 %v581_v11, %v581_v11  ;;  %p738_p13 = pneg %p737_p7 }
  0x61   : > { %p744_p1 = por %p743_p12, %p742_p10 }
  0x62   : > { %583 = vmatprep.subr.msk.bf16.mxu0 %vm289_vm2, %v239_v15  ;;  %600 = vmatprep.subr.msk.bf16.mxu1 %vm289_vm2, %v239_v15  ;;  %v291_v17 = vsel %vm289_vm2, %v238_v16, 0 }
  0x63   : > { %297 = vmatpush1.bf16.msra.mxu0 %v291_v17  ;;  %601 = vmatpush1.bf16.msra.mxu1 %v291_v17  ;;  %p745_p2 = pnand %p744_p1, %p738_p13 }
  0x66   : > { %584 = vmatmul.mubr.msk.bf16.vlgmr.msra.gmra.mrb[0].mxu0 %vm264_vm3, %v256_v18  ;;  %588 = vmatmul.mubr.msk.bf16.vlgmr.msra.gmra.mrb[0].mxu1 %vm264_vm3, %v260_v19 }
  0x67   : > { %338 = vmatprep.mubr.bf16.mxu0 %v827_v1  ;;  %378 = vmatprep.mubr.bf16.mxu1 %v827_v1 }
  0x6e   : > { %585 = vmatmul.mubr.msk.bf16.gmra.mrb[4].mxu0 %vm264_vm3, %v257_v24  ;;  %589 = vmatmul.mubr.msk.bf16.gmra.mrb[4].mxu1 %vm264_vm3, %v261_v25 }
  0x6f   : > { %348 = vmatprep.mubr.bf16.mxu0 %v827_v1  ;;  %388 = vmatprep.mubr.bf16.mxu1 %v827_v1 }
  0x76   : > { %586 = vmatmul.mubr.msk.bf16.gmra.mrb[8].mxu0 %vm264_vm3, %v258_v30  ;;  %590 = vmatmul.mubr.msk.bf16.gmra.mrb[8].mxu1 %vm264_vm3, %v262_v31 }
  0x77   : > { %358 = vmatprep.mubr.bf16.mxu0 %v827_v1  ;;  %398 = vmatprep.mubr.bf16.mxu1 %v827_v1 }
  0x7e   : > { %587 = vmatmul.mubr.msk.bf16.gmra.mrb[12].mxu0 %vm264_vm3, %v259_v36  ;;  %591 = vmatmul.mubr.msk.bf16.gmra.mrb[12].mxu1 %vm264_vm3, %v263_v37 }
 0x139   : > { %v330_v38 = vpop.f32.mrb[0].mxu0  ;;  %v370_v39 = vpop.f32.mrb[0].mxu1 }
 0x13a   : > { %409 = vst [vmem:[%s1044_s16] sm:$0xff] %v330_v38  ;;  %425 = vst [vmem:[%s1044_s16 + $0x80] sm:$0xff] %v370_v39  ;;  %v332_v40 = vpop.f32.mrb[1].mxu0  ;;  %v372_v41 = vpop.f32.mrb[1].mxu1 }
 0x13b   : > { %410 = vst [vmem:[%s1044_s16 + $0x8] sm:$0xff] %v332_v40  ;;  %426 = vst [vmem:[%s1044_s16 + $0x88] sm:$0xff] %v372_v41  ;;  %v334_v42 = vpop.f32.mrb[2].mxu0  ;;  %v374_v43 = vpop.f32.mrb[2].mxu1 }
 0x13c   : > { %411 = vst [vmem:[%s1044_s16 + $0x10] sm:$0xff] %v334_v42  ;;  %427 = vst [vmem:[%s1044_s16 + $0x90] sm:$0xff] %v374_v43  ;;  %v336_v44 = vpop.f32.mrb[3].mxu0  ;;  %v376_v45 = vpop.f32.mrb[3].mxu1 }
 0x13d   : > { %412 = vst [vmem:[%s1044_s16 + $0x18] sm:$0xff] %v336_v44  ;;  %428 = vst [vmem:[%s1044_s16 + $0x98] sm:$0xff] %v376_v45 }
 0x141   : > { %v340_v46 = vpop.f32.mrb[4].mxu0  ;;  %v380_v47 = vpop.f32.mrb[4].mxu1 }
 0x142   : > { %413 = vst [vmem:[%s1044_s16 + $0x20] sm:$0xff] %v340_v46  ;;  %429 = vst [vmem:[%s1044_s16 + $0xa0] sm:$0xff] %v380_v47  ;;  %v342_v48 = vpop.f32.mrb[5].mxu0  ;;  %v382_v49 = vpop.f32.mrb[5].mxu1 }
 0x143   : > { %414 = vst [vmem:[%s1044_s16 + $0x28] sm:$0xff] %v342_v48  ;;  %430 = vst [vmem:[%s1044_s16 + $0xa8] sm:$0xff] %v382_v49  ;;  %v344_v50 = vpop.f32.mrb[6].mxu0  ;;  %v384_v51 = vpop.f32.mrb[6].mxu1 }
 0x144   : > { %415 = vst [vmem:[%s1044_s16 + $0x30] sm:$0xff] %v344_v50  ;;  %431 = vst [vmem:[%s1044_s16 + $0xb0] sm:$0xff] %v384_v51  ;;  %v346_v52 = vpop.f32.mrb[7].mxu0  ;;  %v386_v53 = vpop.f32.mrb[7].mxu1 }
 0x145   : > { %416 = vst [vmem:[%s1044_s16 + $0x38] sm:$0xff] %v346_v52  ;;  %432 = vst [vmem:[%s1044_s16 + $0xb8] sm:$0xff] %v386_v53 }
 0x149   : > { %v350_v54 = vpop.f32.mrb[8].mxu0  ;;  %v390_v55 = vpop.f32.mrb[8].mxu1 }
 0x14a   : > { %417 = vst [vmem:[%s1044_s16 + $0x40] sm:$0xff] %v350_v54  ;;  %433 = vst [vmem:[%s1044_s16 + $0xc0] sm:$0xff] %v390_v55  ;;  %v352_v56 = vpop.f32.mrb[9].mxu0  ;;  %v392_v57 = vpop.f32.mrb[9].mxu1 }
 0x14b   : > { %418 = vst [vmem:[%s1044_s16 + $0x48] sm:$0xff] %v352_v56  ;;  %434 = vst [vmem:[%s1044_s16 + $0xc8] sm:$0xff] %v392_v57  ;;  %v354_v58 = vpop.f32.mrb[10].mxu0  ;;  %v394_v59 = vpop.f32.mrb[10].mxu1 }
 0x14c   : > { %419 = vst [vmem:[%s1044_s16 + $0x50] sm:$0xff] %v354_v58  ;;  %435 = vst [vmem:[%s1044_s16 + $0xd0] sm:$0xff] %v394_v59  ;;  %v356_v60 = vpop.f32.mrb[11].mxu0  ;;  %v396_v61 = vpop.f32.mrb[11].mxu1 }
 0x14d   : > { %420 = vst [vmem:[%s1044_s16 + $0x58] sm:$0xff] %v356_v60  ;;  %436 = vst [vmem:[%s1044_s16 + $0xd8] sm:$0xff] %v396_v61 }
 0x151   : > { %v360_v62 = vpop.f32.mrb[12].mxu0  ;;  %v400_v63 = vpop.f32.mrb[12].mxu1 }
 0x152   : > { %421 = vst [vmem:[%s1044_s16 + $0x60] sm:$0xff] %v360_v62  ;;  %437 = vst [vmem:[%s1044_s16 + $0xe0] sm:$0xff] %v400_v63  ;;  %v362_v0 = vpop.f32.mrb[13].mxu0  ;;  %v402_v1 = vpop.f32.mrb[13].mxu1 }
 0x153   : > { %422 = vst [vmem:[%s1044_s16 + $0x68] sm:$0xff] %v362_v0  ;;  %438 = vst [vmem:[%s1044_s16 + $0xe8] sm:$0xff] %v402_v1  ;;  %v364_v2 = vpop.f32.mrb[14].mxu0  ;;  %v404_v3 = vpop.f32.mrb[14].mxu1 }
 0x154   : > { %423 = vst [vmem:[%s1044_s16 + $0x70] sm:$0xff] %v364_v2  ;;  %439 = vst [vmem:[%s1044_s16 + $0xf0] sm:$0xff] %v404_v3  ;;  %v366_v4 = vpop.f32.mrb[15].mxu0  ;;  %v406_v5 = vpop.f32.mrb[15].mxu1 }
 0x155   : > { %424 = vst [vmem:[%s1044_s16 + $0x78] sm:$0xff] %v366_v4  ;;  %440 = vst [vmem:[%s1044_s16 + $0xf8] sm:$0xff] %v406_v5 }
 0x156   : > { %748 = shalt.err (!%p745_p2)
}
 0x157   : > { %s749_s20 = scalar_lea.hbm %s1077_s7, 4096  ;;  %s753_s25 = scalar_lea.hbm %s1136_s2, 8192 }
 0x158   : > { %p750_p9 = scmp.ne.s32.totalorder %s1077_s7, %s749_s20  ;;  %p754_p6 = scmp.lt.u32.totalorder %s1077_s7, %s1136_s2 }
 0x159   : > { %p755_p4 = scmp.lt.u32.totalorder %s753_s25, %s749_s20  ;;  %p757_p0 = scmp.lt.u32.totalorder %s749_s20, %s1077_s7 }
 0x15a   : > { %p751_p11 = pnand %p750_p9, %p1148_p5 }
 0x15b   : > { %p756_p8 = por %p755_p4, %p754_p6 }
 0x15c   : > { %p752_p3 = pneg %p751_p11 }
 0x15d   : > { %p758_p7 = por %p757_p0, %p756_p8 }
 0x15f   : > { %p759_p13 = pnand %p758_p7, %p752_p3 }
 0x161   : > { %762 = shalt.err (!%p759_p13)
}
 0x162   : > { %s830_s21 = smov 256   ;;  %s831_s16 = smov 16  }
 0x163   : > { %606 = dma.vmem_to_hbm [thread:$0]  (%p1148_p5), %s1079_s30, 4096, %s1077_s7, %s442_s12, %s830_s21, %s830_s21, %s831_s16  }
 0x164 PF: > { %s472_s19 = sand.u32 1, %s801_s9   ;;  %p1149_p10 = scmp.ne.s32.totalorder %s1142_s24, 0 }
 0x165   : > { %p1150_p12 = scmp.ge.s32.totalorder %s821_s14, 2  ;;  %s473_s28 = scalar_lea.sflag [#allocation4], %s472_s19 }
 0x167   : > { %p616_p1 = pnand %p1150_p12, %p1149_p10 }
 0x169   : > { %796 = dma.done.wait (!%p616_p1), %s473_s28, 4096  }
 0x16a   : > { %798 = vsyncadd (!%p616_p1), %s473_s28, 4294963200  ;;  %s21_s14 = sadd.s32 1, %s821_s14   ;;  %s1151_s9 = smov %s805_s10 }
 0x16b   : > { %p18_p2 = scmp.ge.s32.totalorder %s21_s14, 4   ;;  %s1152_s10 = smov %s809_s11 }
 0x16c   : > { %s1153_s11 = smov %s903_s23  ;;  %s1154_s12 = smov %s817_s13 }
 0x16d   : > { %s1155_s13 = smov %s1157_s17  ;;  %20 = sbr.rel (!%p18_p2) target bundleno = 8 (0x8), region = 86 }
 0x174   :  { %478 = vsyncpa [#allocation3], 1 }
 0x175   :  { %480 = vsyncpa [#allocation3 + $0x1], 1 }
 0x176   :  { %481 = vsyncpa [#allocation6], 1 }
 0x177   :  { %483 = vsyncpa [#allocation6 + $0x1], 1 }
 0x178   :  { %484 = vsyncpa [#allocation4], 1 }
 0x179   :  { %486 = vsyncpa [#allocation4 + $0x1], 1 }

// kernel: _lambda_.47
= control target key start
LH: loop header
LB: loop body
LE: loop exit
PB: predicated region body
PF: predicated region fallthrough
CT: control target
= control target key end

     0   :  { %8 = vsyncpa [#allocation4], 0  ;;  %s3576_s0 = inlined_call_operand.hbm [shape: bf16[512,512], index: 0, kind: input, shape index: {}]   ;;  %s3577_s1 = inlined_call_operand.hbm [shape: bf16[512,128], index: 1, kind: input, shape index: {}]   ;;  %s3578_s2 = inlined_call_operand.hbm [shape: f32[1,128], index: 2, kind: input, shape index: {}]   ;;  %s3579_s3 = inlined_call_operand.hbm [shape: bf16[512,128], index: 3, kind: output, shape index: {}]  }
   0x1   :  { %9 = vsyncpa [#allocation7], 0 }
   0x2   :  { %10 = vsyncpa [#allocation5], 0  ;;  %s3393_s12 = smov [#allocation6]   ;;  %s3299_s16 = scalar_lea.hbm %s3577_s1, 4096 }
   0x3   :  { %s28_s13 = sshll.u32 %s3393_s12, 4  ;;  %p3300_p0 = scmp.ne.s32.totalorder %s3577_s1, %s3299_s16  ;;  %s29_s13 = int_to_ptr.vmem [resolvable:$true] %s28_s13 }
   0x4   :  { %p3303_p1 = scmp.lt.u32.totalorder %s3299_s16, %s3577_s1 }
   0x6   :  { %p3305_p2 = pnand %p3303_p1, %p3300_p0 }
   0x8   :  { %3308 = shalt.err (!%p3305_p2)
}
   0x9   :  { %s3309_s21 = scalar_lea.vmem %s29_s13, 4096  ;;  %p3314_p4 = scmp.lt.s32.totalorder %s29_s13, %s29_s13 }
   0xa   :  { %p3310_p3 = scmp.ne.s32.totalorder %s29_s13, %s3309_s21  ;;  %p3315_p5 = scmp.lt.s32.totalorder %s3309_s21, %s3309_s21 }
   0xc   :  { %p3316_p6 = por %p3315_p5, %p3314_p4 }
   0xe   :  { %p3317_p7 = pnand %p3316_p6, %p3310_p3 }
  0x10   :  { %3320 = shalt.err (!%p3317_p7)
}
  0x11   :  { %s3394_s22 = smov 64   ;;  %s3395_s23 = smov 4  }
  0x12   :  { %34 = dma.hbm_to_vmem [thread:$0]  %s3577_s1, 4096, %s29_s13, [#allocation7], %s3394_s22, %s3394_s22, %s3395_s23  }
  0x13   :  { %s3396_s26 = smov [#allocation3]   ;;  %s3321_s30 = scalar_lea.hbm %s3576_s0, 16384 }
  0x14   :  { %s16_s27 = sshll.u32 %s3396_s26, 4  ;;  %p3322_p8 = scmp.ne.s32.totalorder %s3576_s0, %s3321_s30  ;;  %s17_s27 = int_to_ptr.vmem [resolvable:$true] %s16_s27 }
  0x15   :  { %p3325_p9 = scmp.lt.u32.totalorder %s3321_s30, %s3576_s0 }
  0x17   :  { %p3327_p10 = pnand %p3325_p9, %p3322_p8 }
  0x19   :  { %3330 = shalt.err (!%p3327_p10)
}
  0x1a   :  { %s3331_s8 = scalar_lea.vmem %s17_s27, 16384  ;;  %p3336_p12 = scmp.lt.s32.totalorder %s17_s27, %s17_s27 }
  0x1b   :  { %p3332_p11 = scmp.ne.s32.totalorder %s17_s27, %s3331_s8  ;;  %p3337_p13 = scmp.lt.s32.totalorder %s3331_s8, %s3331_s8 }
  0x1d   :  { %p3338_p0 = por %p3337_p13, %p3336_p12 }
  0x1f   :  { %p3339_p1 = pnand %p3338_p0, %p3332_p11 }
  0x21   :  { %3342 = shalt.err (!%p3339_p1)
}
  0x22   :  { %s3397_s1 = smov 256   ;;  %s3398_s9 = smov 16  }
  0x23   :  { %22 = dma.hbm_to_vmem [thread:$0]  %s3576_s0, 16384, %s17_s27, [#allocation4], %s3397_s1, %s3397_s1, %s3398_s9  }
  0x24   :  { %s3399_s12 = smov [#allocation8]   ;;  %s3343_s16 = scalar_lea.hbm %s3578_s2, 16 }
  0x25   :  { %s41_s13 = sshll.u32 %s3399_s12, 4  ;;  %p3344_p2 = scmp.ne.s32.totalorder %s3578_s2, %s3343_s16  ;;  %s42_s13 = int_to_ptr.vmem [resolvable:$true] %s41_s13 }
  0x26   :  { %p3347_p3 = scmp.lt.u32.totalorder %s3343_s16, %s3578_s2 }
  0x28   :  { %p3349_p4 = pnand %p3347_p3, %p3344_p2 }
  0x2a   :  { %3352 = shalt.err (!%p3349_p4)
}
  0x2b   :  { %s3353_s21 = scalar_lea.vmem %s42_s13, 16  ;;  %s3357_s0 = scalar_lea.vmem %s42_s13, 32 }
  0x2c   :  { %p3354_p5 = scmp.ne.s32.totalorder %s42_s13, %s3353_s21  ;;  %p3358_p6 = scmp.lt.s32.totalorder %s42_s13, %s42_s13 }
  0x2d   :  { %p3359_p7 = scmp.lt.s32.totalorder %s3357_s0, %s3353_s21 }
  0x2f   :  { %p3360_p8 = por %p3359_p7, %p3358_p6 }
  0x31   :  { %p3361_p9 = pnand %p3360_p8, %p3354_p5 }
  0x33   :  { %3364 = shalt.err (!%p3361_p9)
}
  0x34   :  { %44 = dma.hbm_to_vmem [thread:$0]  %s3578_s2, 16, %s42_s13, [#allocation7]  }
  0x35   :  { %3387 = dma.done.wait [#allocation4], 16384  }
  0x36   :  { %3388 = vsyncadd [#allocation4], 4294950912 }
  0x37   :  { %3389 = dma.done.wait [#allocation7], 4112  }
  0x38   :  { %3390 = vsyncadd [#allocation7], 4294963184  ;;  %v3400_v0 = vmov 0   ;;  %v2946_v1 = vld [vmem:[#allocation6] sm:$0xff]   ;;  %v2948_v3 = vld [vmem:[#allocation6 + $0x8] sm:$0xff]   ;;  %s3401_s2 = smov [#allocation9]  }
  0x39   :  { %1211 = vmatprep.subr.bf16.mxu0 %v3400_v0  ;;  %1500 = vmatprep.subr.bf16.mxu1 %v3400_v0  ;;  %v2947_v2 = vld [vmem:[#allocation6 + $0x80] sm:$0xff]   ;;  %v2949_v4 = vld [vmem:[#allocation6 + $0x88] sm:$0xff]   ;;  %v2950_v5 = vld [vmem:[#allocation6 + $0x10] sm:$0xff]   ;;  %s2444_s26 = sshll.u32 %s3401_s2, 4  ;;  %s2445_s26 = int_to_ptr.vmem [resolvable:$true] %s2444_s26 }
  0x3a   :  { %1212 = vmatpush1.bf16.msra.mxu0 %v2946_v1  ;;  %1501 = vmatpush1.bf16.msra.mxu1 %v2947_v2  ;;  %v2951_v6 = vld [vmem:[#allocation6 + $0x90] sm:$0xff]   ;;  %v2952_v7 = vld [vmem:[#allocation6 + $0x18] sm:$0xff]   ;;  %v2954_v9 = vld [vmem:[#allocation6 + $0x20] sm:$0xff]   ;;  %s3365_s27 = scalar_lea.vmem %s2445_s26, 4096  ;;  %p3370_p11 = scmp.lt.s32.totalorder %s2445_s26, %s2445_s26 }
  0x3b   :  { %1213 = vmatprep.subr.bf16.mxu0 %v3400_v0  ;;  %1502 = vmatprep.subr.bf16.mxu1 %v3400_v0  ;;  %v2953_v8 = vld [vmem:[#allocation6 + $0x98] sm:$0xff]   ;;  %v2955_v10 = vld [vmem:[#allocation6 + $0xa0] sm:$0xff]   ;;  %v2956_v11 = vld [vmem:[#allocation6 + $0x28] sm:$0xff]   ;;  %p3366_p10 = scmp.ne.s32.totalorder %s2445_s26, %s3365_s27  ;;  %p3371_p12 = scmp.lt.s32.totalorder %s3365_s27, %s3365_s27 }
  0x3c   :  { %v2957_v12 = vld [vmem:[#allocation6 + $0xa8] sm:$0xff]   ;;  %v2958_v13 = vld [vmem:[#allocation6 + $0x30] sm:$0xff]   ;;  %v2960_v15 = vld [vmem:[#allocation6 + $0x38] sm:$0xff]  }
  0x3d   :  { %v2959_v14 = vld [vmem:[#allocation6 + $0xb0] sm:$0xff]   ;;  %v2961_v16 = vld [vmem:[#allocation6 + $0xb8] sm:$0xff]   ;;  %v2962_v17 = vld [vmem:[#allocation6 + $0x40] sm:$0xff]   ;;  %p3372_p13 = por %p3371_p12, %p3370_p11 }
  0x3e   :  { %1214 = vmatpush1.bf16.msra.mxu0 %v2948_v3  ;;  %1503 = vmatpush1.bf16.msra.mxu1 %v2949_v4  ;;  %v2963_v18 = vld [vmem:[#allocation6 + $0xc0] sm:$0xff]   ;;  %v2964_v20 = vld [vmem:[#allocation6 + $0x48] sm:$0xff]   ;;  %v2966_v23 = vld [vmem:[#allocation6 + $0x50] sm:$0xff]  }
  0x3f   :  { %1215 = vmatprep.subr.bf16.mxu0 %v3400_v0  ;;  %1504 = vmatprep.subr.bf16.mxu1 %v3400_v0  ;;  %v2980_v19 = vld [vmem:[#allocation3 + $0x4] ss:$16 sps:$4 sm:$0xff]   ;;  %v2983_v21 = vld [vmem:[#allocation3 + $0xc] ss:$16 sps:$4 sm:$0xff]   ;;  %v2978_v35 = vld [vmem:[#allocation3] ss:$16 sps:$4 sm:$0xff]   ;;  %p3373_p0 = pnand %p3372_p13, %p3366_p10 }
  0x40   :  { %v2965_v22 = vld [vmem:[#allocation6 + $0xc8] sm:$0xff]   ;;  %1243 = vmatprep.mubr.bf16.mxu0 %v2980_v19  ;;  %1532 = vmatprep.mubr.bf16.mxu1 %v2983_v21  ;;  %v2967_v24 = vld [vmem:[#allocation6 + $0xd0] sm:$0xff]   ;;  %v2968_v25 = vld [vmem:[#allocation6 + $0x58] sm:$0xff]  }
  0x41   :  { %v2969_v26 = vld [vmem:[#allocation6 + $0xd8] sm:$0xff]   ;;  %v2970_v27 = vld [vmem:[#allocation6 + $0x60] sm:$0xff]   ;;  %v2972_v29 = vld [vmem:[#allocation6 + $0x68] sm:$0xff]  }
  0x42   :  { %1216 = vmatpush1.bf16.msra.mxu0 %v2950_v5  ;;  %1505 = vmatpush1.bf16.msra.mxu1 %v2951_v6  ;;  %v2971_v28 = vld [vmem:[#allocation6 + $0xe0] sm:$0xff]   ;;  %v2973_v30 = vld [vmem:[#allocation6 + $0xe8] sm:$0xff]   ;;  %v2974_v31 = vld [vmem:[#allocation6 + $0x70] sm:$0xff]  }
  0x43   :  { %1217 = vmatprep.subr.bf16.mxu0 %v3400_v0  ;;  %1506 = vmatprep.subr.bf16.mxu1 %v3400_v0  ;;  %v2975_v32 = vld [vmem:[#allocation6 + $0xf0] sm:$0xff]   ;;  %v2976_v33 = vld [vmem:[#allocation6 + $0x78] sm:$0xff]  }
  0x44   :  { %v2977_v34 = vld [vmem:[#allocation6 + $0xf8] sm:$0xff]   ;;  %v2984_v37 = vld [vmem:[#allocation3 + $0x24] ss:$16 sps:$4 sm:$0xff]   ;;  %v2988_v39 = vld [vmem:[#allocation3 + $0x20] ss:$16 sps:$4 sm:$0xff]  }
  0x45   :  { %v2981_v36 = vld [vmem:[#allocation3 + $0x8] ss:$16 sps:$4 sm:$0xff]   ;;  %v2986_v38 = vld [vmem:[#allocation3 + $0x2c] ss:$16 sps:$4 sm:$0xff]   ;;  %v2990_v41 = vld [vmem:[#allocation3 + $0x44] ss:$16 sps:$4 sm:$0xff]  }
  0x46   :  { %1218 = vmatpush1.bf16.msra.mxu0 %v2952_v7  ;;  %1507 = vmatpush1.bf16.msra.mxu1 %v2953_v8  ;;  %v2989_v40 = vld [vmem:[#allocation3 + $0x28] ss:$16 sps:$4 sm:$0xff]   ;;  %v2992_v42 = vld [vmem:[#allocation3 + $0x4c] ss:$16 sps:$4 sm:$0xff]   ;;  %v2994_v43 = vld [vmem:[#allocation3 + $0x40] ss:$16 sps:$4 sm:$0xff]  }
  0x47   :  { %1219 = vmatprep.subr.bf16.mxu0 %v3400_v0  ;;  %1508 = vmatprep.subr.bf16.mxu1 %v3400_v0  ;;  %v2995_v44 = vld [vmem:[#allocation3 + $0x48] ss:$16 sps:$4 sm:$0xff]   ;;  %v2996_v45 = vld [vmem:[#allocation3 + $0x64] ss:$16 sps:$4 sm:$0xff]   ;;  %v2998_v46 = vld [vmem:[#allocation3 + $0x6c] ss:$16 sps:$4 sm:$0xff]  }
  0x48   :  { %v3000_v47 = vld [vmem:[#allocation3 + $0x60] ss:$16 sps:$4 sm:$0xff]   ;;  %v3001_v48 = vld [vmem:[#allocation3 + $0x68] ss:$16 sps:$4 sm:$0xff]   ;;  %v3002_v49 = vld [vmem:[#allocation3 + $0x84] ss:$16 sps:$4 sm:$0xff]  }
  0x49   :  { %v3004_v50 = vld [vmem:[#allocation3 + $0x8c] ss:$16 sps:$4 sm:$0xff]   ;;  %v3006_v51 = vld [vmem:[#allocation3 + $0x80] ss:$16 sps:$4 sm:$0xff]   ;;  %v3007_v52 = vld [vmem:[#allocation3 + $0x88] ss:$16 sps:$4 sm:$0xff]  }
  0x4a   :  { %1220 = vmatpush1.bf16.msra.mxu0 %v2954_v9  ;;  %1509 = vmatpush1.bf16.msra.mxu1 %v2955_v10  ;;  %v3008_v53 = vld [vmem:[#allocation3 + $0xa4] ss:$16 sps:$4 sm:$0xff]   ;;  %v3010_v54 = vld [vmem:[#allocation3 + $0xac] ss:$16 sps:$4 sm:$0xff]   ;;  %v3012_v55 = vld [vmem:[#allocation3 + $0xa0] ss:$16 sps:$4 sm:$0xff]  }
  0x4b   :  { %1221 = vmatprep.subr.bf16.mxu0 %v3400_v0  ;;  %1510 = vmatprep.subr.bf16.mxu1 %v3400_v0  ;;  %v3013_v56 = vld [vmem:[#allocation3 + $0xa8] ss:$16 sps:$4 sm:$0xff]   ;;  %v3014_v57 = vld [vmem:[#allocation3 + $0xc4] ss:$16 sps:$4 sm:$0xff]   ;;  %v3016_v58 = vld [vmem:[#allocation3 + $0xcc] ss:$16 sps:$4 sm:$0xff]  }
  0x4c   :  { %v3018_v59 = vld [vmem:[#allocation3 + $0xc0] ss:$16 sps:$4 sm:$0xff]   ;;  %v3019_v60 = vld [vmem:[#allocation3 + $0xc8] ss:$16 sps:$4 sm:$0xff]   ;;  %v3020_v61 = vld [vmem:[#allocation3 + $0xe4] ss:$16 sps:$4 sm:$0xff]  }
  0x4d   :  { %v3022_v62 = vld [vmem:[#allocation3 + $0xec] ss:$16 sps:$4 sm:$0xff]   ;;  %v3024_v63 = vld [vmem:[#allocation3 + $0xe0] ss:$16 sps:$4 sm:$0xff]   ;;  %v3026_v1 = vld [vmem:[#allocation3 + $0x104] ss:$16 sps:$4 sm:$0xff]  }
  0x4e   :  { %1222 = vmatpush1.bf16.msra.mxu0 %v2956_v11  ;;  %1511 = vmatpush1.bf16.msra.mxu1 %v2957_v12  ;;  %v3028_v2 = vld [vmem:[#allocation3 + $0x10c] ss:$16 sps:$4 sm:$0xff]   ;;  %v3030_v3 = vld [vmem:[#allocation3 + $0x100] ss:$16 sps:$4 sm:$0xff]   ;;  %v3031_v4 = vld [vmem:[#allocation3 + $0x108] ss:$16 sps:$4 sm:$0xff]  }
  0x4f   :  { %1223 = vmatprep.subr.bf16.mxu0 %v3400_v0  ;;  %1512 = vmatprep.subr.bf16.mxu1 %v3400_v0  ;;  %v3032_v5 = vld [vmem:[#allocation3 + $0x124] ss:$16 sps:$4 sm:$0xff]   ;;  %v3034_v6 = vld [vmem:[#allocation3 + $0x12c] ss:$16 sps:$4 sm:$0xff]   ;;  %v3036_v7 = vld [vmem:[#allocation3 + $0x120] ss:$16 sps:$4 sm:$0xff]  }
  0x50   :  { %v3037_v8 = vld [vmem:[#allocation3 + $0x128] ss:$16 sps:$4 sm:$0xff]   ;;  %v3038_v9 = vld [vmem:[#allocation3 + $0x144] ss:$16 sps:$4 sm:$0xff]   ;;  %v3040_v10 = vld [vmem:[#allocation3 + $0x14c] ss:$16 sps:$4 sm:$0xff]  }
  0x51   :  { %v3042_v11 = vld [vmem:[#allocation3 + $0x140] ss:$16 sps:$4 sm:$0xff]   ;;  %v3043_v12 = vld [vmem:[#allocation3 + $0x148] ss:$16 sps:$4 sm:$0xff]   ;;  %v3056_v21 = vld [vmem:[#allocation3 + $0x1a4] ss:$16 sps:$4 sm:$0xff]  }
  0x52   :  { %1224 = vmatpush1.bf16.msra.mxu0 %v2958_v13  ;;  %1513 = vmatpush1.bf16.msra.mxu1 %v2959_v14  ;;  %v3044_v13 = vld [vmem:[#allocation3 + $0x164] ss:$16 sps:$4 sm:$0xff]   ;;  %v3046_v14 = vld [vmem:[#allocation3 + $0x16c] ss:$16 sps:$4 sm:$0xff]   ;;  %v3054_v19 = vld [vmem:[#allocation3 + $0x180] ss:$16 sps:$4 sm:$0xff]  }
  0x53   :  { %1225 = vmatprep.subr.bf16.mxu0 %v3400_v0  ;;  %1514 = vmatprep.subr.bf16.mxu1 %v3400_v0 }
  0x56   :  { %1226 = vmatpush1.bf16.msra.mxu0 %v2960_v15  ;;  %1515 = vmatpush1.bf16.msra.mxu1 %v2961_v16  ;;  %v3048_v15 = vld [vmem:[#allocation3 + $0x160] ss:$16 sps:$4 sm:$0xff]   ;;  %v3049_v16 = vld [vmem:[#allocation3 + $0x168] ss:$16 sps:$4 sm:$0xff]  }
  0x57   :  { %1227 = vmatprep.subr.bf16.mxu0 %v3400_v0  ;;  %1516 = vmatprep.subr.bf16.mxu1 %v3400_v0 }
  0x5a   :  { %1228 = vmatpush1.bf16.msra.mxu0 %v2962_v17  ;;  %1517 = vmatpush1.bf16.msra.mxu1 %v2963_v18  ;;  %v3050_v17 = vld [vmem:[#allocation3 + $0x184] ss:$16 sps:$4 sm:$0xff]   ;;  %v3052_v18 = vld [vmem:[#allocation3 + $0x18c] ss:$16 sps:$4 sm:$0xff]  }
  0x5b   :  { %1229 = vmatprep.subr.bf16.mxu0 %v3400_v0  ;;  %1518 = vmatprep.subr.bf16.mxu1 %v3400_v0 }
  0x5e   :  { %1230 = vmatpush1.bf16.msra.mxu0 %v2964_v20  ;;  %1519 = vmatpush1.bf16.msra.mxu1 %v2965_v22  ;;  %v3055_v20 = vld [vmem:[#allocation3 + $0x188] ss:$16 sps:$4 sm:$0xff]   ;;  %v3058_v22 = vld [vmem:[#allocation3 + $0x1ac] ss:$16 sps:$4 sm:$0xff]  }
  0x5f   :  { %1231 = vmatprep.subr.bf16.mxu0 %v3400_v0  ;;  %1520 = vmatprep.subr.bf16.mxu1 %v3400_v0 }
  0x62   :  { %1232 = vmatpush1.bf16.msra.mxu0 %v2966_v23  ;;  %1521 = vmatpush1.bf16.msra.mxu1 %v2967_v24  ;;  %v3060_v23 = vld [vmem:[#allocation3 + $0x1a0] ss:$16 sps:$4 sm:$0xff]   ;;  %v3061_v24 = vld [vmem:[#allocation3 + $0x1a8] ss:$16 sps:$4 sm:$0xff]  }
  0x63   :  { %1233 = vmatprep.subr.bf16.mxu0 %v3400_v0  ;;  %1522 = vmatprep.subr.bf16.mxu1 %v3400_v0 }
  0x66   :  { %1234 = vmatpush1.bf16.msra.mxu0 %v2968_v25  ;;  %1523 = vmatpush1.bf16.msra.mxu1 %v2969_v26  ;;  %v3062_v25 = vld [vmem:[#allocation3 + $0x1c4] ss:$16 sps:$4 sm:$0xff]   ;;  %v3064_v26 = vld [vmem:[#allocation3 + $0x1cc] ss:$16 sps:$4 sm:$0xff]  }
  0x67   :  { %1235 = vmatprep.subr.bf16.mxu0 %v3400_v0  ;;  %1524 = vmatprep.subr.bf16.mxu1 %v3400_v0 }
  0x6a   :  { %1236 = vmatpush1.bf16.msra.mxu0 %v2970_v27  ;;  %1525 = vmatpush1.bf16.msra.mxu1 %v2971_v28  ;;  %v3066_v27 = vld [vmem:[#allocation3 + $0x1c0] ss:$16 sps:$4 sm:$0xff]   ;;  %v3067_v28 = vld [vmem:[#allocation3 + $0x1c8] ss:$16 sps:$4 sm:$0xff]  }
  0x6b   :  { %1237 = vmatprep.subr.bf16.mxu0 %v3400_v0  ;;  %1526 = vmatprep.subr.bf16.mxu1 %v3400_v0 }
  0x6e   :  { %1238 = vmatpush1.bf16.msra.mxu0 %v2972_v29  ;;  %1527 = vmatpush1.bf16.msra.mxu1 %v2973_v30  ;;  %v3068_v29 = vld [vmem:[#allocation3 + $0x1e4] ss:$16 sps:$4 sm:$0xff]   ;;  %v3070_v30 = vld [vmem:[#allocation3 + $0x1ec] ss:$16 sps:$4 sm:$0xff]  }
  0x6f   :  { %1239 = vmatprep.subr.bf16.mxu0 %v3400_v0  ;;  %1528 = vmatprep.subr.bf16.mxu1 %v3400_v0 }
  0x72   :  { %1240 = vmatpush1.bf16.msra.mxu0 %v2974_v31  ;;  %1529 = vmatpush1.bf16.msra.mxu1 %v2975_v32  ;;  %v3072_v31 = vld [vmem:[#allocation3 + $0x1e0] ss:$16 sps:$4 sm:$0xff]   ;;  %v3073_v32 = vld [vmem:[#allocation3 + $0x1e8] ss:$16 sps:$4 sm:$0xff]  }
  0x73   :  { %1241 = vmatprep.subr.bf16.mxu0 %v3400_v0  ;;  %1530 = vmatprep.subr.bf16.mxu1 %v3400_v0  ;;  %v3025_v0 = vld [vmem:[#allocation3 + $0xe8] ss:$16 sps:$4 sm:$0xff]  }
  0x76   :  { %1242 = vmatpush1.bf16.msra.mxu0 %v2976_v33  ;;  %1531 = vmatpush1.bf16.msra.mxu1 %v2977_v34  ;;  %v3074_v33 = vld [vmem:[#allocation3 + $0x204] ss:$16 sps:$4 sm:$0xff]   ;;  %v3076_v34 = vld [vmem:[#allocation3 + $0x20c] ss:$16 sps:$4 sm:$0xff]  }
  0x79   :  { %1244 = vmatmul.mubr.bf16.vlgmr.msra.gmra.mrb[0].mxu0 %v2978_v35  ;;  %1533 = vmatmul.mubr.bf16.vlgmr.msra.gmra.mrb[0].mxu1 %v2981_v36  ;;  %v3078_v35 = vld [vmem:[#allocation3 + $0x200] ss:$16 sps:$4 sm:$0xff]   ;;  %v3079_v36 = vld [vmem:[#allocation3 + $0x208] ss:$16 sps:$4 sm:$0xff]  }
  0x7a   :  { %1251 = vmatprep.mubr.bf16.mxu0 %v2984_v37  ;;  %1540 = vmatprep.mubr.bf16.mxu1 %v2986_v38  ;;  %v3080_v37 = vld [vmem:[#allocation3 + $0x224] ss:$16 sps:$4 sm:$0xff]   ;;  %v3082_v38 = vld [vmem:[#allocation3 + $0x22c] ss:$16 sps:$4 sm:$0xff]  }
  0x81   :  { %1252 = vmatmul.mubr.bf16.gmra.mrb[4].mxu0 %v2988_v39  ;;  %1541 = vmatmul.mubr.bf16.gmra.mrb[4].mxu1 %v2989_v40  ;;  %v3084_v39 = vld [vmem:[#allocation3 + $0x220] ss:$16 sps:$4 sm:$0xff]   ;;  %v3085_v40 = vld [vmem:[#allocation3 + $0x228] ss:$16 sps:$4 sm:$0xff]  }
  0x82   :  { %1259 = vmatprep.mubr.bf16.mxu0 %v2990_v41  ;;  %1548 = vmatprep.mubr.bf16.mxu1 %v2992_v42  ;;  %v3086_v41 = vld [vmem:[#allocation3 + $0x244] ss:$16 sps:$4 sm:$0xff]   ;;  %v3088_v42 = vld [vmem:[#allocation3 + $0x24c] ss:$16 sps:$4 sm:$0xff]  }
  0x89   :  { %1260 = vmatmul.mubr.bf16.gmra.mrb[8].mxu0 %v2994_v43  ;;  %1549 = vmatmul.mubr.bf16.gmra.mrb[8].mxu1 %v2995_v44  ;;  %v3090_v43 = vld [vmem:[#allocation3 + $0x240] ss:$16 sps:$4 sm:$0xff]   ;;  %v3091_v44 = vld [vmem:[#allocation3 + $0x248] ss:$16 sps:$4 sm:$0xff]  }
  0x8a   :  { %1267 = vmatprep.mubr.bf16.mxu0 %v2996_v45  ;;  %1556 = vmatprep.mubr.bf16.mxu1 %v2998_v46  ;;  %v3092_v45 = vld [vmem:[#allocation3 + $0x264] ss:$16 sps:$4 sm:$0xff]   ;;  %v3094_v46 = vld [vmem:[#allocation3 + $0x26c] ss:$16 sps:$4 sm:$0xff]  }
  0x91   :  { %1268 = vmatmul.mubr.bf16.gmra.mrb[12].mxu0 %v3000_v47  ;;  %1557 = vmatmul.mubr.bf16.gmra.mrb[12].mxu1 %v3001_v48  ;;  %v3096_v47 = vld [vmem:[#allocation3 + $0x260] ss:$16 sps:$4 sm:$0xff]   ;;  %v3097_v48 = vld [vmem:[#allocation3 + $0x268] ss:$16 sps:$4 sm:$0xff]  }
  0x92   :  { %1275 = vmatprep.mubr.bf16.mxu0 %v3002_v49  ;;  %1564 = vmatprep.mubr.bf16.mxu1 %v3004_v50  ;;  %v3098_v49 = vld [vmem:[#allocation3 + $0x284] ss:$16 sps:$4 sm:$0xff]   ;;  %v3100_v50 = vld [vmem:[#allocation3 + $0x28c] ss:$16 sps:$4 sm:$0xff]  }
  0x99   :  { %1276 = vmatmul.mubr.bf16.gmra.mrb[16].mxu0 %v3006_v51  ;;  %1565 = vmatmul.mubr.bf16.gmra.mrb[16].mxu1 %v3007_v52  ;;  %v3102_v51 = vld [vmem:[#allocation3 + $0x280] ss:$16 sps:$4 sm:$0xff]   ;;  %v3103_v52 = vld [vmem:[#allocation3 + $0x288] ss:$16 sps:$4 sm:$0xff]  }
  0x9a   :  { %1283 = vmatprep.mubr.bf16.mxu0 %v3008_v53  ;;  %1572 = vmatprep.mubr.bf16.mxu1 %v3010_v54  ;;  %v3104_v53 = vld [vmem:[#allocation3 + $0x2a4] ss:$16 sps:$4 sm:$0xff]   ;;  %v3106_v54 = vld [vmem:[#allocation3 + $0x2ac] ss:$16 sps:$4 sm:$0xff]  }
  0xa1   :  { %1284 = vmatmul.mubr.bf16.gmra.mrb[20].mxu0 %v3012_v55  ;;  %1573 = vmatmul.mubr.bf16.gmra.mrb[20].mxu1 %v3013_v56  ;;  %v3108_v55 = vld [vmem:[#allocation3 + $0x2a0] ss:$16 sps:$4 sm:$0xff]   ;;  %v3109_v56 = vld [vmem:[#allocation3 + $0x2a8] ss:$16 sps:$4 sm:$0xff]  }
  0xa2   :  { %1291 = vmatprep.mubr.bf16.mxu0 %v3014_v57  ;;  %1580 = vmatprep.mubr.bf16.mxu1 %v3016_v58  ;;  %v3110_v57 = vld [vmem:[#allocation3 + $0x2c4] ss:$16 sps:$4 sm:$0xff]   ;;  %v3112_v58 = vld [vmem:[#allocation3 + $0x2cc] ss:$16 sps:$4 sm:$0xff]  }
  0xa9   :  { %1292 = vmatmul.mubr.bf16.gmra.mrb[24].mxu0 %v3018_v59  ;;  %1581 = vmatmul.mubr.bf16.gmra.mrb[24].mxu1 %v3019_v60  ;;  %v3114_v59 = vld [vmem:[#allocation3 + $0x2c0] ss:$16 sps:$4 sm:$0xff]   ;;  %v3115_v60 = vld [vmem:[#allocation3 + $0x2c8] ss:$16 sps:$4 sm:$0xff]  }
  0xaa   :  { %1299 = vmatprep.mubr.bf16.mxu0 %v3020_v61  ;;  %1588 = vmatprep.mubr.bf16.mxu1 %v3022_v62  ;;  %v3116_v61 = vld [vmem:[#allocation3 + $0x2e4] ss:$16 sps:$4 sm:$0xff]   ;;  %v3118_v62 = vld [vmem:[#allocation3 + $0x2ec] ss:$16 sps:$4 sm:$0xff]  }
  0xb1   :  { %1300 = vmatmul.mubr.bf16.gmra.mrb[28].mxu0 %v3024_v63  ;;  %1589 = vmatmul.mubr.bf16.gmra.mrb[28].mxu1 %v3025_v0  ;;  %v3120_v63 = vld [vmem:[#allocation3 + $0x2e0] ss:$16 sps:$4 sm:$0xff]   ;;  %v3121_v0 = vld [vmem:[#allocation3 + $0x2e8] ss:$16 sps:$4 sm:$0xff]  }
  0xb2   :  { %1307 = vmatprep.mubr.bf16.mxu0 %v3026_v1  ;;  %1596 = vmatprep.mubr.bf16.mxu1 %v3028_v2  ;;  %v3122_v1 = vld [vmem:[#allocation3 + $0x304] ss:$16 sps:$4 sm:$0xff]   ;;  %v3124_v2 = vld [vmem:[#allocation3 + $0x30c] ss:$16 sps:$4 sm:$0xff]  }
  0xb9   :  { %1308 = vmatmul.mubr.bf16.gmra.mrb[32].mxu0 %v3030_v3  ;;  %1597 = vmatmul.mubr.bf16.gmra.mrb[32].mxu1 %v3031_v4  ;;  %v3126_v3 = vld [vmem:[#allocation3 + $0x300] ss:$16 sps:$4 sm:$0xff]   ;;  %v3127_v4 = vld [vmem:[#allocation3 + $0x308] ss:$16 sps:$4 sm:$0xff]  }
  0xba   :  { %1315 = vmatprep.mubr.bf16.mxu0 %v3032_v5  ;;  %1604 = vmatprep.mubr.bf16.mxu1 %v3034_v6  ;;  %v3128_v5 = vld [vmem:[#allocation3 + $0x324] ss:$16 sps:$4 sm:$0xff]   ;;  %v3130_v6 = vld [vmem:[#allocation3 + $0x32c] ss:$16 sps:$4 sm:$0xff]  }
  0xc1   :  { %1316 = vmatmul.mubr.bf16.gmra.mrb[36].mxu0 %v3036_v7  ;;  %1605 = vmatmul.mubr.bf16.gmra.mrb[36].mxu1 %v3037_v8  ;;  %v3132_v7 = vld [vmem:[#allocation3 + $0x320] ss:$16 sps:$4 sm:$0xff]   ;;  %v3133_v8 = vld [vmem:[#allocation3 + $0x328] ss:$16 sps:$4 sm:$0xff]  }
  0xc2   :  { %1323 = vmatprep.mubr.bf16.mxu0 %v3038_v9  ;;  %1612 = vmatprep.mubr.bf16.mxu1 %v3040_v10  ;;  %v3134_v9 = vld [vmem:[#allocation3 + $0x344] ss:$16 sps:$4 sm:$0xff]   ;;  %v3136_v10 = vld [vmem:[#allocation3 + $0x34c] ss:$16 sps:$4 sm:$0xff]  }
  0xc9   :  { %1324 = vmatmul.mubr.bf16.gmra.mrb[40].mxu0 %v3042_v11  ;;  %1613 = vmatmul.mubr.bf16.gmra.mrb[40].mxu1 %v3043_v12  ;;  %v3138_v11 = vld [vmem:[#allocation3 + $0x340] ss:$16 sps:$4 sm:$0xff]   ;;  %v3139_v12 = vld [vmem:[#allocation3 + $0x348] ss:$16 sps:$4 sm:$0xff]  }
  0xca   :  { %1331 = vmatprep.mubr.bf16.mxu0 %v3044_v13  ;;  %1620 = vmatprep.mubr.bf16.mxu1 %v3046_v14  ;;  %v3140_v13 = vld [vmem:[#allocation3 + $0x364] ss:$16 sps:$4 sm:$0xff]   ;;  %v3142_v14 = vld [vmem:[#allocation3 + $0x36c] ss:$16 sps:$4 sm:$0xff]  }
  0xd1   :  { %1332 = vmatmul.mubr.bf16.gmra.mrb[44].mxu0 %v3048_v15  ;;  %1621 = vmatmul.mubr.bf16.gmra.mrb[44].mxu1 %v3049_v16 }
  0xd2   :  { %1339 = vmatprep.mubr.bf16.mxu0 %v3050_v17  ;;  %1628 = vmatprep.mubr.bf16.mxu1 %v3052_v18  ;;  %v3493_v17 = vld [vmem:[#allocation8] ss:$0 sm:$0xff] }
  0xd9   :  { %1340 = vmatmul.mubr.bf16.gmra.mrb[48].mxu0 %v3054_v19  ;;  %1629 = vmatmul.mubr.bf16.gmra.mrb[48].mxu1 %v3055_v20  ;;  %v3144_v19 = vld [vmem:[#allocation3 + $0x360] ss:$16 sps:$4 sm:$0xff]  }
  0xda   :  { %1347 = vmatprep.mubr.bf16.mxu0 %v3056_v21  ;;  %1636 = vmatprep.mubr.bf16.mxu1 %v3058_v22 }
  0xe1   :  { %1348 = vmatmul.mubr.bf16.gmra.mrb[52].mxu0 %v3060_v23  ;;  %1637 = vmatmul.mubr.bf16.gmra.mrb[52].mxu1 %v3061_v24  ;;  %v3145_v23 = vld [vmem:[#allocation3 + $0x368] ss:$16 sps:$4 sm:$0xff]   ;;  %v3146_v24 = vld [vmem:[#allocation3 + $0x384] ss:$16 sps:$4 sm:$0xff]  }
  0xe2   :  { %1355 = vmatprep.mubr.bf16.mxu0 %v3062_v25  ;;  %1644 = vmatprep.mubr.bf16.mxu1 %v3064_v26 }
  0xe9   :  { %1356 = vmatmul.mubr.bf16.gmra.mrb[56].mxu0 %v3066_v27  ;;  %1645 = vmatmul.mubr.bf16.gmra.mrb[56].mxu1 %v3067_v28  ;;  %v3148_v27 = vld [vmem:[#allocation3 + $0x38c] ss:$16 sps:$4 sm:$0xff]  }
  0xea   :  { %1363 = vmatprep.mubr.bf16.mxu0 %v3068_v29  ;;  %1652 = vmatprep.mubr.bf16.mxu1 %v3070_v30 }
  0xf1   :  { %1364 = vmatmul.mubr.bf16.gmra.mrb[60].mxu0 %v3072_v31  ;;  %1653 = vmatmul.mubr.bf16.gmra.mrb[60].mxu1 %v3073_v32 }
  0xf2   :  { %1371 = vmatprep.mubr.bf16.mxu0 %v3074_v33  ;;  %1660 = vmatprep.mubr.bf16.mxu1 %v3076_v34 }
  0xf9   :  { %1372 = vmatmul.mubr.bf16.gmra.mrb[64].mxu0 %v3078_v35  ;;  %1661 = vmatmul.mubr.bf16.gmra.mrb[64].mxu1 %v3079_v36  ;;  %v3150_v35 = vld [vmem:[#allocation3 + $0x380] ss:$16 sps:$4 sm:$0xff]  }
  0xfa   :  { %1379 = vmatprep.mubr.bf16.mxu0 %v3080_v37  ;;  %1668 = vmatprep.mubr.bf16.mxu1 %v3082_v38 }
 0x101   :  { %1380 = vmatmul.mubr.bf16.gmra.mrb[68].mxu0 %v3084_v39  ;;  %1669 = vmatmul.mubr.bf16.gmra.mrb[68].mxu1 %v3085_v40  ;;  %v3151_v39 = vld [vmem:[#allocation3 + $0x388] ss:$16 sps:$4 sm:$0xff]   ;;  %v3152_v40 = vld [vmem:[#allocation3 + $0x3a4] ss:$16 sps:$4 sm:$0xff]  }
 0x102   :  { %1387 = vmatprep.mubr.bf16.mxu0 %v3086_v41  ;;  %1676 = vmatprep.mubr.bf16.mxu1 %v3088_v42 }
 0x109   :  { %1388 = vmatmul.mubr.bf16.gmra.mrb[72].mxu0 %v3090_v43  ;;  %1677 = vmatmul.mubr.bf16.gmra.mrb[72].mxu1 %v3091_v44  ;;  %v3154_v43 = vld [vmem:[#allocation3 + $0x3ac] ss:$16 sps:$4 sm:$0xff]  }
 0x10a   :  { %1395 = vmatprep.mubr.bf16.mxu0 %v3092_v45  ;;  %1684 = vmatprep.mubr.bf16.mxu1 %v3094_v46 }
 0x111   :  { %1396 = vmatmul.mubr.bf16.gmra.mrb[76].mxu0 %v3096_v47  ;;  %1685 = vmatmul.mubr.bf16.gmra.mrb[76].mxu1 %v3097_v48 }
 0x112   :  { %1403 = vmatprep.mubr.bf16.mxu0 %v3098_v49  ;;  %1692 = vmatprep.mubr.bf16.mxu1 %v3100_v50 }
 0x119   :  { %1404 = vmatmul.mubr.bf16.gmra.mrb[80].mxu0 %v3102_v51  ;;  %1693 = vmatmul.mubr.bf16.gmra.mrb[80].mxu1 %v3103_v52  ;;  %v3156_v52 = vld [vmem:[#allocation3 + $0x3a0] ss:$16 sps:$4 sm:$0xff]  }
 0x11a   :  { %1411 = vmatprep.mubr.bf16.mxu0 %v3104_v53  ;;  %1700 = vmatprep.mubr.bf16.mxu1 %v3106_v54 }
 0x121   :  { %1412 = vmatmul.mubr.bf16.gmra.mrb[84].mxu0 %v3108_v55  ;;  %1701 = vmatmul.mubr.bf16.gmra.mrb[84].mxu1 %v3109_v56 }
 0x122   :  { %1419 = vmatprep.mubr.bf16.mxu0 %v3110_v57  ;;  %1708 = vmatprep.mubr.bf16.mxu1 %v3112_v58  ;;  %v3157_v57 = vld [vmem:[#allocation3 + $0x3a8] ss:$16 sps:$4 sm:$0xff]   ;;  %v3158_v58 = vld [vmem:[#allocation3 + $0x3c4] ss:$16 sps:$4 sm:$0xff]  }
 0x129   :  { %1420 = vmatmul.mubr.bf16.gmra.mrb[88].mxu0 %v3114_v59  ;;  %1709 = vmatmul.mubr.bf16.gmra.mrb[88].mxu1 %v3115_v60 }
 0x12a   :  { %1427 = vmatprep.mubr.bf16.mxu0 %v3116_v61  ;;  %1716 = vmatprep.mubr.bf16.mxu1 %v3118_v62  ;;  %v3160_v62 = vld [vmem:[#allocation3 + $0x3cc] ss:$16 sps:$4 sm:$0xff]  }
 0x131   :  { %1428 = vmatmul.mubr.bf16.gmra.mrb[92].mxu0 %v3120_v63  ;;  %1717 = vmatmul.mubr.bf16.gmra.mrb[92].mxu1 %v3121_v0 }
 0x132   :  { %1435 = vmatprep.mubr.bf16.mxu0 %v3122_v1  ;;  %1724 = vmatprep.mubr.bf16.mxu1 %v3124_v2 }
 0x139   :  { %1436 = vmatmul.mubr.bf16.gmra.mrb[96].mxu0 %v3126_v3  ;;  %1725 = vmatmul.mubr.bf16.gmra.mrb[96].mxu1 %v3127_v4 }
 0x13a   :  { %1443 = vmatprep.mubr.bf16.mxu0 %v3128_v5  ;;  %1732 = vmatprep.mubr.bf16.mxu1 %v3130_v6 }
 0x141   :  { %1444 = vmatmul.mubr.bf16.gmra.mrb[100].mxu0 %v3132_v7  ;;  %1733 = vmatmul.mubr.bf16.gmra.mrb[100].mxu1 %v3133_v8  ;;  %v3162_v7 = vld [vmem:[#allocation3 + $0x3c0] ss:$16 sps:$4 sm:$0xff]  }
 0x142   :  { %1451 = vmatprep.mubr.bf16.mxu0 %v3134_v9  ;;  %1740 = vmatprep.mubr.bf16.mxu1 %v3136_v10 }
 0x149   :  { %1452 = vmatmul.mubr.bf16.gmra.mrb[104].mxu0 %v3138_v11  ;;  %1741 = vmatmul.mubr.bf16.gmra.mrb[104].mxu1 %v3139_v12  ;;  %v3163_v12 = vld [vmem:[#allocation3 + $0x3c8] ss:$16 sps:$4 sm:$0xff]  }
 0x14a   :  { %1459 = vmatprep.mubr.bf16.mxu0 %v3140_v13  ;;  %1748 = vmatprep.mubr.bf16.mxu1 %v3142_v14  ;;  %v3164_v13 = vld [vmem:[#allocation3 + $0x3e4] ss:$16 sps:$4 sm:$0xff]  }
 0x14c   :  { %v1245_v15 = vpop.f32.mrb[0].mxu0  ;;  %v1534_v16 = vpop.f32.mrb[0].mxu1 }
 0x14d   :  { %v1247_v18 = vpop.f32.mrb[1].mxu0  ;;  %v1535_v20 = vadd.f32 %v1534_v16, %v1245_v15  ;;  %v1536_v21 = vpop.f32.mrb[1].mxu1 }
 0x14e   :  { %v1248_v22 = vpop.f32.mrb[2].mxu0  ;;  %v1537_v25 = vpop.f32.mrb[2].mxu1  ;;  %v3166_v18 = vld [vmem:[#allocation3 + $0x3ec] ss:$16 sps:$4 sm:$0xff]  }
 0x14f   :  { %v1250_v26 = vpop.f32.mrb[3].mxu0  ;;  %v1991_v28 = vadd.f32 %v3493_v17, %v1535_v20  ;;  %v1538_v29 = vadd.f32 %v1537_v25, %v1248_v22  ;;  %v1539_v30 = vpop.f32.mrb[3].mxu1 }
 0x151   :  { %1460 = vmatmul.mubr.bf16.gmra.mrb[108].mxu0 %v3144_v19  ;;  %v1992_v31 = vadd.f32 %v3493_v17, %v1538_v29  ;;  %1749 = vmatmul.mubr.bf16.gmra.mrb[108].mxu1 %v3145_v23  ;;  %3170 = vtanh.f32 %v1991_v28 }
 0x152   :  { %1467 = vmatprep.mubr.bf16.mxu0 %v3146_v24  ;;  %1756 = vmatprep.mubr.bf16.mxu1 %v3148_v27  ;;  %v3168_v27 = vld [vmem:[#allocation3 + $0x3e0] ss:$16 sps:$4 sm:$0xff]  }
 0x153   :  { %3172 = vtanh.f32 %v1992_v31 }
 0x154   :  { %v1253_v32 = vpop.f32.mrb[4].mxu0  ;;  %v1542_v33 = vpop.f32.mrb[4].mxu1 }
 0x155   :  { %v1255_v34 = vpop.f32.mrb[5].mxu0  ;;  %v1543_v36 = vadd.f32 %v1542_v33, %v1253_v32  ;;  %v1544_v37 = vpop.f32.mrb[5].mxu1  ;;  %v3169_v32 = vld [vmem:[#allocation3 + $0x3e8] ss:$16 sps:$4 sm:$0xff]  }
 0x156   :  { %v1256_v38 = vpop.f32.mrb[6].mxu0  ;;  %v1545_v41 = vpop.f32.mrb[6].mxu1 }
 0x157   :  { %v1258_v42 = vpop.f32.mrb[7].mxu0  ;;  %v1993_v44 = vadd.f32 %v3493_v17, %v1543_v36  ;;  %v1546_v45 = vadd.f32 %v1545_v41, %v1256_v38  ;;  %v1547_v46 = vpop.f32.mrb[7].mxu1 }
 0x159   :  { %1468 = vmatmul.mubr.bf16.gmra.mrb[112].mxu0 %v3150_v35  ;;  %v1994_v47 = vadd.f32 %v3493_v17, %v1546_v45  ;;  %1757 = vmatmul.mubr.bf16.gmra.mrb[112].mxu1 %v3151_v39  ;;  %3174 = vtanh.f32 %v1993_v44 }
 0x15a   :  { %1475 = vmatprep.mubr.bf16.mxu0 %v3152_v40  ;;  %1764 = vmatprep.mubr.bf16.mxu1 %v3154_v43 }
 0x15b   :  { %3176 = vtanh.f32 %v1994_v47  ;;  %v3171_v49 = vpop.eup %3170 }
 0x15c   :  { %v1261_v48 = vpop.f32.mrb[8].mxu0  ;;  %v1550_v50 = vpop.f32.mrb[8].mxu1 }
 0x15d   :  { %v1263_v51 = vpop.f32.mrb[9].mxu0  ;;  %v3173_v53 = vpop.eup %3172  ;;  %v1551_v54 = vadd.f32 %v1550_v50, %v1261_v48 }
 0x15e   :  { %v1552_v55 = vpop.f32.mrb[9].mxu1  ;;  %v1264_v56 = vpop.f32.mrb[10].mxu0  ;;  %v2749_v59 = vpack.c.bf16 %v3173_v53, %v3171_v49 }
 0x15f   :  { %v1553_v60 = vpop.f32.mrb[10].mxu1  ;;  %v1266_v61 = vpop.f32.mrb[11].mxu0  ;;  %v1995_v63 = vadd.f32 %v3493_v17, %v1551_v54 }
 0x160   :  { %v1554_v0 = vadd.f32 %v1553_v60, %v1264_v56  ;;  %v1555_v1 = vpop.f32.mrb[11].mxu1  ;;  %2750 = vst [vmem:[#allocation9] sm:$0xff] %v2749_v59  }
 0x161   :  { %1476 = vmatmul.mubr.bf16.gmra.mrb[116].mxu0 %v3156_v52  ;;  %1765 = vmatmul.mubr.bf16.gmra.mrb[116].mxu1 %v3157_v57  ;;  %3178 = vtanh.f32 %v1995_v63 }
 0x162   :  { %v1996_v2 = vadd.f32 %v3493_v17, %v1554_v0  ;;  %1483 = vmatprep.mubr.bf16.mxu0 %v3158_v58  ;;  %1772 = vmatprep.mubr.bf16.mxu1 %v3160_v62 }
 0x163   :  { %v3175_v4 = vpop.eup %3174 }
 0x164   :  { %3180 = vtanh.f32 %v1996_v2  ;;  %v1269_v3 = vpop.f32.mrb[12].mxu0  ;;  %v1558_v5 = vpop.f32.mrb[12].mxu1 }
 0x165   :  { %v1271_v6 = vpop.f32.mrb[13].mxu0  ;;  %v3177_v8 = vpop.eup %3176  ;;  %v1559_v9 = vadd.f32 %v1558_v5, %v1269_v3 }
 0x166   :  { %v1560_v10 = vpop.f32.mrb[13].mxu1  ;;  %v1272_v11 = vpop.f32.mrb[14].mxu0  ;;  %v2754_v14 = vpack.c.bf16 %v3177_v8, %v3175_v4 }
 0x167   :  { %v1561_v15 = vpop.f32.mrb[14].mxu1  ;;  %v1274_v16 = vpop.f32.mrb[15].mxu0  ;;  %v1997_v19 = vadd.f32 %v3493_v17, %v1559_v9 }
 0x168   :  { %v1562_v20 = vadd.f32 %v1561_v15, %v1272_v11  ;;  %v1563_v21 = vpop.f32.mrb[15].mxu1  ;;  %2906 = vst [vmem:[#allocation9 + $0x8] sm:$0xff] %v2754_v14  }
 0x169   :  { %1484 = vmatmul.mubr.bf16.gmra.mrb[120].mxu0 %v3162_v7  ;;  %1773 = vmatmul.mubr.bf16.gmra.mrb[120].mxu1 %v3163_v12  ;;  %3182 = vtanh.f32 %v1997_v19 }
 0x16a   :  { %v1998_v22 = vadd.f32 %v3493_v17, %v1562_v20  ;;  %1491 = vmatprep.mubr.bf16.mxu0 %v3164_v13  ;;  %1780 = vmatprep.mubr.bf16.mxu1 %v3166_v18 }
 0x16b   :  { %v3179_v24 = vpop.eup %3178 }
 0x16c   :  { %3184 = vtanh.f32 %v1998_v22  ;;  %v1277_v23 = vpop.f32.mrb[16].mxu0  ;;  %v1566_v25 = vpop.f32.mrb[16].mxu1 }
 0x16d   :  { %v1279_v26 = vpop.f32.mrb[17].mxu0  ;;  %v1567_v29 = vadd.f32 %v1566_v25, %v1277_v23  ;;  %v1568_v30 = vpop.f32.mrb[17].mxu1 }
 0x16e   :  { %v3181_v28 = vpop.eup %3180  ;;  %v1280_v31 = vpop.f32.mrb[18].mxu0 }
 0x16f   :  { %v2759_v33 = vpack.c.bf16 %v3181_v28, %v3179_v24  ;;  %v1569_v34 = vpop.f32.mrb[18].mxu1  ;;  %v1282_v35 = vpop.f32.mrb[19].mxu0  ;;  %v1999_v36 = vadd.f32 %v3493_v17, %v1567_v29 }
 0x170   :  { %v1570_v37 = vadd.f32 %v1569_v34, %v1280_v31  ;;  %v1571_v38 = vpop.f32.mrb[19].mxu1 }
 0x171   :  { %2907 = vst [vmem:[#allocation9 + $0x10] sm:$0xff] %v2759_v33   ;;  %1492 = vmatmul.mubr.bf16.gmra.mrb[124].mxu0 %v3168_v27  ;;  %1781 = vmatmul.mubr.bf16.gmra.mrb[124].mxu1 %v3169_v32  ;;  %3186 = vtanh.f32 %v1999_v36 }
 0x172   :  { %v2000_v39 = vadd.f32 %v3493_v17, %v1570_v37 }
 0x173   :  { %v3183_v41 = vpop.eup %3182 }
 0x174   :  { %3188 = vtanh.f32 %v2000_v39  ;;  %v1285_v40 = vpop.f32.mrb[20].mxu0  ;;  %v1574_v42 = vpop.f32.mrb[20].mxu1 }
 0x175   :  { %v1287_v43 = vpop.f32.mrb[21].mxu0  ;;  %v1575_v45 = vadd.f32 %v1574_v42, %v1285_v40  ;;  %v1576_v46 = vpop.f32.mrb[21].mxu1 }
 0x176   :  { %v3185_v44 = vpop.eup %3184  ;;  %v1288_v47 = vpop.f32.mrb[22].mxu0 }
 0x177   :  { %v2764_v48 = vpack.c.bf16 %v3185_v44, %v3183_v41  ;;  %v1577_v49 = vpop.f32.mrb[22].mxu1  ;;  %v1290_v50 = vpop.f32.mrb[23].mxu0  ;;  %v2001_v51 = vadd.f32 %v3493_v17, %v1575_v45 }
 0x178   :  { %v1578_v52 = vadd.f32 %v1577_v49, %v1288_v47  ;;  %v1579_v53 = vpop.f32.mrb[23].mxu1 }
 0x179   :  { %2908 = vst [vmem:[#allocation9 + $0x18] sm:$0xff] %v2764_v48   ;;  %3190 = vtanh.f32 %v2001_v51 }
 0x17a   :  { %v2002_v54 = vadd.f32 %v3493_v17, %v1578_v52 }
 0x17b   :  { %v3187_v56 = vpop.eup %3186 }
 0x17c   :  { %3192 = vtanh.f32 %v2002_v54  ;;  %v1293_v55 = vpop.f32.mrb[24].mxu0  ;;  %v1582_v57 = vpop.f32.mrb[24].mxu1 }
 0x17d   :  { %v1295_v58 = vpop.f32.mrb[25].mxu0  ;;  %v1583_v60 = vadd.f32 %v1582_v57, %v1293_v55  ;;  %v1584_v61 = vpop.f32.mrb[25].mxu1 }
 0x17e   :  { %v3189_v59 = vpop.eup %3188  ;;  %v1296_v62 = vpop.f32.mrb[26].mxu0 }
 0x17f   :  { %v2769_v63 = vpack.c.bf16 %v3189_v59, %v3187_v56  ;;  %v1585_v0 = vpop.f32.mrb[26].mxu1  ;;  %v1298_v1 = vpop.f32.mrb[27].mxu0  ;;  %v2003_v2 = vadd.f32 %v3493_v17, %v1583_v60 }
 0x180   :  { %v1586_v3 = vadd.f32 %v1585_v0, %v1296_v62  ;;  %v1587_v4 = vpop.f32.mrb[27].mxu1 }
 0x181   :  { %2909 = vst [vmem:[#allocation9 + $0x20] sm:$0xff] %v2769_v63   ;;  %3194 = vtanh.f32 %v2003_v2 }
 0x182   :  { %v2004_v5 = vadd.f32 %v3493_v17, %v1586_v3 }
 0x183   :  { %v3191_v7 = vpop.eup %3190 }
 0x184   :  { %3196 = vtanh.f32 %v2004_v5  ;;  %v1301_v6 = vpop.f32.mrb[28].mxu0  ;;  %v1590_v8 = vpop.f32.mrb[28].mxu1 }
 0x185   :  { %v1303_v9 = vpop.f32.mrb[29].mxu0  ;;  %v1591_v11 = vadd.f32 %v1590_v8, %v1301_v6  ;;  %v1592_v12 = vpop.f32.mrb[29].mxu1 }
 0x186   :  { %v3193_v10 = vpop.eup %3192  ;;  %v1304_v13 = vpop.f32.mrb[30].mxu0 }
 0x187   :  { %v2774_v14 = vpack.c.bf16 %v3193_v10, %v3191_v7  ;;  %v1593_v15 = vpop.f32.mrb[30].mxu1  ;;  %v1306_v16 = vpop.f32.mrb[31].mxu0  ;;  %v2005_v18 = vadd.f32 %v3493_v17, %v1591_v11 }
 0x188   :  { %v1594_v19 = vadd.f32 %v1593_v15, %v1304_v13  ;;  %v1595_v20 = vpop.f32.mrb[31].mxu1 }
 0x189   :  { %2910 = vst [vmem:[#allocation9 + $0x28] sm:$0xff] %v2774_v14   ;;  %3198 = vtanh.f32 %v2005_v18 }
 0x18a   :  { %v2006_v21 = vadd.f32 %v3493_v17, %v1594_v19 }
 0x18b   :  { %v3195_v23 = vpop.eup %3194 }
 0x18c   :  { %3200 = vtanh.f32 %v2006_v21  ;;  %v1309_v22 = vpop.f32.mrb[32].mxu0  ;;  %v1598_v24 = vpop.f32.mrb[32].mxu1 }
 0x18d   :  { %v1311_v25 = vpop.f32.mrb[33].mxu0  ;;  %v1599_v27 = vadd.f32 %v1598_v24, %v1309_v22  ;;  %v1600_v28 = vpop.f32.mrb[33].mxu1 }
 0x18e   :  { %v3197_v26 = vpop.eup %3196  ;;  %v1312_v29 = vpop.f32.mrb[34].mxu0 }
 0x18f   :  { %v2779_v30 = vpack.c.bf16 %v3197_v26, %v3195_v23  ;;  %v1601_v31 = vpop.f32.mrb[34].mxu1  ;;  %v1314_v32 = vpop.f32.mrb[35].mxu0  ;;  %v2007_v33 = vadd.f32 %v3493_v17, %v1599_v27 }
 0x190   :  { %v1602_v34 = vadd.f32 %v1601_v31, %v1312_v29  ;;  %v1603_v35 = vpop.f32.mrb[35].mxu1 }
 0x191   :  { %2911 = vst [vmem:[#allocation9 + $0x30] sm:$0xff] %v2779_v30   ;;  %3202 = vtanh.f32 %v2007_v33 }
 0x192   :  { %v2008_v36 = vadd.f32 %v3493_v17, %v1602_v34 }
 0x193   :  { %v3199_v38 = vpop.eup %3198 }
 0x194   :  { %3204 = vtanh.f32 %v2008_v36  ;;  %v1317_v37 = vpop.f32.mrb[36].mxu0  ;;  %v1606_v39 = vpop.f32.mrb[36].mxu1 }
 0x195   :  { %v1319_v40 = vpop.f32.mrb[37].mxu0  ;;  %v1607_v42 = vadd.f32 %v1606_v39, %v1317_v37  ;;  %v1608_v43 = vpop.f32.mrb[37].mxu1 }
 0x196   :  { %v3201_v41 = vpop.eup %3200  ;;  %v1320_v44 = vpop.f32.mrb[38].mxu0 }
 0x197   :  { %v2784_v45 = vpack.c.bf16 %v3201_v41, %v3199_v38  ;;  %v1609_v46 = vpop.f32.mrb[38].mxu1  ;;  %v1322_v47 = vpop.f32.mrb[39].mxu0  ;;  %v2009_v48 = vadd.f32 %v3493_v17, %v1607_v42 }
 0x198   :  { %v1610_v49 = vadd.f32 %v1609_v46, %v1320_v44  ;;  %v1611_v50 = vpop.f32.mrb[39].mxu1 }
 0x199   :  { %2912 = vst [vmem:[#allocation9 + $0x38] sm:$0xff] %v2784_v45   ;;  %3206 = vtanh.f32 %v2009_v48 }
 0x19a   :  { %v2010_v51 = vadd.f32 %v3493_v17, %v1610_v49 }
 0x19b   :  { %v3203_v53 = vpop.eup %3202 }
 0x19c   :  { %3208 = vtanh.f32 %v2010_v51  ;;  %v1325_v52 = vpop.f32.mrb[40].mxu0  ;;  %v1614_v54 = vpop.f32.mrb[40].mxu1 }
 0x19d   :  { %v1327_v55 = vpop.f32.mrb[41].mxu0  ;;  %v1615_v57 = vadd.f32 %v1614_v54, %v1325_v52  ;;  %v1616_v58 = vpop.f32.mrb[41].mxu1 }
 0x19e   :  { %v3205_v56 = vpop.eup %3204  ;;  %v1328_v59 = vpop.f32.mrb[42].mxu0 }
 0x19f   :  { %v2789_v60 = vpack.c.bf16 %v3205_v56, %v3203_v53  ;;  %v1617_v61 = vpop.f32.mrb[42].mxu1  ;;  %v1330_v62 = vpop.f32.mrb[43].mxu0  ;;  %v2011_v63 = vadd.f32 %v3493_v17, %v1615_v57 }
 0x1a0   :  { %v1618_v0 = vadd.f32 %v1617_v61, %v1328_v59  ;;  %v1619_v1 = vpop.f32.mrb[43].mxu1 }
 0x1a1   :  { %2913 = vst [vmem:[#allocation9 + $0x40] sm:$0xff] %v2789_v60   ;;  %3210 = vtanh.f32 %v2011_v63 }
 0x1a2   :  { %v2012_v2 = vadd.f32 %v3493_v17, %v1618_v0 }
 0x1a3   :  { %v3207_v4 = vpop.eup %3206 }
 0x1a4   :  { %3212 = vtanh.f32 %v2012_v2  ;;  %v1333_v3 = vpop.f32.mrb[44].mxu0  ;;  %v1622_v5 = vpop.f32.mrb[44].mxu1 }
 0x1a5   :  { %v1335_v6 = vpop.f32.mrb[45].mxu0  ;;  %v1623_v8 = vadd.f32 %v1622_v5, %v1333_v3  ;;  %v1624_v9 = vpop.f32.mrb[45].mxu1 }
 0x1a6   :  { %v3209_v7 = vpop.eup %3208  ;;  %v1336_v10 = vpop.f32.mrb[46].mxu0 }
 0x1a7   :  { %v2794_v11 = vpack.c.bf16 %v3209_v7, %v3207_v4  ;;  %v1625_v12 = vpop.f32.mrb[46].mxu1  ;;  %v1338_v13 = vpop.f32.mrb[47].mxu0  ;;  %v2013_v14 = vadd.f32 %v3493_v17, %v1623_v8 }
 0x1a8   :  { %v1626_v15 = vadd.f32 %v1625_v12, %v1336_v10  ;;  %v1627_v16 = vpop.f32.mrb[47].mxu1 }
 0x1a9   :  { %2914 = vst [vmem:[#allocation9 + $0x48] sm:$0xff] %v2794_v11   ;;  %3214 = vtanh.f32 %v2013_v14 }
 0x1aa   :  { %v2014_v18 = vadd.f32 %v3493_v17, %v1626_v15 }
 0x1ab   :  { %v3211_v20 = vpop.eup %3210 }
 0x1ac   :  { %3216 = vtanh.f32 %v2014_v18  ;;  %v1341_v19 = vpop.f32.mrb[48].mxu0  ;;  %v1630_v21 = vpop.f32.mrb[48].mxu1 }
 0x1ad   :  { %v1343_v22 = vpop.f32.mrb[49].mxu0  ;;  %v1631_v24 = vadd.f32 %v1630_v21, %v1341_v19  ;;  %v1632_v25 = vpop.f32.mrb[49].mxu1 }
 0x1ae   :  { %v3213_v23 = vpop.eup %3212  ;;  %v1344_v26 = vpop.f32.mrb[50].mxu0 }
 0x1af   :  { %v2799_v27 = vpack.c.bf16 %v3213_v23, %v3211_v20  ;;  %v1633_v28 = vpop.f32.mrb[50].mxu1  ;;  %v1346_v29 = vpop.f32.mrb[51].mxu0  ;;  %v2015_v30 = vadd.f32 %v3493_v17, %v1631_v24 }
 0x1b0   :  { %v1634_v31 = vadd.f32 %v1633_v28, %v1344_v26  ;;  %v1635_v32 = vpop.f32.mrb[51].mxu1 }
 0x1b1   :  { %2915 = vst [vmem:[#allocation9 + $0x50] sm:$0xff] %v2799_v27   ;;  %3218 = vtanh.f32 %v2015_v30 }
 0x1b2   :  { %v2016_v33 = vadd.f32 %v3493_v17, %v1634_v31 }
 0x1b3   :  { %v3215_v35 = vpop.eup %3214 }
 0x1b4   :  { %3220 = vtanh.f32 %v2016_v33  ;;  %v1349_v34 = vpop.f32.mrb[52].mxu0  ;;  %v1638_v36 = vpop.f32.mrb[52].mxu1 }
 0x1b5   :  { %v1351_v37 = vpop.f32.mrb[53].mxu0  ;;  %v1639_v39 = vadd.f32 %v1638_v36, %v1349_v34  ;;  %v1640_v40 = vpop.f32.mrb[53].mxu1 }
 0x1b6   :  { %v3217_v38 = vpop.eup %3216  ;;  %v1352_v41 = vpop.f32.mrb[54].mxu0 }
 0x1b7   :  { %v2804_v42 = vpack.c.bf16 %v3217_v38, %v3215_v35  ;;  %v1641_v43 = vpop.f32.mrb[54].mxu1  ;;  %v1354_v44 = vpop.f32.mrb[55].mxu0  ;;  %v2017_v45 = vadd.f32 %v3493_v17, %v1639_v39 }
 0x1b8   :  { %v1642_v46 = vadd.f32 %v1641_v43, %v1352_v41  ;;  %v1643_v47 = vpop.f32.mrb[55].mxu1 }
 0x1b9   :  { %2916 = vst [vmem:[#allocation9 + $0x58] sm:$0xff] %v2804_v42   ;;  %3222 = vtanh.f32 %v2017_v45 }
 0x1ba   :  { %v2018_v48 = vadd.f32 %v3493_v17, %v1642_v46 }
 0x1bb   :  { %v3219_v50 = vpop.eup %3218 }
 0x1bc   :  { %3224 = vtanh.f32 %v2018_v48  ;;  %v1357_v49 = vpop.f32.mrb[56].mxu0  ;;  %v1646_v51 = vpop.f32.mrb[56].mxu1 }
 0x1bd   :  { %v1359_v52 = vpop.f32.mrb[57].mxu0  ;;  %v1647_v54 = vadd.f32 %v1646_v51, %v1357_v49  ;;  %v1648_v55 = vpop.f32.mrb[57].mxu1 }
 0x1be   :  { %v3221_v53 = vpop.eup %3220  ;;  %v1360_v56 = vpop.f32.mrb[58].mxu0 }
 0x1bf   :  { %v2809_v57 = vpack.c.bf16 %v3221_v53, %v3219_v50  ;;  %v1649_v58 = vpop.f32.mrb[58].mxu1  ;;  %v1362_v59 = vpop.f32.mrb[59].mxu0  ;;  %v2019_v60 = vadd.f32 %v3493_v17, %v1647_v54 }
 0x1c0   :  { %v1650_v61 = vadd.f32 %v1649_v58, %v1360_v56  ;;  %v1651_v62 = vpop.f32.mrb[59].mxu1 }
 0x1c1   :  { %2917 = vst [vmem:[#allocation9 + $0x60] sm:$0xff] %v2809_v57   ;;  %3226 = vtanh.f32 %v2019_v60 }
 0x1c2   :  { %v2020_v63 = vadd.f32 %v3493_v17, %v1650_v61 }
 0x1c3   :  { %v3223_v1 = vpop.eup %3222 }
 0x1c4   :  { %3228 = vtanh.f32 %v2020_v63  ;;  %v1365_v0 = vpop.f32.mrb[60].mxu0  ;;  %v1654_v2 = vpop.f32.mrb[60].mxu1 }
 0x1c5   :  { %v1367_v3 = vpop.f32.mrb[61].mxu0  ;;  %v1655_v5 = vadd.f32 %v1654_v2, %v1365_v0  ;;  %v1656_v6 = vpop.f32.mrb[61].mxu1 }
 0x1c6   :  { %v3225_v4 = vpop.eup %3224  ;;  %v1368_v7 = vpop.f32.mrb[62].mxu0 }
 0x1c7   :  { %v2814_v8 = vpack.c.bf16 %v3225_v4, %v3223_v1  ;;  %v1657_v9 = vpop.f32.mrb[62].mxu1  ;;  %v1370_v10 = vpop.f32.mrb[63].mxu0  ;;  %v2021_v11 = vadd.f32 %v3493_v17, %v1655_v5 }
 0x1c8   :  { %v1658_v12 = vadd.f32 %v1657_v9, %v1368_v7  ;;  %v1659_v13 = vpop.f32.mrb[63].mxu1 }
 0x1c9   :  { %2918 = vst [vmem:[#allocation9 + $0x68] sm:$0xff] %v2814_v8   ;;  %3230 = vtanh.f32 %v2021_v11 }
 0x1ca   :  { %v2022_v14 = vadd.f32 %v3493_v17, %v1658_v12 }
 0x1cb   :  { %v3227_v16 = vpop.eup %3226 }
 0x1cc   :  { %3232 = vtanh.f32 %v2022_v14  ;;  %v1373_v15 = vpop.f32.mrb[64].mxu0  ;;  %v1662_v18 = vpop.f32.mrb[64].mxu1 }
 0x1cd   :  { %v1375_v19 = vpop.f32.mrb[65].mxu0  ;;  %v1663_v21 = vadd.f32 %v1662_v18, %v1373_v15  ;;  %v1664_v22 = vpop.f32.mrb[65].mxu1 }
 0x1ce   :  { %v3229_v20 = vpop.eup %3228  ;;  %v1376_v23 = vpop.f32.mrb[66].mxu0 }
 0x1cf   :  { %v2819_v24 = vpack.c.bf16 %v3229_v20, %v3227_v16  ;;  %v1665_v25 = vpop.f32.mrb[66].mxu1  ;;  %v1378_v26 = vpop.f32.mrb[67].mxu0  ;;  %v2023_v27 = vadd.f32 %v3493_v17, %v1663_v21 }
 0x1d0   :  { %v1666_v28 = vadd.f32 %v1665_v25, %v1376_v23  ;;  %v1667_v29 = vpop.f32.mrb[67].mxu1 }
 0x1d1   :  { %2919 = vst [vmem:[#allocation9 + $0x70] sm:$0xff] %v2819_v24   ;;  %3234 = vtanh.f32 %v2023_v27 }
 0x1d2   :  { %v2024_v30 = vadd.f32 %v3493_v17, %v1666_v28 }
 0x1d3   :  { %v3231_v32 = vpop.eup %3230 }
 0x1d4   :  { %3236 = vtanh.f32 %v2024_v30  ;;  %v1381_v31 = vpop.f32.mrb[68].mxu0  ;;  %v1670_v33 = vpop.f32.mrb[68].mxu1 }
 0x1d5   :  { %v1383_v34 = vpop.f32.mrb[69].mxu0  ;;  %v1671_v36 = vadd.f32 %v1670_v33, %v1381_v31  ;;  %v1672_v37 = vpop.f32.mrb[69].mxu1 }
 0x1d6   :  { %v3233_v35 = vpop.eup %3232  ;;  %v1384_v38 = vpop.f32.mrb[70].mxu0 }
 0x1d7   :  { %v2824_v39 = vpack.c.bf16 %v3233_v35, %v3231_v32  ;;  %v1673_v40 = vpop.f32.mrb[70].mxu1  ;;  %v1386_v41 = vpop.f32.mrb[71].mxu0  ;;  %v2025_v42 = vadd.f32 %v3493_v17, %v1671_v36 }
 0x1d8   :  { %v1674_v43 = vadd.f32 %v1673_v40, %v1384_v38  ;;  %v1675_v44 = vpop.f32.mrb[71].mxu1 }
 0x1d9   :  { %2920 = vst [vmem:[#allocation9 + $0x78] sm:$0xff] %v2824_v39   ;;  %3238 = vtanh.f32 %v2025_v42 }
 0x1da   :  { %v2026_v45 = vadd.f32 %v3493_v17, %v1674_v43 }
 0x1db   :  { %v3235_v47 = vpop.eup %3234 }
 0x1dc   :  { %3240 = vtanh.f32 %v2026_v45  ;;  %v1389_v46 = vpop.f32.mrb[72].mxu0  ;;  %v1678_v48 = vpop.f32.mrb[72].mxu1 }
 0x1dd   :  { %v1391_v49 = vpop.f32.mrb[73].mxu0  ;;  %v1679_v51 = vadd.f32 %v1678_v48, %v1389_v46  ;;  %v1680_v52 = vpop.f32.mrb[73].mxu1 }
 0x1de   :  { %v3237_v50 = vpop.eup %3236  ;;  %v1392_v53 = vpop.f32.mrb[74].mxu0 }
 0x1df   :  { %v2829_v54 = vpack.c.bf16 %v3237_v50, %v3235_v47  ;;  %v1681_v55 = vpop.f32.mrb[74].mxu1  ;;  %v1394_v56 = vpop.f32.mrb[75].mxu0  ;;  %v2027_v57 = vadd.f32 %v3493_v17, %v1679_v51 }
 0x1e0   :  { %v1682_v58 = vadd.f32 %v1681_v55, %v1392_v53  ;;  %v1683_v59 = vpop.f32.mrb[75].mxu1 }
 0x1e1   :  { %2921 = vst [vmem:[#allocation9 + $0x80] sm:$0xff] %v2829_v54   ;;  %3242 = vtanh.f32 %v2027_v57 }
 0x1e2   :  { %v2028_v60 = vadd.f32 %v3493_v17, %v1682_v58 }
 0x1e3   :  { %v3239_v62 = vpop.eup %3238 }
 0x1e4   :  { %3244 = vtanh.f32 %v2028_v60  ;;  %v1397_v61 = vpop.f32.mrb[76].mxu0  ;;  %v1686_v63 = vpop.f32.mrb[76].mxu1 }
 0x1e5   :  { %v1399_v0 = vpop.f32.mrb[77].mxu0  ;;  %v1687_v2 = vadd.f32 %v1686_v63, %v1397_v61  ;;  %v1688_v3 = vpop.f32.mrb[77].mxu1 }
 0x1e6   :  { %v3241_v1 = vpop.eup %3240  ;;  %v1400_v4 = vpop.f32.mrb[78].mxu0 }
 0x1e7   :  { %v2834_v5 = vpack.c.bf16 %v3241_v1, %v3239_v62  ;;  %v1689_v6 = vpop.f32.mrb[78].mxu1  ;;  %v1402_v7 = vpop.f32.mrb[79].mxu0  ;;  %v2029_v8 = vadd.f32 %v3493_v17, %v1687_v2 }
 0x1e8   :  { %v1690_v9 = vadd.f32 %v1689_v6, %v1400_v4  ;;  %v1691_v10 = vpop.f32.mrb[79].mxu1 }
 0x1e9   :  { %2922 = vst [vmem:[#allocation9 + $0x88] sm:$0xff] %v2834_v5   ;;  %3246 = vtanh.f32 %v2029_v8 }
 0x1ea   :  { %v2030_v11 = vadd.f32 %v3493_v17, %v1690_v9 }
 0x1eb   :  { %v3243_v13 = vpop.eup %3242 }
 0x1ec   :  { %3248 = vtanh.f32 %v2030_v11  ;;  %v1405_v12 = vpop.f32.mrb[80].mxu0  ;;  %v1694_v14 = vpop.f32.mrb[80].mxu1 }
 0x1ed   :  { %v1407_v15 = vpop.f32.mrb[81].mxu0  ;;  %v1695_v18 = vadd.f32 %v1694_v14, %v1405_v12  ;;  %v1696_v19 = vpop.f32.mrb[81].mxu1 }
 0x1ee   :  { %v3245_v16 = vpop.eup %3244  ;;  %v1408_v20 = vpop.f32.mrb[82].mxu0 }
 0x1ef   :  { %v2839_v21 = vpack.c.bf16 %v3245_v16, %v3243_v13  ;;  %v1697_v22 = vpop.f32.mrb[82].mxu1  ;;  %v1410_v23 = vpop.f32.mrb[83].mxu0  ;;  %v2031_v24 = vadd.f32 %v3493_v17, %v1695_v18 }
 0x1f0   :  { %v1698_v25 = vadd.f32 %v1697_v22, %v1408_v20  ;;  %v1699_v26 = vpop.f32.mrb[83].mxu1 }
 0x1f1   :  { %2923 = vst [vmem:[#allocation9 + $0x90] sm:$0xff] %v2839_v21   ;;  %3250 = vtanh.f32 %v2031_v24 }
 0x1f2   :  { %v2032_v27 = vadd.f32 %v3493_v17, %v1698_v25 }
 0x1f3   :  { %v3247_v29 = vpop.eup %3246 }
 0x1f4   :  { %3252 = vtanh.f32 %v2032_v27  ;;  %v1413_v28 = vpop.f32.mrb[84].mxu0  ;;  %v1702_v30 = vpop.f32.mrb[84].mxu1 }
 0x1f5   :  { %v1415_v31 = vpop.f32.mrb[85].mxu0  ;;  %v1703_v33 = vadd.f32 %v1702_v30, %v1413_v28  ;;  %v1704_v34 = vpop.f32.mrb[85].mxu1 }
 0x1f6   :  { %v3249_v32 = vpop.eup %3248  ;;  %v1416_v35 = vpop.f32.mrb[86].mxu0 }
 0x1f7   :  { %v2844_v36 = vpack.c.bf16 %v3249_v32, %v3247_v29  ;;  %v1705_v37 = vpop.f32.mrb[86].mxu1  ;;  %v1418_v38 = vpop.f32.mrb[87].mxu0  ;;  %v2033_v39 = vadd.f32 %v3493_v17, %v1703_v33 }
 0x1f8   :  { %v1706_v40 = vadd.f32 %v1705_v37, %v1416_v35  ;;  %v1707_v41 = vpop.f32.mrb[87].mxu1 }
 0x1f9   :  { %2924 = vst [vmem:[#allocation9 + $0x98] sm:$0xff] %v2844_v36   ;;  %3254 = vtanh.f32 %v2033_v39 }
 0x1fa   :  { %v2034_v42 = vadd.f32 %v3493_v17, %v1706_v40 }
 0x1fb   :  { %v3251_v44 = vpop.eup %3250 }
 0x1fc   :  { %3256 = vtanh.f32 %v2034_v42  ;;  %v1421_v43 = vpop.f32.mrb[88].mxu0  ;;  %v1710_v45 = vpop.f32.mrb[88].mxu1 }
 0x1fd   :  { %v1423_v46 = vpop.f32.mrb[89].mxu0  ;;  %v1711_v48 = vadd.f32 %v1710_v45, %v1421_v43  ;;  %v1712_v49 = vpop.f32.mrb[89].mxu1 }
 0x1fe   :  { %v3253_v47 = vpop.eup %3252  ;;  %v1424_v50 = vpop.f32.mrb[90].mxu0 }
 0x1ff   :  { %v2849_v51 = vpack.c.bf16 %v3253_v47, %v3251_v44  ;;  %v1713_v52 = vpop.f32.mrb[90].mxu1  ;;  %v1426_v53 = vpop.f32.mrb[91].mxu0  ;;  %v2035_v54 = vadd.f32 %v3493_v17, %v1711_v48 }
 0x200   :  { %v1714_v55 = vadd.f32 %v1713_v52, %v1424_v50  ;;  %v1715_v56 = vpop.f32.mrb[91].mxu1 }
 0x201   :  { %2925 = vst [vmem:[#allocation9 + $0xa0] sm:$0xff] %v2849_v51   ;;  %3258 = vtanh.f32 %v2035_v54 }
 0x202   :  { %v2036_v57 = vadd.f32 %v3493_v17, %v1714_v55 }
 0x203   :  { %v3255_v59 = vpop.eup %3254 }
 0x204   :  { %3260 = vtanh.f32 %v2036_v57  ;;  %v1429_v58 = vpop.f32.mrb[92].mxu0  ;;  %v1718_v60 = vpop.f32.mrb[92].mxu1 }
 0x205   :  { %v1431_v61 = vpop.f32.mrb[93].mxu0  ;;  %v1719_v63 = vadd.f32 %v1718_v60, %v1429_v58  ;;  %v1720_v0 = vpop.f32.mrb[93].mxu1 }
 0x206   :  { %v3257_v62 = vpop.eup %3256  ;;  %v1432_v1 = vpop.f32.mrb[94].mxu0 }
 0x207   :  { %v2854_v2 = vpack.c.bf16 %v3257_v62, %v3255_v59  ;;  %v1721_v3 = vpop.f32.mrb[94].mxu1  ;;  %v1434_v4 = vpop.f32.mrb[95].mxu0  ;;  %v2037_v5 = vadd.f32 %v3493_v17, %v1719_v63 }
 0x208   :  { %v1722_v6 = vadd.f32 %v1721_v3, %v1432_v1  ;;  %v1723_v7 = vpop.f32.mrb[95].mxu1 }
 0x209   :  { %2926 = vst [vmem:[#allocation9 + $0xa8] sm:$0xff] %v2854_v2   ;;  %3262 = vtanh.f32 %v2037_v5  ;;  %v3549_v2 = vld [vmem:[#allocation8] ss:$0 sm:$0xff] }
 0x20a   :  { %v2038_v8 = vadd.f32 %v3493_v17, %v1722_v6 }
 0x20b   :  { %v3259_v10 = vpop.eup %3258 }
 0x20c   :  { %3264 = vtanh.f32 %v2038_v8  ;;  %v1437_v9 = vpop.f32.mrb[96].mxu0  ;;  %v1726_v11 = vpop.f32.mrb[96].mxu1 }
 0x20d   :  { %v1439_v12 = vpop.f32.mrb[97].mxu0  ;;  %v1727_v14 = vadd.f32 %v1726_v11, %v1437_v9  ;;  %v1728_v15 = vpop.f32.mrb[97].mxu1 }
 0x20e   :  { %v3261_v13 = vpop.eup %3260  ;;  %v1440_v16 = vpop.f32.mrb[98].mxu0 }
 0x20f   :  { %v2859_v18 = vpack.c.bf16 %v3261_v13, %v3259_v10  ;;  %v1729_v19 = vpop.f32.mrb[98].mxu1  ;;  %v1442_v20 = vpop.f32.mrb[99].mxu0  ;;  %v2039_v21 = vadd.f32 %v3493_v17, %v1727_v14 }
 0x210   :  { %v1730_v22 = vadd.f32 %v1729_v19, %v1440_v16  ;;  %v1731_v23 = vpop.f32.mrb[99].mxu1 }
 0x211   :  { %2927 = vst [vmem:[#allocation9 + $0xb0] sm:$0xff] %v2859_v18   ;;  %3266 = vtanh.f32 %v2039_v21 }
 0x212   :  { %v2040_v24 = vadd.f32 %v3493_v17, %v1730_v22 }
 0x213   :  { %v3263_v26 = vpop.eup %3262 }
 0x214   :  { %3268 = vtanh.f32 %v2040_v24  ;;  %v1445_v25 = vpop.f32.mrb[100].mxu0  ;;  %v1734_v27 = vpop.f32.mrb[100].mxu1 }
 0x215   :  { %v1447_v28 = vpop.f32.mrb[101].mxu0  ;;  %v1735_v30 = vadd.f32 %v1734_v27, %v1445_v25  ;;  %v1736_v31 = vpop.f32.mrb[101].mxu1 }
 0x216   :  { %v3265_v29 = vpop.eup %3264  ;;  %v1448_v32 = vpop.f32.mrb[102].mxu0 }
 0x217   :  { %v2864_v33 = vpack.c.bf16 %v3265_v29, %v3263_v26  ;;  %v1737_v34 = vpop.f32.mrb[102].mxu1  ;;  %v1450_v35 = vpop.f32.mrb[103].mxu0  ;;  %v2041_v36 = vadd.f32 %v3493_v17, %v1735_v30 }
 0x218   :  { %v1738_v37 = vadd.f32 %v1737_v34, %v1448_v32  ;;  %v1739_v38 = vpop.f32.mrb[103].mxu1 }
 0x219   :  { %2928 = vst [vmem:[#allocation9 + $0xb8] sm:$0xff] %v2864_v33   ;;  %3270 = vtanh.f32 %v2041_v36 }
 0x21a   :  { %v2042_v39 = vadd.f32 %v3493_v17, %v1738_v37 }
 0x21b   :  { %v3267_v41 = vpop.eup %3266 }
 0x21c   :  { %3272 = vtanh.f32 %v2042_v39  ;;  %v1453_v40 = vpop.f32.mrb[104].mxu0  ;;  %v1742_v42 = vpop.f32.mrb[104].mxu1 }
 0x21d   :  { %v1455_v43 = vpop.f32.mrb[105].mxu0  ;;  %v1743_v45 = vadd.f32 %v1742_v42, %v1453_v40  ;;  %v1744_v46 = vpop.f32.mrb[105].mxu1 }
 0x21e   :  { %v3269_v44 = vpop.eup %3268  ;;  %v1456_v47 = vpop.f32.mrb[106].mxu0 }
 0x21f   :  { %v2869_v48 = vpack.c.bf16 %v3269_v44, %v3267_v41  ;;  %v1745_v49 = vpop.f32.mrb[106].mxu1  ;;  %v1458_v50 = vpop.f32.mrb[107].mxu0  ;;  %v2043_v51 = vadd.f32 %v3493_v17, %v1743_v45 }
 0x220   :  { %v1746_v52 = vadd.f32 %v1745_v49, %v1456_v47  ;;  %v1747_v53 = vpop.f32.mrb[107].mxu1 }
 0x221   :  { %2929 = vst [vmem:[#allocation9 + $0xc0] sm:$0xff] %v2869_v48   ;;  %3274 = vtanh.f32 %v2043_v51 }
 0x222   :  { %v2044_v54 = vadd.f32 %v3493_v17, %v1746_v52 }
 0x223   :  { %v3271_v56 = vpop.eup %3270 }
 0x224   :  { %3276 = vtanh.f32 %v2044_v54  ;;  %v1461_v55 = vpop.f32.mrb[108].mxu0  ;;  %v1750_v57 = vpop.f32.mrb[108].mxu1 }
 0x225   :  { %v1463_v58 = vpop.f32.mrb[109].mxu0  ;;  %v1751_v60 = vadd.f32 %v1750_v57, %v1461_v55  ;;  %v1752_v61 = vpop.f32.mrb[109].mxu1 }
 0x226   :  { %v3273_v59 = vpop.eup %3272  ;;  %v1464_v62 = vpop.f32.mrb[110].mxu0 }
 0x227   :  { %v2874_v63 = vpack.c.bf16 %v3273_v59, %v3271_v56  ;;  %v1753_v0 = vpop.f32.mrb[110].mxu1  ;;  %v1466_v1 = vpop.f32.mrb[111].mxu0  ;;  %v2045_v3 = vadd.f32 %v3549_v2, %v1751_v60 }
 0x228   :  { %v1754_v4 = vadd.f32 %v1753_v0, %v1464_v62  ;;  %v1755_v5 = vpop.f32.mrb[111].mxu1 }
 0x229   :  { %2930 = vst [vmem:[#allocation9 + $0xc8] sm:$0xff] %v2874_v63   ;;  %3278 = vtanh.f32 %v2045_v3 }
 0x22a   :  { %v2046_v17 = vadd.f32 %v3549_v2, %v1754_v4 }
 0x22b   :  { %v3275_v7 = vpop.eup %3274 }
 0x22c   :  { %3280 = vtanh.f32 %v2046_v17  ;;  %v1469_v6 = vpop.f32.mrb[112].mxu0  ;;  %v1758_v8 = vpop.f32.mrb[112].mxu1 }
 0x22d   :  { %v1471_v9 = vpop.f32.mrb[113].mxu0  ;;  %v1759_v11 = vadd.f32 %v1758_v8, %v1469_v6  ;;  %v1760_v12 = vpop.f32.mrb[113].mxu1 }
 0x22e   :  { %v3277_v10 = vpop.eup %3276  ;;  %v1472_v13 = vpop.f32.mrb[114].mxu0 }
 0x22f   :  { %v2879_v14 = vpack.c.bf16 %v3277_v10, %v3275_v7  ;;  %v1761_v15 = vpop.f32.mrb[114].mxu1  ;;  %v1474_v16 = vpop.f32.mrb[115].mxu0  ;;  %v2047_v18 = vadd.f32 %v3549_v2, %v1759_v11 }
 0x230   :  { %v1762_v19 = vadd.f32 %v1761_v15, %v1472_v13  ;;  %v1763_v20 = vpop.f32.mrb[115].mxu1 }
 0x231   :  { %2931 = vst [vmem:[#allocation9 + $0xd0] sm:$0xff] %v2879_v14   ;;  %3282 = vtanh.f32 %v2047_v18 }
 0x232   :  { %v2048_v21 = vadd.f32 %v3549_v2, %v1762_v19 }
 0x233   :  { %v3279_v23 = vpop.eup %3278 }
 0x234   :  { %3284 = vtanh.f32 %v2048_v21  ;;  %v1477_v22 = vpop.f32.mrb[116].mxu0  ;;  %v1766_v24 = vpop.f32.mrb[116].mxu1 }
 0x235   :  { %v1479_v25 = vpop.f32.mrb[117].mxu0  ;;  %v1767_v27 = vadd.f32 %v1766_v24, %v1477_v22  ;;  %v1768_v28 = vpop.f32.mrb[117].mxu1 }
 0x236   :  { %v3281_v26 = vpop.eup %3280  ;;  %v1480_v29 = vpop.f32.mrb[118].mxu0 }
 0x237   :  { %v2884_v30 = vpack.c.bf16 %v3281_v26, %v3279_v23  ;;  %v1769_v31 = vpop.f32.mrb[118].mxu1  ;;  %v1482_v32 = vpop.f32.mrb[119].mxu0  ;;  %v2049_v33 = vadd.f32 %v3549_v2, %v1767_v27 }
 0x238   :  { %v1770_v34 = vadd.f32 %v1769_v31, %v1480_v29  ;;  %v1771_v35 = vpop.f32.mrb[119].mxu1 }
 0x239   :  { %2932 = vst [vmem:[#allocation9 + $0xd8] sm:$0xff] %v2884_v30   ;;  %3286 = vtanh.f32 %v2049_v33 }
 0x23a   :  { %v2050_v36 = vadd.f32 %v3549_v2, %v1770_v34 }
 0x23b   :  { %v3283_v38 = vpop.eup %3282 }
 0x23c   :  { %3288 = vtanh.f32 %v2050_v36  ;;  %v1485_v37 = vpop.f32.mrb[120].mxu0  ;;  %v1774_v39 = vpop.f32.mrb[120].mxu1 }
 0x23d   :  { %v1487_v40 = vpop.f32.mrb[121].mxu0  ;;  %v1775_v42 = vadd.f32 %v1774_v39, %v1485_v37  ;;  %v1776_v43 = vpop.f32.mrb[121].mxu1 }
 0x23e   :  { %v3285_v41 = vpop.eup %3284  ;;  %v1488_v44 = vpop.f32.mrb[122].mxu0 }
 0x23f   :  { %v2889_v45 = vpack.c.bf16 %v3285_v41, %v3283_v38  ;;  %v1777_v46 = vpop.f32.mrb[122].mxu1  ;;  %v1490_v47 = vpop.f32.mrb[123].mxu0  ;;  %v2051_v48 = vadd.f32 %v3549_v2, %v1775_v42 }
 0x240   :  { %v1778_v49 = vadd.f32 %v1777_v46, %v1488_v44  ;;  %v1779_v50 = vpop.f32.mrb[123].mxu1 }
 0x241   :  { %2933 = vst [vmem:[#allocation9 + $0xe0] sm:$0xff] %v2889_v45   ;;  %3290 = vtanh.f32 %v2051_v48 }
 0x242   :  { %v2052_v51 = vadd.f32 %v3549_v2, %v1778_v49 }
 0x243   :  { %v3287_v53 = vpop.eup %3286 }
 0x244   :  { %3292 = vtanh.f32 %v2052_v51  ;;  %v1493_v52 = vpop.f32.mrb[124].mxu0  ;;  %v1782_v54 = vpop.f32.mrb[124].mxu1 }
 0x245   :  { %v1495_v55 = vpop.f32.mrb[125].mxu0  ;;  %v1783_v57 = vadd.f32 %v1782_v54, %v1493_v52  ;;  %v1784_v58 = vpop.f32.mrb[125].mxu1 }
 0x246   :  { %v3289_v56 = vpop.eup %3288  ;;  %v1496_v59 = vpop.f32.mrb[126].mxu0 }
 0x247   :  { %v2894_v60 = vpack.c.bf16 %v3289_v56, %v3287_v53  ;;  %v1785_v61 = vpop.f32.mrb[126].mxu1  ;;  %v1498_v62 = vpop.f32.mrb[127].mxu0  ;;  %v2053_v63 = vadd.f32 %v3549_v2, %v1783_v57 }
 0x248   :  { %v1786_v0 = vadd.f32 %v1785_v61, %v1496_v59  ;;  %v1787_v1 = vpop.f32.mrb[127].mxu1 }
 0x249   :  { %2934 = vst [vmem:[#allocation9 + $0xe8] sm:$0xff] %v2894_v60   ;;  %3294 = vtanh.f32 %v2053_v63 }
 0x24a   :  { %v2054_v3 = vadd.f32 %v3549_v2, %v1786_v0 }
 0x24b   :  { %v3291_v4 = vpop.eup %3290 }
 0x24c   :  { %3296 = vtanh.f32 %v2054_v3 }
 0x24e   :  { %v3293_v5 = vpop.eup %3292 }
 0x24f   :  { %v2899_v17 = vpack.c.bf16 %v3293_v5, %v3291_v4 }
 0x251   :  { %2935 = vst [vmem:[#allocation9 + $0xf0] sm:$0xff] %v2899_v17  }
 0x253   :  { %v3295_v6 = vpop.eup %3294 }
 0x256   :  { %v3297_v7 = vpop.eup %3296 }
 0x257   :  { %v2904_v8 = vpack.c.bf16 %v3297_v7, %v3295_v6 }
 0x259   :  { %2936 = vst [vmem:[#allocation9 + $0xf8] sm:$0xff] %v2904_v8  }
 0x25a   :  { %3376 = shalt.err (!%p3373_p0)
}
 0x25b   :  { %s3377_s30 = scalar_lea.hbm %s3579_s3, 4096 }
 0x25c   :  { %p3378_p1 = scmp.ne.s32.totalorder %s3579_s3, %s3377_s30  ;;  %p3381_p2 = scmp.lt.u32.totalorder %s3377_s30, %s3579_s3 }
 0x25e   :  { %p3383_p3 = pnand %p3381_p2, %p3378_p1 }
 0x260   :  { %3386 = shalt.err (!%p3383_p3)
}
 0x261   :  { %2450 = dma.vmem_to_hbm [thread:$0]  %s2445_s26, 4096, %s3579_s3, [#allocation5], %s3394_s22, %s3394_s22, %s3395_s23  }
 0x262   :  { %3391 = dma.done.wait [#allocation5], 4096  }
 0x263   :  { %3392 = vsyncadd [#allocation5], 4294963200 }
 0x264   :  { %2454 = vsyncpa [#allocation4], 1 }
 0x265   :  { %2455 = vsyncpa [#allocation7], 1 }
 0x266   :  { %2456 = vsyncpa [#allocation5], 1 }

</bundles_post_ra>
